<compile_context>
chip_gen: v7x
topology: tpu7x:2x2x1
jax: 0.10.0
libtpu: 0.0.40
codegen_flags: <defaults>
</compile_context>

<pallas_src>
import functools

import jax
import jax.numpy as jnp
from jax import lax
from jax.experimental import pallas as pl
from jax.experimental.pallas import tpu as pltpu

HP = 128   # padded per-direction hidden width (lanes)
OP = 128   # padded FC output width (lanes)


# ------------------------------ Pallas kernels --------------------------------


def _matmul_bias_kernel(x_ref, w_ref, b_ref, o_ref):
    # x: (tm, K) (bf16 or f32) -> bf16; w: (K, N) bf16; f32 accumulation on the MXU.
    x = x_ref[...].astype(jnp.bfloat16)
    o_ref[...] = (jnp.dot(x, w_ref[...], preferred_element_type=jnp.float32)
                  + b_ref[...])


def matmul_bias(x, w, b, *, tm_target=512):
    """(M, K) @ (K, N) bf16 + (1, N) f32 -> (M, N) f32, tiled over M ("parallel").

    M is padded up to the tile size (never falls back to tiny 8-row tiles)."""
    M, K = x.shape
    N = w.shape[1]
    tm = min(tm_target, -(-M // 8) * 8)
    Mp = -(-M // tm) * tm
    if Mp != M:
        x = jnp.zeros((Mp, K), x.dtype).at[:M].set(x)
    out = pl.pallas_call(
        _matmul_bias_kernel,
        out_shape=jax.ShapeDtypeStruct((Mp, N), jnp.float32),
        grid=(Mp // tm,),
        in_specs=[pl.BlockSpec((tm, K), lambda i: (i, 0)),
                  pl.BlockSpec((K, N), lambda i: (0, 0)),
                  pl.BlockSpec((1, N), lambda i: (0, 0))],
        out_specs=pl.BlockSpec((tm, N), lambda i: (i, 0)),
        compiler_params=pltpu.CompilerParams(
            dimension_semantics=("parallel",)),
    )(x, w, b)
    return out[:M]


def _bigru_layer_kernel(x_ref, wih_ref, bih_ref, whh_ref, bhn_ref, mask_ref,
                        out_ref, h_scr, gx_scr, out_scr, *, tc, bp, hp):
    """One (direction, time-chunk) grid step of a bidirectional GRU layer.

    grid = (2, n_chunks); axis 0 = direction (0 fwd, 1 bwd; "parallel"), axis 1 = time
    chunk ("arbitrary"; walked front-to-back for fwd and back-to-front for bwd via the
    index_maps).  Rows of the 2-D activations are ordered row = t*Bp + b.

    x_ref:    (tc*bp, din)   bf16  layer input chunk
    wih_ref:  (1, din, 3*hp) bf16  input weights for this direction, gates [r|z|n]
    bih_ref:  (1, 1, 3*hp)   f32   b_ih with b_hr/b_hz folded in
    whh_ref:  (1, hp, 3*hp)  bf16  recurrent weights
    bhn_ref:  (1, 1, hp)     f32   b_hn (must stay inside r * (...))
    mask_ref: (tc*bp, 1)     f32   1.0 where t < length[b] else 0.0
    out_ref:  (tc*bp, hp)    bf16  this direction's lane slice of the layer output
    h_scr:    (bp, hp)       f32   hidden state carried across time chunks
    gx_scr:   (tc*bp, 3*hp)  f32   fused input projection (VMEM only, never HBM)
    out_scr:  (tc*bp, hp)    f32   per-chunk output staging (one unmasked bf16 store)
    """
    d = pl.program_id(0)

    @pl.when(pl.program_id(1) == 0)
    def _init():
        h_scr[...] = jnp.zeros_like(h_scr)

    # Fused input projection: ONE MXU matmul covering all tc timesteps of this chunk.
    gx_scr[...] = (jnp.dot(x_ref[...], wih_ref[0],
                           preferred_element_type=jnp.float32) + bih_ref[0])

    # Loop-invariant Ref reads hoisted off the serial recurrence path.
    whh = whh_ref[0]                      # (hp, 3*hp) bf16
    bhn = bhn_ref[0]                      # (1, hp)    f32

    def step_at(t):
        row = pl.multiple_of(t * bp, 8)
        gx = gx_scr[pl.ds(row, bp), :]                    # (bp, 3*hp)
        m = mask_ref[pl.ds(row, bp), :]                   # (bp, 1)
        h_prev = h_scr[...]
        gh = jnp.dot(h_prev.astype(jnp.bfloat16), whh,
                     preferred_element_type=jnp.float32)  # (bp, 3*hp)
        r = jax.nn.sigmoid(gx[:, 0:hp] + gh[:, 0:hp])
        z = jax.nn.sigmoid(gx[:, hp:2 * hp] + gh[:, hp:2 * hp])
        n = jnp.tanh(gx[:, 2 * hp:3 * hp] + r * (gh[:, 2 * hp:3 * hp] + bhn))
        h_new = n + z * (h_prev - n)                      # == (1-z)*n + z*h_prev
        # packed-sequence semantics: t >= length[b] never updates h; its output is 0.
        h_scr[...] = h_prev + m * (h_new - h_prev)
        out_scr[pl.ds(row, bp), :] = m * h_new

    unroll = True if tc <= 16 else 4

    # Direction-specialized loops: static time stride, no per-step select on `d`.
    @pl.when(d == 0)
    def _fwd():
        def body(i, carry):
            step_at(i)
            return carry
        lax.fori_loop(0, tc, body, 0, unroll=unroll)

    @pl.when(d != 0)
    def _bwd():
        def body(i, carry):
            step_at(tc - 1 - i)
            return carry
        lax.fori_loop(0, tc, body, 0, unroll=unroll)

    # Single full-block, unmasked bf16 store for the whole chunk.
    out_ref[...] = out_scr[...].astype(out_ref.dtype)


def bigru_layer(x2d, wih, bih, whh, bhn, mask2d, *, T, Bp, tc):
    """x2d: (T*Bp, din) bf16 (row = t*Bp + b); returns (T*Bp, 2*hp) bf16."""
    din = x2d.shape[1]
    hp = whh.shape[1]
    nc = T // tc

    def t_blk(d, c):
        # fwd (d=0) walks time chunks 0..nc-1, bwd (d=1) walks nc-1..0
        return c + d * (nc - 1 - 2 * c)

    kern = functools.partial(_bigru_layer_kernel, tc=tc, bp=Bp, hp=hp)
    return pl.pallas_call(
        kern,
        out_shape=jax.ShapeDtypeStruct((T * Bp, 2 * hp), jnp.bfloat16),
        grid=(2, nc),
        in_specs=[
            pl.BlockSpec((tc * Bp, din), lambda d, c: (t_blk(d, c), 0)),
            pl.BlockSpec((1, din, 3 * hp), lambda d, c: (d, 0, 0)),
            pl.BlockSpec((1, 1, 3 * hp), lambda d, c: (d, 0, 0)),
            pl.BlockSpec((1, hp, 3 * hp), lambda d, c: (d, 0, 0)),
            pl.BlockSpec((1, 1, hp), lambda d, c: (d, 0, 0)),
            pl.BlockSpec((tc * Bp, 1), lambda d, c: (t_blk(d, c), 0)),
        ],
        out_specs=pl.BlockSpec((tc * Bp, hp), lambda d, c: (t_blk(d, c), d)),
        scratch_shapes=[pltpu.VMEM((Bp, hp), jnp.float32),
                        pltpu.VMEM((tc * Bp, 3 * hp), jnp.float32),
                        pltpu.VMEM((tc * Bp, hp), jnp.float32)],
        compiler_params=pltpu.CompilerParams(
            dimension_semantics=("parallel", "arbitrary"),
            vmem_limit_bytes=32 * 1024 * 1024),
    )(x2d, wih, bih, whh, bhn, mask2d)


def _pick_time_chunk(Bp, din, hp, budget_bytes=20 << 20, tc_cap=64):
    """VMEM-budgeted time-chunk: double-buffered x/out blocks + gx/out f32 scratch + mask."""
    per_t = Bp * (4 * din + 20 * hp + 8)
    tc = max(8, min(tc_cap, budget_bytes // max(per_t, 1)))
    p = 8
    while p * 2 <= tc:
        p *= 2
    return p


# -------------------------------- Parameters -----------------------------------


def _uniform(key, shape, k):
    return jax.random.uniform(key, shape, jnp.float32, -k, k)


def init_params(key, vocab_size, embedding_dim, hidden_dim, output_dim, n_layers, pad_idx):
    """Raw (unpadded) params, torch-like layout: w_ih (din, 3H), w_hh (H, 3H), gates [r|z|n]."""
    keys = jax.random.split(key, 1 + 8 * n_layers + 2)
    emb = jax.random.normal(keys[0], (vocab_size, embedding_dim), jnp.float32)
    emb = emb.at[pad_idx].set(0.0)                 # padding_idx row is zero

    k_gru = 1.0 / float(hidden_dim) ** 0.5
    layers = []
    ki = 1
    for l in range(n_layers):
        din = embedding_dim if l == 0 else 2 * hidden_dim
        dirs = {}
        for d in ("fwd", "bwd"):
            w_ih = _uniform(keys[ki + 0], (din, 3 * hidden_dim), k_gru)
            w_hh = _uniform(keys[ki + 1], (hidden_dim, 3 * hidden_dim), k_gru)
            b_ih = _uniform(keys[ki + 2], (3 * hidden_dim,), k_gru)
            b_hh = _uniform(keys[ki + 3], (3 * hidden_dim,), k_gru)
            dirs[d] = (w_ih, w_hh, b_ih, b_hh)
            ki += 4
        layers.append(dirs)

    k_fc = 1.0 / float(2 * hidden_dim) ** 0.5
    fc_w = _uniform(keys[ki], (2 * hidden_dim, output_dim), k_fc)
    fc_b = _uniform(keys[ki + 1], (output_dim,), k_fc)
    return {"embedding": emb, "layers": layers, "fc_w": fc_w, "fc_b": fc_b}


def pack_params(raw, hidden_dim, output_dim, hp=HP, op=OP):
    """Pad/pack raw params into the lane-dense TPU layout.

    Per layer: wih (2, din_p, 3*hp) bf16, bih (2, 1, 3*hp) f32 (b_hr/b_hz folded in),
    whh (2, hp, 3*hp) bf16, bhn (2, 1, hp) f32 (b_hn only).  Gate g sits at lane offset
    g*hp with real width H.  For layers > 0 the input features sit fwd at rows [0:H)
    and bwd at rows [hp:hp+H), matching the padded layer output.
    """
    H = hidden_dim
    packed_layers = []
    for l, dirs in enumerate(raw["layers"]):
        din_real = dirs["fwd"][0].shape[0]
        din_p = din_real if l == 0 else 2 * hp
        wih = jnp.zeros((2, din_p, 3 * hp), jnp.float32)
        bih = jnp.zeros((2, 1, 3 * hp), jnp.float32)
        whh = jnp.zeros((2, hp, 3 * hp), jnp.float32)
        bhn = jnp.zeros((2, 1, hp), jnp.float32)
        for di, d in enumerate(("fwd", "bwd")):
            w_ih, w_hh, b_ih, b_hh = dirs[d]
            for g in range(3):
                col = g * hp
                blk = w_ih[:, g * H:(g + 1) * H]          # (din_real, H)
                if l == 0:
                    wih = wih.at[di, :din_real, col:col + H].set(blk)
                else:
                    wih = wih.at[di, 0:H, col:col + H].set(blk[0:H])
                    wih = wih.at[di, hp:hp + H, col:col + H].set(blk[H:2 * H])
                bias = b_ih[g * H:(g + 1) * H]
                if g < 2:                                  # fold b_hr / b_hz
                    bias = bias + b_hh[g * H:(g + 1) * H]
                bih = bih.at[di, 0, col:col + H].set(bias)
                whh = whh.at[di, 0:H, g * hp:g * hp + H].set(w_hh[:, g * H:(g + 1) * H])
            bhn = bhn.at[di, 0, 0:H].set(b_hh[2 * H:3 * H])
        packed_layers.append({"wih": wih.astype(jnp.bfloat16), "bih": bih,
                              "whh": whh.astype(jnp.bfloat16), "bhn": bhn})

    fc_w = jnp.zeros((2 * hp, op), jnp.float32)
    fc_w = fc_w.at[0:H, 0:output_dim].set(raw["fc_w"][0:H])
    fc_w = fc_w.at[hp:hp + H, 0:output_dim].set(raw["fc_w"][H:2 * H])
    fc_b = jnp.zeros((1, op), jnp.float32).at[0, 0:output_dim].set(raw["fc_b"])
    return {"embedding": raw["embedding"].astype(jnp.bfloat16),
            "layers": packed_layers,
            "fc_w": fc_w.astype(jnp.bfloat16), "fc_b": fc_b}


# ---------------------------------- Forward ------------------------------------


@functools.partial(jax.jit, static_argnames=("out_dim",))
def _forward_full(packed, text, text_lengths, *, out_dim):
    """Jittable forward over the full (padded) sequence.  Returns (B, T, out_dim)."""
    B, T = text.shape
    Bp = max(8, -(-B // 8) * 8)                      # pad batch to >= 8 sublanes
    hp = packed["layers"][0]["whh"].shape[1]
    E = packed["embedding"].shape[1]

    # VMEM-budgeted time chunk; pad T up to a multiple of it (masked steps are no-ops).
    tc = _pick_time_chunk(Bp, max(E, 2 * hp), hp)
    tc = min(tc, max(8, -(-T // 8) * 8))
    Tp = -(-T // tc) * tc

    text_p = jnp.zeros((Bp, Tp), jnp.int32).at[:B, :T].set(text)
    len_p = jnp.zeros((Bp,), jnp.int32).at[:B].set(text_lengths.astype(jnp.int32))
    # mask[t*Bp + b] = 1.0 iff t < length[b]; padded rows/timesteps are all zero.
    mask = (jnp.arange(Tp)[:, None] < len_p[None, :]).astype(jnp.float32)
    mask = mask.reshape(Tp * Bp, 1)

    # Embedding gather, directly time-major and bf16; rows ordered (t, b).
    x = jnp.take(packed["embedding"], text_p.T, axis=0).reshape(Tp * Bp, E)
    # TODO(synk): nn.Dropout / inter-layer GRU dropout are identity in eval mode;
    # training-mode dropout is not implemented.

    h = x
    for layer in packed["layers"]:
        h = bigru_layer(h, layer["wih"], layer["bih"], layer["whh"], layer["bhn"],
                        mask, T=Tp, Bp=Bp, tc=tc)            # (Tp*Bp, 2*hp) bf16

    logits = matmul_bias(h, packed["fc_w"], packed["fc_b"])   # (Tp*Bp, OP) f32
    logits = logits.reshape(Tp, Bp, -1)
    return jnp.transpose(logits, (1, 0, 2))[:B, :T, :out_dim]  # (B, T, out_dim)


def text_classifier_forward(packed, text, text_lengths, out_dim):
    logits = _forward_full(packed, text, text_lengths, out_dim=out_dim)
    # pad_packed_sequence truncates to max(text_lengths); done OUTSIDE the jitted graph,
    # so there is no mid-graph host sync.
    t_out = int(jax.device_get(jnp.max(text_lengths)))
    return logits[:, :t_out]


# ----------------------- pure-JAX reference (correctness check) -----------------


def _bf(a):
    return a.astype(jnp.bfloat16).astype(jnp.float32)


def _ref_gru_direction(x, lengths, w_ih, w_hh, b_ih, b_hh, reverse):
    T, B, _ = x.shape
    H = w_hh.shape[0]
    gx_all = jnp.einsum("tbd,dg->tbg", _bf(x), _bf(w_ih)) + b_ih[None, None, :]

    def step(h, t):
        gx = gx_all[t]
        gh = jnp.dot(_bf(h), _bf(w_hh)) + b_hh[None, :]
        r = jax.nn.sigmoid(gx[:, 0:H] + gh[:, 0:H])
        z = jax.nn.sigmoid(gx[:, H:2 * H] + gh[:, H:2 * H])
        n = jnp.tanh(gx[:, 2 * H:3 * H] + r * gh[:, 2 * H:3 * H])
        h_new = n + z * (h - n)
        m = (t < lengths)[:, None].astype(jnp.float32)
        return h + m * (h_new - h), m * h_new

    ts = jnp.arange(T - 1, -1, -1) if reverse else jnp.arange(T)
    _, outs = lax.scan(step, jnp.zeros((B, H), jnp.float32), ts)
    return outs[::-1] if reverse else outs                      # (T, B, H), time order


def _ref_forward(raw, text, text_lengths):
    lengths = text_lengths.astype(jnp.int32)
    h = jnp.take(raw["embedding"], text.T, axis=0)              # (T, B, E)
    for dirs in raw["layers"]:
        fwd = _ref_gru_direction(h, lengths, *dirs["fwd"], reverse=False)
        bwd = _ref_gru_direction(h, lengths, *dirs["bwd"], reverse=True)
        h = jnp.concatenate([fwd, bwd], axis=-1)
    logits = (jnp.einsum("tbd,do->tbo", _bf(h), _bf(raw["fc_w"]))
              + raw["fc_b"][None, None, :])
    return jnp.transpose(logits, (1, 0, 2))                     # (B, T, O)


# ------------------------------------ Main --------------------------------------


if __name__ == "__main__":
    vocab_size = 50
    embedding_dim = 32
    hidden_dim = 32
    output_dim = 4
    n_layers = 2
    pad_idx = 0
    batch, seq = 2, 8

    key = jax.random.PRNGKey(0)
    k_par, k_tok = jax.random.split(key)
    raw = init_params(k_par, vocab_size, embedding_dim, hidden_dim, output_dim,
                      n_layers, pad_idx)
    packed = pack_params(raw, hidden_dim, output_dim)

    text_lengths = jnp.array([8, 5], dtype=jnp.int32)           # max length == seq
    text = jax.random.randint(k_tok, (batch, seq), 1, vocab_size, dtype=jnp.int32)
    pos = jnp.arange(seq)[None, :]
    text = jnp.where(pos < text_lengths[:, None], text, pad_idx)

    logits = text_classifier_forward(packed, text, text_lengths, output_dim)
    jax.block_until_ready(logits)

    t_out = int(text_lengths.max())
    assert logits.shape == (batch, t_out, output_dim), logits.shape

    # numerical check against a pure-JAX reference (same bf16 rounding as the kernels)
    ref = _ref_forward(raw, text, text_lengths)[:, :t_out]
    err = float(jnp.max(jnp.abs(logits - ref)))
    assert err < 2e-2, f"mismatch vs pure-JAX reference: max abs err = {err}"

    print("KERNEL_OK")
</pallas_src>

<mosaic_0001>
module attributes {stable_mosaic.version = 11 : i64} {
  func.func @_matmul_bias_kernel(%arg0: i32, %arg1: memref<64x256xbf16, #tpu.memory_space<vmem>>, %arg2: memref<256x128xbf16, #tpu.memory_space<vmem>>, %arg3: memref<1x128xf32, #tpu.memory_space<vmem>>, %arg4: memref<64x128xf32, #tpu.memory_space<vmem>>) attributes {dimension_semantics = [#tpu.dimension_semantics<parallel>], iteration_bounds = array<i64: 1>, scalar_prefetch = 0 : i64, scratch_operands = 0 : i64, tpu.core_type = #tpu.core_type<tc>, window_params = [{transform_indices = @transform_0, window_bounds = array<i64: 64, 256>}, {pipeline_mode = #tpu.pipeline_mode<synchronous>, transform_indices = @transform_1, window_bounds = array<i64: 256, 128>}, {pipeline_mode = #tpu.pipeline_mode<synchronous>, transform_indices = @transform_2, window_bounds = array<i64: 1, 128>}, {transform_indices = @transform_3, window_bounds = array<i64: 64, 128>}]} {
    %c0 = arith.constant 0 : index
    %c0_0 = arith.constant 0 : index
    %0 = vector.load %arg1[%c0, %c0_0] : memref<64x256xbf16, #tpu.memory_space<vmem>>, vector<64x256xbf16>
    %c0_1 = arith.constant 0 : index
    %c0_2 = arith.constant 0 : index
    %1 = vector.load %arg2[%c0_1, %c0_2] : memref<256x128xbf16, #tpu.memory_space<vmem>>, vector<256x128xbf16>
    %cst = arith.constant dense<0.000000e+00> : vector<64x128xf32>
    %2 = tpu.matmul %0, %1, %cst {dimension_numbers = #tpu.dot_dimension_numbers<[1], [0], [0], [1], [0, 0, 1, 1], [], []>} : vector<64x256xbf16>, vector<256x128xbf16>, vector<64x128xf32> -> vector<64x128xf32>
    %c0_3 = arith.constant 0 : index
    %c0_4 = arith.constant 0 : index
    %3 = vector.load %arg3[%c0_3, %c0_4] : memref<1x128xf32, #tpu.memory_space<vmem>>, vector<1x128xf32>
    %4 = vector.broadcast %3 : vector<1x128xf32> to vector<64x128xf32>
    %5 = arith.addf %2, %4 : vector<64x128xf32>
    %c0_5 = arith.constant 0 : index
    %c0_6 = arith.constant 0 : index
    %6 = vector.load %arg4[%c0_5, %c0_6] : memref<64x128xf32, #tpu.memory_space<vmem>>, vector<64x128xf32>
    tpu.vector_store %arg4[%c0_5, %c0_6], %5 {strides = array<i32>} : memref<64x128xf32, #tpu.memory_space<vmem>>, vector<64x128xf32>,
    return
  }
  func.func @transform_0(%arg0: i32) -> (i32, i32) {
    %c0_i32 = arith.constant 0 : i32
    %c0_i32_0 = arith.constant 0 : i32
    return %arg0, %c0_i32 : i32, i32
  }
  func.func @transform_1(%arg0: i32) -> (i32, i32) {
    %c0_i32 = arith.constant 0 : i32
    %c0_i32_0 = arith.constant 0 : i32
    %c0_i32_1 = arith.constant 0 : i32
    return %c0_i32, %c0_i32_0 : i32, i32
  }
  func.func @transform_2(%arg0: i32) -> (i32, i32) {
    %c0_i32 = arith.constant 0 : i32
    %c0_i32_0 = arith.constant 0 : i32
    %c0_i32_1 = arith.constant 0 : i32
    return %c0_i32, %c0_i32_0 : i32, i32
  }
  func.func @transform_3(%arg0: i32) -> (i32, i32) {
    %c0_i32 = arith.constant 0 : i32
    %c0_i32_0 = arith.constant 0 : i32
    return %arg0, %c0_i32 : i32, i32
  }
}

module attributes {stable_mosaic.version = 11 : i64} {
  func.func @_bigru_layer_kernel(%arg0: i32, %arg1: i32, %arg2: memref<64x32xbf16, #tpu.memory_space<vmem>>, %arg3: memref<1x32x384xbf16, #tpu.memory_space<vmem>>, %arg4: memref<1x1x384xf32, #tpu.memory_space<vmem>>, %arg5: memref<1x128x384xbf16, #tpu.memory_space<vmem>>, %arg6: memref<1x1x128xf32, #tpu.memory_space<vmem>>, %arg7: memref<64x1xf32, #tpu.memory_space<vmem>>, %arg8: memref<64x128xbf16, #tpu.memory_space<vmem>>, %arg9: memref<8x128xf32, #tpu.memory_space<vmem>>, %arg10: memref<64x384xf32, #tpu.memory_space<vmem>>, %arg11: memref<64x128xf32, #tpu.memory_space<vmem>>) attributes {dimension_semantics = [#tpu.dimension_semantics<parallel>, #tpu.dimension_semantics<arbitrary>], iteration_bounds = array<i64: 2, 1>, scalar_prefetch = 0 : i64, scratch_operands = 3 : i64, tpu.core_type = #tpu.core_type<tc>, window_params = [{transform_indices = @transform_0, window_bounds = array<i64: 64, 32>}, {transform_indices = @transform_1, window_bounds = array<i64: 1, 32, 384>}, {transform_indices = @transform_2, window_bounds = array<i64: 1, 1, 384>}, {transform_indices = @transform_3, window_bounds = array<i64: 1, 128, 384>}, {transform_indices = @transform_4, window_bounds = array<i64: 1, 1, 128>}, {transform_indices = @transform_5, window_bounds = array<i64: 64, 1>}, {transform_indices = @transform_6, window_bounds = array<i64: 64, 128>}]} {
    %c0_i32 = arith.constant 0 : i32
    %0 = arith.cmpi eq, %arg1, %c0_i32 : i32
    %1 = arith.extui %0 : i1 to i32
    %c0_i32_0 = arith.constant 0 : i32
    %2 = arith.cmpi ne, %1, %c0_i32_0 : i32
    scf.if %2 {
      %cst_24 = arith.constant 0.000000e+00 : f32
      %25 = vector.broadcast %cst_24 : f32 to vector<8x128xf32>
      %c0_25 = arith.constant 0 : index
      %c0_26 = arith.constant 0 : index
      %26 = vector.load %arg9[%c0_25, %c0_26] : memref<8x128xf32, #tpu.memory_space<vmem>>, vector<8x128xf32>
      tpu.vector_store %arg9[%c0_25, %c0_26], %25 {strides = array<i32>} : memref<8x128xf32, #tpu.memory_space<vmem>>, vector<8x128xf32>,
    } else {
    }
    %c0 = arith.constant 0 : index
    %c0_1 = arith.constant 0 : index
    %3 = vector.load %arg2[%c0, %c0_1] : memref<64x32xbf16, #tpu.memory_space<vmem>>, vector<64x32xbf16>
    %c0_2 = arith.constant 0 : index
    %c0_3 = arith.constant 0 : index
    %c0_4 = arith.constant 0 : index
    %4 = vector.load %arg3[%c0_2, %c0_3, %c0_4] : memref<1x32x384xbf16, #tpu.memory_space<vmem>>, vector<1x32x384xbf16>
    %5 = vector.shape_cast %4 : vector<1x32x384xbf16> to vector<32x384xbf16>
    %cst = arith.constant dense<0.000000e+00> : vector<64x384xf32>
    %6 = tpu.matmul %3, %5, %cst {dimension_numbers = #tpu.dot_dimension_numbers<[1], [0], [0], [1], [0, 0, 1, 1], [], []>} : vector<64x32xbf16>, vector<32x384xbf16>, vector<64x384xf32> -> vector<64x384xf32>
    %c0_5 = arith.constant 0 : index
    %c0_6 = arith.constant 0 : index
    %c0_7 = arith.constant 0 : index
    %7 = vector.load %arg4[%c0_5, %c0_6, %c0_7] : memref<1x1x384xf32, #tpu.memory_space<vmem>>, vector<1x1x384xf32>
    %8 = vector.shape_cast %7 : vector<1x1x384xf32> to vector<1x384xf32>
    %9 = vector.broadcast %8 : vector<1x384xf32> to vector<64x384xf32>
    %10 = arith.addf %6, %9 : vector<64x384xf32>
    %c0_8 = arith.constant 0 : index
    %c0_9 = arith.constant 0 : index
    %11 = vector.load %arg10[%c0_8, %c0_9] : memref<64x384xf32, #tpu.memory_space<vmem>>, vector<64x384xf32>
    tpu.vector_store %arg10[%c0_8, %c0_9], %10 {strides = array<i32>} : memref<64x384xf32, #tpu.memory_space<vmem>>, vector<64x384xf32>,
    %c0_10 = arith.constant 0 : index
    %c0_11 = arith.constant 0 : index
    %c0_12 = arith.constant 0 : index
    %12 = vector.load %arg5[%c0_10, %c0_11, %c0_12] : memref<1x128x384xbf16, #tpu.memory_space<vmem>>, vector<1x128x384xbf16>
    %13 = vector.shape_cast %12 : vector<1x128x384xbf16> to vector<128x384xbf16>
    %c0_13 = arith.constant 0 : index
    %c0_14 = arith.constant 0 : index
    %c0_15 = arith.constant 0 : index
    %14 = vector.load %arg6[%c0_13, %c0_14, %c0_15] : memref<1x1x128xf32, #tpu.memory_space<vmem>>, vector<1x1x128xf32>
    %15 = vector.shape_cast %14 : vector<1x1x128xf32> to vector<1x128xf32>
    %c0_i32_16 = arith.constant 0 : i32
    %16 = arith.cmpi eq, %arg0, %c0_i32_16 : i32
    %17 = arith.extui %16 : i1 to i32
    %c0_i32_17 = arith.constant 0 : i32
    %18 = arith.cmpi ne, %17, %c0_i32_17 : i32
    scf.if %18 {
      %c0_i32_24 = arith.constant 0 : i32
      %c8_i32 = arith.constant 8 : i32
      %25 = arith.muli %c0_i32_24, %c8_i32 : i32
      %26 = tpu.assume_multiple %25, 8 : i32
      %27 = arith.index_cast %26 : i32 to index
      %c0_25 = arith.constant 0 : index
      %28 = vector.load %arg10[%27, %c0_25] : memref<64x384xf32, #tpu.memory_space<vmem>>, vector<8x384xf32>
      %29 = arith.index_cast %26 : i32 to index
      %c0_26 = arith.constant 0 : index
      %30 = vector.load %arg7[%29, %c0_26] : memref<64x1xf32, #tpu.memory_space<vmem>>, vector<8x1xf32>
      %c0_27 = arith.constant 0 : index
      %c0_28 = arith.constant 0 : index
      %31 = vector.load %arg9[%c0_27, %c0_28] : memref<8x128xf32, #tpu.memory_space<vmem>>, vector<8x128xf32>
      %32 = arith.truncf %31 : vector<8x128xf32> to vector<8x128xbf16>
      %cst_29 = arith.constant dense<0.000000e+00> : vector<8x384xf32>
      %33 = tpu.matmul %32, %13, %cst_29 {dimension_numbers = #tpu.dot_dimension_numbers<[1], [0], [0], [1], [0, 0, 1, 1], [], []>} : vector<8x128xbf16>, vector<128x384xbf16>, vector<8x384xf32> -> vector<8x384xf32>
      %34 = vector.extract_strided_slice %28 {offsets = [0, 0], sizes = [8, 128], strides = [1, 1]} : vector<8x384xf32> to vector<8x128xf32>
      %35 = vector.extract_strided_slice %33 {offsets = [0, 0], sizes = [8, 128], strides = [1, 1]} : vector<8x384xf32> to vector<8x128xf32>
      %36 = arith.addf %34, %35 : vector<8x128xf32>
      %37 = arith.negf %36 : vector<8x128xf32>
      %38 = math.exp %37 : vector<8x128xf32>
      %cst_30 = arith.constant 1.000000e+00 : f32
      %39 = vector.broadcast %cst_30 : f32 to vector<8x128xf32>
      %40 = arith.addf %39, %38 : vector<8x128xf32>
      %41 = arith.divf %39, %40 : vector<8x128xf32>
      %42 = vector.extract_strided_slice %28 {offsets = [0, 128], sizes = [8, 128], strides = [1, 1]} : vector<8x384xf32> to vector<8x128xf32>
      %43 = vector.extract_strided_slice %33 {offsets = [0, 128], sizes = [8, 128], strides = [1, 1]} : vector<8x384xf32> to vector<8x128xf32>
      %44 = arith.addf %42, %43 : vector<8x128xf32>
      %45 = arith.negf %44 : vector<8x128xf32>
      %46 = math.exp %45 : vector<8x128xf32>
      %cst_31 = arith.constant 1.000000e+00 : f32
      %47 = vector.broadcast %cst_31 : f32 to vector<8x128xf32>
      %48 = arith.addf %47, %46 : vector<8x128xf32>
      %49 = arith.divf %47, %48 : vector<8x128xf32>
      %50 = vector.extract_strided_slice %28 {offsets = [0, 256], sizes = [8, 128], strides = [1, 1]} : vector<8x384xf32> to vector<8x128xf32>
      %51 = vector.extract_strided_slice %33 {offsets = [0, 256], sizes = [8, 128], strides = [1, 1]} : vector<8x384xf32> to vector<8x128xf32>
      %52 = vector.broadcast %15 : vector<1x128xf32> to vector<8x128xf32>
      %53 = arith.addf %51, %52 : vector<8x128xf32>
      %54 = arith.mulf %41, %53 : vector<8x128xf32>
      %55 = arith.addf %50, %54 : vector<8x128xf32>
      %56 = math.tanh %55 : vector<8x128xf32>
      %57 = arith.subf %31, %56 : vector<8x128xf32>
      %58 = arith.mulf %49, %57 : vector<8x128xf32>
      %59 = arith.addf %56, %58 : vector<8x128xf32>
      %60 = arith.subf %59, %31 : vector<8x128xf32>
      %61 = vector.broadcast %30 : vector<8x1xf32> to vector<8x128xf32>
      %62 = arith.mulf %61, %60 : vector<8x128xf32>
      %63 = arith.addf %31, %62 : vector<8x128xf32>
      %c0_32 = arith.constant 0 : index
      %c0_33 = arith.constant 0 : index
      %64 = vector.load %arg9[%c0_32, %c0_33] : memref<8x128xf32, #tpu.memory_space<vmem>>, vector<8x128xf32>
      tpu.vector_store %arg9[%c0_32, %c0_33], %63 {strides = array<i32>} : memref<8x128xf32, #tpu.memory_space<vmem>>, vector<8x128xf32>,
      %65 = vector.broadcast %30 : vector<8x1xf32> to vector<8x128xf32>
      %66 = arith.mulf %65, %59 : vector<8x128xf32>
      %67 = arith.index_cast %26 : i32 to index
      %c0_34 = arith.constant 0 : index
      %68 = vector.load %arg11[%67, %c0_34] : memref<64x128xf32, #tpu.memory_space<vmem>>, vector<8x128xf32>
      tpu.vector_store %arg11[%67, %c0_34], %66 {strides = array<i32>} : memref<64x128xf32, #tpu.memory_space<vmem>>, vector<8x128xf32>,
      %c1_i32 = arith.constant 1 : i32
      %c8_i32_35 = arith.constant 8 : i32
      %69 = arith.muli %c1_i32, %c8_i32_35 : i32
      %70 = tpu.assume_multiple %69, 8 : i32
      %71 = arith.index_cast %70 : i32 to index
      %c0_36 = arith.constant 0 : index
      %72 = vector.load %arg10[%71, %c0_36] : memref<64x384xf32, #tpu.memory_space<vmem>>, vector<8x384xf32>
      %73 = arith.index_cast %70 : i32 to index
      %c0_37 = arith.constant 0 : index
      %74 = vector.load %arg7[%73, %c0_37] : memref<64x1xf32, #tpu.memory_space<vmem>>, vector<8x1xf32>
      %c0_38 = arith.constant 0 : index
      %c0_39 = arith.constant 0 : index
      %75 = vector.load %arg9[%c0_38, %c0_39] : memref<8x128xf32, #tpu.memory_space<vmem>>, vector<8x128xf32>
      %76 = arith.truncf %75 : vector<8x128xf32> to vector<8x128xbf16>
      %cst_40 = arith.constant dense<0.000000e+00> : vector<8x384xf32>
      %77 = tpu.matmul %76, %13, %cst_40 {dimension_numbers = #tpu.dot_dimension_numbers<[1], [0], [0], [1], [0, 0, 1, 1], [], []>} : vector<8x128xbf16>, vector<128x384xbf16>, vector<8x384xf32> -> vector<8x384xf32>
      %78 = vector.extract_strided_slice %72 {offsets = [0, 0], sizes = [8, 128], strides = [1, 1]} : vector<8x384xf32> to vector<8x128xf32>
      %79 = vector.extract_strided_slice %77 {offsets = [0, 0], sizes = [8, 128], strides = [1, 1]} : vector<8x384xf32> to vector<8x128xf32>
      %80 = arith.addf %78, %79 : vector<8x128xf32>
      %81 = arith.negf %80 : vector<8x128xf32>
      %82 = math.exp %81 : vector<8x128xf32>
      %cst_41 = arith.constant 1.000000e+00 : f32
      %83 = vector.broadcast %cst_41 : f32 to vector<8x128xf32>
      %84 = arith.addf %83, %82 : vector<8x128xf32>
      %85 = arith.divf %83, %84 : vector<8x128xf32>
      %86 = vector.extract_strided_slice %72 {offsets = [0, 128], sizes = [8, 128], strides = [1, 1]} : vector<8x384xf32> to vector<8x128xf32>
      %87 = vector.extract_strided_slice %77 {offsets = [0, 128], sizes = [8, 128], strides = [1, 1]} : vector<8x384xf32> to vector<8x128xf32>
      %88 = arith.addf %86, %87 : vector<8x128xf32>
      %89 = arith.negf %88 : vector<8x128xf32>
      %90 = math.exp %89 : vector<8x128xf32>
      %cst_42 = arith.constant 1.000000e+00 : f32
      %91 = vector.broadcast %cst_42 : f32 to vector<8x128xf32>
      %92 = arith.addf %91, %90 : vector<8x128xf32>
      %93 = arith.divf %91, %92 : vector<8x128xf32>
      %94 = vector.extract_strided_slice %72 {offsets = [0, 256], sizes = [8, 128], strides = [1, 1]} : vector<8x384xf32> to vector<8x128xf32>
      %95 = vector.extract_strided_slice %77 {offsets = [0, 256], sizes = [8, 128], strides = [1, 1]} : vector<8x384xf32> to vector<8x128xf32>
      %96 = vector.broadcast %15 : vector<1x128xf32> to vector<8x128xf32>
      %97 = arith.addf %95, %96 : vector<8x128xf32>
      %98 = arith.mulf %85, %97 : vector<8x128xf32>
      %99 = arith.addf %94, %98 : vector<8x128xf32>
      %100 = math.tanh %99 : vector<8x128xf32>
      %101 = arith.subf %75, %100 : vector<8x128xf32>
      %102 = arith.mulf %93, %101 : vector<8x128xf32>
      %103 = arith.addf %100, %102 : vector<8x128xf32>
      %104 = arith.subf %103, %75 : vector<8x128xf32>
      %105 = vector.broadcast %74 : vector<8x1xf32> to vector<8x128xf32>
      %106 = arith.mulf %105, %104 : vector<8x128xf32>
      %107 = arith.addf %75, %106 : vector<8x128xf32>
      %c0_43 = arith.constant 0 : index
      %c0_44 = arith.constant 0 : index
      %108 = vector.load %arg9[%c0_43, %c0_44] : memref<8x128xf32, #tpu.memory_space<vmem>>, vector<8x128xf32>
      tpu.vector_store %arg9[%c0_43, %c0_44], %107 {strides = array<i32>} : memref<8x128xf32, #tpu.memory_space<vmem>>, vector<8x128xf32>,
      %109 = vector.broadcast %74 : vector<8x1xf32> to vector<8x128xf32>
      %110 = arith.mulf %109, %103 : vector<8x128xf32>
      %111 = arith.index_cast %70 : i32 to index
      %c0_45 = arith.constant 0 : index
      %112 = vector.load %arg11[%111, %c0_45] : memref<64x128xf32, #tpu.memory_space<vmem>>, vector<8x128xf32>
      tpu.vector_store %arg11[%111, %c0_45], %110 {strides = array<i32>} : memref<64x128xf32, #tpu.memory_space<vmem>>, vector<8x128xf32>,
      %c2_i32 = arith.constant 2 : i32
      %c8_i32_46 = arith.constant 8 : i32
      %113 = arith.muli %c2_i32, %c8_i32_46 : i32
      %114 = tpu.assume_multiple %113, 8 : i32
      %115 = arith.index_cast %114 : i32 to index
      %c0_47 = arith.constant 0 : index
      %116 = vector.load %arg10[%115, %c0_47] : memref<64x384xf32, #tpu.memory_space<vmem>>, vector<8x384xf32>
      %117 = arith.index_cast %114 : i32 to index
      %c0_48 = arith.constant 0 : index
      %118 = vector.load %arg7[%117, %c0_48] : memref<64x1xf32, #tpu.memory_space<vmem>>, vector<8x1xf32>
      %c0_49 = arith.constant 0 : index
      %c0_50 = arith.constant 0 : index
      %119 = vector.load %arg9[%c0_49, %c0_50] : memref<8x128xf32, #tpu.memory_space<vmem>>, vector<8x128xf32>
      %120 = arith.truncf %119 : vector<8x128xf32> to vector<8x128xbf16>
      %cst_51 = arith.constant dense<0.000000e+00> : vector<8x384xf32>
      %121 = tpu.matmul %120, %13, %cst_51 {dimension_numbers = #tpu.dot_dimension_numbers<[1], [0], [0], [1], [0, 0, 1, 1], [], []>} : vector<8x128xbf16>, vector<128x384xbf16>, vector<8x384xf32> -> vector<8x384xf32>
      %122 = vector.extract_strided_slice %116 {offsets = [0, 0], sizes = [8, 128], strides = [1, 1]} : vector<8x384xf32> to vector<8x128xf32>
      %123 = vector.extract_strided_slice %121 {offsets = [0, 0], sizes = [8, 128], strides = [1, 1]} : vector<8x384xf32> to vector<8x128xf32>
      %124 = arith.addf %122, %123 : vector<8x128xf32>
      %125 = arith.negf %124 : vector<8x128xf32>
      %126 = math.exp %125 : vector<8x128xf32>
      %cst_52 = arith.constant 1.000000e+00 : f32
      %127 = vector.broadcast %cst_52 : f32 to vector<8x128xf32>
      %128 = arith.addf %127, %126 : vector<8x128xf32>
      %129 = arith.divf %127, %128 : vector<8x128xf32>
      %130 = vector.extract_strided_slice %116 {offsets = [0, 128], sizes = [8, 128], strides = [1, 1]} : vector<8x384xf32> to vector<8x128xf32>
      %131 = vector.extract_strided_slice %121 {offsets = [0, 128], sizes = [8, 128], strides = [1, 1]} : vector<8x384xf32> to vector<8x128xf32>
      %132 = arith.addf %130, %131 : vector<8x128xf32>
      %133 = arith.negf %132 : vector<8x128xf32>
      %134 = math.exp %133 : vector<8x128xf32>
      %cst_53 = arith.constant 1.000000e+00 : f32
      %135 = vector.broadcast %cst_53 : f32 to vector<8x128xf32>
      %136 = arith.addf %135, %134 : vector<8x128xf32>
      %137 = arith.divf %135, %136 : vector<8x128xf32>
      %138 = vector.extract_strided_slice %116 {offsets = [0, 256], sizes = [8, 128], strides = [1, 1]} : vector<8x384xf32> to vector<8x128xf32>
      %139 = vector.extract_strided_slice %121 {offsets = [0, 256], sizes = [8, 128], strides = [1, 1]} : vector<8x384xf32> to vector<8x128xf32>
      %140 = vector.broadcast %15 : vector<1x128xf32> to vector<8x128xf32>
      %141 = arith.addf %139, %140 : vector<8x128xf32>
      %142 = arith.mulf %129, %141 : vector<8x128xf32>
      %143 = arith.addf %138, %142 : vector<8x128xf32>
      %144 = math.tanh %143 : vector<8x128xf32>
      %145 = arith.subf %119, %144 : vector<8x128xf32>
      %146 = arith.mulf %137, %145 : vector<8x128xf32>
      %147 = arith.addf %144, %146 : vector<8x128xf32>
      %148 = arith.subf %147, %119 : vector<8x128xf32>
      %149 = vector.broadcast %118 : vector<8x1xf32> to vector<8x128xf32>
      %150 = arith.mulf %149, %148 : vector<8x128xf32>
      %151 = arith.addf %119, %150 : vector<8x128xf32>
      %c0_54 = arith.constant 0 : index
      %c0_55 = arith.constant 0 : index
      %152 = vector.load %arg9[%c0_54, %c0_55] : memref<8x128xf32, #tpu.memory_space<vmem>>, vector<8x128xf32>
      tpu.vector_store %arg9[%c0_54, %c0_55], %151 {strides = array<i32>} : memref<8x128xf32, #tpu.memory_space<vmem>>, vector<8x128xf32>,
      %153 = vector.broadcast %118 : vector<8x1xf32> to vector<8x128xf32>
      %154 = arith.mulf %153, %147 : vector<8x128xf32>
      %155 = arith.index_cast %114 : i32 to index
      %c0_56 = arith.constant 0 : index
      %156 = vector.load %arg11[%155, %c0_56] : memref<64x128xf32, #tpu.memory_space<vmem>>, vector<8x128xf32>
      tpu.vector_store %arg11[%155, %c0_56], %154 {strides = array<i32>} : memref<64x128xf32, #tpu.memory_space<vmem>>, vector<8x128xf32>,
      %c3_i32 = arith.constant 3 : i32
      %c8_i32_57 = arith.constant 8 : i32
      %157 = arith.muli %c3_i32, %c8_i32_57 : i32
      %158 = tpu.assume_multiple %157, 8 : i32
      %159 = arith.index_cast %158 : i32 to index
      %c0_58 = arith.constant 0 : index
      %160 = vector.load %arg10[%159, %c0_58] : memref<64x384xf32, #tpu.memory_space<vmem>>, vector<8x384xf32>
      %161 = arith.index_cast %158 : i32 to index
      %c0_59 = arith.constant 0 : index
      %162 = vector.load %arg7[%161, %c0_59] : memref<64x1xf32, #tpu.memory_space<vmem>>, vector<8x1xf32>
      %c0_60 = arith.constant 0 : index
      %c0_61 = arith.constant 0 : index
      %163 = vector.load %arg9[%c0_60, %c0_61] : memref<8x128xf32, #tpu.memory_space<vmem>>, vector<8x128xf32>
      %164 = arith.truncf %163 : vector<8x128xf32> to vector<8x128xbf16>
      %cst_62 = arith.constant dense<0.000000e+00> : vector<8x384xf32>
      %165 = tpu.matmul %164, %13, %cst_62 {dimension_numbers = #tpu.dot_dimension_numbers<[1], [0], [0], [1], [0, 0, 1, 1], [], []>} : vector<8x128xbf16>, vector<128x384xbf16>, vector<8x384xf32> -> vector<8x384xf32>
      %166 = vector.extract_strided_slice %160 {offsets = [0, 0], sizes = [8, 128], strides = [1, 1]} : vector<8x384xf32> to vector<8x128xf32>
      %167 = vector.extract_strided_slice %165 {offsets = [0, 0], sizes = [8, 128], strides = [1, 1]} : vector<8x384xf32> to vector<8x128xf32>
      %168 = arith.addf %166, %167 : vector<8x128xf32>
      %169 = arith.negf %168 : vector<8x128xf32>
      %170 = math.exp %169 : vector<8x128xf32>
      %cst_63 = arith.constant 1.000000e+00 : f32
      %171 = vector.broadcast %cst_63 : f32 to vector<8x128xf32>
      %172 = arith.addf %171, %170 : vector<8x128xf32>
      %173 = arith.divf %171, %172 : vector<8x128xf32>
      %174 = vector.extract_strided_slice %160 {offsets = [0, 128], sizes = [8, 128], strides = [1, 1]} : vector<8x384xf32> to vector<8x128xf32>
      %175 = vector.extract_strided_slice %165 {offsets = [0, 128], sizes = [8, 128], strides = [1, 1]} : vector<8x384xf32> to vector<8x128xf32>
      %176 = arith.addf %174, %175 : vector<8x128xf32>
      %177 = arith.negf %176 : vector<8x128xf32>
      %178 = math.exp %177 : vector<8x128xf32>
      %cst_64 = arith.constant 1.000000e+00 : f32
      %179 = vector.broadcast %cst_64 : f32 to vector<8x128xf32>
      %180 = arith.addf %179, %178 : vector<8x128xf32>
      %181 = arith.divf %179, %180 : vector<8x128xf32>
      %182 = vector.extract_strided_slice %160 {offsets = [0, 256], sizes = [8, 128], strides = [1, 1]} : vector<8x384xf32> to vector<8x128xf32>
      %183 = vector.extract_strided_slice %165 {offsets = [0, 256], sizes = [8, 128], strides = [1, 1]} : vector<8x384xf32> to vector<8x128xf32>
      %184 = vector.broadcast %15 : vector<1x128xf32> to vector<8x128xf32>
      %185 = arith.addf %183, %184 : vector<8x128xf32>
      %186 = arith.mulf %173, %185 : vector<8x128xf32>
      %187 = arith.addf %182, %186 : vector<8x128xf32>
      %188 = math.tanh %187 : vector<8x128xf32>
      %189 = arith.subf %163, %188 : vector<8x128xf32>
      %190 = arith.mulf %181, %189 : vector<8x128xf32>
      %191 = arith.addf %188, %190 : vector<8x128xf32>
      %192 = arith.subf %191, %163 : vector<8x128xf32>
      %193 = vector.broadcast %162 : vector<8x1xf32> to vector<8x128xf32>
      %194 = arith.mulf %193, %192 : vector<8x128xf32>
      %195 = arith.addf %163, %194 : vector<8x128xf32>
      %c0_65 = arith.constant 0 : index
      %c0_66 = arith.constant 0 : index
      %196 = vector.load %arg9[%c0_65, %c0_66] : memref<8x128xf32, #tpu.memory_space<vmem>>, vector<8x128xf32>
      tpu.vector_store %arg9[%c0_65, %c0_66], %195 {strides = array<i32>} : memref<8x128xf32, #tpu.memory_space<vmem>>, vector<8x128xf32>,
      %197 = vector.broadcast %162 : vector<8x1xf32> to vector<8x128xf32>
      %198 = arith.mulf %197, %191 : vector<8x128xf32>
      %199 = arith.index_cast %158 : i32 to index
      %c0_67 = arith.constant 0 : index
      %200 = vector.load %arg11[%199, %c0_67] : memref<64x128xf32, #tpu.memory_space<vmem>>, vector<8x128xf32>
      tpu.vector_store %arg11[%199, %c0_67], %198 {strides = array<i32>} : memref<64x128xf32, #tpu.memory_space<vmem>>, vector<8x128xf32>,
      %c4_i32 = arith.constant 4 : i32
      %c8_i32_68 = arith.constant 8 : i32
      %201 = arith.muli %c4_i32, %c8_i32_68 : i32
      %202 = tpu.assume_multiple %201, 8 : i32
      %203 = arith.index_cast %202 : i32 to index
      %c0_69 = arith.constant 0 : index
      %204 = vector.load %arg10[%203, %c0_69] : memref<64x384xf32, #tpu.memory_space<vmem>>, vector<8x384xf32>
      %205 = arith.index_cast %202 : i32 to index
      %c0_70 = arith.constant 0 : index
      %206 = vector.load %arg7[%205, %c0_70] : memref<64x1xf32, #tpu.memory_space<vmem>>, vector<8x1xf32>
      %c0_71 = arith.constant 0 : index
      %c0_72 = arith.constant 0 : index
      %207 = vector.load %arg9[%c0_71, %c0_72] : memref<8x128xf32, #tpu.memory_space<vmem>>, vector<8x128xf32>
      %208 = arith.truncf %207 : vector<8x128xf32> to vector<8x128xbf16>
      %cst_73 = arith.constant dense<0.000000e+00> : vector<8x384xf32>
      %209 = tpu.matmul %208, %13, %cst_73 {dimension_numbers = #tpu.dot_dimension_numbers<[1], [0], [0], [1], [0, 0, 1, 1], [], []>} : vector<8x128xbf16>, vector<128x384xbf16>, vector<8x384xf32> -> vector<8x384xf32>
      %210 = vector.extract_strided_slice %204 {offsets = [0, 0], sizes = [8, 128], strides = [1, 1]} : vector<8x384xf32> to vector<8x128xf32>
      %211 = vector.extract_strided_slice %209 {offsets = [0, 0], sizes = [8, 128], strides = [1, 1]} : vector<8x384xf32> to vector<8x128xf32>
      %212 = arith.addf %210, %211 : vector<8x128xf32>
      %213 = arith.negf %212 : vector<8x128xf32>
      %214 = math.exp %213 : vector<8x128xf32>
      %cst_74 = arith.constant 1.000000e+00 : f32
      %215 = vector.broadcast %cst_74 : f32 to vector<8x128xf32>
      %216 = arith.addf %215, %214 : vector<8x128xf32>
      %217 = arith.divf %215, %216 : vector<8x128xf32>
      %218 = vector.extract_strided_slice %204 {offsets = [0, 128], sizes = [8, 128], strides = [1, 1]} : vector<8x384xf32> to vector<8x128xf32>
      %219 = vector.extract_strided_slice %209 {offsets = [0, 128], sizes = [8, 128], strides = [1, 1]} : vector<8x384xf32> to vector<8x128xf32>
      %220 = arith.addf %218, %219 : vector<8x128xf32>
      %221 = arith.negf %220 : vector<8x128xf32>
      %222 = math.exp %221 : vector<8x128xf32>
      %cst_75 = arith.constant 1.000000e+00 : f32
      %223 = vector.broadcast %cst_75 : f32 to vector<8x128xf32>
      %224 = arith.addf %223, %222 : vector<8x128xf32>
      %225 = arith.divf %223, %224 : vector<8x128xf32>
      %226 = vector.extract_strided_slice %204 {offsets = [0, 256], sizes = [8, 128], strides = [1, 1]} : vector<8x384xf32> to vector<8x128xf32>
      %227 = vector.extract_strided_slice %209 {offsets = [0, 256], sizes = [8, 128], strides = [1, 1]} : vector<8x384xf32> to vector<8x128xf32>
      %228 = vector.broadcast %15 : vector<1x128xf32> to vector<8x128xf32>
      %229 = arith.addf %227, %228 : vector<8x128xf32>
      %230 = arith.mulf %217, %229 : vector<8x128xf32>
      %231 = arith.addf %226, %230 : vector<8x128xf32>
      %232 = math.tanh %231 : vector<8x128xf32>
      %233 = arith.subf %207, %232 : vector<8x128xf32>
      %234 = arith.mulf %225, %233 : vector<8x128xf32>
      %235 = arith.addf %232, %234 : vector<8x128xf32>
      %236 = arith.subf %235, %207 : vector<8x128xf32>
      %237 = vector.broadcast %206 : vector<8x1xf32> to vector<8x128xf32>
      %238 = arith.mulf %237, %236 : vector<8x128xf32>
      %239 = arith.addf %207, %238 : vector<8x128xf32>
      %c0_76 = arith.constant 0 : index
      %c0_77 = arith.constant 0 : index
      %240 = vector.load %arg9[%c0_76, %c0_77] : memref<8x128xf32, #tpu.memory_space<vmem>>, vector<8x128xf32>
      tpu.vector_store %arg9[%c0_76, %c0_77], %239 {strides = array<i32>} : memref<8x128xf32, #tpu.memory_space<vmem>>, vector<8x128xf32>,
      %241 = vector.broadcast %206 : vector<8x1xf32> to vector<8x128xf32>
      %242 = arith.mulf %241, %235 : vector<8x128xf32>
      %243 = arith.index_cast %202 : i32 to index
      %c0_78 = arith.constant 0 : index
      %244 = vector.load %arg11[%243, %c0_78] : memref<64x128xf32, #tpu.memory_space<vmem>>, vector<8x128xf32>
      tpu.vector_store %arg11[%243, %c0_78], %242 {strides = array<i32>} : memref<64x128xf32, #tpu.memory_space<vmem>>, vector<8x128xf32>,
      %c5_i32 = arith.constant 5 : i32
      %c8_i32_79 = arith.constant 8 : i32
      %245 = arith.muli %c5_i32, %c8_i32_79 : i32
      %246 = tpu.assume_multiple %245, 8 : i32
      %247 = arith.index_cast %246 : i32 to index
      %c0_80 = arith.constant 0 : index
      %248 = vector.load %arg10[%247, %c0_80] : memref<64x384xf32, #tpu.memory_space<vmem>>, vector<8x384xf32>
      %249 = arith.index_cast %246 : i32 to index
      %c0_81 = arith.constant 0 : index
      %250 = vector.load %arg7[%249, %c0_81] : memref<64x1xf32, #tpu.memory_space<vmem>>, vector<8x1xf32>
      %c0_82 = arith.constant 0 : index
      %c0_83 = arith.constant 0 : index
      %251 = vector.load %arg9[%c0_82, %c0_83] : memref<8x128xf32, #tpu.memory_space<vmem>>, vector<8x128xf32>
      %252 = arith.truncf %251 : vector<8x128xf32> to vector<8x128xbf16>
      %cst_84 = arith.constant dense<0.000000e+00> : vector<8x384xf32>
      %253 = tpu.matmul %252, %13, %cst_84 {dimension_numbers = #tpu.dot_dimension_numbers<[1], [0], [0], [1], [0, 0, 1, 1], [], []>} : vector<8x128xbf16>, vector<128x384xbf16>, vector<8x384xf32> -> vector<8x384xf32>
      %254 = vector.extract_strided_slice %248 {offsets = [0, 0], sizes = [8, 128], strides = [1, 1]} : vector<8x384xf32> to vector<8x128xf32>
      %255 = vector.extract_strided_slice %253 {offsets = [0, 0], sizes = [8, 128], strides = [1, 1]} : vector<8x384xf32> to vector<8x128xf32>
      %256 = arith.addf %254, %255 : vector<8x128xf32>
      %257 = arith.negf %256 : vector<8x128xf32>
      %258 = math.exp %257 : vector<8x128xf32>
      %cst_85 = arith.constant 1.000000e+00 : f32
      %259 = vector.broadcast %cst_85 : f32 to vector<8x128xf32>
      %260 = arith.addf %259, %258 : vector<8x128xf32>
      %261 = arith.divf %259, %260 : vector<8x128xf32>
      %262 = vector.extract_strided_slice %248 {offsets = [0, 128], sizes = [8, 128], strides = [1, 1]} : vector<8x384xf32> to vector<8x128xf32>
      %263 = vector.extract_strided_slice %253 {offsets = [0, 128], sizes = [8, 128], strides = [1, 1]} : vector<8x384xf32> to vector<8x128xf32>
      %264 = arith.addf %262, %263 : vector<8x128xf32>
      %265 = arith.negf %264 : vector<8x128xf32>
      %266 = math.exp %265 : vector<8x128xf32>
      %cst_86 = arith.constant 1.000000e+00 : f32
      %267 = vector.broadcast %cst_86 : f32 to vector<8x128xf32>
      %268 = arith.addf %267, %266 : vector<8x128xf32>
      %269 = arith.divf %267, %268 : vector<8x128xf32>
      %270 = vector.extract_strided_slice %248 {offsets = [0, 256], sizes = [8, 128], strides = [1, 1]} : vector<8x384xf32> to vector<8x128xf32>
      %271 = vector.extract_strided_slice %253 {offsets = [0, 256], sizes = [8, 128], strides = [1, 1]} : vector<8x384xf32> to vector<8x128xf32>
      %272 = vector.broadcast %15 : vector<1x128xf32> to vector<8x128xf32>
      %273 = arith.addf %271, %272 : vector<8x128xf32>
      %274 = arith.mulf %261, %273 : vector<8x128xf32>
      %275 = arith.addf %270, %274 : vector<8x128xf32>
      %276 = math.tanh %275 : vector<8x128xf32>
      %277 = arith.subf %251, %276 : vector<8x128xf32>
      %278 = arith.mulf %269, %277 : vector<8x128xf32>
      %279 = arith.addf %276, %278 : vector<8x128xf32>
      %280 = arith.subf %279, %251 : vector<8x128xf32>
      %281 = vector.broadcast %250 : vector<8x1xf32> to vector<8x128xf32>
      %282 = arith.mulf %281, %280 : vector<8x128xf32>
      %283 = arith.addf %251, %282 : vector<8x128xf32>
      %c0_87 = arith.constant 0 : index
      %c0_88 = arith.constant 0 : index
      %284 = vector.load %arg9[%c0_87, %c0_88] : memref<8x128xf32, #tpu.memory_space<vmem>>, vector<8x128xf32>
      tpu.vector_store %arg9[%c0_87, %c0_88], %283 {strides = array<i32>} : memref<8x128xf32, #tpu.memory_space<vmem>>, vector<8x128xf32>,
      %285 = vector.broadcast %250 : vector<8x1xf32> to vector<8x128xf32>
      %286 = arith.mulf %285, %279 : vector<8x128xf32>
      %287 = arith.index_cast %246 : i32 to index
      %c0_89 = arith.constant 0 : index
      %288 = vector.load %arg11[%287, %c0_89] : memref<64x128xf32, #tpu.memory_space<vmem>>, vector<8x128xf32>
      tpu.vector_store %arg11[%287, %c0_89], %286 {strides = array<i32>} : memref<64x128xf32, #tpu.memory_space<vmem>>, vector<8x128xf32>,
      %c6_i32 = arith.constant 6 : i32
      %c8_i32_90 = arith.constant 8 : i32
      %289 = arith.muli %c6_i32, %c8_i32_90 : i32
      %290 = tpu.assume_multiple %289, 8 : i32
      %291 = arith.index_cast %290 : i32 to index
      %c0_91 = arith.constant 0 : index
      %292 = vector.load %arg10[%291, %c0_91] : memref<64x384xf32, #tpu.memory_space<vmem>>, vector<8x384xf32>
      %293 = arith.index_cast %290 : i32 to index
      %c0_92 = arith.constant 0 : index
      %294 = vector.load %arg7[%293, %c0_92] : memref<64x1xf32, #tpu.memory_space<vmem>>, vector<8x1xf32>
      %c0_93 = arith.constant 0 : index
      %c0_94 = arith.constant 0 : index
      %295 = vector.load %arg9[%c0_93, %c0_94] : memref<8x128xf32, #tpu.memory_space<vmem>>, vector<8x128xf32>
      %296 = arith.truncf %295 : vector<8x128xf32> to vector<8x128xbf16>
      %cst_95 = arith.constant dense<0.000000e+00> : vector<8x384xf32>
      %297 = tpu.matmul %296, %13, %cst_95 {dimension_numbers = #tpu.dot_dimension_numbers<[1], [0], [0], [1], [0, 0, 1, 1], [], []>} : vector<8x128xbf16>, vector<128x384xbf16>, vector<8x384xf32> -> vector<8x384xf32>
      %298 = vector.extract_strided_slice %292 {offsets = [0, 0], sizes = [8, 128], strides = [1, 1]} : vector<8x384xf32> to vector<8x128xf32>
      %299 = vector.extract_strided_slice %297 {offsets = [0, 0], sizes = [8, 128], strides = [1, 1]} : vector<8x384xf32> to vector<8x128xf32>
      %300 = arith.addf %298, %299 : vector<8x128xf32>
      %301 = arith.negf %300 : vector<8x128xf32>
      %302 = math.exp %301 : vector<8x128xf32>
      %cst_96 = arith.constant 1.000000e+00 : f32
      %303 = vector.broadcast %cst_96 : f32 to vector<8x128xf32>
      %304 = arith.addf %303, %302 : vector<8x128xf32>
      %305 = arith.divf %303, %304 : vector<8x128xf32>
      %306 = vector.extract_strided_slice %292 {offsets = [0, 128], sizes = [8, 128], strides = [1, 1]} : vector<8x384xf32> to vector<8x128xf32>
      %307 = vector.extract_strided_slice %297 {offsets = [0, 128], sizes = [8, 128], strides = [1, 1]} : vector<8x384xf32> to vector<8x128xf32>
      %308 = arith.addf %306, %307 : vector<8x128xf32>
      %309 = arith.negf %308 : vector<8x128xf32>
      %310 = math.exp %309 : vector<8x128xf32>
      %cst_97 = arith.constant 1.000000e+00 : f32
      %311 = vector.broadcast %cst_97 : f32 to vector<8x128xf32>
      %312 = arith.addf %311, %310 : vector<8x128xf32>
      %313 = arith.divf %311, %312 : vector<8x128xf32>
      %314 = vector.extract_strided_slice %292 {offsets = [0, 256], sizes = [8, 128], strides = [1, 1]} : vector<8x384xf32> to vector<8x128xf32>
      %315 = vector.extract_strided_slice %297 {offsets = [0, 256], sizes = [8, 128], strides = [1, 1]} : vector<8x384xf32> to vector<8x128xf32>
      %316 = vector.broadcast %15 : vector<1x128xf32> to vector<8x128xf32>
      %317 = arith.addf %315, %316 : vector<8x128xf32>
      %318 = arith.mulf %305, %317 : vector<8x128xf32>
      %319 = arith.addf %314, %318 : vector<8x128xf32>
      %320 = math.tanh %319 : vector<8x128xf32>
      %321 = arith.subf %295, %320 : vector<8x128xf32>
      %322 = arith.mulf %313, %321 : vector<8x128xf32>
      %323 = arith.addf %320, %322 : vector<8x128xf32>
      %324 = arith.subf %323, %295 : vector<8x128xf32>
      %325 = vector.broadcast %294 : vector<8x1xf32> to vector<8x128xf32>
      %326 = arith.mulf %325, %324 : vector<8x128xf32>
      %327 = arith.addf %295, %326 : vector<8x128xf32>
      %c0_98 = arith.constant 0 : index
      %c0_99 = arith.constant 0 : index
      %328 = vector.load %arg9[%c0_98, %c0_99] : memref<8x128xf32, #tpu.memory_space<vmem>>, vector<8x128xf32>
      tpu.vector_store %arg9[%c0_98, %c0_99], %327 {strides = array<i32>} : memref<8x128xf32, #tpu.memory_space<vmem>>, vector<8x128xf32>,
      %329 = vector.broadcast %294 : vector<8x1xf32> to vector<8x128xf32>
      %330 = arith.mulf %329, %323 : vector<8x128xf32>
      %331 = arith.index_cast %290 : i32 to index
      %c0_100 = arith.constant 0 : index
      %332 = vector.load %arg11[%331, %c0_100] : memref<64x128xf32, #tpu.memory_space<vmem>>, vector<8x128xf32>
      tpu.vector_store %arg11[%331, %c0_100], %330 {strides = array<i32>} : memref<64x128xf32, #tpu.memory_space<vmem>>, vector<8x128xf32>,
      %c7_i32 = arith.constant 7 : i32
      %c8_i32_101 = arith.constant 8 : i32
      %333 = arith.muli %c7_i32, %c8_i32_101 : i32
      %334 = tpu.assume_multiple %333, 8 : i32
      %335 = arith.index_cast %334 : i32 to index
      %c0_102 = arith.constant 0 : index
      %336 = vector.load %arg10[%335, %c0_102] : memref<64x384xf32, #tpu.memory_space<vmem>>, vector<8x384xf32>
      %337 = arith.index_cast %334 : i32 to index
      %c0_103 = arith.constant 0 : index
      %338 = vector.load %arg7[%337, %c0_103] : memref<64x1xf32, #tpu.memory_space<vmem>>, vector<8x1xf32>
      %c0_104 = arith.constant 0 : index
      %c0_105 = arith.constant 0 : index
      %339 = vector.load %arg9[%c0_104, %c0_105] : memref<8x128xf32, #tpu.memory_space<vmem>>, vector<8x128xf32>
      %340 = arith.truncf %339 : vector<8x128xf32> to vector<8x128xbf16>
      %cst_106 = arith.constant dense<0.000000e+00> : vector<8x384xf32>
      %341 = tpu.matmul %340, %13, %cst_106 {dimension_numbers = #tpu.dot_dimension_numbers<[1], [0], [0], [1], [0, 0, 1, 1], [], []>} : vector<8x128xbf16>, vector<128x384xbf16>, vector<8x384xf32> -> vector<8x384xf32>
      %342 = vector.extract_strided_slice %336 {offsets = [0, 0], sizes = [8, 128], strides = [1, 1]} : vector<8x384xf32> to vector<8x128xf32>
      %343 = vector.extract_strided_slice %341 {offsets = [0, 0], sizes = [8, 128], strides = [1, 1]} : vector<8x384xf32> to vector<8x128xf32>
      %344 = arith.addf %342, %343 : vector<8x128xf32>
      %345 = arith.negf %344 : vector<8x128xf32>
      %346 = math.exp %345 : vector<8x128xf32>
      %cst_107 = arith.constant 1.000000e+00 : f32
      %347 = vector.broadcast %cst_107 : f32 to vector<8x128xf32>
      %348 = arith.addf %347, %346 : vector<8x128xf32>
      %349 = arith.divf %347, %348 : vector<8x128xf32>
      %350 = vector.extract_strided_slice %336 {offsets = [0, 128], sizes = [8, 128], strides = [1, 1]} : vector<8x384xf32> to vector<8x128xf32>
      %351 = vector.extract_strided_slice %341 {offsets = [0, 128], sizes = [8, 128], strides = [1, 1]} : vector<8x384xf32> to vector<8x128xf32>
      %352 = arith.addf %350, %351 : vector<8x128xf32>
      %353 = arith.negf %352 : vector<8x128xf32>
      %354 = math.exp %353 : vector<8x128xf32>
      %cst_108 = arith.constant 1.000000e+00 : f32
      %355 = vector.broadcast %cst_108 : f32 to vector<8x128xf32>
      %356 = arith.addf %355, %354 : vector<8x128xf32>
      %357 = arith.divf %355, %356 : vector<8x128xf32>
      %358 = vector.extract_strided_slice %336 {offsets = [0, 256], sizes = [8, 128], strides = [1, 1]} : vector<8x384xf32> to vector<8x128xf32>
      %359 = vector.extract_strided_slice %341 {offsets = [0, 256], sizes = [8, 128], strides = [1, 1]} : vector<8x384xf32> to vector<8x128xf32>
      %360 = vector.broadcast %15 : vector<1x128xf32> to vector<8x128xf32>
      %361 = arith.addf %359, %360 : vector<8x128xf32>
      %362 = arith.mulf %349, %361 : vector<8x128xf32>
      %363 = arith.addf %358, %362 : vector<8x128xf32>
      %364 = math.tanh %363 : vector<8x128xf32>
      %365 = arith.subf %339, %364 : vector<8x128xf32>
      %366 = arith.mulf %357, %365 : vector<8x128xf32>
      %367 = arith.addf %364, %366 : vector<8x128xf32>
      %368 = arith.subf %367, %339 : vector<8x128xf32>
      %369 = vector.broadcast %338 : vector<8x1xf32> to vector<8x128xf32>
      %370 = arith.mulf %369, %368 : vector<8x128xf32>
      %371 = arith.addf %339, %370 : vector<8x128xf32>
      %c0_109 = arith.constant 0 : index
      %c0_110 = arith.constant 0 : index
      %372 = vector.load %arg9[%c0_109, %c0_110] : memref<8x128xf32, #tpu.memory_space<vmem>>, vector<8x128xf32>
      tpu.vector_store %arg9[%c0_109, %c0_110], %371 {strides = array<i32>} : memref<8x128xf32, #tpu.memory_space<vmem>>, vector<8x128xf32>,
      %373 = vector.broadcast %338 : vector<8x1xf32> to vector<8x128xf32>
      %374 = arith.mulf %373, %367 : vector<8x128xf32>
      %375 = arith.index_cast %334 : i32 to index
      %c0_111 = arith.constant 0 : index
      %376 = vector.load %arg11[%375, %c0_111] : memref<64x128xf32, #tpu.memory_space<vmem>>, vector<8x128xf32>
      tpu.vector_store %arg11[%375, %c0_111], %374 {strides = array<i32>} : memref<64x128xf32, #tpu.memory_space<vmem>>, vector<8x128xf32>,
      %c8_i32_112 = arith.constant 8 : i32
    } else {
    }
    %c0_i32_18 = arith.constant 0 : i32
    %19 = arith.cmpi ne, %arg0, %c0_i32_18 : i32
    %20 = arith.extui %19 : i1 to i32
    %c0_i32_19 = arith.constant 0 : i32
    %21 = arith.cmpi ne, %20, %c0_i32_19 : i32
    scf.if %21 {
      %c0_i32_24 = arith.constant 0 : i32
      %c7_i32 = arith.constant 7 : i32
      %25 = arith.subi %c7_i32, %c0_i32_24 : i32
      %c8_i32 = arith.constant 8 : i32
      %26 = arith.muli %25, %c8_i32 : i32
      %27 = tpu.assume_multiple %26, 8 : i32
      %28 = arith.index_cast %27 : i32 to index
      %c0_25 = arith.constant 0 : index
      %29 = vector.load %arg10[%28, %c0_25] : memref<64x384xf32, #tpu.memory_space<vmem>>, vector<8x384xf32>
      %30 = arith.index_cast %27 : i32 to index
      %c0_26 = arith.constant 0 : index
      %31 = vector.load %arg7[%30, %c0_26] : memref<64x1xf32, #tpu.memory_space<vmem>>, vector<8x1xf32>
      %c0_27 = arith.constant 0 : index
      %c0_28 = arith.constant 0 : index
      %32 = vector.load %arg9[%c0_27, %c0_28] : memref<8x128xf32, #tpu.memory_space<vmem>>, vector<8x128xf32>
      %33 = arith.truncf %32 : vector<8x128xf32> to vector<8x128xbf16>
      %cst_29 = arith.constant dense<0.000000e+00> : vector<8x384xf32>
      %34 = tpu.matmul %33, %13, %cst_29 {dimension_numbers = #tpu.dot_dimension_numbers<[1], [0], [0], [1], [0, 0, 1, 1], [], []>} : vector<8x128xbf16>, vector<128x384xbf16>, vector<8x384xf32> -> vector<8x384xf32>
      %35 = vector.extract_strided_slice %29 {offsets = [0, 0], sizes = [8, 128], strides = [1, 1]} : vector<8x384xf32> to vector<8x128xf32>
      %36 = vector.extract_strided_slice %34 {offsets = [0, 0], sizes = [8, 128], strides = [1, 1]} : vector<8x384xf32> to vector<8x128xf32>
      %37 = arith.addf %35, %36 : vector<8x128xf32>
      %38 = arith.negf %37 : vector<8x128xf32>
      %39 = math.exp %38 : vector<8x128xf32>
      %cst_30 = arith.constant 1.000000e+00 : f32
      %40 = vector.broadcast %cst_30 : f32 to vector<8x128xf32>
      %41 = arith.addf %40, %39 : vector<8x128xf32>
      %42 = arith.divf %40, %41 : vector<8x128xf32>
      %43 = vector.extract_strided_slice %29 {offsets = [0, 128], sizes = [8, 128], strides = [1, 1]} : vector<8x384xf32> to vector<8x128xf32>
      %44 = vector.extract_strided_slice %34 {offsets = [0, 128], sizes = [8, 128], strides = [1, 1]} : vector<8x384xf32> to vector<8x128xf32>
      %45 = arith.addf %43, %44 : vector<8x128xf32>
      %46 = arith.negf %45 : vector<8x128xf32>
      %47 = math.exp %46 : vector<8x128xf32>
      %cst_31 = arith.constant 1.000000e+00 : f32
      %48 = vector.broadcast %cst_31 : f32 to vector<8x128xf32>
      %49 = arith.addf %48, %47 : vector<8x128xf32>
      %50 = arith.divf %48, %49 : vector<8x128xf32>
      %51 = vector.extract_strided_slice %29 {offsets = [0, 256], sizes = [8, 128], strides = [1, 1]} : vector<8x384xf32> to vector<8x128xf32>
      %52 = vector.extract_strided_slice %34 {offsets = [0, 256], sizes = [8, 128], strides = [1, 1]} : vector<8x384xf32> to vector<8x128xf32>
      %53 = vector.broadcast %15 : vector<1x128xf32> to vector<8x128xf32>
      %54 = arith.addf %52, %53 : vector<8x128xf32>
      %55 = arith.mulf %42, %54 : vector<8x128xf32>
      %56 = arith.addf %51, %55 : vector<8x128xf32>
      %57 = math.tanh %56 : vector<8x128xf32>
      %58 = arith.subf %32, %57 : vector<8x128xf32>
      %59 = arith.mulf %50, %58 : vector<8x128xf32>
      %60 = arith.addf %57, %59 : vector<8x128xf32>
      %61 = arith.subf %60, %32 : vector<8x128xf32>
      %62 = vector.broadcast %31 : vector<8x1xf32> to vector<8x128xf32>
      %63 = arith.mulf %62, %61 : vector<8x128xf32>
      %64 = arith.addf %32, %63 : vector<8x128xf32>
      %c0_32 = arith.constant 0 : index
      %c0_33 = arith.constant 0 : index
      %65 = vector.load %arg9[%c0_32, %c0_33] : memref<8x128xf32, #tpu.memory_space<vmem>>, vector<8x128xf32>
      tpu.vector_store %arg9[%c0_32, %c0_33], %64 {strides = array<i32>} : memref<8x128xf32, #tpu.memory_space<vmem>>, vector<8x128xf32>,
      %66 = vector.broadcast %31 : vector<8x1xf32> to vector<8x128xf32>
      %67 = arith.mulf %66, %60 : vector<8x128xf32>
      %68 = arith.index_cast %27 : i32 to index
      %c0_34 = arith.constant 0 : index
      %69 = vector.load %arg11[%68, %c0_34] : memref<64x128xf32, #tpu.memory_space<vmem>>, vector<8x128xf32>
      tpu.vector_store %arg11[%68, %c0_34], %67 {strides = array<i32>} : memref<64x128xf32, #tpu.memory_space<vmem>>, vector<8x128xf32>,
      %c1_i32 = arith.constant 1 : i32
      %c7_i32_35 = arith.constant 7 : i32
      %70 = arith.subi %c7_i32_35, %c1_i32 : i32
      %c8_i32_36 = arith.constant 8 : i32
      %71 = arith.muli %70, %c8_i32_36 : i32
      %72 = tpu.assume_multiple %71, 8 : i32
      %73 = arith.index_cast %72 : i32 to index
      %c0_37 = arith.constant 0 : index
      %74 = vector.load %arg10[%73, %c0_37] : memref<64x384xf32, #tpu.memory_space<vmem>>, vector<8x384xf32>
      %75 = arith.index_cast %72 : i32 to index
      %c0_38 = arith.constant 0 : index
      %76 = vector.load %arg7[%75, %c0_38] : memref<64x1xf32, #tpu.memory_space<vmem>>, vector<8x1xf32>
      %c0_39 = arith.constant 0 : index
      %c0_40 = arith.constant 0 : index
      %77 = vector.load %arg9[%c0_39, %c0_40] : memref<8x128xf32, #tpu.memory_space<vmem>>, vector<8x128xf32>
      %78 = arith.truncf %77 : vector<8x128xf32> to vector<8x128xbf16>
      %cst_41 = arith.constant dense<0.000000e+00> : vector<8x384xf32>
      %79 = tpu.matmul %78, %13, %cst_41 {dimension_numbers = #tpu.dot_dimension_numbers<[1], [0], [0], [1], [0, 0, 1, 1], [], []>} : vector<8x128xbf16>, vector<128x384xbf16>, vector<8x384xf32> -> vector<8x384xf32>
      %80 = vector.extract_strided_slice %74 {offsets = [0, 0], sizes = [8, 128], strides = [1, 1]} : vector<8x384xf32> to vector<8x128xf32>
      %81 = vector.extract_strided_slice %79 {offsets = [0, 0], sizes = [8, 128], strides = [1, 1]} : vector<8x384xf32> to vector<8x128xf32>
      %82 = arith.addf %80, %81 : vector<8x128xf32>
      %83 = arith.negf %82 : vector<8x128xf32>
      %84 = math.exp %83 : vector<8x128xf32>
      %cst_42 = arith.constant 1.000000e+00 : f32
      %85 = vector.broadcast %cst_42 : f32 to vector<8x128xf32>
      %86 = arith.addf %85, %84 : vector<8x128xf32>
      %87 = arith.divf %85, %86 : vector<8x128xf32>
      %88 = vector.extract_strided_slice %74 {offsets = [0, 128], sizes = [8, 128], strides = [1, 1]} : vector<8x384xf32> to vector<8x128xf32>
      %89 = vector.extract_strided_slice %79 {offsets = [0, 128], sizes = [8, 128], strides = [1, 1]} : vector<8x384xf32> to vector<8x128xf32>
      %90 = arith.addf %88, %89 : vector<8x128xf32>
      %91 = arith.negf %90 : vector<8x128xf32>
      %92 = math.exp %91 : vector<8x128xf32>
      %cst_43 = arith.constant 1.000000e+00 : f32
      %93 = vector.broadcast %cst_43 : f32 to vector<8x128xf32>
      %94 = arith.addf %93, %92 : vector<8x128xf32>
      %95 = arith.divf %93, %94 : vector<8x128xf32>
      %96 = vector.extract_strided_slice %74 {offsets = [0, 256], sizes = [8, 128], strides = [1, 1]} : vector<8x384xf32> to vector<8x128xf32>
      %97 = vector.extract_strided_slice %79 {offsets = [0, 256], sizes = [8, 128], strides = [1, 1]} : vector<8x384xf32> to vector<8x128xf32>
      %98 = vector.broadcast %15 : vector<1x128xf32> to vector<8x128xf32>
      %99 = arith.addf %97, %98 : vector<8x128xf32>
      %100 = arith.mulf %87, %99 : vector<8x128xf32>
      %101 = arith.addf %96, %100 : vector<8x128xf32>
      %102 = math.tanh %101 : vector<8x128xf32>
      %103 = arith.subf %77, %102 : vector<8x128xf32>
      %104 = arith.mulf %95, %103 : vector<8x128xf32>
      %105 = arith.addf %102, %104 : vector<8x128xf32>
      %106 = arith.subf %105, %77 : vector<8x128xf32>
      %107 = vector.broadcast %76 : vector<8x1xf32> to vector<8x128xf32>
      %108 = arith.mulf %107, %106 : vector<8x128xf32>
      %109 = arith.addf %77, %108 : vector<8x128xf32>
      %c0_44 = arith.constant 0 : index
      %c0_45 = arith.constant 0 : index
      %110 = vector.load %arg9[%c0_44, %c0_45] : memref<8x128xf32, #tpu.memory_space<vmem>>, vector<8x128xf32>
      tpu.vector_store %arg9[%c0_44, %c0_45], %109 {strides = array<i32>} : memref<8x128xf32, #tpu.memory_space<vmem>>, vector<8x128xf32>,
      %111 = vector.broadcast %76 : vector<8x1xf32> to vector<8x128xf32>
      %112 = arith.mulf %111, %105 : vector<8x128xf32>
      %113 = arith.index_cast %72 : i32 to index
      %c0_46 = arith.constant 0 : index
      %114 = vector.load %arg11[%113, %c0_46] : memref<64x128xf32, #tpu.memory_space<vmem>>, vector<8x128xf32>
      tpu.vector_store %arg11[%113, %c0_46], %112 {strides = array<i32>} : memref<64x128xf32, #tpu.memory_space<vmem>>, vector<8x128xf32>,
      %c2_i32 = arith.constant 2 : i32
      %c7_i32_47 = arith.constant 7 : i32
      %115 = arith.subi %c7_i32_47, %c2_i32 : i32
      %c8_i32_48 = arith.constant 8 : i32
      %116 = arith.muli %115, %c8_i32_48 : i32
      %117 = tpu.assume_multiple %116, 8 : i32
      %118 = arith.index_cast %117 : i32 to index
      %c0_49 = arith.constant 0 : index
      %119 = vector.load %arg10[%118, %c0_49] : memref<64x384xf32, #tpu.memory_space<vmem>>, vector<8x384xf32>
      %120 = arith.index_cast %117 : i32 to index
      %c0_50 = arith.constant 0 : index
      %121 = vector.load %arg7[%120, %c0_50] : memref<64x1xf32, #tpu.memory_space<vmem>>, vector<8x1xf32>
      %c0_51 = arith.constant 0 : index
      %c0_52 = arith.constant 0 : index
      %122 = vector.load %arg9[%c0_51, %c0_52] : memref<8x128xf32, #tpu.memory_space<vmem>>, vector<8x128xf32>
      %123 = arith.truncf %122 : vector<8x128xf32> to vector<8x128xbf16>
      %cst_53 = arith.constant dense<0.000000e+00> : vector<8x384xf32>
      %124 = tpu.matmul %123, %13, %cst_53 {dimension_numbers = #tpu.dot_dimension_numbers<[1], [0], [0], [1], [0, 0, 1, 1], [], []>} : vector<8x128xbf16>, vector<128x384xbf16>, vector<8x384xf32> -> vector<8x384xf32>
      %125 = vector.extract_strided_slice %119 {offsets = [0, 0], sizes = [8, 128], strides = [1, 1]} : vector<8x384xf32> to vector<8x128xf32>
      %126 = vector.extract_strided_slice %124 {offsets = [0, 0], sizes = [8, 128], strides = [1, 1]} : vector<8x384xf32> to vector<8x128xf32>
      %127 = arith.addf %125, %126 : vector<8x128xf32>
      %128 = arith.negf %127 : vector<8x128xf32>
      %129 = math.exp %128 : vector<8x128xf32>
      %cst_54 = arith.constant 1.000000e+00 : f32
      %130 = vector.broadcast %cst_54 : f32 to vector<8x128xf32>
      %131 = arith.addf %130, %129 : vector<8x128xf32>
      %132 = arith.divf %130, %131 : vector<8x128xf32>
      %133 = vector.extract_strided_slice %119 {offsets = [0, 128], sizes = [8, 128], strides = [1, 1]} : vector<8x384xf32> to vector<8x128xf32>
      %134 = vector.extract_strided_slice %124 {offsets = [0, 128], sizes = [8, 128], strides = [1, 1]} : vector<8x384xf32> to vector<8x128xf32>
      %135 = arith.addf %133, %134 : vector<8x128xf32>
      %136 = arith.negf %135 : vector<8x128xf32>
      %137 = math.exp %136 : vector<8x128xf32>
      %cst_55 = arith.constant 1.000000e+00 : f32
      %138 = vector.broadcast %cst_55 : f32 to vector<8x128xf32>
      %139 = arith.addf %138, %137 : vector<8x128xf32>
      %140 = arith.divf %138, %139 : vector<8x128xf32>
      %141 = vector.extract_strided_slice %119 {offsets = [0, 256], sizes = [8, 128], strides = [1, 1]} : vector<8x384xf32> to vector<8x128xf32>
      %142 = vector.extract_strided_slice %124 {offsets = [0, 256], sizes = [8, 128], strides = [1, 1]} : vector<8x384xf32> to vector<8x128xf32>
      %143 = vector.broadcast %15 : vector<1x128xf32> to vector<8x128xf32>
      %144 = arith.addf %142, %143 : vector<8x128xf32>
      %145 = arith.mulf %132, %144 : vector<8x128xf32>
      %146 = arith.addf %141, %145 : vector<8x128xf32>
      %147 = math.tanh %146 : vector<8x128xf32>
      %148 = arith.subf %122, %147 : vector<8x128xf32>
      %149 = arith.mulf %140, %148 : vector<8x128xf32>
      %150 = arith.addf %147, %149 : vector<8x128xf32>
      %151 = arith.subf %150, %122 : vector<8x128xf32>
      %152 = vector.broadcast %121 : vector<8x1xf32> to vector<8x128xf32>
      %153 = arith.mulf %152, %151 : vector<8x128xf32>
      %154 = arith.addf %122, %153 : vector<8x128xf32>
      %c0_56 = arith.constant 0 : index
      %c0_57 = arith.constant 0 : index
      %155 = vector.load %arg9[%c0_56, %c0_57] : memref<8x128xf32, #tpu.memory_space<vmem>>, vector<8x128xf32>
      tpu.vector_store %arg9[%c0_56, %c0_57], %154 {strides = array<i32>} : memref<8x128xf32, #tpu.memory_space<vmem>>, vector<8x128xf32>,
      %156 = vector.broadcast %121 : vector<8x1xf32> to vector<8x128xf32>
      %157 = arith.mulf %156, %150 : vector<8x128xf32>
      %158 = arith.index_cast %117 : i32 to index
      %c0_58 = arith.constant 0 : index
      %159 = vector.load %arg11[%158, %c0_58] : memref<64x128xf32, #tpu.memory_space<vmem>>, vector<8x128xf32>
      tpu.vector_store %arg11[%158, %c0_58], %157 {strides = array<i32>} : memref<64x128xf32, #tpu.memory_space<vmem>>, vector<8x128xf32>,
      %c3_i32 = arith.constant 3 : i32
      %c7_i32_59 = arith.constant 7 : i32
      %160 = arith.subi %c7_i32_59, %c3_i32 : i32
      %c8_i32_60 = arith.constant 8 : i32
      %161 = arith.muli %160, %c8_i32_60 : i32
      %162 = tpu.assume_multiple %161, 8 : i32
      %163 = arith.index_cast %162 : i32 to index
      %c0_61 = arith.constant 0 : index
      %164 = vector.load %arg10[%163, %c0_61] : memref<64x384xf32, #tpu.memory_space<vmem>>, vector<8x384xf32>
      %165 = arith.index_cast %162 : i32 to index
      %c0_62 = arith.constant 0 : index
      %166 = vector.load %arg7[%165, %c0_62] : memref<64x1xf32, #tpu.memory_space<vmem>>, vector<8x1xf32>
      %c0_63 = arith.constant 0 : index
      %c0_64 = arith.constant 0 : index
      %167 = vector.load %arg9[%c0_63, %c0_64] : memref<8x128xf32, #tpu.memory_space<vmem>>, vector<8x128xf32>
      %168 = arith.truncf %167 : vector<8x128xf32> to vector<8x128xbf16>
      %cst_65 = arith.constant dense<0.000000e+00> : vector<8x384xf32>
      %169 = tpu.matmul %168, %13, %cst_65 {dimension_numbers = #tpu.dot_dimension_numbers<[1], [0], [0], [1], [0, 0, 1, 1], [], []>} : vector<8x128xbf16>, vector<128x384xbf16>, vector<8x384xf32> -> vector<8x384xf32>
      %170 = vector.extract_strided_slice %164 {offsets = [0, 0], sizes = [8, 128], strides = [1, 1]} : vector<8x384xf32> to vector<8x128xf32>
      %171 = vector.extract_strided_slice %169 {offsets = [0, 0], sizes = [8, 128], strides = [1, 1]} : vector<8x384xf32> to vector<8x128xf32>
      %172 = arith.addf %170, %171 : vector<8x128xf32>
      %173 = arith.negf %172 : vector<8x128xf32>
      %174 = math.exp %173 : vector<8x128xf32>
      %cst_66 = arith.constant 1.000000e+00 : f32
      %175 = vector.broadcast %cst_66 : f32 to vector<8x128xf32>
      %176 = arith.addf %175, %174 : vector<8x128xf32>
      %177 = arith.divf %175, %176 : vector<8x128xf32>
      %178 = vector.extract_strided_slice %164 {offsets = [0, 128], sizes = [8, 128], strides = [1, 1]} : vector<8x384xf32> to vector<8x128xf32>
      %179 = vector.extract_strided_slice %169 {offsets = [0, 128], sizes = [8, 128], strides = [1, 1]} : vector<8x384xf32> to vector<8x128xf32>
      %180 = arith.addf %178, %179 : vector<8x128xf32>
      %181 = arith.negf %180 : vector<8x128xf32>
      %182 = math.exp %181 : vector<8x128xf32>
      %cst_67 = arith.constant 1.000000e+00 : f32
      %183 = vector.broadcast %cst_67 : f32 to vector<8x128xf32>
      %184 = arith.addf %183, %182 : vector<8x128xf32>
      %185 = arith.divf %183, %184 : vector<8x128xf32>
      %186 = vector.extract_strided_slice %164 {offsets = [0, 256], sizes = [8, 128], strides = [1, 1]} : vector<8x384xf32> to vector<8x128xf32>
      %187 = vector.extract_strided_slice %169 {offsets = [0, 256], sizes = [8, 128], strides = [1, 1]} : vector<8x384xf32> to vector<8x128xf32>
      %188 = vector.broadcast %15 : vector<1x128xf32> to vector<8x128xf32>
      %189 = arith.addf %187, %188 : vector<8x128xf32>
      %190 = arith.mulf %177, %189 : vector<8x128xf32>
      %191 = arith.addf %186, %190 : vector<8x128xf32>
      %192 = math.tanh %191 : vector<8x128xf32>
      %193 = arith.subf %167, %192 : vector<8x128xf32>
      %194 = arith.mulf %185, %193 : vector<8x128xf32>
      %195 = arith.addf %192, %194 : vector<8x128xf32>
      %196 = arith.subf %195, %167 : vector<8x128xf32>
      %197 = vector.broadcast %166 : vector<8x1xf32> to vector<8x128xf32>
      %198 = arith.mulf %197, %196 : vector<8x128xf32>
      %199 = arith.addf %167, %198 : vector<8x128xf32>
      %c0_68 = arith.constant 0 : index
      %c0_69 = arith.constant 0 : index
      %200 = vector.load %arg9[%c0_68, %c0_69] : memref<8x128xf32, #tpu.memory_space<vmem>>, vector<8x128xf32>
      tpu.vector_store %arg9[%c0_68, %c0_69], %199 {strides = array<i32>} : memref<8x128xf32, #tpu.memory_space<vmem>>, vector<8x128xf32>,
      %201 = vector.broadcast %166 : vector<8x1xf32> to vector<8x128xf32>
      %202 = arith.mulf %201, %195 : vector<8x128xf32>
      %203 = arith.index_cast %162 : i32 to index
      %c0_70 = arith.constant 0 : index
      %204 = vector.load %arg11[%203, %c0_70] : memref<64x128xf32, #tpu.memory_space<vmem>>, vector<8x128xf32>
      tpu.vector_store %arg11[%203, %c0_70], %202 {strides = array<i32>} : memref<64x128xf32, #tpu.memory_space<vmem>>, vector<8x128xf32>,
      %c4_i32 = arith.constant 4 : i32
      %c7_i32_71 = arith.constant 7 : i32
      %205 = arith.subi %c7_i32_71, %c4_i32 : i32
      %c8_i32_72 = arith.constant 8 : i32
      %206 = arith.muli %205, %c8_i32_72 : i32
      %207 = tpu.assume_multiple %206, 8 : i32
      %208 = arith.index_cast %207 : i32 to index
      %c0_73 = arith.constant 0 : index
      %209 = vector.load %arg10[%208, %c0_73] : memref<64x384xf32, #tpu.memory_space<vmem>>, vector<8x384xf32>
      %210 = arith.index_cast %207 : i32 to index
      %c0_74 = arith.constant 0 : index
      %211 = vector.load %arg7[%210, %c0_74] : memref<64x1xf32, #tpu.memory_space<vmem>>, vector<8x1xf32>
      %c0_75 = arith.constant 0 : index
      %c0_76 = arith.constant 0 : index
      %212 = vector.load %arg9[%c0_75, %c0_76] : memref<8x128xf32, #tpu.memory_space<vmem>>, vector<8x128xf32>
      %213 = arith.truncf %212 : vector<8x128xf32> to vector<8x128xbf16>
      %cst_77 = arith.constant dense<0.000000e+00> : vector<8x384xf32>
      %214 = tpu.matmul %213, %13, %cst_77 {dimension_numbers = #tpu.dot_dimension_numbers<[1], [0], [0], [1], [0, 0, 1, 1], [], []>} : vector<8x128xbf16>, vector<128x384xbf16>, vector<8x384xf32> -> vector<8x384xf32>
      %215 = vector.extract_strided_slice %209 {offsets = [0, 0], sizes = [8, 128], strides = [1, 1]} : vector<8x384xf32> to vector<8x128xf32>
      %216 = vector.extract_strided_slice %214 {offsets = [0, 0], sizes = [8, 128], strides = [1, 1]} : vector<8x384xf32> to vector<8x128xf32>
      %217 = arith.addf %215, %216 : vector<8x128xf32>
      %218 = arith.negf %217 : vector<8x128xf32>
      %219 = math.exp %218 : vector<8x128xf32>
      %cst_78 = arith.constant 1.000000e+00 : f32
      %220 = vector.broadcast %cst_78 : f32 to vector<8x128xf32>
      %221 = arith.addf %220, %219 : vector<8x128xf32>
      %222 = arith.divf %220, %221 : vector<8x128xf32>
      %223 = vector.extract_strided_slice %209 {offsets = [0, 128], sizes = [8, 128], strides = [1, 1]} : vector<8x384xf32> to vector<8x128xf32>
      %224 = vector.extract_strided_slice %214 {offsets = [0, 128], sizes = [8, 128], strides = [1, 1]} : vector<8x384xf32> to vector<8x128xf32>
      %225 = arith.addf %223, %224 : vector<8x128xf32>
      %226 = arith.negf %225 : vector<8x128xf32>
      %227 = math.exp %226 : vector<8x128xf32>
      %cst_79 = arith.constant 1.000000e+00 : f32
      %228 = vector.broadcast %cst_79 : f32 to vector<8x128xf32>
      %229 = arith.addf %228, %227 : vector<8x128xf32>
      %230 = arith.divf %228, %229 : vector<8x128xf32>
      %231 = vector.extract_strided_slice %209 {offsets = [0, 256], sizes = [8, 128], strides = [1, 1]} : vector<8x384xf32> to vector<8x128xf32>
      %232 = vector.extract_strided_slice %214 {offsets = [0, 256], sizes = [8, 128], strides = [1, 1]} : vector<8x384xf32> to vector<8x128xf32>
      %233 = vector.broadcast %15 : vector<1x128xf32> to vector<8x128xf32>
      %234 = arith.addf %232, %233 : vector<8x128xf32>
      %235 = arith.mulf %222, %234 : vector<8x128xf32>
      %236 = arith.addf %231, %235 : vector<8x128xf32>
      %237 = math.tanh %236 : vector<8x128xf32>
      %238 = arith.subf %212, %237 : vector<8x128xf32>
      %239 = arith.mulf %230, %238 : vector<8x128xf32>
      %240 = arith.addf %237, %239 : vector<8x128xf32>
      %241 = arith.subf %240, %212 : vector<8x128xf32>
      %242 = vector.broadcast %211 : vector<8x1xf32> to vector<8x128xf32>
      %243 = arith.mulf %242, %241 : vector<8x128xf32>
      %244 = arith.addf %212, %243 : vector<8x128xf32>
      %c0_80 = arith.constant 0 : index
      %c0_81 = arith.constant 0 : index
      %245 = vector.load %arg9[%c0_80, %c0_81] : memref<8x128xf32, #tpu.memory_space<vmem>>, vector<8x128xf32>
      tpu.vector_store %arg9[%c0_80, %c0_81], %244 {strides = array<i32>} : memref<8x128xf32, #tpu.memory_space<vmem>>, vector<8x128xf32>,
      %246 = vector.broadcast %211 : vector<8x1xf32> to vector<8x128xf32>
      %247 = arith.mulf %246, %240 : vector<8x128xf32>
      %248 = arith.index_cast %207 : i32 to index
      %c0_82 = arith.constant 0 : index
      %249 = vector.load %arg11[%248, %c0_82] : memref<64x128xf32, #tpu.memory_space<vmem>>, vector<8x128xf32>
      tpu.vector_store %arg11[%248, %c0_82], %247 {strides = array<i32>} : memref<64x128xf32, #tpu.memory_space<vmem>>, vector<8x128xf32>,
      %c5_i32 = arith.constant 5 : i32
      %c7_i32_83 = arith.constant 7 : i32
      %250 = arith.subi %c7_i32_83, %c5_i32 : i32
      %c8_i32_84 = arith.constant 8 : i32
      %251 = arith.muli %250, %c8_i32_84 : i32
      %252 = tpu.assume_multiple %251, 8 : i32
      %253 = arith.index_cast %252 : i32 to index
      %c0_85 = arith.constant 0 : index
      %254 = vector.load %arg10[%253, %c0_85] : memref<64x384xf32, #tpu.memory_space<vmem>>, vector<8x384xf32>
      %255 = arith.index_cast %252 : i32 to index
      %c0_86 = arith.constant 0 : index
      %256 = vector.load %arg7[%255, %c0_86] : memref<64x1xf32, #tpu.memory_space<vmem>>, vector<8x1xf32>
      %c0_87 = arith.constant 0 : index
      %c0_88 = arith.constant 0 : index
      %257 = vector.load %arg9[%c0_87, %c0_88] : memref<8x128xf32, #tpu.memory_space<vmem>>, vector<8x128xf32>
      %258 = arith.truncf %257 : vector<8x128xf32> to vector<8x128xbf16>
      %cst_89 = arith.constant dense<0.000000e+00> : vector<8x384xf32>
      %259 = tpu.matmul %258, %13, %cst_89 {dimension_numbers = #tpu.dot_dimension_numbers<[1], [0], [0], [1], [0, 0, 1, 1], [], []>} : vector<8x128xbf16>, vector<128x384xbf16>, vector<8x384xf32> -> vector<8x384xf32>
      %260 = vector.extract_strided_slice %254 {offsets = [0, 0], sizes = [8, 128], strides = [1, 1]} : vector<8x384xf32> to vector<8x128xf32>
      %261 = vector.extract_strided_slice %259 {offsets = [0, 0], sizes = [8, 128], strides = [1, 1]} : vector<8x384xf32> to vector<8x128xf32>
      %262 = arith.addf %260, %261 : vector<8x128xf32>
      %263 = arith.negf %262 : vector<8x128xf32>
      %264 = math.exp %263 : vector<8x128xf32>
      %cst_90 = arith.constant 1.000000e+00 : f32
      %265 = vector.broadcast %cst_90 : f32 to vector<8x128xf32>
      %266 = arith.addf %265, %264 : vector<8x128xf32>
      %267 = arith.divf %265, %266 : vector<8x128xf32>
      %268 = vector.extract_strided_slice %254 {offsets = [0, 128], sizes = [8, 128], strides = [1, 1]} : vector<8x384xf32> to vector<8x128xf32>
      %269 = vector.extract_strided_slice %259 {offsets = [0, 128], sizes = [8, 128], strides = [1, 1]} : vector<8x384xf32> to vector<8x128xf32>
      %270 = arith.addf %268, %269 : vector<8x128xf32>
      %271 = arith.negf %270 : vector<8x128xf32>
      %272 = math.exp %271 : vector<8x128xf32>
      %cst_91 = arith.constant 1.000000e+00 : f32
      %273 = vector.broadcast %cst_91 : f32 to vector<8x128xf32>
      %274 = arith.addf %273, %272 : vector<8x128xf32>
      %275 = arith.divf %273, %274 : vector<8x128xf32>
      %276 = vector.extract_strided_slice %254 {offsets = [0, 256], sizes = [8, 128], strides = [1, 1]} : vector<8x384xf32> to vector<8x128xf32>
      %277 = vector.extract_strided_slice %259 {offsets = [0, 256], sizes = [8, 128], strides = [1, 1]} : vector<8x384xf32> to vector<8x128xf32>
      %278 = vector.broadcast %15 : vector<1x128xf32> to vector<8x128xf32>
      %279 = arith.addf %277, %278 : vector<8x128xf32>
      %280 = arith.mulf %267, %279 : vector<8x128xf32>
      %281 = arith.addf %276, %280 : vector<8x128xf32>
      %282 = math.tanh %281 : vector<8x128xf32>
      %283 = arith.subf %257, %282 : vector<8x128xf32>
      %284 = arith.mulf %275, %283 : vector<8x128xf32>
      %285 = arith.addf %282, %284 : vector<8x128xf32>
      %286 = arith.subf %285, %257 : vector<8x128xf32>
      %287 = vector.broadcast %256 : vector<8x1xf32> to vector<8x128xf32>
      %288 = arith.mulf %287, %286 : vector<8x128xf32>
      %289 = arith.addf %257, %288 : vector<8x128xf32>
      %c0_92 = arith.constant 0 : index
      %c0_93 = arith.constant 0 : index
      %290 = vector.load %arg9[%c0_92, %c0_93] : memref<8x128xf32, #tpu.memory_space<vmem>>, vector<8x128xf32>
      tpu.vector_store %arg9[%c0_92, %c0_93], %289 {strides = array<i32>} : memref<8x128xf32, #tpu.memory_space<vmem>>, vector<8x128xf32>,
      %291 = vector.broadcast %256 : vector<8x1xf32> to vector<8x128xf32>
      %292 = arith.mulf %291, %285 : vector<8x128xf32>
      %293 = arith.index_cast %252 : i32 to index
      %c0_94 = arith.constant 0 : index
      %294 = vector.load %arg11[%293, %c0_94] : memref<64x128xf32, #tpu.memory_space<vmem>>, vector<8x128xf32>
      tpu.vector_store %arg11[%293, %c0_94], %292 {strides = array<i32>} : memref<64x128xf32, #tpu.memory_space<vmem>>, vector<8x128xf32>,
      %c6_i32 = arith.constant 6 : i32
      %c7_i32_95 = arith.constant 7 : i32
      %295 = arith.subi %c7_i32_95, %c6_i32 : i32
      %c8_i32_96 = arith.constant 8 : i32
      %296 = arith.muli %295, %c8_i32_96 : i32
      %297 = tpu.assume_multiple %296, 8 : i32
      %298 = arith.index_cast %297 : i32 to index
      %c0_97 = arith.constant 0 : index
      %299 = vector.load %arg10[%298, %c0_97] : memref<64x384xf32, #tpu.memory_space<vmem>>, vector<8x384xf32>
      %300 = arith.index_cast %297 : i32 to index
      %c0_98 = arith.constant 0 : index
      %301 = vector.load %arg7[%300, %c0_98] : memref<64x1xf32, #tpu.memory_space<vmem>>, vector<8x1xf32>
      %c0_99 = arith.constant 0 : index
      %c0_100 = arith.constant 0 : index
      %302 = vector.load %arg9[%c0_99, %c0_100] : memref<8x128xf32, #tpu.memory_space<vmem>>, vector<8x128xf32>
      %303 = arith.truncf %302 : vector<8x128xf32> to vector<8x128xbf16>
      %cst_101 = arith.constant dense<0.000000e+00> : vector<8x384xf32>
      %304 = tpu.matmul %303, %13, %cst_101 {dimension_numbers = #tpu.dot_dimension_numbers<[1], [0], [0], [1], [0, 0, 1, 1], [], []>} : vector<8x128xbf16>, vector<128x384xbf16>, vector<8x384xf32> -> vector<8x384xf32>
      %305 = vector.extract_strided_slice %299 {offsets = [0, 0], sizes = [8, 128], strides = [1, 1]} : vector<8x384xf32> to vector<8x128xf32>
      %306 = vector.extract_strided_slice %304 {offsets = [0, 0], sizes = [8, 128], strides = [1, 1]} : vector<8x384xf32> to vector<8x128xf32>
      %307 = arith.addf %305, %306 : vector<8x128xf32>
      %308 = arith.negf %307 : vector<8x128xf32>
      %309 = math.exp %308 : vector<8x128xf32>
      %cst_102 = arith.constant 1.000000e+00 : f32
      %310 = vector.broadcast %cst_102 : f32 to vector<8x128xf32>
      %311 = arith.addf %310, %309 : vector<8x128xf32>
      %312 = arith.divf %310, %311 : vector<8x128xf32>
      %313 = vector.extract_strided_slice %299 {offsets = [0, 128], sizes = [8, 128], strides = [1, 1]} : vector<8x384xf32> to vector<8x128xf32>
      %314 = vector.extract_strided_slice %304 {offsets = [0, 128], sizes = [8, 128], strides = [1, 1]} : vector<8x384xf32> to vector<8x128xf32>
      %315 = arith.addf %313, %314 : vector<8x128xf32>
      %316 = arith.negf %315 : vector<8x128xf32>
      %317 = math.exp %316 : vector<8x128xf32>
      %cst_103 = arith.constant 1.000000e+00 : f32
      %318 = vector.broadcast %cst_103 : f32 to vector<8x128xf32>
      %319 = arith.addf %318, %317 : vector<8x128xf32>
      %320 = arith.divf %318, %319 : vector<8x128xf32>
      %321 = vector.extract_strided_slice %299 {offsets = [0, 256], sizes = [8, 128], strides = [1, 1]} : vector<8x384xf32> to vector<8x128xf32>
      %322 = vector.extract_strided_slice %304 {offsets = [0, 256], sizes = [8, 128], strides = [1, 1]} : vector<8x384xf32> to vector<8x128xf32>
      %323 = vector.broadcast %15 : vector<1x128xf32> to vector<8x128xf32>
      %324 = arith.addf %322, %323 : vector<8x128xf32>
      %325 = arith.mulf %312, %324 : vector<8x128xf32>
      %326 = arith.addf %321, %325 : vector<8x128xf32>
      %327 = math.tanh %326 : vector<8x128xf32>
      %328 = arith.subf %302, %327 : vector<8x128xf32>
      %329 = arith.mulf %320, %328 : vector<8x128xf32>
      %330 = arith.addf %327, %329 : vector<8x128xf32>
      %331 = arith.subf %330, %302 : vector<8x128xf32>
      %332 = vector.broadcast %301 : vector<8x1xf32> to vector<8x128xf32>
      %333 = arith.mulf %332, %331 : vector<8x128xf32>
      %334 = arith.addf %302, %333 : vector<8x128xf32>
      %c0_104 = arith.constant 0 : index
      %c0_105 = arith.constant 0 : index
      %335 = vector.load %arg9[%c0_104, %c0_105] : memref<8x128xf32, #tpu.memory_space<vmem>>, vector<8x128xf32>
      tpu.vector_store %arg9[%c0_104, %c0_105], %334 {strides = array<i32>} : memref<8x128xf32, #tpu.memory_space<vmem>>, vector<8x128xf32>,
      %336 = vector.broadcast %301 : vector<8x1xf32> to vector<8x128xf32>
      %337 = arith.mulf %336, %330 : vector<8x128xf32>
      %338 = arith.index_cast %297 : i32 to index
      %c0_106 = arith.constant 0 : index
      %339 = vector.load %arg11[%338, %c0_106] : memref<64x128xf32, #tpu.memory_space<vmem>>, vector<8x128xf32>
      tpu.vector_store %arg11[%338, %c0_106], %337 {strides = array<i32>} : memref<64x128xf32, #tpu.memory_space<vmem>>, vector<8x128xf32>,
      %c7_i32_107 = arith.constant 7 : i32
      %c7_i32_108 = arith.constant 7 : i32
      %340 = arith.subi %c7_i32_108, %c7_i32_107 : i32
      %c8_i32_109 = arith.constant 8 : i32
      %341 = arith.muli %340, %c8_i32_109 : i32
      %342 = tpu.assume_multiple %341, 8 : i32
      %343 = arith.index_cast %342 : i32 to index
      %c0_110 = arith.constant 0 : index
      %344 = vector.load %arg10[%343, %c0_110] : memref<64x384xf32, #tpu.memory_space<vmem>>, vector<8x384xf32>
      %345 = arith.index_cast %342 : i32 to index
      %c0_111 = arith.constant 0 : index
      %346 = vector.load %arg7[%345, %c0_111] : memref<64x1xf32, #tpu.memory_space<vmem>>, vector<8x1xf32>
      %c0_112 = arith.constant 0 : index
      %c0_113 = arith.constant 0 : index
      %347 = vector.load %arg9[%c0_112, %c0_113] : memref<8x128xf32, #tpu.memory_space<vmem>>, vector<8x128xf32>
      %348 = arith.truncf %347 : vector<8x128xf32> to vector<8x128xbf16>
      %cst_114 = arith.constant dense<0.000000e+00> : vector<8x384xf32>
      %349 = tpu.matmul %348, %13, %cst_114 {dimension_numbers = #tpu.dot_dimension_numbers<[1], [0], [0], [1], [0, 0, 1, 1], [], []>} : vector<8x128xbf16>, vector<128x384xbf16>, vector<8x384xf32> -> vector<8x384xf32>
      %350 = vector.extract_strided_slice %344 {offsets = [0, 0], sizes = [8, 128], strides = [1, 1]} : vector<8x384xf32> to vector<8x128xf32>
      %351 = vector.extract_strided_slice %349 {offsets = [0, 0], sizes = [8, 128], strides = [1, 1]} : vector<8x384xf32> to vector<8x128xf32>
      %352 = arith.addf %350, %351 : vector<8x128xf32>
      %353 = arith.negf %352 : vector<8x128xf32>
      %354 = math.exp %353 : vector<8x128xf32>
      %cst_115 = arith.constant 1.000000e+00 : f32
      %355 = vector.broadcast %cst_115 : f32 to vector<8x128xf32>
      %356 = arith.addf %355, %354 : vector<8x128xf32>
      %357 = arith.divf %355, %356 : vector<8x128xf32>
      %358 = vector.extract_strided_slice %344 {offsets = [0, 128], sizes = [8, 128], strides = [1, 1]} : vector<8x384xf32> to vector<8x128xf32>
      %359 = vector.extract_strided_slice %349 {offsets = [0, 128], sizes = [8, 128], strides = [1, 1]} : vector<8x384xf32> to vector<8x128xf32>
      %360 = arith.addf %358, %359 : vector<8x128xf32>
      %361 = arith.negf %360 : vector<8x128xf32>
      %362 = math.exp %361 : vector<8x128xf32>
      %cst_116 = arith.constant 1.000000e+00 : f32
      %363 = vector.broadcast %cst_116 : f32 to vector<8x128xf32>
      %364 = arith.addf %363, %362 : vector<8x128xf32>
      %365 = arith.divf %363, %364 : vector<8x128xf32>
      %366 = vector.extract_strided_slice %344 {offsets = [0, 256], sizes = [8, 128], strides = [1, 1]} : vector<8x384xf32> to vector<8x128xf32>
      %367 = vector.extract_strided_slice %349 {offsets = [0, 256], sizes = [8, 128], strides = [1, 1]} : vector<8x384xf32> to vector<8x128xf32>
      %368 = vector.broadcast %15 : vector<1x128xf32> to vector<8x128xf32>
      %369 = arith.addf %367, %368 : vector<8x128xf32>
      %370 = arith.mulf %357, %369 : vector<8x128xf32>
      %371 = arith.addf %366, %370 : vector<8x128xf32>
      %372 = math.tanh %371 : vector<8x128xf32>
      %373 = arith.subf %347, %372 : vector<8x128xf32>
      %374 = arith.mulf %365, %373 : vector<8x128xf32>
      %375 = arith.addf %372, %374 : vector<8x128xf32>
      %376 = arith.subf %375, %347 : vector<8x128xf32>
      %377 = vector.broadcast %346 : vector<8x1xf32> to vector<8x128xf32>
      %378 = arith.mulf %377, %376 : vector<8x128xf32>
      %379 = arith.addf %347, %378 : vector<8x128xf32>
      %c0_117 = arith.constant 0 : index
      %c0_118 = arith.constant 0 : index
      %380 = vector.load %arg9[%c0_117, %c0_118] : memref<8x128xf32, #tpu.memory_space<vmem>>, vector<8x128xf32>
      tpu.vector_store %arg9[%c0_117, %c0_118], %379 {strides = array<i32>} : memref<8x128xf32, #tpu.memory_space<vmem>>, vector<8x128xf32>,
      %381 = vector.broadcast %346 : vector<8x1xf32> to vector<8x128xf32>
      %382 = arith.mulf %381, %375 : vector<8x128xf32>
      %383 = arith.index_cast %342 : i32 to index
      %c0_119 = arith.constant 0 : index
      %384 = vector.load %arg11[%383, %c0_119] : memref<64x128xf32, #tpu.memory_space<vmem>>, vector<8x128xf32>
      tpu.vector_store %arg11[%383, %c0_119], %382 {strides = array<i32>} : memref<64x128xf32, #tpu.memory_space<vmem>>, vector<8x128xf32>,
      %c8_i32_120 = arith.constant 8 : i32
    } else {
    }
    %c0_20 = arith.constant 0 : index
    %c0_21 = arith.constant 0 : index
    %22 = vector.load %arg11[%c0_20, %c0_21] : memref<64x128xf32, #tpu.memory_space<vmem>>, vector<64x128xf32>
    %23 = arith.truncf %22 : vector<64x128xf32> to vector<64x128xbf16>
    %c0_22 = arith.constant 0 : index
    %c0_23 = arith.constant 0 : index
    %24 = vector.load %arg8[%c0_22, %c0_23] : memref<64x128xbf16, #tpu.memory_space<vmem>>, vector<64x128xbf16>
    tpu.vector_store %arg8[%c0_22, %c0_23], %23 {strides = array<i32>} : memref<64x128xbf16, #tpu.memory_space<vmem>>, vector<64x128xbf16>,
    return
  }
  func.func @transform_0(%arg0: i32, %arg1: i32) -> (i32, i32) {
    %c2_i32 = arith.constant 2 : i32
    %0 = arith.muli %c2_i32, %arg1 : i32
    %c0_i32 = arith.constant 0 : i32
    %1 = arith.subi %c0_i32, %0 : i32
    %2 = arith.muli %arg0, %1 : i32
    %3 = arith.addi %arg1, %2 : i32
    %c0_i32_0 = arith.constant 0 : i32
    %c0_i32_1 = arith.constant 0 : i32
    return %3, %c0_i32_0 : i32, i32
  }
  func.func @transform_1(%arg0: i32, %arg1: i32) -> (i32, i32, i32) {
    %c0_i32 = arith.constant 0 : i32
    %c0_i32_0 = arith.constant 0 : i32
    %c0_i32_1 = arith.constant 0 : i32
    return %arg0, %c0_i32, %c0_i32_0 : i32, i32, i32
  }
  func.func @transform_2(%arg0: i32, %arg1: i32) -> (i32, i32, i32) {
    %c0_i32 = arith.constant 0 : i32
    %c0_i32_0 = arith.constant 0 : i32
    %c0_i32_1 = arith.constant 0 : i32
    return %arg0, %c0_i32, %c0_i32_0 : i32, i32, i32
  }
  func.func @transform_3(%arg0: i32, %arg1: i32) -> (i32, i32, i32) {
    %c0_i32 = arith.constant 0 : i32
    %c0_i32_0 = arith.constant 0 : i32
    %c0_i32_1 = arith.constant 0 : i32
    return %arg0, %c0_i32, %c0_i32_0 : i32, i32, i32
  }
  func.func @transform_4(%arg0: i32, %arg1: i32) -> (i32, i32, i32) {
    %c0_i32 = arith.constant 0 : i32
    %c0_i32_0 = arith.constant 0 : i32
    %c0_i32_1 = arith.constant 0 : i32
    return %arg0, %c0_i32, %c0_i32_0 : i32, i32, i32
  }
  func.func @transform_5(%arg0: i32, %arg1: i32) -> (i32, i32) {
    %c2_i32 = arith.constant 2 : i32
    %0 = arith.muli %c2_i32, %arg1 : i32
    %c0_i32 = arith.constant 0 : i32
    %1 = arith.subi %c0_i32, %0 : i32
    %2 = arith.muli %arg0, %1 : i32
    %3 = arith.addi %arg1, %2 : i32
    %c0_i32_0 = arith.constant 0 : i32
    %c0_i32_1 = arith.constant 0 : i32
    return %3, %c0_i32_0 : i32, i32
  }
  func.func @transform_6(%arg0: i32, %arg1: i32) -> (i32, i32) {
    %c2_i32 = arith.constant 2 : i32
    %0 = arith.muli %c2_i32, %arg1 : i32
    %c0_i32 = arith.constant 0 : i32
    %1 = arith.subi %c0_i32, %0 : i32
    %2 = arith.muli %arg0, %1 : i32
    %3 = arith.addi %arg1, %2 : i32
    %c0_i32_0 = arith.constant 0 : i32
    return %3, %arg0 : i32, i32
  }
}

module attributes {stable_mosaic.version = 11 : i64} {
  func.func @_bigru_layer_kernel(%arg0: i32, %arg1: i32, %arg2: memref<64x256xbf16, #tpu.memory_space<vmem>>, %arg3: memref<1x256x384xbf16, #tpu.memory_space<vmem>>, %arg4: memref<1x1x384xf32, #tpu.memory_space<vmem>>, %arg5: memref<1x128x384xbf16, #tpu.memory_space<vmem>>, %arg6: memref<1x1x128xf32, #tpu.memory_space<vmem>>, %arg7: memref<64x1xf32, #tpu.memory_space<vmem>>, %arg8: memref<64x128xbf16, #tpu.memory_space<vmem>>, %arg9: memref<8x128xf32, #tpu.memory_space<vmem>>, %arg10: memref<64x384xf32, #tpu.memory_space<vmem>>, %arg11: memref<64x128xf32, #tpu.memory_space<vmem>>) attributes {dimension_semantics = [#tpu.dimension_semantics<parallel>, #tpu.dimension_semantics<arbitrary>], iteration_bounds = array<i64: 2, 1>, scalar_prefetch = 0 : i64, scratch_operands = 3 : i64, tpu.core_type = #tpu.core_type<tc>, window_params = [{transform_indices = @transform_0, window_bounds = array<i64: 64, 256>}, {transform_indices = @transform_1, window_bounds = array<i64: 1, 256, 384>}, {transform_indices = @transform_2, window_bounds = array<i64: 1, 1, 384>}, {transform_indices = @transform_3, window_bounds = array<i64: 1, 128, 384>}, {transform_indices = @transform_4, window_bounds = array<i64: 1, 1, 128>}, {transform_indices = @transform_5, window_bounds = array<i64: 64, 1>}, {transform_indices = @transform_6, window_bounds = array<i64: 64, 128>}]} {
    %c0_i32 = arith.constant 0 : i32
    %0 = arith.cmpi eq, %arg1, %c0_i32 : i32
    %1 = arith.extui %0 : i1 to i32
    %c0_i32_0 = arith.constant 0 : i32
    %2 = arith.cmpi ne, %1, %c0_i32_0 : i32
    scf.if %2 {
      %cst_24 = arith.constant 0.000000e+00 : f32
      %25 = vector.broadcast %cst_24 : f32 to vector<8x128xf32>
      %c0_25 = arith.constant 0 : index
      %c0_26 = arith.constant 0 : index
      %26 = vector.load %arg9[%c0_25, %c0_26] : memref<8x128xf32, #tpu.memory_space<vmem>>, vector<8x128xf32>
      tpu.vector_store %arg9[%c0_25, %c0_26], %25 {strides = array<i32>} : memref<8x128xf32, #tpu.memory_space<vmem>>, vector<8x128xf32>,
    } else {
    }
    %c0 = arith.constant 0 : index
    %c0_1 = arith.constant 0 : index
    %3 = vector.load %arg2[%c0, %c0_1] : memref<64x256xbf16, #tpu.memory_space<vmem>>, vector<64x256xbf16>
    %c0_2 = arith.constant 0 : index
    %c0_3 = arith.constant 0 : index
    %c0_4 = arith.constant 0 : index
    %4 = vector.load %arg3[%c0_2, %c0_3, %c0_4] : memref<1x256x384xbf16, #tpu.memory_space<vmem>>, vector<1x256x384xbf16>
    %5 = vector.shape_cast %4 : vector<1x256x384xbf16> to vector<256x384xbf16>
    %cst = arith.constant dense<0.000000e+00> : vector<64x384xf32>
    %6 = tpu.matmul %3, %5, %cst {dimension_numbers = #tpu.dot_dimension_numbers<[1], [0], [0], [1], [0, 0, 1, 1], [], []>} : vector<64x256xbf16>, vector<256x384xbf16>, vector<64x384xf32> -> vector<64x384xf32>
    %c0_5 = arith.constant 0 : index
    %c0_6 = arith.constant 0 : index
    %c0_7 = arith.constant 0 : index
    %7 = vector.load %arg4[%c0_5, %c0_6, %c0_7] : memref<1x1x384xf32, #tpu.memory_space<vmem>>, vector<1x1x384xf32>
    %8 = vector.shape_cast %7 : vector<1x1x384xf32> to vector<1x384xf32>
    %9 = vector.broadcast %8 : vector<1x384xf32> to vector<64x384xf32>
    %10 = arith.addf %6, %9 : vector<64x384xf32>
    %c0_8 = arith.constant 0 : index
    %c0_9 = arith.constant 0 : index
    %11 = vector.load %arg10[%c0_8, %c0_9] : memref<64x384xf32, #tpu.memory_space<vmem>>, vector<64x384xf32>
    tpu.vector_store %arg10[%c0_8, %c0_9], %10 {strides = array<i32>} : memref<64x384xf32, #tpu.memory_space<vmem>>, vector<64x384xf32>,
    %c0_10 = arith.constant 0 : index
    %c0_11 = arith.constant 0 : index
    %c0_12 = arith.constant 0 : index
    %12 = vector.load %arg5[%c0_10, %c0_11, %c0_12] : memref<1x128x384xbf16, #tpu.memory_space<vmem>>, vector<1x128x384xbf16>
    %13 = vector.shape_cast %12 : vector<1x128x384xbf16> to vector<128x384xbf16>
    %c0_13 = arith.constant 0 : index
    %c0_14 = arith.constant 0 : index
    %c0_15 = arith.constant 0 : index
    %14 = vector.load %arg6[%c0_13, %c0_14, %c0_15] : memref<1x1x128xf32, #tpu.memory_space<vmem>>, vector<1x1x128xf32>
    %15 = vector.shape_cast %14 : vector<1x1x128xf32> to vector<1x128xf32>
    %c0_i32_16 = arith.constant 0 : i32
    %16 = arith.cmpi eq, %arg0, %c0_i32_16 : i32
    %17 = arith.extui %16 : i1 to i32
    %c0_i32_17 = arith.constant 0 : i32
    %18 = arith.cmpi ne, %17, %c0_i32_17 : i32
    scf.if %18 {
      %c0_i32_24 = arith.constant 0 : i32
      %c8_i32 = arith.constant 8 : i32
      %25 = arith.muli %c0_i32_24, %c8_i32 : i32
      %26 = tpu.assume_multiple %25, 8 : i32
      %27 = arith.index_cast %26 : i32 to index
      %c0_25 = arith.constant 0 : index
      %28 = vector.load %arg10[%27, %c0_25] : memref<64x384xf32, #tpu.memory_space<vmem>>, vector<8x384xf32>
      %29 = arith.index_cast %26 : i32 to index
      %c0_26 = arith.constant 0 : index
      %30 = vector.load %arg7[%29, %c0_26] : memref<64x1xf32, #tpu.memory_space<vmem>>, vector<8x1xf32>
      %c0_27 = arith.constant 0 : index
      %c0_28 = arith.constant 0 : index
      %31 = vector.load %arg9[%c0_27, %c0_28] : memref<8x128xf32, #tpu.memory_space<vmem>>, vector<8x128xf32>
      %32 = arith.truncf %31 : vector<8x128xf32> to vector<8x128xbf16>
      %cst_29 = arith.constant dense<0.000000e+00> : vector<8x384xf32>
      %33 = tpu.matmul %32, %13, %cst_29 {dimension_numbers = #tpu.dot_dimension_numbers<[1], [0], [0], [1], [0, 0, 1, 1], [], []>} : vector<8x128xbf16>, vector<128x384xbf16>, vector<8x384xf32> -> vector<8x384xf32>
      %34 = vector.extract_strided_slice %28 {offsets = [0, 0], sizes = [8, 128], strides = [1, 1]} : vector<8x384xf32> to vector<8x128xf32>
      %35 = vector.extract_strided_slice %33 {offsets = [0, 0], sizes = [8, 128], strides = [1, 1]} : vector<8x384xf32> to vector<8x128xf32>
      %36 = arith.addf %34, %35 : vector<8x128xf32>
      %37 = arith.negf %36 : vector<8x128xf32>
      %38 = math.exp %37 : vector<8x128xf32>
      %cst_30 = arith.constant 1.000000e+00 : f32
      %39 = vector.broadcast %cst_30 : f32 to vector<8x128xf32>
      %40 = arith.addf %39, %38 : vector<8x128xf32>
      %41 = arith.divf %39, %40 : vector<8x128xf32>
      %42 = vector.extract_strided_slice %28 {offsets = [0, 128], sizes = [8, 128], strides = [1, 1]} : vector<8x384xf32> to vector<8x128xf32>
      %43 = vector.extract_strided_slice %33 {offsets = [0, 128], sizes = [8, 128], strides = [1, 1]} : vector<8x384xf32> to vector<8x128xf32>
      %44 = arith.addf %42, %43 : vector<8x128xf32>
      %45 = arith.negf %44 : vector<8x128xf32>
      %46 = math.exp %45 : vector<8x128xf32>
      %cst_31 = arith.constant 1.000000e+00 : f32
      %47 = vector.broadcast %cst_31 : f32 to vector<8x128xf32>
      %48 = arith.addf %47, %46 : vector<8x128xf32>
      %49 = arith.divf %47, %48 : vector<8x128xf32>
      %50 = vector.extract_strided_slice %28 {offsets = [0, 256], sizes = [8, 128], strides = [1, 1]} : vector<8x384xf32> to vector<8x128xf32>
      %51 = vector.extract_strided_slice %33 {offsets = [0, 256], sizes = [8, 128], strides = [1, 1]} : vector<8x384xf32> to vector<8x128xf32>
      %52 = vector.broadcast %15 : vector<1x128xf32> to vector<8x128xf32>
      %53 = arith.addf %51, %52 : vector<8x128xf32>
      %54 = arith.mulf %41, %53 : vector<8x128xf32>
      %55 = arith.addf %50, %54 : vector<8x128xf32>
      %56 = math.tanh %55 : vector<8x128xf32>
      %57 = arith.subf %31, %56 : vector<8x128xf32>
      %58 = arith.mulf %49, %57 : vector<8x128xf32>
      %59 = arith.addf %56, %58 : vector<8x128xf32>
      %60 = arith.subf %59, %31 : vector<8x128xf32>
      %61 = vector.broadcast %30 : vector<8x1xf32> to vector<8x128xf32>
      %62 = arith.mulf %61, %60 : vector<8x128xf32>
      %63 = arith.addf %31, %62 : vector<8x128xf32>
      %c0_32 = arith.constant 0 : index
      %c0_33 = arith.constant 0 : index
      %64 = vector.load %arg9[%c0_32, %c0_33] : memref<8x128xf32, #tpu.memory_space<vmem>>, vector<8x128xf32>
      tpu.vector_store %arg9[%c0_32, %c0_33], %63 {strides = array<i32>} : memref<8x128xf32, #tpu.memory_space<vmem>>, vector<8x128xf32>,
      %65 = vector.broadcast %30 : vector<8x1xf32> to vector<8x128xf32>
      %66 = arith.mulf %65, %59 : vector<8x128xf32>
      %67 = arith.index_cast %26 : i32 to index
      %c0_34 = arith.constant 0 : index
      %68 = vector.load %arg11[%67, %c0_34] : memref<64x128xf32, #tpu.memory_space<vmem>>, vector<8x128xf32>
      tpu.vector_store %arg11[%67, %c0_34], %66 {strides = array<i32>} : memref<64x128xf32, #tpu.memory_space<vmem>>, vector<8x128xf32>,
      %c1_i32 = arith.constant 1 : i32
      %c8_i32_35 = arith.constant 8 : i32
      %69 = arith.muli %c1_i32, %c8_i32_35 : i32
      %70 = tpu.assume_multiple %69, 8 : i32
      %71 = arith.index_cast %70 : i32 to index
      %c0_36 = arith.constant 0 : index
      %72 = vector.load %arg10[%71, %c0_36] : memref<64x384xf32, #tpu.memory_space<vmem>>, vector<8x384xf32>
      %73 = arith.index_cast %70 : i32 to index
      %c0_37 = arith.constant 0 : index
      %74 = vector.load %arg7[%73, %c0_37] : memref<64x1xf32, #tpu.memory_space<vmem>>, vector<8x1xf32>
      %c0_38 = arith.constant 0 : index
      %c0_39 = arith.constant 0 : index
      %75 = vector.load %arg9[%c0_38, %c0_39] : memref<8x128xf32, #tpu.memory_space<vmem>>, vector<8x128xf32>
      %76 = arith.truncf %75 : vector<8x128xf32> to vector<8x128xbf16>
      %cst_40 = arith.constant dense<0.000000e+00> : vector<8x384xf32>
      %77 = tpu.matmul %76, %13, %cst_40 {dimension_numbers = #tpu.dot_dimension_numbers<[1], [0], [0], [1], [0, 0, 1, 1], [], []>} : vector<8x128xbf16>, vector<128x384xbf16>, vector<8x384xf32> -> vector<8x384xf32>
      %78 = vector.extract_strided_slice %72 {offsets = [0, 0], sizes = [8, 128], strides = [1, 1]} : vector<8x384xf32> to vector<8x128xf32>
      %79 = vector.extract_strided_slice %77 {offsets = [0, 0], sizes = [8, 128], strides = [1, 1]} : vector<8x384xf32> to vector<8x128xf32>
      %80 = arith.addf %78, %79 : vector<8x128xf32>
      %81 = arith.negf %80 : vector<8x128xf32>
      %82 = math.exp %81 : vector<8x128xf32>
      %cst_41 = arith.constant 1.000000e+00 : f32
      %83 = vector.broadcast %cst_41 : f32 to vector<8x128xf32>
      %84 = arith.addf %83, %82 : vector<8x128xf32>
      %85 = arith.divf %83, %84 : vector<8x128xf32>
      %86 = vector.extract_strided_slice %72 {offsets = [0, 128], sizes = [8, 128], strides = [1, 1]} : vector<8x384xf32> to vector<8x128xf32>
      %87 = vector.extract_strided_slice %77 {offsets = [0, 128], sizes = [8, 128], strides = [1, 1]} : vector<8x384xf32> to vector<8x128xf32>
      %88 = arith.addf %86, %87 : vector<8x128xf32>
      %89 = arith.negf %88 : vector<8x128xf32>
      %90 = math.exp %89 : vector<8x128xf32>
      %cst_42 = arith.constant 1.000000e+00 : f32
      %91 = vector.broadcast %cst_42 : f32 to vector<8x128xf32>
      %92 = arith.addf %91, %90 : vector<8x128xf32>
      %93 = arith.divf %91, %92 : vector<8x128xf32>
      %94 = vector.extract_strided_slice %72 {offsets = [0, 256], sizes = [8, 128], strides = [1, 1]} : vector<8x384xf32> to vector<8x128xf32>
      %95 = vector.extract_strided_slice %77 {offsets = [0, 256], sizes = [8, 128], strides = [1, 1]} : vector<8x384xf32> to vector<8x128xf32>
      %96 = vector.broadcast %15 : vector<1x128xf32> to vector<8x128xf32>
      %97 = arith.addf %95, %96 : vector<8x128xf32>
      %98 = arith.mulf %85, %97 : vector<8x128xf32>
      %99 = arith.addf %94, %98 : vector<8x128xf32>
      %100 = math.tanh %99 : vector<8x128xf32>
      %101 = arith.subf %75, %100 : vector<8x128xf32>
      %102 = arith.mulf %93, %101 : vector<8x128xf32>
      %103 = arith.addf %100, %102 : vector<8x128xf32>
      %104 = arith.subf %103, %75 : vector<8x128xf32>
      %105 = vector.broadcast %74 : vector<8x1xf32> to vector<8x128xf32>
      %106 = arith.mulf %105, %104 : vector<8x128xf32>
      %107 = arith.addf %75, %106 : vector<8x128xf32>
      %c0_43 = arith.constant 0 : index
      %c0_44 = arith.constant 0 : index
      %108 = vector.load %arg9[%c0_43, %c0_44] : memref<8x128xf32, #tpu.memory_space<vmem>>, vector<8x128xf32>
      tpu.vector_store %arg9[%c0_43, %c0_44], %107 {strides = array<i32>} : memref<8x128xf32, #tpu.memory_space<vmem>>, vector<8x128xf32>,
      %109 = vector.broadcast %74 : vector<8x1xf32> to vector<8x128xf32>
      %110 = arith.mulf %109, %103 : vector<8x128xf32>
      %111 = arith.index_cast %70 : i32 to index
      %c0_45 = arith.constant 0 : index
      %112 = vector.load %arg11[%111, %c0_45] : memref<64x128xf32, #tpu.memory_space<vmem>>, vector<8x128xf32>
      tpu.vector_store %arg11[%111, %c0_45], %110 {strides = array<i32>} : memref<64x128xf32, #tpu.memory_space<vmem>>, vector<8x128xf32>,
      %c2_i32 = arith.constant 2 : i32
      %c8_i32_46 = arith.constant 8 : i32
      %113 = arith.muli %c2_i32, %c8_i32_46 : i32
      %114 = tpu.assume_multiple %113, 8 : i32
      %115 = arith.index_cast %114 : i32 to index
      %c0_47 = arith.constant 0 : index
      %116 = vector.load %arg10[%115, %c0_47] : memref<64x384xf32, #tpu.memory_space<vmem>>, vector<8x384xf32>
      %117 = arith.index_cast %114 : i32 to index
      %c0_48 = arith.constant 0 : index
      %118 = vector.load %arg7[%117, %c0_48] : memref<64x1xf32, #tpu.memory_space<vmem>>, vector<8x1xf32>
      %c0_49 = arith.constant 0 : index
      %c0_50 = arith.constant 0 : index
      %119 = vector.load %arg9[%c0_49, %c0_50] : memref<8x128xf32, #tpu.memory_space<vmem>>, vector<8x128xf32>
      %120 = arith.truncf %119 : vector<8x128xf32> to vector<8x128xbf16>
      %cst_51 = arith.constant dense<0.000000e+00> : vector<8x384xf32>
      %121 = tpu.matmul %120, %13, %cst_51 {dimension_numbers = #tpu.dot_dimension_numbers<[1], [0], [0], [1], [0, 0, 1, 1], [], []>} : vector<8x128xbf16>, vector<128x384xbf16>, vector<8x384xf32> -> vector<8x384xf32>
      %122 = vector.extract_strided_slice %116 {offsets = [0, 0], sizes = [8, 128], strides = [1, 1]} : vector<8x384xf32> to vector<8x128xf32>
      %123 = vector.extract_strided_slice %121 {offsets = [0, 0], sizes = [8, 128], strides = [1, 1]} : vector<8x384xf32> to vector<8x128xf32>
      %124 = arith.addf %122, %123 : vector<8x128xf32>
      %125 = arith.negf %124 : vector<8x128xf32>
      %126 = math.exp %125 : vector<8x128xf32>
      %cst_52 = arith.constant 1.000000e+00 : f32
      %127 = vector.broadcast %cst_52 : f32 to vector<8x128xf32>
      %128 = arith.addf %127, %126 : vector<8x128xf32>
      %129 = arith.divf %127, %128 : vector<8x128xf32>
      %130 = vector.extract_strided_slice %116 {offsets = [0, 128], sizes = [8, 128], strides = [1, 1]} : vector<8x384xf32> to vector<8x128xf32>
      %131 = vector.extract_strided_slice %121 {offsets = [0, 128], sizes = [8, 128], strides = [1, 1]} : vector<8x384xf32> to vector<8x128xf32>
      %132 = arith.addf %130, %131 : vector<8x128xf32>
      %133 = arith.negf %132 : vector<8x128xf32>
      %134 = math.exp %133 : vector<8x128xf32>
      %cst_53 = arith.constant 1.000000e+00 : f32
      %135 = vector.broadcast %cst_53 : f32 to vector<8x128xf32>
      %136 = arith.addf %135, %134 : vector<8x128xf32>
      %137 = arith.divf %135, %136 : vector<8x128xf32>
      %138 = vector.extract_strided_slice %116 {offsets = [0, 256], sizes = [8, 128], strides = [1, 1]} : vector<8x384xf32> to vector<8x128xf32>
      %139 = vector.extract_strided_slice %121 {offsets = [0, 256], sizes = [8, 128], strides = [1, 1]} : vector<8x384xf32> to vector<8x128xf32>
      %140 = vector.broadcast %15 : vector<1x128xf32> to vector<8x128xf32>
      %141 = arith.addf %139, %140 : vector<8x128xf32>
      %142 = arith.mulf %129, %141 : vector<8x128xf32>
      %143 = arith.addf %138, %142 : vector<8x128xf32>
      %144 = math.tanh %143 : vector<8x128xf32>
      %145 = arith.subf %119, %144 : vector<8x128xf32>
      %146 = arith.mulf %137, %145 : vector<8x128xf32>
      %147 = arith.addf %144, %146 : vector<8x128xf32>
      %148 = arith.subf %147, %119 : vector<8x128xf32>
      %149 = vector.broadcast %118 : vector<8x1xf32> to vector<8x128xf32>
      %150 = arith.mulf %149, %148 : vector<8x128xf32>
      %151 = arith.addf %119, %150 : vector<8x128xf32>
      %c0_54 = arith.constant 0 : index
      %c0_55 = arith.constant 0 : index
      %152 = vector.load %arg9[%c0_54, %c0_55] : memref<8x128xf32, #tpu.memory_space<vmem>>, vector<8x128xf32>
      tpu.vector_store %arg9[%c0_54, %c0_55], %151 {strides = array<i32>} : memref<8x128xf32, #tpu.memory_space<vmem>>, vector<8x128xf32>,
      %153 = vector.broadcast %118 : vector<8x1xf32> to vector<8x128xf32>
      %154 = arith.mulf %153, %147 : vector<8x128xf32>
      %155 = arith.index_cast %114 : i32 to index
      %c0_56 = arith.constant 0 : index
      %156 = vector.load %arg11[%155, %c0_56] : memref<64x128xf32, #tpu.memory_space<vmem>>, vector<8x128xf32>
      tpu.vector_store %arg11[%155, %c0_56], %154 {strides = array<i32>} : memref<64x128xf32, #tpu.memory_space<vmem>>, vector<8x128xf32>,
      %c3_i32 = arith.constant 3 : i32
      %c8_i32_57 = arith.constant 8 : i32
      %157 = arith.muli %c3_i32, %c8_i32_57 : i32
      %158 = tpu.assume_multiple %157, 8 : i32
      %159 = arith.index_cast %158 : i32 to index
      %c0_58 = arith.constant 0 : index
      %160 = vector.load %arg10[%159, %c0_58] : memref<64x384xf32, #tpu.memory_space<vmem>>, vector<8x384xf32>
      %161 = arith.index_cast %158 : i32 to index
      %c0_59 = arith.constant 0 : index
      %162 = vector.load %arg7[%161, %c0_59] : memref<64x1xf32, #tpu.memory_space<vmem>>, vector<8x1xf32>
      %c0_60 = arith.constant 0 : index
      %c0_61 = arith.constant 0 : index
      %163 = vector.load %arg9[%c0_60, %c0_61] : memref<8x128xf32, #tpu.memory_space<vmem>>, vector<8x128xf32>
      %164 = arith.truncf %163 : vector<8x128xf32> to vector<8x128xbf16>
      %cst_62 = arith.constant dense<0.000000e+00> : vector<8x384xf32>
      %165 = tpu.matmul %164, %13, %cst_62 {dimension_numbers = #tpu.dot_dimension_numbers<[1], [0], [0], [1], [0, 0, 1, 1], [], []>} : vector<8x128xbf16>, vector<128x384xbf16>, vector<8x384xf32> -> vector<8x384xf32>
      %166 = vector.extract_strided_slice %160 {offsets = [0, 0], sizes = [8, 128], strides = [1, 1]} : vector<8x384xf32> to vector<8x128xf32>
      %167 = vector.extract_strided_slice %165 {offsets = [0, 0], sizes = [8, 128], strides = [1, 1]} : vector<8x384xf32> to vector<8x128xf32>
      %168 = arith.addf %166, %167 : vector<8x128xf32>
      %169 = arith.negf %168 : vector<8x128xf32>
      %170 = math.exp %169 : vector<8x128xf32>
      %cst_63 = arith.constant 1.000000e+00 : f32
      %171 = vector.broadcast %cst_63 : f32 to vector<8x128xf32>
      %172 = arith.addf %171, %170 : vector<8x128xf32>
      %173 = arith.divf %171, %172 : vector<8x128xf32>
      %174 = vector.extract_strided_slice %160 {offsets = [0, 128], sizes = [8, 128], strides = [1, 1]} : vector<8x384xf32> to vector<8x128xf32>
      %175 = vector.extract_strided_slice %165 {offsets = [0, 128], sizes = [8, 128], strides = [1, 1]} : vector<8x384xf32> to vector<8x128xf32>
      %176 = arith.addf %174, %175 : vector<8x128xf32>
      %177 = arith.negf %176 : vector<8x128xf32>
      %178 = math.exp %177 : vector<8x128xf32>
      %cst_64 = arith.constant 1.000000e+00 : f32
      %179 = vector.broadcast %cst_64 : f32 to vector<8x128xf32>
      %180 = arith.addf %179, %178 : vector<8x128xf32>
      %181 = arith.divf %179, %180 : vector<8x128xf32>
      %182 = vector.extract_strided_slice %160 {offsets = [0, 256], sizes = [8, 128], strides = [1, 1]} : vector<8x384xf32> to vector<8x128xf32>
      %183 = vector.extract_strided_slice %165 {offsets = [0, 256], sizes = [8, 128], strides = [1, 1]} : vector<8x384xf32> to vector<8x128xf32>
      %184 = vector.broadcast %15 : vector<1x128xf32> to vector<8x128xf32>
      %185 = arith.addf %183, %184 : vector<8x128xf32>
      %186 = arith.mulf %173, %185 : vector<8x128xf32>
      %187 = arith.addf %182, %186 : vector<8x128xf32>
      %188 = math.tanh %187 : vector<8x128xf32>
      %189 = arith.subf %163, %188 : vector<8x128xf32>
      %190 = arith.mulf %181, %189 : vector<8x128xf32>
      %191 = arith.addf %188, %190 : vector<8x128xf32>
      %192 = arith.subf %191, %163 : vector<8x128xf32>
      %193 = vector.broadcast %162 : vector<8x1xf32> to vector<8x128xf32>
      %194 = arith.mulf %193, %192 : vector<8x128xf32>
      %195 = arith.addf %163, %194 : vector<8x128xf32>
      %c0_65 = arith.constant 0 : index
      %c0_66 = arith.constant 0 : index
      %196 = vector.load %arg9[%c0_65, %c0_66] : memref<8x128xf32, #tpu.memory_space<vmem>>, vector<8x128xf32>
      tpu.vector_store %arg9[%c0_65, %c0_66], %195 {strides = array<i32>} : memref<8x128xf32, #tpu.memory_space<vmem>>, vector<8x128xf32>,
      %197 = vector.broadcast %162 : vector<8x1xf32> to vector<8x128xf32>
      %198 = arith.mulf %197, %191 : vector<8x128xf32>
      %199 = arith.index_cast %158 : i32 to index
      %c0_67 = arith.constant 0 : index
      %200 = vector.load %arg11[%199, %c0_67] : memref<64x128xf32, #tpu.memory_space<vmem>>, vector<8x128xf32>
      tpu.vector_store %arg11[%199, %c0_67], %198 {strides = array<i32>} : memref<64x128xf32, #tpu.memory_space<vmem>>, vector<8x128xf32>,
      %c4_i32 = arith.constant 4 : i32
      %c8_i32_68 = arith.constant 8 : i32
      %201 = arith.muli %c4_i32, %c8_i32_68 : i32
      %202 = tpu.assume_multiple %201, 8 : i32
      %203 = arith.index_cast %202 : i32 to index
      %c0_69 = arith.constant 0 : index
      %204 = vector.load %arg10[%203, %c0_69] : memref<64x384xf32, #tpu.memory_space<vmem>>, vector<8x384xf32>
      %205 = arith.index_cast %202 : i32 to index
      %c0_70 = arith.constant 0 : index
      %206 = vector.load %arg7[%205, %c0_70] : memref<64x1xf32, #tpu.memory_space<vmem>>, vector<8x1xf32>
      %c0_71 = arith.constant 0 : index
      %c0_72 = arith.constant 0 : index
      %207 = vector.load %arg9[%c0_71, %c0_72] : memref<8x128xf32, #tpu.memory_space<vmem>>, vector<8x128xf32>
      %208 = arith.truncf %207 : vector<8x128xf32> to vector<8x128xbf16>
      %cst_73 = arith.constant dense<0.000000e+00> : vector<8x384xf32>
      %209 = tpu.matmul %208, %13, %cst_73 {dimension_numbers = #tpu.dot_dimension_numbers<[1], [0], [0], [1], [0, 0, 1, 1], [], []>} : vector<8x128xbf16>, vector<128x384xbf16>, vector<8x384xf32> -> vector<8x384xf32>
      %210 = vector.extract_strided_slice %204 {offsets = [0, 0], sizes = [8, 128], strides = [1, 1]} : vector<8x384xf32> to vector<8x128xf32>
      %211 = vector.extract_strided_slice %209 {offsets = [0, 0], sizes = [8, 128], strides = [1, 1]} : vector<8x384xf32> to vector<8x128xf32>
      %212 = arith.addf %210, %211 : vector<8x128xf32>
      %213 = arith.negf %212 : vector<8x128xf32>
      %214 = math.exp %213 : vector<8x128xf32>
      %cst_74 = arith.constant 1.000000e+00 : f32
      %215 = vector.broadcast %cst_74 : f32 to vector<8x128xf32>
      %216 = arith.addf %215, %214 : vector<8x128xf32>
      %217 = arith.divf %215, %216 : vector<8x128xf32>
      %218 = vector.extract_strided_slice %204 {offsets = [0, 128], sizes = [8, 128], strides = [1, 1]} : vector<8x384xf32> to vector<8x128xf32>
      %219 = vector.extract_strided_slice %209 {offsets = [0, 128], sizes = [8, 128], strides = [1, 1]} : vector<8x384xf32> to vector<8x128xf32>
      %220 = arith.addf %218, %219 : vector<8x128xf32>
      %221 = arith.negf %220 : vector<8x128xf32>
      %222 = math.exp %221 : vector<8x128xf32>
      %cst_75 = arith.constant 1.000000e+00 : f32
      %223 = vector.broadcast %cst_75 : f32 to vector<8x128xf32>
      %224 = arith.addf %223, %222 : vector<8x128xf32>
      %225 = arith.divf %223, %224 : vector<8x128xf32>
      %226 = vector.extract_strided_slice %204 {offsets = [0, 256], sizes = [8, 128], strides = [1, 1]} : vector<8x384xf32> to vector<8x128xf32>
      %227 = vector.extract_strided_slice %209 {offsets = [0, 256], sizes = [8, 128], strides = [1, 1]} : vector<8x384xf32> to vector<8x128xf32>
      %228 = vector.broadcast %15 : vector<1x128xf32> to vector<8x128xf32>
      %229 = arith.addf %227, %228 : vector<8x128xf32>
      %230 = arith.mulf %217, %229 : vector<8x128xf32>
      %231 = arith.addf %226, %230 : vector<8x128xf32>
      %232 = math.tanh %231 : vector<8x128xf32>
      %233 = arith.subf %207, %232 : vector<8x128xf32>
      %234 = arith.mulf %225, %233 : vector<8x128xf32>
      %235 = arith.addf %232, %234 : vector<8x128xf32>
      %236 = arith.subf %235, %207 : vector<8x128xf32>
      %237 = vector.broadcast %206 : vector<8x1xf32> to vector<8x128xf32>
      %238 = arith.mulf %237, %236 : vector<8x128xf32>
      %239 = arith.addf %207, %238 : vector<8x128xf32>
      %c0_76 = arith.constant 0 : index
      %c0_77 = arith.constant 0 : index
      %240 = vector.load %arg9[%c0_76, %c0_77] : memref<8x128xf32, #tpu.memory_space<vmem>>, vector<8x128xf32>
      tpu.vector_store %arg9[%c0_76, %c0_77], %239 {strides = array<i32>} : memref<8x128xf32, #tpu.memory_space<vmem>>, vector<8x128xf32>,
      %241 = vector.broadcast %206 : vector<8x1xf32> to vector<8x128xf32>
      %242 = arith.mulf %241, %235 : vector<8x128xf32>
      %243 = arith.index_cast %202 : i32 to index
      %c0_78 = arith.constant 0 : index
      %244 = vector.load %arg11[%243, %c0_78] : memref<64x128xf32, #tpu.memory_space<vmem>>, vector<8x128xf32>
      tpu.vector_store %arg11[%243, %c0_78], %242 {strides = array<i32>} : memref<64x128xf32, #tpu.memory_space<vmem>>, vector<8x128xf32>,
      %c5_i32 = arith.constant 5 : i32
      %c8_i32_79 = arith.constant 8 : i32
      %245 = arith.muli %c5_i32, %c8_i32_79 : i32
      %246 = tpu.assume_multiple %245, 8 : i32
      %247 = arith.index_cast %246 : i32 to index
      %c0_80 = arith.constant 0 : index
      %248 = vector.load %arg10[%247, %c0_80] : memref<64x384xf32, #tpu.memory_space<vmem>>, vector<8x384xf32>
      %249 = arith.index_cast %246 : i32 to index
      %c0_81 = arith.constant 0 : index
      %250 = vector.load %arg7[%249, %c0_81] : memref<64x1xf32, #tpu.memory_space<vmem>>, vector<8x1xf32>
      %c0_82 = arith.constant 0 : index
      %c0_83 = arith.constant 0 : index
      %251 = vector.load %arg9[%c0_82, %c0_83] : memref<8x128xf32, #tpu.memory_space<vmem>>, vector<8x128xf32>
      %252 = arith.truncf %251 : vector<8x128xf32> to vector<8x128xbf16>
      %cst_84 = arith.constant dense<0.000000e+00> : vector<8x384xf32>
      %253 = tpu.matmul %252, %13, %cst_84 {dimension_numbers = #tpu.dot_dimension_numbers<[1], [0], [0], [1], [0, 0, 1, 1], [], []>} : vector<8x128xbf16>, vector<128x384xbf16>, vector<8x384xf32> -> vector<8x384xf32>
      %254 = vector.extract_strided_slice %248 {offsets = [0, 0], sizes = [8, 128], strides = [1, 1]} : vector<8x384xf32> to vector<8x128xf32>
      %255 = vector.extract_strided_slice %253 {offsets = [0, 0], sizes = [8, 128], strides = [1, 1]} : vector<8x384xf32> to vector<8x128xf32>
      %256 = arith.addf %254, %255 : vector<8x128xf32>
      %257 = arith.negf %256 : vector<8x128xf32>
      %258 = math.exp %257 : vector<8x128xf32>
      %cst_85 = arith.constant 1.000000e+00 : f32
      %259 = vector.broadcast %cst_85 : f32 to vector<8x128xf32>
      %260 = arith.addf %259, %258 : vector<8x128xf32>
      %261 = arith.divf %259, %260 : vector<8x128xf32>
      %262 = vector.extract_strided_slice %248 {offsets = [0, 128], sizes = [8, 128], strides = [1, 1]} : vector<8x384xf32> to vector<8x128xf32>
      %263 = vector.extract_strided_slice %253 {offsets = [0, 128], sizes = [8, 128], strides = [1, 1]} : vector<8x384xf32> to vector<8x128xf32>
      %264 = arith.addf %262, %263 : vector<8x128xf32>
      %265 = arith.negf %264 : vector<8x128xf32>
      %266 = math.exp %265 : vector<8x128xf32>
      %cst_86 = arith.constant 1.000000e+00 : f32
      %267 = vector.broadcast %cst_86 : f32 to vector<8x128xf32>
      %268 = arith.addf %267, %266 : vector<8x128xf32>
      %269 = arith.divf %267, %268 : vector<8x128xf32>
      %270 = vector.extract_strided_slice %248 {offsets = [0, 256], sizes = [8, 128], strides = [1, 1]} : vector<8x384xf32> to vector<8x128xf32>
      %271 = vector.extract_strided_slice %253 {offsets = [0, 256], sizes = [8, 128], strides = [1, 1]} : vector<8x384xf32> to vector<8x128xf32>
      %272 = vector.broadcast %15 : vector<1x128xf32> to vector<8x128xf32>
      %273 = arith.addf %271, %272 : vector<8x128xf32>
      %274 = arith.mulf %261, %273 : vector<8x128xf32>
      %275 = arith.addf %270, %274 : vector<8x128xf32>
      %276 = math.tanh %275 : vector<8x128xf32>
      %277 = arith.subf %251, %276 : vector<8x128xf32>
      %278 = arith.mulf %269, %277 : vector<8x128xf32>
      %279 = arith.addf %276, %278 : vector<8x128xf32>
      %280 = arith.subf %279, %251 : vector<8x128xf32>
      %281 = vector.broadcast %250 : vector<8x1xf32> to vector<8x128xf32>
      %282 = arith.mulf %281, %280 : vector<8x128xf32>
      %283 = arith.addf %251, %282 : vector<8x128xf32>
      %c0_87 = arith.constant 0 : index
      %c0_88 = arith.constant 0 : index
      %284 = vector.load %arg9[%c0_87, %c0_88] : memref<8x128xf32, #tpu.memory_space<vmem>>, vector<8x128xf32>
      tpu.vector_store %arg9[%c0_87, %c0_88], %283 {strides = array<i32>} : memref<8x128xf32, #tpu.memory_space<vmem>>, vector<8x128xf32>,
      %285 = vector.broadcast %250 : vector<8x1xf32> to vector<8x128xf32>
      %286 = arith.mulf %285, %279 : vector<8x128xf32>
      %287 = arith.index_cast %246 : i32 to index
      %c0_89 = arith.constant 0 : index
      %288 = vector.load %arg11[%287, %c0_89] : memref<64x128xf32, #tpu.memory_space<vmem>>, vector<8x128xf32>
      tpu.vector_store %arg11[%287, %c0_89], %286 {strides = array<i32>} : memref<64x128xf32, #tpu.memory_space<vmem>>, vector<8x128xf32>,
      %c6_i32 = arith.constant 6 : i32
      %c8_i32_90 = arith.constant 8 : i32
      %289 = arith.muli %c6_i32, %c8_i32_90 : i32
      %290 = tpu.assume_multiple %289, 8 : i32
      %291 = arith.index_cast %290 : i32 to index
      %c0_91 = arith.constant 0 : index
      %292 = vector.load %arg10[%291, %c0_91] : memref<64x384xf32, #tpu.memory_space<vmem>>, vector<8x384xf32>
      %293 = arith.index_cast %290 : i32 to index
      %c0_92 = arith.constant 0 : index
      %294 = vector.load %arg7[%293, %c0_92] : memref<64x1xf32, #tpu.memory_space<vmem>>, vector<8x1xf32>
      %c0_93 = arith.constant 0 : index
      %c0_94 = arith.constant 0 : index
      %295 = vector.load %arg9[%c0_93, %c0_94] : memref<8x128xf32, #tpu.memory_space<vmem>>, vector<8x128xf32>
      %296 = arith.truncf %295 : vector<8x128xf32> to vector<8x128xbf16>
      %cst_95 = arith.constant dense<0.000000e+00> : vector<8x384xf32>
      %297 = tpu.matmul %296, %13, %cst_95 {dimension_numbers = #tpu.dot_dimension_numbers<[1], [0], [0], [1], [0, 0, 1, 1], [], []>} : vector<8x128xbf16>, vector<128x384xbf16>, vector<8x384xf32> -> vector<8x384xf32>
      %298 = vector.extract_strided_slice %292 {offsets = [0, 0], sizes = [8, 128], strides = [1, 1]} : vector<8x384xf32> to vector<8x128xf32>
      %299 = vector.extract_strided_slice %297 {offsets = [0, 0], sizes = [8, 128], strides = [1, 1]} : vector<8x384xf32> to vector<8x128xf32>
      %300 = arith.addf %298, %299 : vector<8x128xf32>
      %301 = arith.negf %300 : vector<8x128xf32>
      %302 = math.exp %301 : vector<8x128xf32>
      %cst_96 = arith.constant 1.000000e+00 : f32
      %303 = vector.broadcast %cst_96 : f32 to vector<8x128xf32>
      %304 = arith.addf %303, %302 : vector<8x128xf32>
      %305 = arith.divf %303, %304 : vector<8x128xf32>
      %306 = vector.extract_strided_slice %292 {offsets = [0, 128], sizes = [8, 128], strides = [1, 1]} : vector<8x384xf32> to vector<8x128xf32>
      %307 = vector.extract_strided_slice %297 {offsets = [0, 128], sizes = [8, 128], strides = [1, 1]} : vector<8x384xf32> to vector<8x128xf32>
      %308 = arith.addf %306, %307 : vector<8x128xf32>
      %309 = arith.negf %308 : vector<8x128xf32>
      %310 = math.exp %309 : vector<8x128xf32>
      %cst_97 = arith.constant 1.000000e+00 : f32
      %311 = vector.broadcast %cst_97 : f32 to vector<8x128xf32>
      %312 = arith.addf %311, %310 : vector<8x128xf32>
      %313 = arith.divf %311, %312 : vector<8x128xf32>
      %314 = vector.extract_strided_slice %292 {offsets = [0, 256], sizes = [8, 128], strides = [1, 1]} : vector<8x384xf32> to vector<8x128xf32>
      %315 = vector.extract_strided_slice %297 {offsets = [0, 256], sizes = [8, 128], strides = [1, 1]} : vector<8x384xf32> to vector<8x128xf32>
      %316 = vector.broadcast %15 : vector<1x128xf32> to vector<8x128xf32>
      %317 = arith.addf %315, %316 : vector<8x128xf32>
      %318 = arith.mulf %305, %317 : vector<8x128xf32>
      %319 = arith.addf %314, %318 : vector<8x128xf32>
      %320 = math.tanh %319 : vector<8x128xf32>
      %321 = arith.subf %295, %320 : vector<8x128xf32>
      %322 = arith.mulf %313, %321 : vector<8x128xf32>
      %323 = arith.addf %320, %322 : vector<8x128xf32>
      %324 = arith.subf %323, %295 : vector<8x128xf32>
      %325 = vector.broadcast %294 : vector<8x1xf32> to vector<8x128xf32>
      %326 = arith.mulf %325, %324 : vector<8x128xf32>
      %327 = arith.addf %295, %326 : vector<8x128xf32>
      %c0_98 = arith.constant 0 : index
      %c0_99 = arith.constant 0 : index
      %328 = vector.load %arg9[%c0_98, %c0_99] : memref<8x128xf32, #tpu.memory_space<vmem>>, vector<8x128xf32>
      tpu.vector_store %arg9[%c0_98, %c0_99], %327 {strides = array<i32>} : memref<8x128xf32, #tpu.memory_space<vmem>>, vector<8x128xf32>,
      %329 = vector.broadcast %294 : vector<8x1xf32> to vector<8x128xf32>
      %330 = arith.mulf %329, %323 : vector<8x128xf32>
      %331 = arith.index_cast %290 : i32 to index
      %c0_100 = arith.constant 0 : index
      %332 = vector.load %arg11[%331, %c0_100] : memref<64x128xf32, #tpu.memory_space<vmem>>, vector<8x128xf32>
      tpu.vector_store %arg11[%331, %c0_100], %330 {strides = array<i32>} : memref<64x128xf32, #tpu.memory_space<vmem>>, vector<8x128xf32>,
      %c7_i32 = arith.constant 7 : i32
      %c8_i32_101 = arith.constant 8 : i32
      %333 = arith.muli %c7_i32, %c8_i32_101 : i32
      %334 = tpu.assume_multiple %333, 8 : i32
      %335 = arith.index_cast %334 : i32 to index
      %c0_102 = arith.constant 0 : index
      %336 = vector.load %arg10[%335, %c0_102] : memref<64x384xf32, #tpu.memory_space<vmem>>, vector<8x384xf32>
      %337 = arith.index_cast %334 : i32 to index
      %c0_103 = arith.constant 0 : index
      %338 = vector.load %arg7[%337, %c0_103] : memref<64x1xf32, #tpu.memory_space<vmem>>, vector<8x1xf32>
      %c0_104 = arith.constant 0 : index
      %c0_105 = arith.constant 0 : index
      %339 = vector.load %arg9[%c0_104, %c0_105] : memref<8x128xf32, #tpu.memory_space<vmem>>, vector<8x128xf32>
      %340 = arith.truncf %339 : vector<8x128xf32> to vector<8x128xbf16>
      %cst_106 = arith.constant dense<0.000000e+00> : vector<8x384xf32>
      %341 = tpu.matmul %340, %13, %cst_106 {dimension_numbers = #tpu.dot_dimension_numbers<[1], [0], [0], [1], [0, 0, 1, 1], [], []>} : vector<8x128xbf16>, vector<128x384xbf16>, vector<8x384xf32> -> vector<8x384xf32>
      %342 = vector.extract_strided_slice %336 {offsets = [0, 0], sizes = [8, 128], strides = [1, 1]} : vector<8x384xf32> to vector<8x128xf32>
      %343 = vector.extract_strided_slice %341 {offsets = [0, 0], sizes = [8, 128], strides = [1, 1]} : vector<8x384xf32> to vector<8x128xf32>
      %344 = arith.addf %342, %343 : vector<8x128xf32>
      %345 = arith.negf %344 : vector<8x128xf32>
      %346 = math.exp %345 : vector<8x128xf32>
      %cst_107 = arith.constant 1.000000e+00 : f32
      %347 = vector.broadcast %cst_107 : f32 to vector<8x128xf32>
      %348 = arith.addf %347, %346 : vector<8x128xf32>
      %349 = arith.divf %347, %348 : vector<8x128xf32>
      %350 = vector.extract_strided_slice %336 {offsets = [0, 128], sizes = [8, 128], strides = [1, 1]} : vector<8x384xf32> to vector<8x128xf32>
      %351 = vector.extract_strided_slice %341 {offsets = [0, 128], sizes = [8, 128], strides = [1, 1]} : vector<8x384xf32> to vector<8x128xf32>
      %352 = arith.addf %350, %351 : vector<8x128xf32>
      %353 = arith.negf %352 : vector<8x128xf32>
      %354 = math.exp %353 : vector<8x128xf32>
      %cst_108 = arith.constant 1.000000e+00 : f32
      %355 = vector.broadcast %cst_108 : f32 to vector<8x128xf32>
      %356 = arith.addf %355, %354 : vector<8x128xf32>
      %357 = arith.divf %355, %356 : vector<8x128xf32>
      %358 = vector.extract_strided_slice %336 {offsets = [0, 256], sizes = [8, 128], strides = [1, 1]} : vector<8x384xf32> to vector<8x128xf32>
      %359 = vector.extract_strided_slice %341 {offsets = [0, 256], sizes = [8, 128], strides = [1, 1]} : vector<8x384xf32> to vector<8x128xf32>
      %360 = vector.broadcast %15 : vector<1x128xf32> to vector<8x128xf32>
      %361 = arith.addf %359, %360 : vector<8x128xf32>
      %362 = arith.mulf %349, %361 : vector<8x128xf32>
      %363 = arith.addf %358, %362 : vector<8x128xf32>
      %364 = math.tanh %363 : vector<8x128xf32>
      %365 = arith.subf %339, %364 : vector<8x128xf32>
      %366 = arith.mulf %357, %365 : vector<8x128xf32>
      %367 = arith.addf %364, %366 : vector<8x128xf32>
      %368 = arith.subf %367, %339 : vector<8x128xf32>
      %369 = vector.broadcast %338 : vector<8x1xf32> to vector<8x128xf32>
      %370 = arith.mulf %369, %368 : vector<8x128xf32>
      %371 = arith.addf %339, %370 : vector<8x128xf32>
      %c0_109 = arith.constant 0 : index
      %c0_110 = arith.constant 0 : index
      %372 = vector.load %arg9[%c0_109, %c0_110] : memref<8x128xf32, #tpu.memory_space<vmem>>, vector<8x128xf32>
      tpu.vector_store %arg9[%c0_109, %c0_110], %371 {strides = array<i32>} : memref<8x128xf32, #tpu.memory_space<vmem>>, vector<8x128xf32>,
      %373 = vector.broadcast %338 : vector<8x1xf32> to vector<8x128xf32>
      %374 = arith.mulf %373, %367 : vector<8x128xf32>
      %375 = arith.index_cast %334 : i32 to index
      %c0_111 = arith.constant 0 : index
      %376 = vector.load %arg11[%375, %c0_111] : memref<64x128xf32, #tpu.memory_space<vmem>>, vector<8x128xf32>
      tpu.vector_store %arg11[%375, %c0_111], %374 {strides = array<i32>} : memref<64x128xf32, #tpu.memory_space<vmem>>, vector<8x128xf32>,
      %c8_i32_112 = arith.constant 8 : i32
    } else {
    }
    %c0_i32_18 = arith.constant 0 : i32
    %19 = arith.cmpi ne, %arg0, %c0_i32_18 : i32
    %20 = arith.extui %19 : i1 to i32
    %c0_i32_19 = arith.constant 0 : i32
    %21 = arith.cmpi ne, %20, %c0_i32_19 : i32
    scf.if %21 {
      %c0_i32_24 = arith.constant 0 : i32
      %c7_i32 = arith.constant 7 : i32
      %25 = arith.subi %c7_i32, %c0_i32_24 : i32
      %c8_i32 = arith.constant 8 : i32
      %26 = arith.muli %25, %c8_i32 : i32
      %27 = tpu.assume_multiple %26, 8 : i32
      %28 = arith.index_cast %27 : i32 to index
      %c0_25 = arith.constant 0 : index
      %29 = vector.load %arg10[%28, %c0_25] : memref<64x384xf32, #tpu.memory_space<vmem>>, vector<8x384xf32>
      %30 = arith.index_cast %27 : i32 to index
      %c0_26 = arith.constant 0 : index
      %31 = vector.load %arg7[%30, %c0_26] : memref<64x1xf32, #tpu.memory_space<vmem>>, vector<8x1xf32>
      %c0_27 = arith.constant 0 : index
      %c0_28 = arith.constant 0 : index
      %32 = vector.load %arg9[%c0_27, %c0_28] : memref<8x128xf32, #tpu.memory_space<vmem>>, vector<8x128xf32>
      %33 = arith.truncf %32 : vector<8x128xf32> to vector<8x128xbf16>
      %cst_29 = arith.constant dense<0.000000e+00> : vector<8x384xf32>
      %34 = tpu.matmul %33, %13, %cst_29 {dimension_numbers = #tpu.dot_dimension_numbers<[1], [0], [0], [1], [0, 0, 1, 1], [], []>} : vector<8x128xbf16>, vector<128x384xbf16>, vector<8x384xf32> -> vector<8x384xf32>
      %35 = vector.extract_strided_slice %29 {offsets = [0, 0], sizes = [8, 128], strides = [1, 1]} : vector<8x384xf32> to vector<8x128xf32>
      %36 = vector.extract_strided_slice %34 {offsets = [0, 0], sizes = [8, 128], strides = [1, 1]} : vector<8x384xf32> to vector<8x128xf32>
      %37 = arith.addf %35, %36 : vector<8x128xf32>
      %38 = arith.negf %37 : vector<8x128xf32>
      %39 = math.exp %38 : vector<8x128xf32>
      %cst_30 = arith.constant 1.000000e+00 : f32
      %40 = vector.broadcast %cst_30 : f32 to vector<8x128xf32>
      %41 = arith.addf %40, %39 : vector<8x128xf32>
      %42 = arith.divf %40, %41 : vector<8x128xf32>
      %43 = vector.extract_strided_slice %29 {offsets = [0, 128], sizes = [8, 128], strides = [1, 1]} : vector<8x384xf32> to vector<8x128xf32>
      %44 = vector.extract_strided_slice %34 {offsets = [0, 128], sizes = [8, 128], strides = [1, 1]} : vector<8x384xf32> to vector<8x128xf32>
      %45 = arith.addf %43, %44 : vector<8x128xf32>
      %46 = arith.negf %45 : vector<8x128xf32>
      %47 = math.exp %46 : vector<8x128xf32>
      %cst_31 = arith.constant 1.000000e+00 : f32
      %48 = vector.broadcast %cst_31 : f32 to vector<8x128xf32>
      %49 = arith.addf %48, %47 : vector<8x128xf32>
      %50 = arith.divf %48, %49 : vector<8x128xf32>
      %51 = vector.extract_strided_slice %29 {offsets = [0, 256], sizes = [8, 128], strides = [1, 1]} : vector<8x384xf32> to vector<8x128xf32>
      %52 = vector.extract_strided_slice %34 {offsets = [0, 256], sizes = [8, 128], strides = [1, 1]} : vector<8x384xf32> to vector<8x128xf32>
      %53 = vector.broadcast %15 : vector<1x128xf32> to vector<8x128xf32>
      %54 = arith.addf %52, %53 : vector<8x128xf32>
      %55 = arith.mulf %42, %54 : vector<8x128xf32>
      %56 = arith.addf %51, %55 : vector<8x128xf32>
      %57 = math.tanh %56 : vector<8x128xf32>
      %58 = arith.subf %32, %57 : vector<8x128xf32>
      %59 = arith.mulf %50, %58 : vector<8x128xf32>
      %60 = arith.addf %57, %59 : vector<8x128xf32>
      %61 = arith.subf %60, %32 : vector<8x128xf32>
      %62 = vector.broadcast %31 : vector<8x1xf32> to vector<8x128xf32>
      %63 = arith.mulf %62, %61 : vector<8x128xf32>
      %64 = arith.addf %32, %63 : vector<8x128xf32>
      %c0_32 = arith.constant 0 : index
      %c0_33 = arith.constant 0 : index
      %65 = vector.load %arg9[%c0_32, %c0_33] : memref<8x128xf32, #tpu.memory_space<vmem>>, vector<8x128xf32>
      tpu.vector_store %arg9[%c0_32, %c0_33], %64 {strides = array<i32>} : memref<8x128xf32, #tpu.memory_space<vmem>>, vector<8x128xf32>,
      %66 = vector.broadcast %31 : vector<8x1xf32> to vector<8x128xf32>
      %67 = arith.mulf %66, %60 : vector<8x128xf32>
      %68 = arith.index_cast %27 : i32 to index
      %c0_34 = arith.constant 0 : index
      %69 = vector.load %arg11[%68, %c0_34] : memref<64x128xf32, #tpu.memory_space<vmem>>, vector<8x128xf32>
      tpu.vector_store %arg11[%68, %c0_34], %67 {strides = array<i32>} : memref<64x128xf32, #tpu.memory_space<vmem>>, vector<8x128xf32>,
      %c1_i32 = arith.constant 1 : i32
      %c7_i32_35 = arith.constant 7 : i32
      %70 = arith.subi %c7_i32_35, %c1_i32 : i32
      %c8_i32_36 = arith.constant 8 : i32
      %71 = arith.muli %70, %c8_i32_36 : i32
      %72 = tpu.assume_multiple %71, 8 : i32
      %73 = arith.index_cast %72 : i32 to index
      %c0_37 = arith.constant 0 : index
      %74 = vector.load %arg10[%73, %c0_37] : memref<64x384xf32, #tpu.memory_space<vmem>>, vector<8x384xf32>
      %75 = arith.index_cast %72 : i32 to index
      %c0_38 = arith.constant 0 : index
      %76 = vector.load %arg7[%75, %c0_38] : memref<64x1xf32, #tpu.memory_space<vmem>>, vector<8x1xf32>
      %c0_39 = arith.constant 0 : index
      %c0_40 = arith.constant 0 : index
      %77 = vector.load %arg9[%c0_39, %c0_40] : memref<8x128xf32, #tpu.memory_space<vmem>>, vector<8x128xf32>
      %78 = arith.truncf %77 : vector<8x128xf32> to vector<8x128xbf16>
      %cst_41 = arith.constant dense<0.000000e+00> : vector<8x384xf32>
      %79 = tpu.matmul %78, %13, %cst_41 {dimension_numbers = #tpu.dot_dimension_numbers<[1], [0], [0], [1], [0, 0, 1, 1], [], []>} : vector<8x128xbf16>, vector<128x384xbf16>, vector<8x384xf32> -> vector<8x384xf32>
      %80 = vector.extract_strided_slice %74 {offsets = [0, 0], sizes = [8, 128], strides = [1, 1]} : vector<8x384xf32> to vector<8x128xf32>
      %81 = vector.extract_strided_slice %79 {offsets = [0, 0], sizes = [8, 128], strides = [1, 1]} : vector<8x384xf32> to vector<8x128xf32>
      %82 = arith.addf %80, %81 : vector<8x128xf32>
      %83 = arith.negf %82 : vector<8x128xf32>
      %84 = math.exp %83 : vector<8x128xf32>
      %cst_42 = arith.constant 1.000000e+00 : f32
      %85 = vector.broadcast %cst_42 : f32 to vector<8x128xf32>
      %86 = arith.addf %85, %84 : vector<8x128xf32>
      %87 = arith.divf %85, %86 : vector<8x128xf32>
      %88 = vector.extract_strided_slice %74 {offsets = [0, 128], sizes = [8, 128], strides = [1, 1]} : vector<8x384xf32> to vector<8x128xf32>
      %89 = vector.extract_strided_slice %79 {offsets = [0, 128], sizes = [8, 128], strides = [1, 1]} : vector<8x384xf32> to vector<8x128xf32>
      %90 = arith.addf %88, %89 : vector<8x128xf32>
      %91 = arith.negf %90 : vector<8x128xf32>
      %92 = math.exp %91 : vector<8x128xf32>
      %cst_43 = arith.constant 1.000000e+00 : f32
      %93 = vector.broadcast %cst_43 : f32 to vector<8x128xf32>
      %94 = arith.addf %93, %92 : vector<8x128xf32>
      %95 = arith.divf %93, %94 : vector<8x128xf32>
      %96 = vector.extract_strided_slice %74 {offsets = [0, 256], sizes = [8, 128], strides = [1, 1]} : vector<8x384xf32> to vector<8x128xf32>
      %97 = vector.extract_strided_slice %79 {offsets = [0, 256], sizes = [8, 128], strides = [1, 1]} : vector<8x384xf32> to vector<8x128xf32>
      %98 = vector.broadcast %15 : vector<1x128xf32> to vector<8x128xf32>
      %99 = arith.addf %97, %98 : vector<8x128xf32>
      %100 = arith.mulf %87, %99 : vector<8x128xf32>
      %101 = arith.addf %96, %100 : vector<8x128xf32>
      %102 = math.tanh %101 : vector<8x128xf32>
      %103 = arith.subf %77, %102 : vector<8x128xf32>
      %104 = arith.mulf %95, %103 : vector<8x128xf32>
      %105 = arith.addf %102, %104 : vector<8x128xf32>
      %106 = arith.subf %105, %77 : vector<8x128xf32>
      %107 = vector.broadcast %76 : vector<8x1xf32> to vector<8x128xf32>
      %108 = arith.mulf %107, %106 : vector<8x128xf32>
      %109 = arith.addf %77, %108 : vector<8x128xf32>
      %c0_44 = arith.constant 0 : index
      %c0_45 = arith.constant 0 : index
      %110 = vector.load %arg9[%c0_44, %c0_45] : memref<8x128xf32, #tpu.memory_space<vmem>>, vector<8x128xf32>
      tpu.vector_store %arg9[%c0_44, %c0_45], %109 {strides = array<i32>} : memref<8x128xf32, #tpu.memory_space<vmem>>, vector<8x128xf32>,
      %111 = vector.broadcast %76 : vector<8x1xf32> to vector<8x128xf32>
      %112 = arith.mulf %111, %105 : vector<8x128xf32>
      %113 = arith.index_cast %72 : i32 to index
      %c0_46 = arith.constant 0 : index
      %114 = vector.load %arg11[%113, %c0_46] : memref<64x128xf32, #tpu.memory_space<vmem>>, vector<8x128xf32>
      tpu.vector_store %arg11[%113, %c0_46], %112 {strides = array<i32>} : memref<64x128xf32, #tpu.memory_space<vmem>>, vector<8x128xf32>,
      %c2_i32 = arith.constant 2 : i32
      %c7_i32_47 = arith.constant 7 : i32
      %115 = arith.subi %c7_i32_47, %c2_i32 : i32
      %c8_i32_48 = arith.constant 8 : i32
      %116 = arith.muli %115, %c8_i32_48 : i32
      %117 = tpu.assume_multiple %116, 8 : i32
      %118 = arith.index_cast %117 : i32 to index
      %c0_49 = arith.constant 0 : index
      %119 = vector.load %arg10[%118, %c0_49] : memref<64x384xf32, #tpu.memory_space<vmem>>, vector<8x384xf32>
      %120 = arith.index_cast %117 : i32 to index
      %c0_50 = arith.constant 0 : index
      %121 = vector.load %arg7[%120, %c0_50] : memref<64x1xf32, #tpu.memory_space<vmem>>, vector<8x1xf32>
      %c0_51 = arith.constant 0 : index
      %c0_52 = arith.constant 0 : index
      %122 = vector.load %arg9[%c0_51, %c0_52] : memref<8x128xf32, #tpu.memory_space<vmem>>, vector<8x128xf32>
      %123 = arith.truncf %122 : vector<8x128xf32> to vector<8x128xbf16>
      %cst_53 = arith.constant dense<0.000000e+00> : vector<8x384xf32>
      %124 = tpu.matmul %123, %13, %cst_53 {dimension_numbers = #tpu.dot_dimension_numbers<[1], [0], [0], [1], [0, 0, 1, 1], [], []>} : vector<8x128xbf16>, vector<128x384xbf16>, vector<8x384xf32> -> vector<8x384xf32>
      %125 = vector.extract_strided_slice %119 {offsets = [0, 0], sizes = [8, 128], strides = [1, 1]} : vector<8x384xf32> to vector<8x128xf32>
      %126 = vector.extract_strided_slice %124 {offsets = [0, 0], sizes = [8, 128], strides = [1, 1]} : vector<8x384xf32> to vector<8x128xf32>
      %127 = arith.addf %125, %126 : vector<8x128xf32>
      %128 = arith.negf %127 : vector<8x128xf32>
      %129 = math.exp %128 : vector<8x128xf32>
      %cst_54 = arith.constant 1.000000e+00 : f32
      %130 = vector.broadcast %cst_54 : f32 to vector<8x128xf32>
      %131 = arith.addf %130, %129 : vector<8x128xf32>
      %132 = arith.divf %130, %131 : vector<8x128xf32>
      %133 = vector.extract_strided_slice %119 {offsets = [0, 128], sizes = [8, 128], strides = [1, 1]} : vector<8x384xf32> to vector<8x128xf32>
      %134 = vector.extract_strided_slice %124 {offsets = [0, 128], sizes = [8, 128], strides = [1, 1]} : vector<8x384xf32> to vector<8x128xf32>
      %135 = arith.addf %133, %134 : vector<8x128xf32>
      %136 = arith.negf %135 : vector<8x128xf32>
      %137 = math.exp %136 : vector<8x128xf32>
      %cst_55 = arith.constant 1.000000e+00 : f32
      %138 = vector.broadcast %cst_55 : f32 to vector<8x128xf32>
      %139 = arith.addf %138, %137 : vector<8x128xf32>
      %140 = arith.divf %138, %139 : vector<8x128xf32>
      %141 = vector.extract_strided_slice %119 {offsets = [0, 256], sizes = [8, 128], strides = [1, 1]} : vector<8x384xf32> to vector<8x128xf32>
      %142 = vector.extract_strided_slice %124 {offsets = [0, 256], sizes = [8, 128], strides = [1, 1]} : vector<8x384xf32> to vector<8x128xf32>
      %143 = vector.broadcast %15 : vector<1x128xf32> to vector<8x128xf32>
      %144 = arith.addf %142, %143 : vector<8x128xf32>
      %145 = arith.mulf %132, %144 : vector<8x128xf32>
      %146 = arith.addf %141, %145 : vector<8x128xf32>
      %147 = math.tanh %146 : vector<8x128xf32>
      %148 = arith.subf %122, %147 : vector<8x128xf32>
      %149 = arith.mulf %140, %148 : vector<8x128xf32>
      %150 = arith.addf %147, %149 : vector<8x128xf32>
      %151 = arith.subf %150, %122 : vector<8x128xf32>
      %152 = vector.broadcast %121 : vector<8x1xf32> to vector<8x128xf32>
      %153 = arith.mulf %152, %151 : vector<8x128xf32>
      %154 = arith.addf %122, %153 : vector<8x128xf32>
      %c0_56 = arith.constant 0 : index
      %c0_57 = arith.constant 0 : index
      %155 = vector.load %arg9[%c0_56, %c0_57] : memref<8x128xf32, #tpu.memory_space<vmem>>, vector<8x128xf32>
      tpu.vector_store %arg9[%c0_56, %c0_57], %154 {strides = array<i32>} : memref<8x128xf32, #tpu.memory_space<vmem>>, vector<8x128xf32>,
      %156 = vector.broadcast %121 : vector<8x1xf32> to vector<8x128xf32>
      %157 = arith.mulf %156, %150 : vector<8x128xf32>
      %158 = arith.index_cast %117 : i32 to index
      %c0_58 = arith.constant 0 : index
      %159 = vector.load %arg11[%158, %c0_58] : memref<64x128xf32, #tpu.memory_space<vmem>>, vector<8x128xf32>
      tpu.vector_store %arg11[%158, %c0_58], %157 {strides = array<i32>} : memref<64x128xf32, #tpu.memory_space<vmem>>, vector<8x128xf32>,
      %c3_i32 = arith.constant 3 : i32
      %c7_i32_59 = arith.constant 7 : i32
      %160 = arith.subi %c7_i32_59, %c3_i32 : i32
      %c8_i32_60 = arith.constant 8 : i32
      %161 = arith.muli %160, %c8_i32_60 : i32
      %162 = tpu.assume_multiple %161, 8 : i32
      %163 = arith.index_cast %162 : i32 to index
      %c0_61 = arith.constant 0 : index
      %164 = vector.load %arg10[%163, %c0_61] : memref<64x384xf32, #tpu.memory_space<vmem>>, vector<8x384xf32>
      %165 = arith.index_cast %162 : i32 to index
      %c0_62 = arith.constant 0 : index
      %166 = vector.load %arg7[%165, %c0_62] : memref<64x1xf32, #tpu.memory_space<vmem>>, vector<8x1xf32>
      %c0_63 = arith.constant 0 : index
      %c0_64 = arith.constant 0 : index
      %167 = vector.load %arg9[%c0_63, %c0_64] : memref<8x128xf32, #tpu.memory_space<vmem>>, vector<8x128xf32>
      %168 = arith.truncf %167 : vector<8x128xf32> to vector<8x128xbf16>
      %cst_65 = arith.constant dense<0.000000e+00> : vector<8x384xf32>
      %169 = tpu.matmul %168, %13, %cst_65 {dimension_numbers = #tpu.dot_dimension_numbers<[1], [0], [0], [1], [0, 0, 1, 1], [], []>} : vector<8x128xbf16>, vector<128x384xbf16>, vector<8x384xf32> -> vector<8x384xf32>
      %170 = vector.extract_strided_slice %164 {offsets = [0, 0], sizes = [8, 128], strides = [1, 1]} : vector<8x384xf32> to vector<8x128xf32>
      %171 = vector.extract_strided_slice %169 {offsets = [0, 0], sizes = [8, 128], strides = [1, 1]} : vector<8x384xf32> to vector<8x128xf32>
      %172 = arith.addf %170, %171 : vector<8x128xf32>
      %173 = arith.negf %172 : vector<8x128xf32>
      %174 = math.exp %173 : vector<8x128xf32>
      %cst_66 = arith.constant 1.000000e+00 : f32
      %175 = vector.broadcast %cst_66 : f32 to vector<8x128xf32>
      %176 = arith.addf %175, %174 : vector<8x128xf32>
      %177 = arith.divf %175, %176 : vector<8x128xf32>
      %178 = vector.extract_strided_slice %164 {offsets = [0, 128], sizes = [8, 128], strides = [1, 1]} : vector<8x384xf32> to vector<8x128xf32>
      %179 = vector.extract_strided_slice %169 {offsets = [0, 128], sizes = [8, 128], strides = [1, 1]} : vector<8x384xf32> to vector<8x128xf32>
      %180 = arith.addf %178, %179 : vector<8x128xf32>
      %181 = arith.negf %180 : vector<8x128xf32>
      %182 = math.exp %181 : vector<8x128xf32>
      %cst_67 = arith.constant 1.000000e+00 : f32
      %183 = vector.broadcast %cst_67 : f32 to vector<8x128xf32>
      %184 = arith.addf %183, %182 : vector<8x128xf32>
      %185 = arith.divf %183, %184 : vector<8x128xf32>
      %186 = vector.extract_strided_slice %164 {offsets = [0, 256], sizes = [8, 128], strides = [1, 1]} : vector<8x384xf32> to vector<8x128xf32>
      %187 = vector.extract_strided_slice %169 {offsets = [0, 256], sizes = [8, 128], strides = [1, 1]} : vector<8x384xf32> to vector<8x128xf32>
      %188 = vector.broadcast %15 : vector<1x128xf32> to vector<8x128xf32>
      %189 = arith.addf %187, %188 : vector<8x128xf32>
      %190 = arith.mulf %177, %189 : vector<8x128xf32>
      %191 = arith.addf %186, %190 : vector<8x128xf32>
      %192 = math.tanh %191 : vector<8x128xf32>
      %193 = arith.subf %167, %192 : vector<8x128xf32>
      %194 = arith.mulf %185, %193 : vector<8x128xf32>
      %195 = arith.addf %192, %194 : vector<8x128xf32>
      %196 = arith.subf %195, %167 : vector<8x128xf32>
      %197 = vector.broadcast %166 : vector<8x1xf32> to vector<8x128xf32>
      %198 = arith.mulf %197, %196 : vector<8x128xf32>
      %199 = arith.addf %167, %198 : vector<8x128xf32>
      %c0_68 = arith.constant 0 : index
      %c0_69 = arith.constant 0 : index
      %200 = vector.load %arg9[%c0_68, %c0_69] : memref<8x128xf32, #tpu.memory_space<vmem>>, vector<8x128xf32>
      tpu.vector_store %arg9[%c0_68, %c0_69], %199 {strides = array<i32>} : memref<8x128xf32, #tpu.memory_space<vmem>>, vector<8x128xf32>,
      %201 = vector.broadcast %166 : vector<8x1xf32> to vector<8x128xf32>
      %202 = arith.mulf %201, %195 : vector<8x128xf32>
      %203 = arith.index_cast %162 : i32 to index
      %c0_70 = arith.constant 0 : index
      %204 = vector.load %arg11[%203, %c0_70] : memref<64x128xf32, #tpu.memory_space<vmem>>, vector<8x128xf32>
      tpu.vector_store %arg11[%203, %c0_70], %202 {strides = array<i32>} : memref<64x128xf32, #tpu.memory_space<vmem>>, vector<8x128xf32>,
      %c4_i32 = arith.constant 4 : i32
      %c7_i32_71 = arith.constant 7 : i32
      %205 = arith.subi %c7_i32_71, %c4_i32 : i32
      %c8_i32_72 = arith.constant 8 : i32
      %206 = arith.muli %205, %c8_i32_72 : i32
      %207 = tpu.assume_multiple %206, 8 : i32
      %208 = arith.index_cast %207 : i32 to index
      %c0_73 = arith.constant 0 : index
      %209 = vector.load %arg10[%208, %c0_73] : memref<64x384xf32, #tpu.memory_space<vmem>>, vector<8x384xf32>
      %210 = arith.index_cast %207 : i32 to index
      %c0_74 = arith.constant 0 : index
      %211 = vector.load %arg7[%210, %c0_74] : memref<64x1xf32, #tpu.memory_space<vmem>>, vector<8x1xf32>
      %c0_75 = arith.constant 0 : index
      %c0_76 = arith.constant 0 : index
      %212 = vector.load %arg9[%c0_75, %c0_76] : memref<8x128xf32, #tpu.memory_space<vmem>>, vector<8x128xf32>
      %213 = arith.truncf %212 : vector<8x128xf32> to vector<8x128xbf16>
      %cst_77 = arith.constant dense<0.000000e+00> : vector<8x384xf32>
      %214 = tpu.matmul %213, %13, %cst_77 {dimension_numbers = #tpu.dot_dimension_numbers<[1], [0], [0], [1], [0, 0, 1, 1], [], []>} : vector<8x128xbf16>, vector<128x384xbf16>, vector<8x384xf32> -> vector<8x384xf32>
      %215 = vector.extract_strided_slice %209 {offsets = [0, 0], sizes = [8, 128], strides = [1, 1]} : vector<8x384xf32> to vector<8x128xf32>
      %216 = vector.extract_strided_slice %214 {offsets = [0, 0], sizes = [8, 128], strides = [1, 1]} : vector<8x384xf32> to vector<8x128xf32>
      %217 = arith.addf %215, %216 : vector<8x128xf32>
      %218 = arith.negf %217 : vector<8x128xf32>
      %219 = math.exp %218 : vector<8x128xf32>
      %cst_78 = arith.constant 1.000000e+00 : f32
      %220 = vector.broadcast %cst_78 : f32 to vector<8x128xf32>
      %221 = arith.addf %220, %219 : vector<8x128xf32>
      %222 = arith.divf %220, %221 : vector<8x128xf32>
      %223 = vector.extract_strided_slice %209 {offsets = [0, 128], sizes = [8, 128], strides = [1, 1]} : vector<8x384xf32> to vector<8x128xf32>
      %224 = vector.extract_strided_slice %214 {offsets = [0, 128], sizes = [8, 128], strides = [1, 1]} : vector<8x384xf32> to vector<8x128xf32>
      %225 = arith.addf %223, %224 : vector<8x128xf32>
      %226 = arith.negf %225 : vector<8x128xf32>
      %227 = math.exp %226 : vector<8x128xf32>
      %cst_79 = arith.constant 1.000000e+00 : f32
      %228 = vector.broadcast %cst_79 : f32 to vector<8x128xf32>
      %229 = arith.addf %228, %227 : vector<8x128xf32>
      %230 = arith.divf %228, %229 : vector<8x128xf32>
      %231 = vector.extract_strided_slice %209 {offsets = [0, 256], sizes = [8, 128], strides = [1, 1]} : vector<8x384xf32> to vector<8x128xf32>
      %232 = vector.extract_strided_slice %214 {offsets = [0, 256], sizes = [8, 128], strides = [1, 1]} : vector<8x384xf32> to vector<8x128xf32>
      %233 = vector.broadcast %15 : vector<1x128xf32> to vector<8x128xf32>
      %234 = arith.addf %232, %233 : vector<8x128xf32>
      %235 = arith.mulf %222, %234 : vector<8x128xf32>
      %236 = arith.addf %231, %235 : vector<8x128xf32>
      %237 = math.tanh %236 : vector<8x128xf32>
      %238 = arith.subf %212, %237 : vector<8x128xf32>
      %239 = arith.mulf %230, %238 : vector<8x128xf32>
      %240 = arith.addf %237, %239 : vector<8x128xf32>
      %241 = arith.subf %240, %212 : vector<8x128xf32>
      %242 = vector.broadcast %211 : vector<8x1xf32> to vector<8x128xf32>
      %243 = arith.mulf %242, %241 : vector<8x128xf32>
      %244 = arith.addf %212, %243 : vector<8x128xf32>
      %c0_80 = arith.constant 0 : index
      %c0_81 = arith.constant 0 : index
      %245 = vector.load %arg9[%c0_80, %c0_81] : memref<8x128xf32, #tpu.memory_space<vmem>>, vector<8x128xf32>
      tpu.vector_store %arg9[%c0_80, %c0_81], %244 {strides = array<i32>} : memref<8x128xf32, #tpu.memory_space<vmem>>, vector<8x128xf32>,
      %246 = vector.broadcast %211 : vector<8x1xf32> to vector<8x128xf32>
      %247 = arith.mulf %246, %240 : vector<8x128xf32>
      %248 = arith.index_cast %207 : i32 to index
      %c0_82 = arith.constant 0 : index
      %249 = vector.load %arg11[%248, %c0_82] : memref<64x128xf32, #tpu.memory_space<vmem>>, vector<8x128xf32>
      tpu.vector_store %arg11[%248, %c0_82], %247 {strides = array<i32>} : memref<64x128xf32, #tpu.memory_space<vmem>>, vector<8x128xf32>,
      %c5_i32 = arith.constant 5 : i32
      %c7_i32_83 = arith.constant 7 : i32
      %250 = arith.subi %c7_i32_83, %c5_i32 : i32
      %c8_i32_84 = arith.constant 8 : i32
      %251 = arith.muli %250, %c8_i32_84 : i32
      %252 = tpu.assume_multiple %251, 8 : i32
      %253 = arith.index_cast %252 : i32 to index
      %c0_85 = arith.constant 0 : index
      %254 = vector.load %arg10[%253, %c0_85] : memref<64x384xf32, #tpu.memory_space<vmem>>, vector<8x384xf32>
      %255 = arith.index_cast %252 : i32 to index
      %c0_86 = arith.constant 0 : index
      %256 = vector.load %arg7[%255, %c0_86] : memref<64x1xf32, #tpu.memory_space<vmem>>, vector<8x1xf32>
      %c0_87 = arith.constant 0 : index
      %c0_88 = arith.constant 0 : index
      %257 = vector.load %arg9[%c0_87, %c0_88] : memref<8x128xf32, #tpu.memory_space<vmem>>, vector<8x128xf32>
      %258 = arith.truncf %257 : vector<8x128xf32> to vector<8x128xbf16>
      %cst_89 = arith.constant dense<0.000000e+00> : vector<8x384xf32>
      %259 = tpu.matmul %258, %13, %cst_89 {dimension_numbers = #tpu.dot_dimension_numbers<[1], [0], [0], [1], [0, 0, 1, 1], [], []>} : vector<8x128xbf16>, vector<128x384xbf16>, vector<8x384xf32> -> vector<8x384xf32>
      %260 = vector.extract_strided_slice %254 {offsets = [0, 0], sizes = [8, 128], strides = [1, 1]} : vector<8x384xf32> to vector<8x128xf32>
      %261 = vector.extract_strided_slice %259 {offsets = [0, 0], sizes = [8, 128], strides = [1, 1]} : vector<8x384xf32> to vector<8x128xf32>
      %262 = arith.addf %260, %261 : vector<8x128xf32>
      %263 = arith.negf %262 : vector<8x128xf32>
      %264 = math.exp %263 : vector<8x128xf32>
      %cst_90 = arith.constant 1.000000e+00 : f32
      %265 = vector.broadcast %cst_90 : f32 to vector<8x128xf32>
      %266 = arith.addf %265, %264 : vector<8x128xf32>
      %267 = arith.divf %265, %266 : vector<8x128xf32>
      %268 = vector.extract_strided_slice %254 {offsets = [0, 128], sizes = [8, 128], strides = [1, 1]} : vector<8x384xf32> to vector<8x128xf32>
      %269 = vector.extract_strided_slice %259 {offsets = [0, 128], sizes = [8, 128], strides = [1, 1]} : vector<8x384xf32> to vector<8x128xf32>
      %270 = arith.addf %268, %269 : vector<8x128xf32>
      %271 = arith.negf %270 : vector<8x128xf32>
      %272 = math.exp %271 : vector<8x128xf32>
      %cst_91 = arith.constant 1.000000e+00 : f32
      %273 = vector.broadcast %cst_91 : f32 to vector<8x128xf32>
      %274 = arith.addf %273, %272 : vector<8x128xf32>
      %275 = arith.divf %273, %274 : vector<8x128xf32>
      %276 = vector.extract_strided_slice %254 {offsets = [0, 256], sizes = [8, 128], strides = [1, 1]} : vector<8x384xf32> to vector<8x128xf32>
      %277 = vector.extract_strided_slice %259 {offsets = [0, 256], sizes = [8, 128], strides = [1, 1]} : vector<8x384xf32> to vector<8x128xf32>
      %278 = vector.broadcast %15 : vector<1x128xf32> to vector<8x128xf32>
      %279 = arith.addf %277, %278 : vector<8x128xf32>
      %280 = arith.mulf %267, %279 : vector<8x128xf32>
      %281 = arith.addf %276, %280 : vector<8x128xf32>
      %282 = math.tanh %281 : vector<8x128xf32>
      %283 = arith.subf %257, %282 : vector<8x128xf32>
      %284 = arith.mulf %275, %283 : vector<8x128xf32>
      %285 = arith.addf %282, %284 : vector<8x128xf32>
      %286 = arith.subf %285, %257 : vector<8x128xf32>
      %287 = vector.broadcast %256 : vector<8x1xf32> to vector<8x128xf32>
      %288 = arith.mulf %287, %286 : vector<8x128xf32>
      %289 = arith.addf %257, %288 : vector<8x128xf32>
      %c0_92 = arith.constant 0 : index
      %c0_93 = arith.constant 0 : index
      %290 = vector.load %arg9[%c0_92, %c0_93] : memref<8x128xf32, #tpu.memory_space<vmem>>, vector<8x128xf32>
      tpu.vector_store %arg9[%c0_92, %c0_93], %289 {strides = array<i32>} : memref<8x128xf32, #tpu.memory_space<vmem>>, vector<8x128xf32>,
      %291 = vector.broadcast %256 : vector<8x1xf32> to vector<8x128xf32>
      %292 = arith.mulf %291, %285 : vector<8x128xf32>
      %293 = arith.index_cast %252 : i32 to index
      %c0_94 = arith.constant 0 : index
      %294 = vector.load %arg11[%293, %c0_94] : memref<64x128xf32, #tpu.memory_space<vmem>>, vector<8x128xf32>
      tpu.vector_store %arg11[%293, %c0_94], %292 {strides = array<i32>} : memref<64x128xf32, #tpu.memory_space<vmem>>, vector<8x128xf32>,
      %c6_i32 = arith.constant 6 : i32
      %c7_i32_95 = arith.constant 7 : i32
      %295 = arith.subi %c7_i32_95, %c6_i32 : i32
      %c8_i32_96 = arith.constant 8 : i32
      %296 = arith.muli %295, %c8_i32_96 : i32
      %297 = tpu.assume_multiple %296, 8 : i32
      %298 = arith.index_cast %297 : i32 to index
      %c0_97 = arith.constant 0 : index
      %299 = vector.load %arg10[%298, %c0_97] : memref<64x384xf32, #tpu.memory_space<vmem>>, vector<8x384xf32>
      %300 = arith.index_cast %297 : i32 to index
      %c0_98 = arith.constant 0 : index
      %301 = vector.load %arg7[%300, %c0_98] : memref<64x1xf32, #tpu.memory_space<vmem>>, vector<8x1xf32>
      %c0_99 = arith.constant 0 : index
      %c0_100 = arith.constant 0 : index
      %302 = vector.load %arg9[%c0_99, %c0_100] : memref<8x128xf32, #tpu.memory_space<vmem>>, vector<8x128xf32>
      %303 = arith.truncf %302 : vector<8x128xf32> to vector<8x128xbf16>
      %cst_101 = arith.constant dense<0.000000e+00> : vector<8x384xf32>
      %304 = tpu.matmul %303, %13, %cst_101 {dimension_numbers = #tpu.dot_dimension_numbers<[1], [0], [0], [1], [0, 0, 1, 1], [], []>} : vector<8x128xbf16>, vector<128x384xbf16>, vector<8x384xf32> -> vector<8x384xf32>
      %305 = vector.extract_strided_slice %299 {offsets = [0, 0], sizes = [8, 128], strides = [1, 1]} : vector<8x384xf32> to vector<8x128xf32>
      %306 = vector.extract_strided_slice %304 {offsets = [0, 0], sizes = [8, 128], strides = [1, 1]} : vector<8x384xf32> to vector<8x128xf32>
      %307 = arith.addf %305, %306 : vector<8x128xf32>
      %308 = arith.negf %307 : vector<8x128xf32>
      %309 = math.exp %308 : vector<8x128xf32>
      %cst_102 = arith.constant 1.000000e+00 : f32
      %310 = vector.broadcast %cst_102 : f32 to vector<8x128xf32>
      %311 = arith.addf %310, %309 : vector<8x128xf32>
      %312 = arith.divf %310, %311 : vector<8x128xf32>
      %313 = vector.extract_strided_slice %299 {offsets = [0, 128], sizes = [8, 128], strides = [1, 1]} : vector<8x384xf32> to vector<8x128xf32>
      %314 = vector.extract_strided_slice %304 {offsets = [0, 128], sizes = [8, 128], strides = [1, 1]} : vector<8x384xf32> to vector<8x128xf32>
      %315 = arith.addf %313, %314 : vector<8x128xf32>
      %316 = arith.negf %315 : vector<8x128xf32>
      %317 = math.exp %316 : vector<8x128xf32>
      %cst_103 = arith.constant 1.000000e+00 : f32
      %318 = vector.broadcast %cst_103 : f32 to vector<8x128xf32>
      %319 = arith.addf %318, %317 : vector<8x128xf32>
      %320 = arith.divf %318, %319 : vector<8x128xf32>
      %321 = vector.extract_strided_slice %299 {offsets = [0, 256], sizes = [8, 128], strides = [1, 1]} : vector<8x384xf32> to vector<8x128xf32>
      %322 = vector.extract_strided_slice %304 {offsets = [0, 256], sizes = [8, 128], strides = [1, 1]} : vector<8x384xf32> to vector<8x128xf32>
      %323 = vector.broadcast %15 : vector<1x128xf32> to vector<8x128xf32>
      %324 = arith.addf %322, %323 : vector<8x128xf32>
      %325 = arith.mulf %312, %324 : vector<8x128xf32>
      %326 = arith.addf %321, %325 : vector<8x128xf32>
      %327 = math.tanh %326 : vector<8x128xf32>
      %328 = arith.subf %302, %327 : vector<8x128xf32>
      %329 = arith.mulf %320, %328 : vector<8x128xf32>
      %330 = arith.addf %327, %329 : vector<8x128xf32>
      %331 = arith.subf %330, %302 : vector<8x128xf32>
      %332 = vector.broadcast %301 : vector<8x1xf32> to vector<8x128xf32>
      %333 = arith.mulf %332, %331 : vector<8x128xf32>
      %334 = arith.addf %302, %333 : vector<8x128xf32>
      %c0_104 = arith.constant 0 : index
      %c0_105 = arith.constant 0 : index
      %335 = vector.load %arg9[%c0_104, %c0_105] : memref<8x128xf32, #tpu.memory_space<vmem>>, vector<8x128xf32>
      tpu.vector_store %arg9[%c0_104, %c0_105], %334 {strides = array<i32>} : memref<8x128xf32, #tpu.memory_space<vmem>>, vector<8x128xf32>,
      %336 = vector.broadcast %301 : vector<8x1xf32> to vector<8x128xf32>
      %337 = arith.mulf %336, %330 : vector<8x128xf32>
      %338 = arith.index_cast %297 : i32 to index
      %c0_106 = arith.constant 0 : index
      %339 = vector.load %arg11[%338, %c0_106] : memref<64x128xf32, #tpu.memory_space<vmem>>, vector<8x128xf32>
      tpu.vector_store %arg11[%338, %c0_106], %337 {strides = array<i32>} : memref<64x128xf32, #tpu.memory_space<vmem>>, vector<8x128xf32>,
      %c7_i32_107 = arith.constant 7 : i32
      %c7_i32_108 = arith.constant 7 : i32
      %340 = arith.subi %c7_i32_108, %c7_i32_107 : i32
      %c8_i32_109 = arith.constant 8 : i32
      %341 = arith.muli %340, %c8_i32_109 : i32
      %342 = tpu.assume_multiple %341, 8 : i32
      %343 = arith.index_cast %342 : i32 to index
      %c0_110 = arith.constant 0 : index
      %344 = vector.load %arg10[%343, %c0_110] : memref<64x384xf32, #tpu.memory_space<vmem>>, vector<8x384xf32>
      %345 = arith.index_cast %342 : i32 to index
      %c0_111 = arith.constant 0 : index
      %346 = vector.load %arg7[%345, %c0_111] : memref<64x1xf32, #tpu.memory_space<vmem>>, vector<8x1xf32>
      %c0_112 = arith.constant 0 : index
      %c0_113 = arith.constant 0 : index
      %347 = vector.load %arg9[%c0_112, %c0_113] : memref<8x128xf32, #tpu.memory_space<vmem>>, vector<8x128xf32>
      %348 = arith.truncf %347 : vector<8x128xf32> to vector<8x128xbf16>
      %cst_114 = arith.constant dense<0.000000e+00> : vector<8x384xf32>
      %349 = tpu.matmul %348, %13, %cst_114 {dimension_numbers = #tpu.dot_dimension_numbers<[1], [0], [0], [1], [0, 0, 1, 1], [], []>} : vector<8x128xbf16>, vector<128x384xbf16>, vector<8x384xf32> -> vector<8x384xf32>
      %350 = vector.extract_strided_slice %344 {offsets = [0, 0], sizes = [8, 128], strides = [1, 1]} : vector<8x384xf32> to vector<8x128xf32>
      %351 = vector.extract_strided_slice %349 {offsets = [0, 0], sizes = [8, 128], strides = [1, 1]} : vector<8x384xf32> to vector<8x128xf32>
      %352 = arith.addf %350, %351 : vector<8x128xf32>
      %353 = arith.negf %352 : vector<8x128xf32>
      %354 = math.exp %353 : vector<8x128xf32>
      %cst_115 = arith.constant 1.000000e+00 : f32
      %355 = vector.broadcast %cst_115 : f32 to vector<8x128xf32>
      %356 = arith.addf %355, %354 : vector<8x128xf32>
      %357 = arith.divf %355, %356 : vector<8x128xf32>
      %358 = vector.extract_strided_slice %344 {offsets = [0, 128], sizes = [8, 128], strides = [1, 1]} : vector<8x384xf32> to vector<8x128xf32>
      %359 = vector.extract_strided_slice %349 {offsets = [0, 128], sizes = [8, 128], strides = [1, 1]} : vector<8x384xf32> to vector<8x128xf32>
      %360 = arith.addf %358, %359 : vector<8x128xf32>
      %361 = arith.negf %360 : vector<8x128xf32>
      %362 = math.exp %361 : vector<8x128xf32>
      %cst_116 = arith.constant 1.000000e+00 : f32
      %363 = vector.broadcast %cst_116 : f32 to vector<8x128xf32>
      %364 = arith.addf %363, %362 : vector<8x128xf32>
      %365 = arith.divf %363, %364 : vector<8x128xf32>
      %366 = vector.extract_strided_slice %344 {offsets = [0, 256], sizes = [8, 128], strides = [1, 1]} : vector<8x384xf32> to vector<8x128xf32>
      %367 = vector.extract_strided_slice %349 {offsets = [0, 256], sizes = [8, 128], strides = [1, 1]} : vector<8x384xf32> to vector<8x128xf32>
      %368 = vector.broadcast %15 : vector<1x128xf32> to vector<8x128xf32>
      %369 = arith.addf %367, %368 : vector<8x128xf32>
      %370 = arith.mulf %357, %369 : vector<8x128xf32>
      %371 = arith.addf %366, %370 : vector<8x128xf32>
      %372 = math.tanh %371 : vector<8x128xf32>
      %373 = arith.subf %347, %372 : vector<8x128xf32>
      %374 = arith.mulf %365, %373 : vector<8x128xf32>
      %375 = arith.addf %372, %374 : vector<8x128xf32>
      %376 = arith.subf %375, %347 : vector<8x128xf32>
      %377 = vector.broadcast %346 : vector<8x1xf32> to vector<8x128xf32>
      %378 = arith.mulf %377, %376 : vector<8x128xf32>
      %379 = arith.addf %347, %378 : vector<8x128xf32>
      %c0_117 = arith.constant 0 : index
      %c0_118 = arith.constant 0 : index
      %380 = vector.load %arg9[%c0_117, %c0_118] : memref<8x128xf32, #tpu.memory_space<vmem>>, vector<8x128xf32>
      tpu.vector_store %arg9[%c0_117, %c0_118], %379 {strides = array<i32>} : memref<8x128xf32, #tpu.memory_space<vmem>>, vector<8x128xf32>,
      %381 = vector.broadcast %346 : vector<8x1xf32> to vector<8x128xf32>
      %382 = arith.mulf %381, %375 : vector<8x128xf32>
      %383 = arith.index_cast %342 : i32 to index
      %c0_119 = arith.constant 0 : index
      %384 = vector.load %arg11[%383, %c0_119] : memref<64x128xf32, #tpu.memory_space<vmem>>, vector<8x128xf32>
      tpu.vector_store %arg11[%383, %c0_119], %382 {strides = array<i32>} : memref<64x128xf32, #tpu.memory_space<vmem>>, vector<8x128xf32>,
      %c8_i32_120 = arith.constant 8 : i32
    } else {
    }
    %c0_20 = arith.constant 0 : index
    %c0_21 = arith.constant 0 : index
    %22 = vector.load %arg11[%c0_20, %c0_21] : memref<64x128xf32, #tpu.memory_space<vmem>>, vector<64x128xf32>
    %23 = arith.truncf %22 : vector<64x128xf32> to vector<64x128xbf16>
    %c0_22 = arith.constant 0 : index
    %c0_23 = arith.constant 0 : index
    %24 = vector.load %arg8[%c0_22, %c0_23] : memref<64x128xbf16, #tpu.memory_space<vmem>>, vector<64x128xbf16>
    tpu.vector_store %arg8[%c0_22, %c0_23], %23 {strides = array<i32>} : memref<64x128xbf16, #tpu.memory_space<vmem>>, vector<64x128xbf16>,
    return
  }
  func.func @transform_0(%arg0: i32, %arg1: i32) -> (i32, i32) {
    %c2_i32 = arith.constant 2 : i32
    %0 = arith.muli %c2_i32, %arg1 : i32
    %c0_i32 = arith.constant 0 : i32
    %1 = arith.subi %c0_i32, %0 : i32
    %2 = arith.muli %arg0, %1 : i32
    %3 = arith.addi %arg1, %2 : i32
    %c0_i32_0 = arith.constant 0 : i32
    %c0_i32_1 = arith.constant 0 : i32
    return %3, %c0_i32_0 : i32, i32
  }
  func.func @transform_1(%arg0: i32, %arg1: i32) -> (i32, i32, i32) {
    %c0_i32 = arith.constant 0 : i32
    %c0_i32_0 = arith.constant 0 : i32
    %c0_i32_1 = arith.constant 0 : i32
    return %arg0, %c0_i32, %c0_i32_0 : i32, i32, i32
  }
  func.func @transform_2(%arg0: i32, %arg1: i32) -> (i32, i32, i32) {
    %c0_i32 = arith.constant 0 : i32
    %c0_i32_0 = arith.constant 0 : i32
    %c0_i32_1 = arith.constant 0 : i32
    return %arg0, %c0_i32, %c0_i32_0 : i32, i32, i32
  }
  func.func @transform_3(%arg0: i32, %arg1: i32) -> (i32, i32, i32) {
    %c0_i32 = arith.constant 0 : i32
    %c0_i32_0 = arith.constant 0 : i32
    %c0_i32_1 = arith.constant 0 : i32
    return %arg0, %c0_i32, %c0_i32_0 : i32, i32, i32
  }
  func.func @transform_4(%arg0: i32, %arg1: i32) -> (i32, i32, i32) {
    %c0_i32 = arith.constant 0 : i32
    %c0_i32_0 = arith.constant 0 : i32
    %c0_i32_1 = arith.constant 0 : i32
    return %arg0, %c0_i32, %c0_i32_0 : i32, i32, i32
  }
  func.func @transform_5(%arg0: i32, %arg1: i32) -> (i32, i32) {
    %c2_i32 = arith.constant 2 : i32
    %0 = arith.muli %c2_i32, %arg1 : i32
    %c0_i32 = arith.constant 0 : i32
    %1 = arith.subi %c0_i32, %0 : i32
    %2 = arith.muli %arg0, %1 : i32
    %3 = arith.addi %arg1, %2 : i32
    %c0_i32_0 = arith.constant 0 : i32
    %c0_i32_1 = arith.constant 0 : i32
    return %3, %c0_i32_0 : i32, i32
  }
  func.func @transform_6(%arg0: i32, %arg1: i32) -> (i32, i32) {
    %c2_i32 = arith.constant 2 : i32
    %0 = arith.muli %c2_i32, %arg1 : i32
    %c0_i32 = arith.constant 0 : i32
    %1 = arith.subi %c0_i32, %0 : i32
    %2 = arith.muli %arg0, %1 : i32
    %3 = arith.addi %arg1, %2 : i32
    %c0_i32_0 = arith.constant 0 : i32
    return %3, %arg0 : i32, i32
  }
}

</mosaic_0001>

<bundles_post_ra>
// kernel: _forward_full.5
= control target key start
LH: loop header
LB: loop body
LE: loop exit
PB: predicated region body
PF: predicated region fallthrough
CT: control target
= control target key end

     0   :  { %s503_s1 = inlined_call_operand.vmem [shape: bf16[256,128], index: 1, kind: input, shape index: {}]   ;;  %s504_s0 = inlined_call_operand.vmem [shape: bf16[64,256], index: 0, kind: input, shape index: {}]   ;;  %s505_s2 = inlined_call_operand.vmem [shape: f32[1,128], index: 2, kind: input, shape index: {}]   ;;  %s506_s3 = inlined_call_operand.vmem [shape: f32[64,128], index: 3, kind: output, shape index: {}]  }
   0x1   :  { %v356_v0 = vld [vmem:[%s503_s1 + $0x40] sm:$0xff]   ;;  %v358_v2 = vld [vmem:[%s503_s1 + $0x48] sm:$0xff]   ;;  %v360_v4 = vld [vmem:[%s503_s1 + $0x50] sm:$0xff]  }
   0x2   :  { %v357_v1 = vld [vmem:[%s503_s1] sm:$0xff]   ;;  %300 = vmatprep.subr.bf16.mxu0 %v356_v0  ;;  %340 = vmatprep.subr.bf16.mxu1 %v356_v0  ;;  %v359_v3 = vld [vmem:[%s503_s1 + $0x8] sm:$0xff]   ;;  %v361_v5 = vld [vmem:[%s503_s1 + $0x10] sm:$0xff]  }
   0x3   :  { %301 = vmatpush3.bf16.msra.mxu0 %v357_v1  ;;  %348 = vmatpush3.bf16.msra.mxu1 %v357_v1  ;;  %v362_v6 = vld [vmem:[%s503_s1 + $0x58] sm:$0xff]   ;;  %v364_v8 = vld [vmem:[%s503_s1 + $0x60] sm:$0xff]   ;;  %v366_v10 = vld [vmem:[%s503_s1 + $0x68] sm:$0xff]  }
   0x4   :  { %302 = vmatprep.subr.bf16.mxu0 %v358_v2  ;;  %341 = vmatprep.subr.bf16.mxu1 %v358_v2  ;;  %v363_v7 = vld [vmem:[%s503_s1 + $0x18] sm:$0xff]   ;;  %v365_v9 = vld [vmem:[%s503_s1 + $0x20] sm:$0xff]   ;;  %v367_v13 = vld [vmem:[%s503_s1 + $0x28] sm:$0xff]  }
   0x5   :  { %v374_v11 = vld [vmem:[%s504_s0 + $0x4] ss:$8 sps:$4 sm:$0xff]   ;;  %v368_v14 = vld [vmem:[%s503_s1 + $0x70] sm:$0xff]   ;;  %v370_v16 = vld [vmem:[%s503_s1 + $0x78] sm:$0xff]  }
   0x6   :  { %v377_v12 = vld [vmem:[%s504_s0 + $0x24] ss:$8 sps:$4 sm:$0xff]   ;;  %230 = vmatprep.mubr.bf16.mxu0 %v374_v11  ;;  %v369_v15 = vld [vmem:[%s503_s1 + $0x30] sm:$0xff]   ;;  %v371_v17 = vld [vmem:[%s503_s1 + $0x38] sm:$0xff]  }
   0x7   :  { %303 = vmatpush3.bf16.msra.mxu0 %v359_v3  ;;  %349 = vmatpush3.bf16.msra.mxu1 %v359_v3  ;;  %v372_v18 = vld [vmem:[%s504_s0] ss:$8 sps:$4 sm:$0xff]   ;;  %v378_v20 = vld [vmem:[%s504_s0 + $0x14] ss:$8 sps:$4 sm:$0xff]   ;;  %v382_v22 = vld [vmem:[%s504_s0 + $0x10] ss:$8 sps:$4 sm:$0xff]  }
   0x8   :  { %304 = vmatprep.subr.bf16.mxu0 %v360_v4  ;;  %342 = vmatprep.subr.bf16.mxu1 %v360_v4  ;;  %v375_v19 = vld [vmem:[%s504_s0 + $0x20] ss:$8 sps:$4 sm:$0xff]   ;;  %v380_v21 = vld [vmem:[%s504_s0 + $0x34] ss:$8 sps:$4 sm:$0xff]   ;;  %v383_v23 = vld [vmem:[%s504_s0 + $0x30] ss:$8 sps:$4 sm:$0xff]  }
   0x9   :  { %246 = vmatprep.mubr.bf16.mxu1 %v377_v12  ;;  %v275_v26 = vld [vmem:[%s505_s2] ss:$0 sm:$0xff] }
   0xb   :  { %305 = vmatpush3.bf16.msra.mxu0 %v361_v5  ;;  %350 = vmatpush3.bf16.msra.mxu1 %v361_v5 }
   0xc   :  { %306 = vmatprep.subr.bf16.mxu0 %v362_v6  ;;  %343 = vmatprep.subr.bf16.mxu1 %v362_v6 }
   0xf   :  { %307 = vmatpush3.bf16.msra.mxu0 %v363_v7  ;;  %351 = vmatpush3.bf16.msra.mxu1 %v363_v7 }
  0x10   :  { %308 = vmatprep.subr.bf16.mxu0 %v364_v8  ;;  %344 = vmatprep.subr.bf16.mxu1 %v364_v8 }
  0x13   :  { %309 = vmatpush3.bf16.msra.mxu0 %v365_v9  ;;  %352 = vmatpush3.bf16.msra.mxu1 %v365_v9 }
  0x14   :  { %310 = vmatprep.subr.bf16.mxu0 %v366_v10  ;;  %345 = vmatprep.subr.bf16.mxu1 %v366_v10 }
  0x17   :  { %311 = vmatpush3.bf16.msra.mxu0 %v367_v13  ;;  %353 = vmatpush3.bf16.msra.mxu1 %v367_v13 }
  0x18   :  { %312 = vmatprep.subr.bf16.mxu0 %v368_v14  ;;  %346 = vmatprep.subr.bf16.mxu1 %v368_v14 }
  0x1b   :  { %313 = vmatpush3.bf16.msra.mxu0 %v369_v15  ;;  %354 = vmatpush3.bf16.msra.mxu1 %v369_v15 }
  0x1c   :  { %314 = vmatprep.subr.bf16.mxu0 %v370_v16  ;;  %347 = vmatprep.subr.bf16.mxu1 %v370_v16 }
  0x1f   :  { %315 = vmatpush3.bf16.msra.mxu0 %v371_v17  ;;  %355 = vmatpush3.bf16.msra.mxu1 %v371_v17 }
  0x22   :  { %231 = vmatmul.mubr.bf16.vlgmr.msra.gmra.mrb[0].mxu0 %v372_v18  ;;  %247 = vmatmul.mubr.bf16.vlgmr.msra.gmra.mrb[0].mxu1 %v375_v19 }
  0x23   :  { %238 = vmatprep.mubr.bf16.mxu0 %v378_v20  ;;  %254 = vmatprep.mubr.bf16.mxu1 %v380_v21 }
  0x2a   :  { %239 = vmatmul.mubr.bf16.gmra.mrb[4].mxu0 %v382_v22  ;;  %255 = vmatmul.mubr.bf16.gmra.mrb[4].mxu1 %v383_v23 }
  0xf5   :  { %v316_v24 = vpop.f32.mrb[0].mxu0  ;;  %v328_v25 = vpop.f32.mrb[0].mxu1 }
  0xf6   :  { %v317_v27 = vpop.f32.mrb[1].mxu0  ;;  %v329_v28 = vpop.f32.mrb[1].mxu1 }
  0xf7   :  { %v318_v29 = vadd.f32 %v317_v27, %v316_v24  ;;  %v330_v30 = vadd.f32 %v329_v28, %v328_v25  ;;  %v319_v31 = vpop.f32.mrb[2].mxu0  ;;  %v331_v32 = vpop.f32.mrb[2].mxu1 }
  0xf8   :  { %v320_v33 = vpop.f32.mrb[3].mxu0  ;;  %v332_v34 = vpop.f32.mrb[3].mxu1 }
  0xf9   :  { %v233_v35 = vadd.f32 %v318_v29, %v275_v26  ;;  %v249_v36 = vadd.f32 %v330_v30, %v275_v26  ;;  %v321_v37 = vadd.f32 %v320_v33, %v319_v31  ;;  %v333_v38 = vadd.f32 %v332_v34, %v331_v32 }
  0xfb   :  { %263 = vst [vmem:[%s506_s3] sm:$0xff] %v233_v35  ;;  %267 = vst [vmem:[%s506_s3 + $0x20] sm:$0xff] %v249_v36  ;;  %v236_v39 = vadd.f32 %v321_v37, %v275_v26  ;;  %v252_v40 = vadd.f32 %v333_v38, %v275_v26 }
  0xfd   :  { %264 = vst [vmem:[%s506_s3 + $0x8] sm:$0xff] %v236_v39  ;;  %268 = vst [vmem:[%s506_s3 + $0x28] sm:$0xff] %v252_v40  ;;  %v322_v41 = vpop.f32.mrb[4].mxu0  ;;  %v334_v42 = vpop.f32.mrb[4].mxu1 }
  0xfe   :  { %v323_v43 = vpop.f32.mrb[5].mxu0  ;;  %v335_v44 = vpop.f32.mrb[5].mxu1 }
  0xff   :  { %v324_v45 = vadd.f32 %v323_v43, %v322_v41  ;;  %v336_v46 = vadd.f32 %v335_v44, %v334_v42  ;;  %v325_v47 = vpop.f32.mrb[6].mxu0  ;;  %v337_v48 = vpop.f32.mrb[6].mxu1 }
 0x100   :  { %v326_v49 = vpop.f32.mrb[7].mxu0  ;;  %v338_v50 = vpop.f32.mrb[7].mxu1 }
 0x101   :  { %v241_v51 = vadd.f32 %v324_v45, %v275_v26  ;;  %v257_v52 = vadd.f32 %v336_v46, %v275_v26  ;;  %v327_v53 = vadd.f32 %v326_v49, %v325_v47  ;;  %v339_v54 = vadd.f32 %v338_v50, %v337_v48 }
 0x103   :  { %265 = vst [vmem:[%s506_s3 + $0x10] sm:$0xff] %v241_v51  ;;  %269 = vst [vmem:[%s506_s3 + $0x30] sm:$0xff] %v257_v52  ;;  %v244_v55 = vadd.f32 %v327_v53, %v275_v26  ;;  %v260_v56 = vadd.f32 %v339_v54, %v275_v26 }
 0x105   :  { %266 = vst [vmem:[%s506_s3 + $0x18] sm:$0xff] %v244_v55  ;;  %270 = vst [vmem:[%s506_s3 + $0x38] sm:$0xff] %v260_v56 }

// kernel: _forward_full.3
= control target key start
LH: loop header
LB: loop body
LE: loop exit
PB: predicated region body
PF: predicated region fallthrough
CT: control target
= control target key end

     0   :  { %s5869_s0 = inlined_call_operand.vmem [shape: bf16[64,32], index: 0, kind: input, shape index: {}]   ;;  %s5870_s1 = inlined_call_operand.hbm [shape: bf16[2,32,384], index: 1, kind: input, shape index: {}]   ;;  %s5871_s2 = inlined_call_operand.hbm [shape: f32[2,1,384], index: 2, kind: input, shape index: {}]   ;;  %s5872_s3 = inlined_call_operand.hbm [shape: bf16[2,128,384], index: 3, kind: input, shape index: {}]   ;;  %s5873_s4 = inlined_call_operand.hbm [shape: f32[2,1,128], index: 4, kind: input, shape index: {}]   ;;  %s5874_s5 = inlined_call_operand.vmem [shape: f32[64,1], index: 5, kind: input, shape index: {}]   ;;  %s5875_s6 = inlined_call_operand.vmem [shape: bf16[64,256], index: 6, kind: output, shape index: {}]  }
   0x1   :  { %5906 = sst [smem:[#allocation35_spill]] %s5870_s1 }
   0x2   :  { %5907 = sst [smem:[#allocation36_spill]] %s5871_s2 }
   0x3   :  { %11 = vsyncpa [#allocation6], 0 }
   0x4   :  { %13 = vsyncpa [#allocation6 + $0x1], 0 }
   0x5   :  { %14 = vsyncpa [#allocation8], 0 }
   0x6   :  { %16 = vsyncpa [#allocation8 + $0x1], 0 }
   0x7   :  { %17 = vsyncpa [#allocation11], 0 }
   0x8   :  { %19 = vsyncpa [#allocation11 + $0x1], 0  ;;  %s4511_s21 = smov 0   ;;  %s4513_s22 = smov 0  }
   0x9   :  { %s4515_s23 = smov 0   ;;  %s4517_s24 = smov 0  }
   0xa   :  { %s4519_s25 = smov 0   ;;  %s4521_s26 = smov 0  }
   0xb LB: > { %s4540_s27 = sadd.s32 4294967295, %s4460_s26   ;;  %s37_s28 = sadd.s32 1, %s4456_s25  ;;  %s4460_s26 = sphi %s4521_s26, %s25_s26   ;;  %s4456_s25 = sphi %s4519_s25, %s5963_s25   ;;  %s4452_s24 = sphi %s4517_s24, %s5962_s24   ;;  %s4448_s23 = sphi %s4515_s23, %s5961_s23   ;;  %s4444_s22 = sphi %s4513_s22, %s5960_s22   ;;  %s4440_s21 = sphi %s4511_s21, %s5959_s21  }
   0xc   : > { %p39_p0 = scmp.ge.s32.totalorder %s37_s28, 2  ;;  %s78_s29 = sadd.s32 1, %s4448_s23 }
   0xd   : > { %p85_p1 = scmp.ne.s32.totalorder %s4448_s23, %s4444_s22  ;;  %p86_p2 = scmp.eq.s32.totalorder %s4460_s26, 0 }
   0xe   : > { %s5965_s28 = smov (%p39_p0, %s37_s28), 0  ;;  %p91_p4 = scmp.ne.s32.totalorder %s4444_s22, %s4440_s21 }
   0xf   : > { %5908 = sst [smem:[#allocation16_spill]] %s5965_s28  ;;  %p87_p3 = por %p86_p2, %p85_p1 }
  0x10   : > { %s75_s30 = ssub.s32 %s4456_s25, %s5965_s28  ;;  %p92_p5 = scmp.eq.s32.totalorder %s4540_s27, 0 }
  0x11   : > { %p76_p6 = scmp.eq.s32.totalorder %s75_s30, 0  ;;  %p237_p7 = scmp.eq.s32.totalorder %s4540_s27, 1 }
  0x12   : > { %p4554_p8 = por %p92_p5, %p91_p4  ;;  %p4047_p10 = scmp.lt.s32.totalorder %s4460_s26, 2 }
  0x13   : > { %s4559_s8 = scalar_select %p76_p6, %s4448_s23, %s78_s29  }
  0x14   : > { %s5909_s7 = scalar_select %p4554_p8, 1, 0 }
  0x15   : > { %5910 = sst [smem:[#allocation17_spill]] %s4559_s8  ;;  %p4561_p9 = por %p237_p7, %p85_p1 }
  0x16   : > { %s4567_s10 = sand.u32 1, %s4448_s23   ;;  %s301_s11 = sand.u32 1, %s4460_s26  }
  0x17   : > { %s5911_s9 = scalar_select %p4561_p9, 1, 0 }
  0x18   : > { %p4570_p11 = pnand %p4047_p10, %p87_p3  ;;  %s4019_s13 = smul.u32 3, %s4567_s10 }
  0x19   : > { %p3372_p12 = scmp.ge.s32.totalorder %s4460_s26, 1  ;;  %s4020_s14 = smul.u32 48, %s4456_s25 }
  0x1a   : > { %s5912_s12 = scalar_select %p4570_p11, 1, 0 }
  0x1b   : > { %p373_p13 = scmp.lt.s32.totalorder %s4460_s26, 3  ;;  %s5913_s2 = sld [smem:[#allocation36_spill]] }
  0x1c   : > { %s305_s18 = scalar_lea.vmem [#allocation7], %s4019_s13  ;;  %s4589_s21 = scalar_lea.sflag [#allocation8], %s301_s11 }
  0x1d   : > { %s313_s19 = sshll.u32 %s305_s18, 4  ;;  %p4585_p0 = pnand %p3372_p12, %p373_p13  ;;  %s4583_s19 = int_to_ptr.vmem [resolvable:$true] %s313_s19 }
  0x1e   : > { %p4595_p2 = pneg %p4570_p11 }
  0x1f   : > { %s5914_s20 = scalar_select %p4585_p0, 1, 0 }
  0x21   : > { %s4581_s17 = scalar_lea.hbm %s5913_s2, %s4020_s14  ;;  %s4287_s15 = scalar_lea.hbm %s5913_s2, 96 }
  0x22   : > { %s4282_s29 = scalar_lea.hbm %s4581_s17, 48  ;;  %p4288_p5 = scmp.lt.u32.totalorder %s4581_s17, %s5913_s2 }
  0x23   : > { %p4283_p1 = scmp.ne.s32.totalorder %s4581_s17, %s4282_s29  ;;  %p4289_p6 = scmp.lt.u32.totalorder %s4287_s15, %s4282_s29 }
  0x24   : > { %p4291_p10 = scmp.lt.u32.totalorder %s4282_s29, %s4581_s17 }
  0x25   : > { %p4285_p3 = pnand %p4595_p2, %p4283_p1  ;;  %p4290_p7 = por %p4289_p6, %p4288_p5 }
  0x27   : > { %p4286_p4 = pneg %p4285_p3  ;;  %p4292_p12 = por %p4291_p10, %p4290_p7 }
  0x29   : > { %p4293_p13 = pnand %p4292_p12, %p4286_p4 }
  0x2b   : > { %4296 = shalt.err (!%p4293_p13)
}
  0x2c   : > { %s4297_s11 = scalar_lea.vmem %s4583_s19, 48  ;;  %s4462_s13 = smov [#allocation7]  }
  0x2d   : > { %p4298_p1 = scmp.ne.s32.totalorder %s4583_s19, %s4297_s11  ;;  %s4302_s14 = sshll.u32 %s4462_s13, 4  ;;  %s4303_s14 = int_to_ptr.vmem [resolvable:$false] %s4302_s14 }
  0x2e   : > { %s4304_s16 = scalar_lea.vmem %s4303_s14, 96  ;;  %p4305_p8 = scmp.lt.s32.totalorder %s4583_s19, %s4303_s14 }
  0x2f   : > { %p4300_p3 = pnand %p4298_p1, %p4595_p2  ;;  %p4306_p0 = scmp.lt.s32.totalorder %s4304_s16, %s4297_s11 }
  0x31   : > { %p4301_p9 = pneg %p4300_p3  ;;  %p4307_p5 = por %p4306_p0, %p4305_p8 }
  0x33   : > { %p4308_p6 = pnand %p4307_p5, %p4301_p9 }
  0x35   : > { %4311 = shalt.err (!%p4308_p6)
}
  0x36   : > { %4040 = dma.hbm_to_vmem [thread:$0]  (!%p4570_p11), %s4581_s17, 48, %s4583_s19, %s4589_s21  }
  0x37   : > { %s4017_s29 = smul.u32 48, %s4567_s10  ;;  %s5916_s1 = sld [smem:[#allocation35_spill]] }
  0x38   : > { %s4018_s15 = smul.u32 768, %s4456_s25  ;;  %s281_s28 = scalar_lea.sflag [#allocation6], %s4567_s10 }
  0x39   : > { %s284_s14 = scalar_lea.vmem [#allocation5], %s4017_s29  ;;  %s4021_s2 = smul.u32 192, %s4567_s10 }
  0x3a   : > { %s291_s16 = sshll.u32 %s284_s14, 4  ;;  %s4626_s16 = int_to_ptr.vmem [resolvable:$true] %s291_s16 }
  0x3d   : > { %s4624_s11 = scalar_lea.hbm %s5916_s1, %s4018_s15  ;;  %s4317_s15 = scalar_lea.hbm %s5916_s1, 1536 }
  0x3e   : > { %s4312_s8 = scalar_lea.hbm %s4624_s11, 768  ;;  %p4318_p4 = scmp.lt.u32.totalorder %s4624_s11, %s5916_s1 }
  0x3f   : > { %p4313_p8 = scmp.ne.s32.totalorder %s4624_s11, %s4312_s8  ;;  %p4319_p7 = scmp.lt.u32.totalorder %s4317_s15, %s4312_s8 }
  0x40   : > { %p4321_p12 = scmp.lt.u32.totalorder %s4312_s8, %s4624_s11 }
  0x41   : > { %p4315_p9 = pnand %p4313_p8, %p4595_p2  ;;  %p4320_p10 = por %p4319_p7, %p4318_p4 }
  0x43   : > { %p4316_p0 = pneg %p4315_p9  ;;  %p4322_p13 = por %p4321_p12, %p4320_p10 }
  0x45   : > { %p4323_p1 = pnand %p4322_p13, %p4316_p0 }
  0x47   : > { %4326 = shalt.err (!%p4323_p1)
}
  0x48   : > { %s4327_s29 = scalar_lea.vmem %s4626_s16, 768  ;;  %s4463_s14 = smov [#allocation5]  }
  0x49   : > { %p4328_p3 = scmp.ne.s32.totalorder %s4626_s16, %s4327_s29  ;;  %s4332_s17 = sshll.u32 %s4463_s14, 4  ;;  %s4333_s17 = int_to_ptr.vmem [resolvable:$false] %s4332_s17 }
  0x4a   : > { %s4334_s19 = scalar_lea.vmem %s4333_s17, 1536  ;;  %p4335_p8 = scmp.lt.s32.totalorder %s4626_s16, %s4333_s17 }
  0x4b   : > { %p4330_p5 = pnand %p4328_p3, %p4595_p2  ;;  %p4336_p9 = scmp.lt.s32.totalorder %s4334_s19, %s4327_s29 }
  0x4d   : > { %p4331_p6 = pneg %p4330_p5  ;;  %p4337_p4 = por %p4336_p9, %p4335_p8 }
  0x4f   : > { %p4338_p7 = pnand %p4337_p4, %p4331_p6 }
  0x51   : > { %4341 = shalt.err (!%p4338_p7)
}
  0x52   : > { %s4464_s8 = smov 192   ;;  %s4465_s15 = smov 12  }
  0x53   : > { %4037 = dma.hbm_to_vmem [thread:$0]  (!%p4570_p11), %s4624_s11, 768, %s4626_s16, %s281_s28, %s4464_s8, %s4464_s8, %s4465_s15  }
  0x54   : > { %s4022_s18 = smul.u32 3072, %s4456_s25  ;;  %s324_s13 = scalar_lea.vmem [#allocation9], %s4021_s2 }
  0x55   : > { %s331_s29 = sshll.u32 %s324_s13, 4  ;;  %s4347_s2 = scalar_lea.hbm %s5872_s3, 6144  ;;  %s4664_s29 = int_to_ptr.vmem [resolvable:$true] %s331_s29 }
  0x56   : > { %s4662_s19 = scalar_lea.hbm %s5872_s3, %s4022_s18 }
  0x57   : > { %s4342_s1 = scalar_lea.hbm %s4662_s19, 3072  ;;  %p4348_p13 = scmp.lt.u32.totalorder %s4662_s19, %s5872_s3 }
  0x58   : > { %p4343_p0 = scmp.ne.s32.totalorder %s4662_s19, %s4342_s1  ;;  %p4349_p1 = scmp.lt.u32.totalorder %s4347_s2, %s4342_s1 }
  0x59   : > { %p4351_p5 = scmp.lt.u32.totalorder %s4342_s1, %s4662_s19 }
  0x5a   : > { %p4345_p10 = pnand %p4343_p0, %p4595_p2  ;;  %p4350_p3 = por %p4349_p1, %p4348_p13 }
  0x5c   : > { %p4346_p12 = pneg %p4345_p10  ;;  %p4352_p6 = por %p4351_p5, %p4350_p3 }
  0x5e   : > { %p4353_p8 = pnand %p4352_p6, %p4346_p12 }
  0x60   : > { %4356 = shalt.err (!%p4353_p8)
}
  0x61   : > { %s4357_s18 = scalar_lea.vmem %s4664_s29, 3072  ;;  %s4466_s14 = smov [#allocation9]  }
  0x62   : > { %p4358_p9 = scmp.ne.s32.totalorder %s4664_s29, %s4357_s18  ;;  %s4362_s17 = sshll.u32 %s4466_s14, 4  ;;  %s4363_s17 = int_to_ptr.vmem [resolvable:$false] %s4362_s17 }
  0x63   : > { %s4364_s28 = scalar_lea.vmem %s4363_s17, 6144  ;;  %p4365_p0 = scmp.lt.s32.totalorder %s4664_s29, %s4363_s17 }
  0x64   : > { %p4360_p4 = pnand %p4358_p9, %p4595_p2  ;;  %p4366_p10 = scmp.lt.s32.totalorder %s4364_s28, %s4357_s18 }
  0x66   : > { %p4361_p7 = pneg %p4360_p4  ;;  %p4367_p13 = por %p4366_p10, %p4365_p0 }
  0x68   : > { %p4368_p1 = pnand %p4367_p13, %p4361_p7 }
  0x6a   : > { %4371 = shalt.err (!%p4368_p1)
}
  0x6b   : > { %4043 = dma.hbm_to_vmem [thread:$0]  (!%p4570_p11), %s4662_s19, 3072, %s4664_s29, %s4589_s21, %s4464_s8, %s4464_s8, %s4465_s15  }
  0x6c   : > { %s3370_s1 = sshll.u32 %s4456_s25, 4  ;;  %s344_s13 = scalar_lea.vmem [#allocation10], %s4567_s10 }
  0x6d   : > { %s4695_s16 = scalar_lea.hbm %s5873_s4, %s3370_s1  ;;  %s351_s18 = sshll.u32 %s344_s13, 4  ;;  %s352_s18 = int_to_ptr.vmem [resolvable:$true] %s351_s18 }
  0x6e   : > { %s342_s14 = scalar_lea.sflag [#allocation11], %s4567_s10  ;;  %s4372_s17 = scalar_lea.hbm %s4695_s16, 16 }
  0x6f   : > { %p4373_p12 = scmp.ne.s32.totalorder %s4695_s16, %s4372_s17  ;;  %s4377_s15 = scalar_lea.hbm %s5873_s4, 32 }
  0x70   : > { %p4378_p6 = scmp.lt.u32.totalorder %s4695_s16, %s5873_s4  ;;  %p4379_p8 = scmp.lt.u32.totalorder %s4377_s15, %s4372_s17 }
  0x71   : > { %p4375_p3 = pnand %p4373_p12, %p4595_p2  ;;  %p4381_p4 = scmp.lt.u32.totalorder %s4372_s17, %s4695_s16 }
  0x72   : > { %p4380_p9 = por %p4379_p8, %p4378_p6 }
  0x73   : > { %p4376_p5 = pneg %p4375_p3 }
  0x74   : > { %p4382_p7 = por %p4381_p4, %p4380_p9 }
  0x76   : > { %p4383_p0 = pnand %p4382_p7, %p4376_p5 }
  0x78   : > { %4386 = shalt.err (!%p4383_p0)
}
  0x79   : > { %s4387_s10 = scalar_lea.vmem %s352_s18, 16  ;;  %s4467_s28 = smov [#allocation10]  }
  0x7a   : > { %p4388_p10 = scmp.ne.s32.totalorder %s352_s18, %s4387_s10  ;;  %s4392_s1 = sshll.u32 %s4467_s28, 4  ;;  %s4393_s1 = int_to_ptr.vmem [resolvable:$false] %s4392_s1 }
  0x7b   : > { %s4394_s11 = scalar_lea.vmem %s4393_s1, 32  ;;  %p4395_p12 = scmp.lt.s32.totalorder %s352_s18, %s4393_s1 }
  0x7c   : > { %p4390_p13 = pnand %p4388_p10, %p4595_p2  ;;  %p4396_p3 = scmp.lt.s32.totalorder %s4394_s11, %s4387_s10 }
  0x7e   : > { %p4391_p1 = pneg %p4390_p13  ;;  %p4397_p11 = por %p4396_p3, %p4395_p12 }
  0x80   : > { %p4398_p6 = pnand %p4397_p11, %p4391_p1 }
  0x82   : > { %4401 = shalt.err (!%p4398_p6)
}
  0x83   : > { %p5917_p8 = scmp.ne.s32.totalorder %s5912_s12, 0  ;;  %p5918_p5 = scmp.ne.s32.totalorder %s5914_s20, 0 }
  0x85   : > { %4046 = dma.hbm_to_vmem [thread:$0]  (!%p5917_p8), %s4695_s16, 16, %s352_s18, %s342_s14  }
  0x86   : > { %377 = sbr.rel (%p5918_p5) target bundleno = 4793 (0x12b9), region = 44 }
  0x8d   : > { %s4719_s30 = sand.u32 1, %s4444_s22   ;;  %p5919_p2 = scmp.ne.s32.totalorder %s5909_s7, 0 }
  0x8e   : > { %s4023_s2 = smul.u32 48, %s4719_s30  ;;  %s380_s13 = scalar_lea.sflag [#allocation6], %s4719_s30 }
  0x90   : > { %s4723_s17 = scalar_lea.vmem [#allocation5], %s4023_s2 }
  0x91   : > { %4427 = dma.done.wait (%p5919_p2), %s380_s13, 768  }
  0x92   : > { %4429 = vsyncadd (%p5919_p2), %s380_s13, 4294966528  ;;  %s388_s12 = sand.u32 1, %s4540_s27   ;;  %s4024_s20 = smul.u32 3, %s4719_s30 }
  0x93   : > { %s389_s16 = scalar_lea.sflag [#allocation8], %s388_s12 }
  0x94   : > { %s4731_s18 = scalar_lea.vmem [#allocation7], %s4024_s20 }
  0x95   : > { %4431 = dma.done.wait (%p5919_p2), %s389_s16, 3120  }
  0x96   : > { %4433 = vsyncadd (%p5919_p2), %s389_s16, 4294964176  ;;  %s4025_s14 = smul.u32 192, %s4719_s30  ;;  %s407_s8 = scalar_lea.sflag [#allocation11], %s4719_s30 }
  0x97   : > { %s409_s15 = scalar_lea.vmem [#allocation10], %s4719_s30 }
  0x98   : > { %s4738_s21 = scalar_lea.vmem [#allocation9], %s4025_s14 }
  0x99   : > { %4435 = dma.done.wait (%p5919_p2), %s407_s8, 16  }
  0x9a   : > { %4437 = vsyncadd (%p5919_p2), %s407_s8, 4294967280  ;;  %s3373_s27 = sshll.u32 %s4719_s30, 5  ;;  %v4468_v0 = vmov 0.0   ;;  %v4469_v1 = vmov 0   ;;  %v4750_v2 = vld [vmem:[%s4738_s21] sm:$0xff]  ;;  %v4756_v4 = vld [vmem:[%s4738_s21 + $0xc] sm:$0xff]  ;;  %v526_v45 = vlaneseq }
  0x9b   : > { %507 = vst [vmem:[#allocation2] sm:$0xff] %v4468_v0  ;;  %638 = vmatprep.mubr.bf16.mxu0 %v4469_v1  ;;  %668 = vmatprep.mubr.bf16.mxu1 %v4469_v1  ;;  %v4753_v3 = vld [vmem:[%s4738_s21 + $0x8] sm:$0xf]  ;;  %v4759_v5 = vld [vmem:[%s4738_s21 + $0x14] sm:$0xf]  ;;  %v4762_v6 = vld [vmem:[%s4738_s21 + $0x18] sm:$0xff] }
  0x9c   : > { %v4765_v7 = vld [vmem:[%s4738_s21 + $0x20] sm:$0xf]  ;;  %v4768_v8 = vld [vmem:[%s4738_s21 + $0x24] sm:$0xff]  ;;  %v4771_v9 = vld [vmem:[%s4738_s21 + $0x2c] sm:$0xf]  ;;  %vm593_vm0 = vcmask 261120  }
  0x9d   : > { %v4774_v10 = vld [vmem:[%s4738_s21 + $0x30] sm:$0xff]  ;;  %v4777_v11 = vld [vmem:[%s4738_s21 + $0x38] sm:$0xf]  ;;  %v4780_v12 = vld [vmem:[%s4738_s21 + $0x3c] sm:$0xff]  ;;  %v527_v46 = vshrl.u32 %v526_v45, 7  ;;  %s4903_s13 = scalar_lea.vmem [#allocation12], %s3373_s27 }
  0x9e   : > { %v4783_v13 = vld [vmem:[%s4738_s21 + $0x44] sm:$0xf]  ;;  %v4786_v14 = vld [vmem:[%s4738_s21 + $0x48] sm:$0xff]  ;;  %v4789_v15 = vld [vmem:[%s4738_s21 + $0x50] sm:$0xf]  ;;  %p3392_p11 = scmp.ne.s32.totalorder %s4452_s24, 0 }
  0x9f   : > { %5920 = vst [vmem:[#allocation18_spill] sm:$0xff] %v4789_v15  ;;  %v4792_v16 = vld [vmem:[%s4738_s21 + $0x54] sm:$0xff]  ;;  %v4795_v17 = vld [vmem:[%s4738_s21 + $0x5c] sm:$0xf]  ;;  %v4798_v18 = vld [vmem:[%s4738_s21 + $0x60] sm:$0xff]  ;;  %v4877_v47 = vsub.s32 0, %v527_v46 }
  0xa0   : > { %v4801_v19 = vld [vmem:[%s4738_s21 + $0x68] sm:$0xf]  ;;  %v4804_v20 = vld [vmem:[%s4738_s21 + $0x6c] sm:$0xff]  ;;  %v4807_v21 = vld [vmem:[%s4738_s21 + $0x74] sm:$0xf]  ;;  %v532_v49 = vsub.s32 1, %v527_v46 }
  0xa1   : > { %5921 = vst [vmem:[#allocation19_spill] sm:$0xff] %v4801_v19  ;;  %5922 = vst [vmem:[#allocation20_spill] sm:$0xff] %v4807_v21  ;;  %v4810_v22 = vld [vmem:[%s4738_s21 + $0x78] sm:$0xff]  ;;  %v4813_v23 = vld [vmem:[%s4738_s21 + $0x80] sm:$0xf]  ;;  %v536_v58 = vsub.s32 2, %v527_v46 }
  0xa2   : > { %5923 = vst [vmem:[#allocation21_spill] sm:$0xff] %v4810_v22  ;;  %5924 = vst [vmem:[#allocation22_spill] sm:$0xff] %v4813_v23  ;;  %v4816_v24 = vld [vmem:[%s4738_s21 + $0x84] sm:$0xff]  ;;  %v4819_v25 = vld [vmem:[%s4738_s21 + $0x8c] sm:$0xf]  ;;  %vm4472_vm1 = vmmov (!%p3392_p11), 0  }
  0xa3   : > { %5925 = vst [vmem:[#allocation23_spill] sm:$0xff] %v4816_v24  ;;  %5926 = vst [vmem:[#allocation24_spill] sm:$0xff] %v4819_v25  ;;  %v4822_v26 = vld [vmem:[%s4738_s21 + $0x90] sm:$0xff]  ;;  %v4825_v27 = vld [vmem:[%s4738_s21 + $0x98] sm:$0xf] }
  0xa4   : > { %5927 = vst [vmem:[#allocation25_spill] sm:$0xff] %v4822_v26  ;;  %5928 = vst [vmem:[#allocation26_spill] sm:$0xff] %v4825_v27  ;;  %v4828_v28 = vld [vmem:[%s4738_s21 + $0x9c] sm:$0xff]  ;;  %v4831_v29 = vld [vmem:[%s4738_s21 + $0xa4] sm:$0xf] }
  0xa5   : > { %5929 = vst [vmem:[#allocation27_spill] sm:$0xff] %v4828_v28  ;;  %5930 = vst [vmem:[#allocation28_spill] sm:$0xff] %v4831_v29  ;;  %v4834_v30 = vld [vmem:[%s4738_s21 + $0xa8] sm:$0xff]  ;;  %v4837_v31 = vld [vmem:[%s4738_s21 + $0xb0] sm:$0xf] }
  0xa6   : > { %5931 = vst [vmem:[#allocation29_spill] sm:$0xff] %v4834_v30  ;;  %5932 = vst [vmem:[#allocation30_spill] sm:$0xff] %v4837_v31  ;;  %v4840_v32 = vld [vmem:[%s4738_s21 + $0xb4] sm:$0xff]  ;;  %v4843_v33 = vld [vmem:[%s4738_s21 + $0xbc] sm:$0xf] }
  0xa7   : > { %5933 = vst [vmem:[#allocation31_spill] sm:$0xff] %v4840_v32  ;;  %5934 = vst [vmem:[#allocation32_spill] sm:$0xff] %v4843_v33  ;;  %v4847_v34 = vld [vmem:[%s409_s15] sm:$0x1]  ;;  %v4106_v35 = vld [vmem:[%s4723_s17 + $0x4] ss:$12 sps:$4 sm:$0xff]  }
  0xa8   : > { %5935 = vst [vmem:[#allocation33_spill] sm:$0xff] %v4847_v34  ;;  %v4108_v36 = vld [vmem:[%s4723_s17] ss:$12 sps:$4 sm:$0xff]   ;;  %606 = vmatprep.subr.bf16.mxu0 %v4106_v35  ;;  %4013 = vmatprep.subr.bf16.mxu1 %v4106_v35  ;;  %v4109_v37 = vld [vmem:[%s4723_s17 + $0x1c] ss:$12 sps:$4 sm:$0xff]   ;;  %5936 = vst [vmem:[#allocation34_spill] sm:$0xff] %v4877_v47 }
  0xa9   : > { %607 = vmatpush1.bf16.msra.mxu0 %v4108_v36  ;;  %4015 = vmatpush1.bf16.msra.mxu1 %v4108_v36  ;;  %v4111_v38 = vld [vmem:[%s4723_s17 + $0x18] ss:$12 sps:$4 sm:$0xff]   ;;  %v4114_v40 = vld [vmem:[%s4723_s17 + $0x8] ss:$12 sps:$4 sm:$0xff]   ;;  %v4115_v42 = vld [vmem:[%s4723_s17 + $0x20] ss:$12 sps:$4 sm:$0xff]  }
  0xaa   : > { %608 = vmatprep.subr.bf16.mxu0 %v4109_v37  ;;  %4014 = vmatprep.subr.bf16.mxu1 %v4109_v37  ;;  %v4112_v39 = vld [vmem:[%s5869_s0] sm:$0xff]   ;;  %v4113_v41 = vld [vmem:[%s5869_s0 + $0x18] sm:$0xff]   ;;  %v4116_v43 = vld [vmem:[%s5869_s0 + $0x8] sm:$0xff]  }
  0xab   : > { %v4117_v44 = vld [vmem:[%s5869_s0 + $0x10] sm:$0xff]   ;;  %v524_v48 = vld [vmem:[%s4731_s18] sm:$0x7] }
  0xac   : > { %v4881_v50 = vrot.slane %v524_v48, %v4877_v47  ;;  %v4883_v51 = vrot.slane %v524_v48, %v532_v49 }
  0xad   : > { %609 = vmatpush1.bf16.msra.mxu0 %v4111_v38  ;;  %4016 = vmatpush1.bf16.msra.mxu1 %v4111_v38  ;;  %v537_v38 = vrot.slane %v524_v48, %v536_v58 }
  0xae   : > { %3681 = vmatprep.subr.bf16.mxu1 %v4114_v40 }
  0xb0   : > { %3384 = vmatmul.mubr.msk.bf16.vlgmr.msra.gmra.mrb[0].mxu0 %vm593_vm0, %v4112_v39  ;;  %3387 = vmatmul.mubr.msk.bf16.vlgmr.msra.gmra.mrb[0].mxu1 %vm593_vm0, %v4113_v41 }
  0xb1   : > { %3682 = vmatpush3.bf16.msra.mxu1 %v4114_v40  ;;  %648 = vmatprep.mubr.bf16.mxu0 %v4469_v1 }
  0xb2   : > { %3683 = vmatprep.subr.bf16.mxu1 %v4115_v42  ;;  %3685 = vmatprep.mubr.msk.bf16.mxu1 %vm593_vm0, %v4112_v39 }
  0xb5   : > { %3684 = vmatpush3.bf16.msra.mxu1 %v4115_v42 }
  0xb8   : > { %3385 = vmatmul.mubr.msk.bf16.gmra.mrb[4].mxu0 %vm593_vm0, %v4116_v43  ;;  %3686 = vmatmul.mubr.msk.bf16.vlgmr.msra.gmra.mrb[4].mxu1 %vm593_vm0, %v4116_v43 }
  0xb9   : > { %658 = vmatprep.mubr.bf16.mxu0 %v4469_v1  ;;  %3689 = vmatprep.mubr.msk.bf16.mxu1 %vm593_vm0, %v4117_v44 }
  0xc0   : > { %3386 = vmatmul.mubr.msk.bf16.gmra.mrb[8].mxu0 %vm593_vm0, %v4117_v44  ;;  %3690 = vmatmul.mubr.msk.bf16.gmra.mrb[8].mxu1 %vm593_vm0, %v4113_v41 }
 0x183   : > { %v640_v52 = vpop.f32.mrb[0].mxu0  ;;  %v670_v53 = vpop.f32.mrb[0].mxu1 }
 0x184   : > { %v641_v54 = vadd.f32 %v640_v52, %v4881_v50  ;;  %v671_v55 = vadd.f32 %v670_v53, %v4881_v50  ;;  %v642_v56 = vpop.f32.mrb[1].mxu0  ;;  %v672_v57 = vpop.f32.mrb[1].mxu1 }
 0x185   : > { %v643_v59 = vadd.f32 %v642_v56, %v4883_v51  ;;  %v673_v60 = vadd.f32 %v672_v57, %v4883_v51  ;;  %v644_v61 = vpop.f32.mrb[2].mxu0  ;;  %v674_v62 = vpop.f32.mrb[2].mxu1 }
 0x186   : > { %744 = vst [vmem:[#allocation3] sm:$0xff] %v641_v54  ;;  %762 = vst [vmem:[#allocation3 + $0x90] sm:$0xff] %v671_v55  ;;  %v645_v63 = vadd.f32 %v644_v61, %v4881_v50  ;;  %v675_v0 = vadd.f32 %v674_v62, %v4881_v50  ;;  %v646_v1 = vpop.f32.mrb[3].mxu0  ;;  %v676_v35 = vpop.f32.mrb[3].mxu1 }
 0x187   : > { %745 = vst [vmem:[#allocation3 + $0x8] sm:$0xff] %v643_v59  ;;  %763 = vst [vmem:[#allocation3 + $0x98] sm:$0xff] %v673_v60  ;;  %v647_v36 = vadd.f32 %v646_v1, %v4883_v51  ;;  %v677_v37 = vadd.f32 %v676_v35, %v4883_v51 }
 0x188   : > { %747 = vst [vmem:[#allocation3 + $0x18] sm:$0xff] %v645_v63  ;;  %765 = vst [vmem:[#allocation3 + $0xa8] sm:$0xff] %v675_v0 }
 0x189   : > { %748 = vst [vmem:[#allocation3 + $0x20] sm:$0xff] %v647_v36  ;;  %766 = vst [vmem:[#allocation3 + $0xb0] sm:$0xff] %v677_v37 }
 0x18b   : > { %v650_v39 = vpop.f32.mrb[4].mxu0  ;;  %v3687_v40 = vpop.f32.mrb[4].mxu1 }
 0x18c   : > { %v651_v41 = vadd.f32 %v650_v39, %v4881_v50  ;;  %v722_v42 = vadd.f32 %v3687_v40, %v537_v38  ;;  %v652_v43 = vpop.f32.mrb[5].mxu0  ;;  %v713_v44 = vpop.f32.mrb[5].mxu1 }
 0x18d   : > { %v653_v45 = vadd.f32 %v652_v43, %v4883_v51  ;;  %v714_v46 = vadd.f32 %v713_v44, %v537_v38  ;;  %v654_v49 = vpop.f32.mrb[6].mxu0  ;;  %v3688_v52 = vpop.f32.mrb[6].mxu1  ;;  %v4912_v44 = vcombine.low (!%p3392_p11), %v4750_v2, %v4756_v4 }
 0x18e   : > { %750 = vst [vmem:[#allocation3 + $0x30] sm:$0xff] %v651_v41  ;;  %752 = vst [vmem:[#allocation3 + $0x40] sm:$0xff] %v722_v42  ;;  %v655_v53 = vadd.f32 %v654_v49, %v4881_v50  ;;  %v725_v54 = vadd.f32 %v3688_v52, %v537_v38  ;;  %v656_v48 = vpop.f32.mrb[7].mxu0  ;;  %v716_v55 = vpop.f32.mrb[7].mxu1  ;;  %v5897_v49 = vmov (!%p3392_p11), 0.0   ;;  %v4937_v52 = vcombine.low (!%p3392_p11), %v4765_v7, %v4771_v9 }
 0x18f   : > { %751 = vst [vmem:[#allocation3 + $0x38] sm:$0xff] %v653_v45  ;;  %746 = vst [vmem:[#allocation3 + $0x10] sm:$0xff] %v714_v46  ;;  %v657_v56 = vadd.f32 %v656_v48, %v4883_v51  ;;  %v717_v57 = vadd.f32 %v716_v55, %v537_v38  ;;  %v4926_v45 = vcombine.low (!%p3392_p11), %v4753_v3, %v4759_v5  ;;  %3693 = vmatprep.subr.bf16.mxu1 (!%p3392_p11), %v5897_v49 }
 0x190   : > { %753 = vst [vmem:[#allocation3 + $0x48] sm:$0xff] %v655_v53  ;;  %755 = vst [vmem:[#allocation3 + $0x58] sm:$0xff] %v725_v54  ;;  %v4931_v46 = vcombine.high (!%p3392_p11), %v4774_v10, %v4780_v12  ;;  %v5879_v53 = vmov (!%p3392_p11), 0   ;;  %v811_v54 = vld [vmem:[%s5874_s5] sm:$0xff] (!%p3392_p11)  ;;  %v4947_v48 = vcombine.low (!%p3392_p11), %v4774_v10, %v4780_v12  ;;  %3709 = vmatprep.mubr.msk.bf16.mxu1 (!%p3392_p11), %vm4472_vm1, %v5897_v49  ;;  %v4954_v55 = vcombine.high (!%p3392_p11), %v4786_v14, %v4792_v16 }
 0x191   : > { %754 = vst [vmem:[#allocation3 + $0x50] sm:$0xff] %v657_v56  ;;  %749 = vst [vmem:[#allocation3 + $0x28] sm:$0xff] %v717_v57  ;;  %3694 = vmatpush3.bf16.msra.mxu1 (!%p3392_p11), %v4926_v45  ;;  %974 = vmatprep.mubr.bf16.mxu0 (!%p3392_p11), %v5879_v53  ;;  %v4960_v56 = vcombine.low (!%p3392_p11), %v4777_v11, %v4783_v13  ;;  %v3419_v57 = vld [vmem:[%s5874_s5 + $0x8] sm:$0xff] (!%p3392_p11) }
 0x192   : > { %3695 = vmatprep.subr.bf16.mxu1 (!%p3392_p11), %v5897_v49  ;;  %4118 = vset.pattern.permute.xlu0 (!%p3392_p11), %v5879_v53 }
 0x193   : > { %v660_v58 = vpop.f32.mrb[8].mxu0  ;;  %v3691_v59 = vpop.f32.mrb[8].mxu1  ;;  %804 = sbr.rel (%p3392_p11) target bundleno = 2591 (0xa1f), region = 68  ;;  %1053 = vperm.xlu0 (!%p3392_p11), %4118, %v811_v54   ;;  %4119 = vset.pattern.permute.xlu1 (!%p3392_p11), %v5879_v53  ;;  %v5048_v54 = vcombine.low (!%p3392_p11), %v4837_v31, %v4843_v33 }
 0x194   : > { %v661_v60 = vadd.f32 %v660_v58, %v4881_v50  ;;  %v738_v61 = vadd.f32 %v3691_v59, %v537_v38  ;;  %v662_v62 = vpop.f32.mrb[9].mxu0  ;;  %v729_v63 = vpop.f32.mrb[9].mxu1  ;;  %v4970_v58 = vcombine.low (!%p3392_p11), %v4786_v14, %v4792_v16  ;;  %v4975_v59 = vcombine.high (!%p3392_p11), %v4798_v18, %v4804_v20 }
 0x195   : > { %v663_v0 = vadd.f32 %v662_v62, %v4883_v51  ;;  %v730_v1 = vadd.f32 %v729_v63, %v537_v38  ;;  %v664_v35 = vpop.f32.mrb[10].mxu0  ;;  %v3692_v36 = vpop.f32.mrb[10].mxu1  ;;  %3696 = vmatpush3.bf16.msra.mxu1 (!%p3392_p11), %v4937_v52  ;;  %v4989_v62 = vcombine.low (!%p3392_p11), %v4798_v18, %v4804_v20  ;;  %v4994_v63 = vcombine.high (!%p3392_p11), %v4810_v22, %v4816_v24 }
 0x196   : > { %756 = vst [vmem:[#allocation3 + $0x60] sm:$0xff] %v661_v60  ;;  %764 = vst [vmem:[#allocation3 + $0xa0] sm:$0xff] %v738_v61  ;;  %v665_v37 = vadd.f32 %v664_v35, %v4881_v50  ;;  %v741_v39 = vadd.f32 %v3692_v36, %v537_v38  ;;  %v666_v40 = vpop.f32.mrb[11].mxu0  ;;  %v732_v41 = vpop.f32.mrb[11].mxu1  ;;  %v4908_v50 = vcombine.high (!%p3392_p11), %v4750_v2, %v4756_v4  ;;  %3697 = vmatprep.subr.bf16.mxu1 (!%p3392_p11), %v5897_v49  ;;  %v3428_v61 = vld [vmem:[%s5874_s5 + $0x20] sm:$0xff] (!%p3392_p11) }
 0x197   : > { %757 = vst [vmem:[#allocation3 + $0x68] sm:$0xff] %v663_v0  ;;  %758 = vst [vmem:[#allocation3 + $0x70] sm:$0xff] %v730_v1  ;;  %v667_v42 = vadd.f32 %v666_v40, %v4883_v51  ;;  %v733_v43 = vadd.f32 %v732_v41, %v537_v38  ;;  %v4916_v51 = vcombine.high (!%p3392_p11), %v4762_v6, %v4768_v8  ;;  %1176 = vperm.xlu0 (!%p3392_p11), %4118, %v3419_v57   ;;  %v3434_v1 = vld [vmem:[%s5874_s5 + $0x30] sm:$0xff] (!%p3392_p11) }
 0x198   : > { %759 = vst [vmem:[#allocation3 + $0x78] sm:$0xff] %v665_v37  ;;  %767 = vst [vmem:[#allocation3 + $0xb8] sm:$0xff] %v741_v39  ;;  %942 = vmatprep.subr.bf16.mxu0 (!%p3392_p11), %v4908_v50  ;;  %v4922_v38 = vcombine.low (!%p3392_p11), %v4762_v6, %v4768_v8  ;;  %v4980_v60 = vcombine.low (!%p3392_p11), %v4789_v15, %v4795_v17  ;;  %v4999_v0 = vcombine.low (!%p3392_p11), %v4801_v19, %v4807_v21 }
 0x199   : > { %760 = vst [vmem:[#allocation3 + $0x80] sm:$0xff] %v667_v42  ;;  %761 = vst [vmem:[#allocation3 + $0x88] sm:$0xff] %v733_v43  ;;  %943 = vmatpush1.bf16.msra.mxu0 (!%p3392_p11), %v4912_v44  ;;  %3698 = vmatpush3.bf16.msra.mxu1 (!%p3392_p11), %v4960_v56  ;;  %v5008_v35 = vcombine.low (!%p3392_p11), %v4810_v22, %v4816_v24  ;;  %v5013_v36 = vcombine.high (!%p3392_p11), %v4822_v26, %v4828_v28  ;;  %v5042_v43 = vld [vmem:[#allocation2] sm:$0xff] (!%p3392_p11) }
 0x19a   : > { %944 = vmatprep.subr.bf16.mxu0 %v4916_v51  ;;  %3699 = vmatprep.subr.bf16.mxu1 %v5897_v49  ;;  %v5018_v37 = vcombine.low %v4813_v23, %v4819_v25  ;;  %v5024_v39 = vcombine.low %v4822_v26, %v4828_v28  ;;  %v5029_v40 = vcombine.high %v4834_v30, %v4840_v32  ;;  %v809_v25 = vld [vmem:[#allocation3 + $0x8] sm:$0xff] }
 0x19b   : > { %1548 = vperm.xlu0 %4118, %v3428_v61   ;;  %v5034_v41 = vcombine.low %v4825_v27, %v4831_v29  ;;  %v5040_v42 = vcombine.low %v4834_v30, %v4840_v32  ;;  %v813_v57 = vpack.c.bf16 %v5042_v43, %v5042_v43  ;;  %v808_v61 = vld [vmem:[#allocation3] sm:$0xff] }
 0x19d   : > { %945 = vmatpush1.bf16.msra.mxu0 %v4922_v38  ;;  %3700 = vmatpush3.bf16.msra.mxu1 %v4980_v60 }
 0x19e   : > { %946 = vmatprep.subr.bf16.mxu0 %v4931_v46  ;;  %3701 = vmatprep.subr.bf16.mxu1 %v5897_v49 }
 0x19f   : > { %1796 = vperm.xlu0 %4118, %v3434_v1  }
 0x1a1   : > { %947 = vmatpush1.bf16.msra.mxu0 %v4947_v48  ;;  %3702 = vmatpush3.bf16.msra.mxu1 %v4999_v0 }
 0x1a2   : > { %948 = vmatprep.subr.bf16.mxu0 %v4954_v55  ;;  %3703 = vmatprep.subr.bf16.mxu1 %v5897_v49 }
 0x1a5   : > { %949 = vmatpush1.bf16.msra.mxu0 %v4970_v58  ;;  %3704 = vmatpush3.bf16.msra.mxu1 %v5018_v37 }
 0x1a6   : > { %950 = vmatprep.subr.bf16.mxu0 %v4975_v59  ;;  %3705 = vmatprep.subr.bf16.mxu1 %v5897_v49 }
 0x1a9   : > { %951 = vmatpush1.bf16.msra.mxu0 %v4989_v62  ;;  %3706 = vmatpush3.bf16.msra.mxu1 %v5034_v41 }
 0x1aa   : > { %952 = vmatprep.subr.bf16.mxu0 %v4994_v63  ;;  %3707 = vmatprep.subr.bf16.mxu1 %v5897_v49 }
 0x1ad   : > { %953 = vmatpush1.bf16.msra.mxu0 %v5008_v35  ;;  %3708 = vmatpush3.bf16.msra.mxu1 %v5048_v54 }
 0x1ae   : > { %954 = vmatprep.subr.bf16.mxu0 %v5013_v36  ;;  %3713 = vmatprep.subr.bf16.mxu1 %v5897_v49 }
 0x1b0   : > { %3710 = vmatmul.mubr.bf16.vlgmr.msra.gmra.mrb[0].mxu1 %v813_v57 }
 0x1b1   : > { %955 = vmatpush1.bf16.msra.mxu0 %v5024_v39  ;;  %3714 = vmatpush3.bf16.msra.mxu1 %v4926_v45 }
 0x1b2   : > { %956 = vmatprep.subr.bf16.mxu0 %v5029_v40  ;;  %3729 = vmatprep.mubr.msk.bf16.mxu1 %vm4472_vm1, %v5897_v49 }
 0x1b3   : > { %3715 = vmatprep.subr.bf16.mxu1 %v5897_v49 }
 0x1b5   : > { %957 = vmatpush1.bf16.msra.mxu0 %v5040_v42  ;;  %3716 = vmatpush3.bf16.msra.mxu1 %v4937_v52 }
 0x1b6   : > { %1071 = vmatprep.subr.bf16.mxu0 %v4908_v50  ;;  %3717 = vmatprep.subr.bf16.mxu1 %v5897_v49 }
 0x1b8   : > { %975 = vmatmul.mubr.bf16.vlgmr.msra.gmra.mrb[0].mxu0 %v813_v57 }
 0x1b9   : > { %1072 = vmatpush1.bf16.msra.mxu0 %v4912_v44  ;;  %1103 = vmatprep.mubr.bf16.mxu0 %v5879_v53 }
 0x1ba   : > { %1073 = vmatprep.subr.bf16.mxu0 %v4916_v51  ;;  %3718 = vmatpush3.bf16.msra.mxu1 %v4960_v56 }
 0x1bb   : > { %3719 = vmatprep.subr.bf16.mxu1 %v5897_v49 }
 0x1bd   : > { %1074 = vmatpush1.bf16.msra.mxu0 %v4922_v38 }
 0x1be   : > { %1075 = vmatprep.subr.bf16.mxu0 %v4931_v46  ;;  %3720 = vmatpush3.bf16.msra.mxu1 %v4980_v60 }
 0x1bf   : > { %3721 = vmatprep.subr.bf16.mxu1 %v5897_v49 }
 0x1c1   : > { %1076 = vmatpush1.bf16.msra.mxu0 %v4947_v48 }
 0x1c2   : > { %1077 = vmatprep.subr.bf16.mxu0 %v4954_v55  ;;  %3722 = vmatpush3.bf16.msra.mxu1 %v4999_v0 }
 0x1c3   : > { %3723 = vmatprep.subr.bf16.mxu1 %v5897_v49 }
 0x1c5   : > { %1078 = vmatpush1.bf16.msra.mxu0 %v4970_v58 }
 0x1c6   : > { %1079 = vmatprep.subr.bf16.mxu0 %v4975_v59  ;;  %3724 = vmatpush3.bf16.msra.mxu1 %v5018_v37 }
 0x1c7   : > { %3725 = vmatprep.subr.bf16.mxu1 %v5897_v49 }
 0x1c9   : > { %1080 = vmatpush1.bf16.msra.mxu0 %v4989_v62 }
 0x1ca   : > { %1081 = vmatprep.subr.bf16.mxu0 %v4994_v63  ;;  %3726 = vmatpush3.bf16.msra.mxu1 %v5034_v41 }
 0x1cb   : > { %3727 = vmatprep.subr.bf16.mxu1 %v5897_v49 }
 0x1cd   : > { %1082 = vmatpush1.bf16.msra.mxu0 %v5008_v35 }
 0x1ce   : > { %1083 = vmatprep.subr.bf16.mxu0 %v5013_v36  ;;  %3728 = vmatpush3.bf16.msra.mxu1 %v5048_v54 }
 0x1cf   : > { %3733 = vmatprep.subr.bf16.mxu1 %v5897_v49  ;;  %v5094_v49 = vrot.slane %v4847_v34, %v4877_v47 }
 0x1d1   : > { %1084 = vmatpush1.bf16.msra.mxu0 %v5024_v39 }
 0x1d2   : > { %1085 = vmatprep.subr.bf16.mxu0 %v5029_v40 }
 0x1d5   : > { %1086 = vmatpush1.bf16.msra.mxu0 %v5040_v42 }
 0x1d6   : > { %1195 = vmatprep.subr.bf16.mxu0 %v4908_v50 }
 0x283   : > { %v1017_v33 = vpop.f32.mrb[0].mxu1 }
 0x284   : > { %v3711_v30 = vpop.f32.mrb[1].mxu1 }
 0x285   : > { %v1020_v32 = vpop.f32.mrb[2].mxu1 }
 0x286   : > { %v3712_v23 = vpop.f32.mrb[3].mxu1 }
 0x28b   : > { %v976_v1 = vpop.f32.mrb[0].mxu0 }
 0x28c   : > { %v1023_v57 = vadd.f32 %v976_v1, %v808_v61  ;;  %v978_v53 = vpop.f32.mrb[1].mxu0 }
 0x28d   : > { %v980_v31 = vpop.f32.mrb[2].mxu0  ;;  %v1030_v26 = vadd.f32 %v978_v53, %v809_v25 }
 0x28e   : > { %v3417_v27 = vmul.f32 -1.442695, %v1023_v57  ;;  %v981_v29 = vpop.f32.mrb[3].mxu0  ;;  %v1043_v31 = vadd.f32 %v5094_v49, %v1017_v33 }
 0x28f   : > { %v3418_v28 = vmul.f32 -1.442695, %v1030_v26  ;;  %v810_v29 = vld [vmem:[#allocation3 + $0x10] sm:$0xff] }
 0x290   : > { %4120 = vpow2.f32 %v3417_v27 }
 0x291   : > { %4122 = vpow2.f32 %v3418_v28  ;;  %v1054_v28 = vpop.permute.xlu0 %1053 }
 0x29a   : > { %v4121_v19 = vpop.eup %4120 }
 0x29b   : > { %v1027_v21 = vadd.f32 1.0, %v4121_v19  ;;  %v4123_v61 = vpop.eup %4122 }
 0x29c   : > { %v1034_v32 = vadd.f32 1.0, %v4123_v61  ;;  %v5937_v61 = vmov 0.0  }
 0x29d   : > { %4124 = vrcp.f32 %v1027_v21 }
 0x2a7   : > { %v4125_v1 = vpop.eup %4124 }
 0x2a8   : > { %v1044_v30 = vmul.f32 %v4125_v1, %v1043_v31  ;;  %v5938_v1 = vmov 0  }
 0x2aa   : > { %v1045_v27 = vadd.f32 %v1044_v30, %v810_v29  ;;  %v3431_v29 = vld [vmem:[%s5874_s5 + $0x28] sm:$0xff]  ;;  %v3437_v30 = vld [vmem:[%s5874_s5 + $0x38] sm:$0xff] }
 0x2ac   : > { %4126 = vtanh.f32 %v1045_v27 }
 0x2ad   : > { %4128 = vrcp.f32 %v1034_v32  ;;  %v1064_v32 = vld [vmem:[#allocation3 + $0x18] sm:$0xff] }
 0x2b6   : > { %v4127_v23 = vpop.eup %4126 }
 0x2b7   : > { %v1047_v25 = vsub.f32 %v5042_v43, %v4127_v23  ;;  %v4129_v19 = vpop.eup %4128 }
 0x2b9   : > { %v1048_v26 = vmul.f32 %v4129_v19, %v1047_v25 }
 0x2bb   : > { %v1049_v21 = vadd.f32 %v4127_v23, %v1048_v26 }
 0x2bd   : > { %v1050_v53 = vsub.f32 %v1049_v21, %v5042_v43  ;;  %v1059_v57 = vmul.f32 %v1054_v28, %v1049_v21 }
 0x2bf   : > { %v1056_v34 = vmul.f32 %v1054_v28, %v1050_v53  ;;  %1060 = vst [vmem:[#allocation4] sm:$0xff] %v1059_v57 }
 0x2c1   : > { %v5100_v33 = vadd.f32 %v1056_v34, %v5042_v43  ;;  %v3422_v34 = vld [vmem:[%s5874_s5 + $0x10] sm:$0xff]  ;;  %v3425_v43 = vld [vmem:[%s5874_s5 + $0x18] sm:$0xff] }
 0x2c2   : > { %1300 = vperm.xlu1 %4119, %v3422_v34   ;;  %v1065_v34 = vld [vmem:[#allocation3 + $0x20] sm:$0xff] }
 0x2c3   : > { %v1070_v31 = vpack.c.bf16 %v5100_v33, %v5100_v33 }
 0x2c5   : > { %1104 = vmatmul.mubr.bf16.vlgmr.msra.gmra.mrb[4].mxu0 %v1070_v31  ;;  %3730 = vmatmul.mubr.bf16.vlgmr.msra.gmra.mrb[4].mxu1 %v1070_v31 }
 0x2c6   : > { %1196 = vmatpush1.bf16.msra.mxu0 %v4912_v44  ;;  %3734 = vmatpush3.bf16.msra.mxu1 %v4926_v45 }
 0x2c7   : > { %1197 = vmatprep.subr.bf16.mxu0 %v4916_v51  ;;  %3735 = vmatprep.subr.bf16.mxu1 %v5937_v61 }
 0x2c8   : > { %1227 = vmatprep.mubr.bf16.mxu0 %v5938_v1  ;;  %3749 = vmatprep.mubr.msk.bf16.mxu1 %vm4472_vm1, %v5937_v61 }
 0x2c9   : > { %1424 = vperm.xlu1 %4119, %v3425_v43  }
 0x2ca   : > { %1198 = vmatpush1.bf16.msra.mxu0 %v4922_v38  ;;  %3736 = vmatpush3.bf16.msra.mxu1 %v4937_v52 }
 0x2cb   : > { %1199 = vmatprep.subr.bf16.mxu0 %v4931_v46  ;;  %3737 = vmatprep.subr.bf16.mxu1 %v5937_v61 }
 0x2cd   : > { %1672 = vperm.xlu1 %4119, %v3431_v29  }
 0x2ce   : > { %1200 = vmatpush1.bf16.msra.mxu0 %v4947_v48  ;;  %3738 = vmatpush3.bf16.msra.mxu1 %v4960_v56 }
 0x2cf   : > { %1201 = vmatprep.subr.bf16.mxu0 %v4954_v55  ;;  %3739 = vmatprep.subr.bf16.mxu1 %v5937_v61 }
 0x2d1   : > { %1920 = vperm.xlu1 %4119, %v3437_v30  }
 0x2d2   : > { %1202 = vmatpush1.bf16.msra.mxu0 %v4970_v58  ;;  %3740 = vmatpush3.bf16.msra.mxu1 %v4980_v60 }
 0x2d3   : > { %1203 = vmatprep.subr.bf16.mxu0 %v4975_v59  ;;  %3741 = vmatprep.subr.bf16.mxu1 %v5937_v61 }
 0x2d6   : > { %1204 = vmatpush1.bf16.msra.mxu0 %v4989_v62  ;;  %3742 = vmatpush3.bf16.msra.mxu1 %v4999_v0 }
 0x2d7   : > { %1205 = vmatprep.subr.bf16.mxu0 %v4994_v63  ;;  %3743 = vmatprep.subr.bf16.mxu1 %v5937_v61 }
 0x2da   : > { %1206 = vmatpush1.bf16.msra.mxu0 %v5008_v35  ;;  %3744 = vmatpush3.bf16.msra.mxu1 %v5018_v37 }
 0x2db   : > { %1207 = vmatprep.subr.bf16.mxu0 %v5013_v36  ;;  %3745 = vmatprep.subr.bf16.mxu1 %v5937_v61 }
 0x2de   : > { %1208 = vmatpush1.bf16.msra.mxu0 %v5024_v39  ;;  %3746 = vmatpush3.bf16.msra.mxu1 %v5034_v41 }
 0x2df   : > { %1209 = vmatprep.subr.bf16.mxu0 %v5029_v40  ;;  %3747 = vmatprep.subr.bf16.mxu1 %v5937_v61 }
 0x2e2   : > { %1210 = vmatpush1.bf16.msra.mxu0 %v5040_v42  ;;  %3748 = vmatpush3.bf16.msra.mxu1 %v5048_v54 }
 0x2e3   : > { %1319 = vmatprep.subr.bf16.mxu0 %v4908_v50  ;;  %3753 = vmatprep.subr.bf16.mxu1 %v5937_v61 }
 0x398   : > { %v1105_v27 = vpop.f32.mrb[4].mxu0  ;;  %v1146_v23 = vpop.f32.mrb[4].mxu1 }
 0x399   : > { %v1152_v25 = vadd.f32 %v1105_v27, %v1064_v32  ;;  %v1107_v19 = vpop.f32.mrb[5].mxu0  ;;  %v3731_v26 = vpop.f32.mrb[5].mxu1  ;;  %v1166_v24 = vadd.f32 %v1146_v23, %v5094_v49  ;;  %v1066_v32 = vld [vmem:[#allocation3 + $0x28] sm:$0xff] }
 0x39a   : > { %v1109_v21 = vpop.f32.mrb[6].mxu0  ;;  %v1149_v28 = vpop.f32.mrb[6].mxu1  ;;  %v1159_v43 = vadd.f32 %v1107_v19, %v1065_v34 }
 0x39b   : > { %v3420_v53 = vmul.f32 -1.442695, %v1152_v25  ;;  %v1110_v57 = vpop.f32.mrb[7].mxu0  ;;  %v3732_v31 = vpop.f32.mrb[7].mxu1 }
 0x39c   : > { %v3421_v29 = vmul.f32 -1.442695, %v1159_v43  ;;  %v1177_v31 = vpop.permute.xlu0 %1176 }
 0x39d   : > { %4130 = vpow2.f32 %v3420_v53 }
 0x39e   : > { %4132 = vpow2.f32 %v3421_v29 }
 0x3a7   : > { %v4131_v47 = vpop.eup %4130 }
 0x3a8   : > { %v1156_v22 = vadd.f32 1.0, %v4131_v47  ;;  %v4133_v30 = vpop.eup %4132 }
 0x3a9   : > { %v1163_v21 = vadd.f32 1.0, %v4133_v30 }
 0x3aa   : > { %4134 = vrcp.f32 %v1156_v22 }
 0x3b4   : > { %v4135_v15 = vpop.eup %4134 }
 0x3b5   : > { %v1167_v27 = vmul.f32 %v4135_v15, %v1166_v24  ;;  %v1188_v24 = vld [vmem:[#allocation3 + $0x30] sm:$0xff] }
 0x3b7   : > { %v1168_v26 = vadd.f32 %v1167_v27, %v1066_v32 }
 0x3b9   : > { %4136 = vtanh.f32 %v1168_v26 }
 0x3ba   : > { %4138 = vrcp.f32 %v1163_v21 }
 0x3c3   : > { %v4137_v25 = vpop.eup %4136 }
 0x3c4   : > { %v1170_v28 = vsub.f32 %v5100_v33, %v4137_v25  ;;  %v4139_v53 = vpop.eup %4138 }
 0x3c6   : > { %v1171_v19 = vmul.f32 %v4139_v53, %v1170_v28  ;;  %v1189_v53 = vld [vmem:[#allocation3 + $0x38] sm:$0xff] }
 0x3c8   : > { %v1172_v57 = vadd.f32 %v4137_v25, %v1171_v19 }
 0x3ca   : > { %v1173_v47 = vsub.f32 %v1172_v57, %v5100_v33  ;;  %v1182_v22 = vmul.f32 %v1177_v31, %v1172_v57 }
 0x3cc   : > { %v1179_v34 = vmul.f32 %v1177_v31, %v1173_v47  ;;  %1184 = vst [vmem:[#allocation4 + $0x8] sm:$0xff] %v1182_v22 }
 0x3ce   : > { %v5155_v23 = vadd.f32 %v1179_v34, %v5100_v33 }
 0x3d0   : > { %v1194_v15 = vpack.c.bf16 %v5155_v23, %v5155_v23 }
 0x3d2   : > { %1228 = vmatmul.mubr.bf16.vlgmr.msra.gmra.mrb[8].mxu0 %v1194_v15  ;;  %3750 = vmatmul.mubr.bf16.vlgmr.msra.gmra.mrb[8].mxu1 %v1194_v15 }
 0x3d3   : > { %1320 = vmatpush1.bf16.msra.mxu0 %v4912_v44  ;;  %3754 = vmatpush3.bf16.msra.mxu1 %v4926_v45 }
 0x3d4   : > { %1321 = vmatprep.subr.bf16.mxu0 %v4916_v51  ;;  %3755 = vmatprep.subr.bf16.mxu1 %v5937_v61 }
 0x3d5   : > { %1351 = vmatprep.mubr.bf16.mxu0 %v5938_v1  ;;  %3769 = vmatprep.mubr.msk.bf16.mxu1 %vm4472_vm1, %v5937_v61 }
 0x3d7   : > { %1322 = vmatpush1.bf16.msra.mxu0 %v4922_v38  ;;  %3756 = vmatpush3.bf16.msra.mxu1 %v4937_v52 }
 0x3d8   : > { %1323 = vmatprep.subr.bf16.mxu0 %v4931_v46  ;;  %3757 = vmatprep.subr.bf16.mxu1 %v5937_v61 }
 0x3db   : > { %1324 = vmatpush1.bf16.msra.mxu0 %v4947_v48  ;;  %3758 = vmatpush3.bf16.msra.mxu1 %v4960_v56 }
 0x3dc   : > { %1325 = vmatprep.subr.bf16.mxu0 %v4954_v55  ;;  %3759 = vmatprep.subr.bf16.mxu1 %v5937_v61 }
 0x3df   : > { %1326 = vmatpush1.bf16.msra.mxu0 %v4970_v58  ;;  %3760 = vmatpush3.bf16.msra.mxu1 %v4980_v60 }
 0x3e0   : > { %1327 = vmatprep.subr.bf16.mxu0 %v4975_v59  ;;  %3761 = vmatprep.subr.bf16.mxu1 %v5937_v61 }
 0x3e3   : > { %1328 = vmatpush1.bf16.msra.mxu0 %v4989_v62  ;;  %3762 = vmatpush3.bf16.msra.mxu1 %v4999_v0 }
 0x3e4   : > { %1329 = vmatprep.subr.bf16.mxu0 %v4994_v63  ;;  %3763 = vmatprep.subr.bf16.mxu1 %v5937_v61 }
 0x3e7   : > { %1330 = vmatpush1.bf16.msra.mxu0 %v5008_v35  ;;  %3764 = vmatpush3.bf16.msra.mxu1 %v5018_v37 }
 0x3e8   : > { %1331 = vmatprep.subr.bf16.mxu0 %v5013_v36  ;;  %3765 = vmatprep.subr.bf16.mxu1 %v5937_v61 }
 0x3eb   : > { %1332 = vmatpush1.bf16.msra.mxu0 %v5024_v39  ;;  %3766 = vmatpush3.bf16.msra.mxu1 %v5034_v41 }
 0x3ec   : > { %1333 = vmatprep.subr.bf16.mxu0 %v5029_v40  ;;  %3767 = vmatprep.subr.bf16.mxu1 %v5937_v61 }
 0x3ef   : > { %1334 = vmatpush1.bf16.msra.mxu0 %v5040_v42  ;;  %3768 = vmatpush3.bf16.msra.mxu1 %v5048_v54 }
 0x3f0   : > { %1443 = vmatprep.subr.bf16.mxu0 %v4908_v50  ;;  %3773 = vmatprep.subr.bf16.mxu1 %v5937_v61 }
 0x4a5   : > { %v1229_v33 = vpop.f32.mrb[8].mxu0  ;;  %v1270_v43 = vpop.f32.mrb[8].mxu1 }
 0x4a6   : > { %v1276_v29 = vadd.f32 %v1229_v33, %v1188_v24  ;;  %v1231_v30 = vpop.f32.mrb[9].mxu0  ;;  %v3751_v32 = vpop.f32.mrb[9].mxu1  ;;  %v1290_v34 = vadd.f32 %v1270_v43, %v5094_v49  ;;  %v1190_v24 = vld [vmem:[#allocation3 + $0x40] sm:$0xff] }
 0x4a7   : > { %v1233_v27 = vpop.f32.mrb[10].mxu0  ;;  %v1273_v26 = vpop.f32.mrb[10].mxu1  ;;  %v1283_v19 = vadd.f32 %v1231_v30, %v1189_v53 }
 0x4a8   : > { %v3423_v21 = vmul.f32 -1.442695, %v1276_v29  ;;  %v1234_v25 = vpop.f32.mrb[11].mxu0  ;;  %v3752_v28 = vpop.f32.mrb[11].mxu1 }
 0x4a9   : > { %v3424_v57 = vmul.f32 -1.442695, %v1283_v19  ;;  %v1301_v28 = vpop.permute.xlu1 %1300 }
 0x4aa   : > { %4140 = vpow2.f32 %v3423_v21 }
 0x4ab   : > { %4142 = vpow2.f32 %v3424_v57 }
 0x4b4   : > { %v4141_v31 = vpop.eup %4140 }
 0x4b5   : > { %v1280_v47 = vadd.f32 1.0, %v4141_v31  ;;  %v4143_v22 = vpop.eup %4142 }
 0x4b6   : > { %v1287_v27 = vadd.f32 1.0, %v4143_v22 }
 0x4b7   : > { %4144 = vrcp.f32 %v1280_v47 }
 0x4c1   : > { %v4145_v15 = vpop.eup %4144 }
 0x4c2   : > { %v1291_v33 = vmul.f32 %v4145_v15, %v1290_v34 }
 0x4c4   : > { %v1292_v32 = vadd.f32 %v1291_v33, %v1190_v24 }
 0x4c6   : > { %4146 = vtanh.f32 %v1292_v32 }
 0x4c7   : > { %4148 = vrcp.f32 %v1287_v27 }
 0x4d0   : > { %v4147_v29 = vpop.eup %4146 }
 0x4d1   : > { %v1294_v26 = vsub.f32 %v5155_v23, %v4147_v29  ;;  %v4149_v21 = vpop.eup %4148 }
 0x4d3   : > { %v1295_v30 = vmul.f32 %v4149_v21, %v1294_v26  ;;  %v1313_v21 = vld [vmem:[#allocation3 + $0x50] sm:$0xff] }
 0x4d5   : > { %v1296_v25 = vadd.f32 %v4147_v29, %v1295_v30 }
 0x4d7   : > { %v1297_v53 = vsub.f32 %v1296_v25, %v5155_v23  ;;  %v1306_v19 = vmul.f32 %v1301_v28, %v1296_v25 }
 0x4d9   : > { %v1303_v57 = vmul.f32 %v1301_v28, %v1297_v53  ;;  %1308 = vst [vmem:[#allocation4 + $0x10] sm:$0xff] %v1306_v19 }
 0x4db   : > { %v5198_v43 = vadd.f32 %v1303_v57, %v5155_v23  ;;  %v1312_v23 = vld [vmem:[#allocation3 + $0x48] sm:$0xff] }
 0x4dd   : > { %v1318_v31 = vpack.c.bf16 %v5198_v43, %v5198_v43 }
 0x4df   : > { %1352 = vmatmul.mubr.bf16.vlgmr.msra.gmra.mrb[12].mxu0 %v1318_v31  ;;  %3770 = vmatmul.mubr.bf16.vlgmr.msra.gmra.mrb[12].mxu1 %v1318_v31 }
 0x4e0   : > { %1444 = vmatpush1.bf16.msra.mxu0 %v4912_v44  ;;  %3774 = vmatpush3.bf16.msra.mxu1 %v4926_v45 }
 0x4e1   : > { %1445 = vmatprep.subr.bf16.mxu0 %v4916_v51  ;;  %3775 = vmatprep.subr.bf16.mxu1 %v5937_v61 }
 0x4e2   : > { %1475 = vmatprep.mubr.bf16.mxu0 %v5938_v1  ;;  %3789 = vmatprep.mubr.msk.bf16.mxu1 %vm4472_vm1, %v5937_v61 }
 0x4e4   : > { %1446 = vmatpush1.bf16.msra.mxu0 %v4922_v38  ;;  %3776 = vmatpush3.bf16.msra.mxu1 %v4937_v52 }
 0x4e5   : > { %1447 = vmatprep.subr.bf16.mxu0 %v4931_v46  ;;  %3777 = vmatprep.subr.bf16.mxu1 %v5937_v61 }
 0x4e8   : > { %1448 = vmatpush1.bf16.msra.mxu0 %v4947_v48  ;;  %3778 = vmatpush3.bf16.msra.mxu1 %v4960_v56 }
 0x4e9   : > { %1449 = vmatprep.subr.bf16.mxu0 %v4954_v55  ;;  %3779 = vmatprep.subr.bf16.mxu1 %v5937_v61 }
 0x4ec   : > { %1450 = vmatpush1.bf16.msra.mxu0 %v4970_v58  ;;  %3780 = vmatpush3.bf16.msra.mxu1 %v4980_v60 }
 0x4ed   : > { %1451 = vmatprep.subr.bf16.mxu0 %v4975_v59  ;;  %3781 = vmatprep.subr.bf16.mxu1 %v5937_v61 }
 0x4f0   : > { %1452 = vmatpush1.bf16.msra.mxu0 %v4989_v62  ;;  %3782 = vmatpush3.bf16.msra.mxu1 %v4999_v0 }
 0x4f1   : > { %1453 = vmatprep.subr.bf16.mxu0 %v4994_v63  ;;  %3783 = vmatprep.subr.bf16.mxu1 %v5937_v61 }
 0x4f4   : > { %1454 = vmatpush1.bf16.msra.mxu0 %v5008_v35  ;;  %3784 = vmatpush3.bf16.msra.mxu1 %v5018_v37 }
 0x4f5   : > { %1455 = vmatprep.subr.bf16.mxu0 %v5013_v36  ;;  %3785 = vmatprep.subr.bf16.mxu1 %v5937_v61 }
 0x4f8   : > { %1456 = vmatpush1.bf16.msra.mxu0 %v5024_v39  ;;  %3786 = vmatpush3.bf16.msra.mxu1 %v5034_v41 }
 0x4f9   : > { %1457 = vmatprep.subr.bf16.mxu0 %v5029_v40  ;;  %3787 = vmatprep.subr.bf16.mxu1 %v5937_v61 }
 0x4fc   : > { %1458 = vmatpush1.bf16.msra.mxu0 %v5040_v42  ;;  %3788 = vmatpush3.bf16.msra.mxu1 %v5048_v54 }
 0x4fd   : > { %1567 = vmatprep.subr.bf16.mxu0 %v4908_v50  ;;  %3793 = vmatprep.subr.bf16.mxu1 %v5937_v61 }
 0x5b2   : > { %v1353_v47 = vpop.f32.mrb[12].mxu0  ;;  %v1394_v22 = vpop.f32.mrb[12].mxu1 }
 0x5b3   : > { %v1400_v34 = vadd.f32 %v1353_v47, %v1312_v23  ;;  %v1355_v15 = vpop.f32.mrb[13].mxu0  ;;  %v3771_v24 = vpop.f32.mrb[13].mxu1  ;;  %v1414_v57 = vadd.f32 %v1394_v22, %v5094_v49  ;;  %v1314_v23 = vld [vmem:[#allocation3 + $0x58] sm:$0xff] }
 0x5b4   : > { %v1357_v33 = vpop.f32.mrb[14].mxu0  ;;  %v1397_v32 = vpop.f32.mrb[14].mxu1  ;;  %v1407_v30 = vadd.f32 %v1355_v15, %v1313_v21 }
 0x5b5   : > { %v3426_v27 = vmul.f32 -1.442695, %v1400_v34  ;;  %v1358_v29 = vpop.f32.mrb[15].mxu0  ;;  %v3772_v26 = vpop.f32.mrb[15].mxu1 }
 0x5b6   : > { %v3427_v25 = vmul.f32 -1.442695, %v1407_v30  ;;  %v1425_v26 = vpop.permute.xlu1 %1424 }
 0x5b7   : > { %4150 = vpow2.f32 %v3426_v27 }
 0x5b8   : > { %4152 = vpow2.f32 %v3427_v25 }
 0x5c1   : > { %v4151_v28 = vpop.eup %4150 }
 0x5c2   : > { %v1404_v53 = vadd.f32 1.0, %v4151_v28  ;;  %v4153_v19 = vpop.eup %4152 }
 0x5c3   : > { %v1411_v33 = vadd.f32 1.0, %v4153_v19 }
 0x5c4   : > { %4154 = vrcp.f32 %v1404_v53 }
 0x5ce   : > { %v4155_v31 = vpop.eup %4154 }
 0x5cf   : > { %v1415_v47 = vmul.f32 %v4155_v31, %v1414_v57 }
 0x5d1   : > { %v1416_v24 = vadd.f32 %v1415_v47, %v1314_v23 }
 0x5d3   : > { %4156 = vtanh.f32 %v1416_v24 }
 0x5d4   : > { %4158 = vrcp.f32 %v1411_v33 }
 0x5dd   : > { %v4157_v34 = vpop.eup %4156 }
 0x5de   : > { %v1418_v32 = vsub.f32 %v5198_v43, %v4157_v34  ;;  %v4159_v27 = vpop.eup %4158 }
 0x5e0   : > { %v1419_v15 = vmul.f32 %v4159_v27, %v1418_v32  ;;  %v1437_v27 = vld [vmem:[#allocation3 + $0x68] sm:$0xff] }
 0x5e2   : > { %v1420_v29 = vadd.f32 %v4157_v34, %v1419_v15 }
 0x5e4   : > { %v1421_v21 = vsub.f32 %v1420_v29, %v5198_v43  ;;  %v1430_v30 = vmul.f32 %v1425_v26, %v1420_v29 }
 0x5e6   : > { %v1427_v25 = vmul.f32 %v1425_v26, %v1421_v21  ;;  %1432 = vst [vmem:[#allocation4 + $0x18] sm:$0xff] %v1430_v30 }
 0x5e8   : > { %v5241_v22 = vadd.f32 %v1427_v25, %v5198_v43  ;;  %v1436_v43 = vld [vmem:[#allocation3 + $0x60] sm:$0xff] }
 0x5ea   : > { %v1442_v28 = vpack.c.bf16 %v5241_v22, %v5241_v22 }
 0x5ec   : > { %1476 = vmatmul.mubr.bf16.vlgmr.msra.gmra.mrb[16].mxu0 %v1442_v28  ;;  %3790 = vmatmul.mubr.bf16.vlgmr.msra.gmra.mrb[16].mxu1 %v1442_v28 }
 0x5ed   : > { %1568 = vmatpush1.bf16.msra.mxu0 %v4912_v44  ;;  %3794 = vmatpush3.bf16.msra.mxu1 %v4926_v45 }
 0x5ee   : > { %1569 = vmatprep.subr.bf16.mxu0 %v4916_v51  ;;  %3795 = vmatprep.subr.bf16.mxu1 %v5937_v61 }
 0x5ef   : > { %1599 = vmatprep.mubr.bf16.mxu0 %v5938_v1  ;;  %3809 = vmatprep.mubr.msk.bf16.mxu1 %vm4472_vm1, %v5937_v61 }
 0x5f1   : > { %1570 = vmatpush1.bf16.msra.mxu0 %v4922_v38  ;;  %3796 = vmatpush3.bf16.msra.mxu1 %v4937_v52 }
 0x5f2   : > { %1571 = vmatprep.subr.bf16.mxu0 %v4931_v46  ;;  %3797 = vmatprep.subr.bf16.mxu1 %v5937_v61 }
 0x5f5   : > { %1572 = vmatpush1.bf16.msra.mxu0 %v4947_v48  ;;  %3798 = vmatpush3.bf16.msra.mxu1 %v4960_v56 }
 0x5f6   : > { %1573 = vmatprep.subr.bf16.mxu0 %v4954_v55  ;;  %3799 = vmatprep.subr.bf16.mxu1 %v5937_v61 }
 0x5f9   : > { %1574 = vmatpush1.bf16.msra.mxu0 %v4970_v58  ;;  %3800 = vmatpush3.bf16.msra.mxu1 %v4980_v60 }
 0x5fa   : > { %1575 = vmatprep.subr.bf16.mxu0 %v4975_v59  ;;  %3801 = vmatprep.subr.bf16.mxu1 %v5937_v61 }
 0x5fd   : > { %1576 = vmatpush1.bf16.msra.mxu0 %v4989_v62  ;;  %3802 = vmatpush3.bf16.msra.mxu1 %v4999_v0 }
 0x5fe   : > { %1577 = vmatprep.subr.bf16.mxu0 %v4994_v63  ;;  %3803 = vmatprep.subr.bf16.mxu1 %v5937_v61 }
 0x601   : > { %1578 = vmatpush1.bf16.msra.mxu0 %v5008_v35  ;;  %3804 = vmatpush3.bf16.msra.mxu1 %v5018_v37 }
 0x602   : > { %1579 = vmatprep.subr.bf16.mxu0 %v5013_v36  ;;  %3805 = vmatprep.subr.bf16.mxu1 %v5937_v61 }
 0x605   : > { %1580 = vmatpush1.bf16.msra.mxu0 %v5024_v39  ;;  %3806 = vmatpush3.bf16.msra.mxu1 %v5034_v41 }
 0x606   : > { %1581 = vmatprep.subr.bf16.mxu0 %v5029_v40  ;;  %3807 = vmatprep.subr.bf16.mxu1 %v5937_v61 }
 0x609   : > { %1582 = vmatpush1.bf16.msra.mxu0 %v5040_v42  ;;  %3808 = vmatpush3.bf16.msra.mxu1 %v5048_v54 }
 0x60a   : > { %1691 = vmatprep.subr.bf16.mxu0 %v4908_v50  ;;  %3813 = vmatprep.subr.bf16.mxu1 %v5937_v61 }
 0x6bf   : > { %v1477_v53 = vpop.f32.mrb[16].mxu0  ;;  %v1518_v19 = vpop.f32.mrb[16].mxu1 }
 0x6c0   : > { %v1524_v57 = vadd.f32 %v1477_v53, %v1436_v43  ;;  %v1479_v31 = vpop.f32.mrb[17].mxu0  ;;  %v3791_v23 = vpop.f32.mrb[17].mxu1  ;;  %v1538_v25 = vadd.f32 %v1518_v19, %v5094_v49  ;;  %v1438_v43 = vld [vmem:[#allocation3 + $0x70] sm:$0xff] }
 0x6c1   : > { %v1481_v47 = vpop.f32.mrb[18].mxu0  ;;  %v1521_v24 = vpop.f32.mrb[18].mxu1  ;;  %v1531_v15 = vadd.f32 %v1479_v31, %v1437_v27 }
 0x6c2   : > { %v3429_v33 = vmul.f32 -1.442695, %v1524_v57  ;;  %v1482_v34 = vpop.f32.mrb[19].mxu0  ;;  %v3792_v32 = vpop.f32.mrb[19].mxu1 }
 0x6c3   : > { %v3430_v29 = vmul.f32 -1.442695, %v1531_v15  ;;  %v1549_v32 = vpop.permute.xlu0 %1548 }
 0x6c4   : > { %4160 = vpow2.f32 %v3429_v33 }
 0x6c5   : > { %4162 = vpow2.f32 %v3430_v29 }
 0x6ce   : > { %v4161_v26 = vpop.eup %4160 }
 0x6cf   : > { %v1528_v21 = vadd.f32 1.0, %v4161_v26  ;;  %v4163_v30 = vpop.eup %4162 }
 0x6d0   : > { %v1535_v47 = vadd.f32 1.0, %v4163_v30 }
 0x6d1   : > { %4164 = vrcp.f32 %v1528_v21 }
 0x6db   : > { %v4165_v28 = vpop.eup %4164 }
 0x6dc   : > { %v1539_v53 = vmul.f32 %v4165_v28, %v1538_v25 }
 0x6de   : > { %v1540_v23 = vadd.f32 %v1539_v53, %v1438_v43 }
 0x6e0   : > { %4166 = vtanh.f32 %v1540_v23 }
 0x6e1   : > { %4168 = vrcp.f32 %v1535_v47 }
 0x6ea   : > { %v4167_v57 = vpop.eup %4166 }
 0x6eb   : > { %v1542_v24 = vsub.f32 %v5241_v22, %v4167_v57  ;;  %v4169_v33 = vpop.eup %4168 }
 0x6ed   : > { %v1543_v31 = vmul.f32 %v4169_v33, %v1542_v24  ;;  %v1561_v33 = vld [vmem:[#allocation3 + $0x80] sm:$0xff] }
 0x6ef   : > { %v1544_v34 = vadd.f32 %v4167_v57, %v1543_v31 }
 0x6f1   : > { %v1545_v27 = vsub.f32 %v1544_v34, %v5241_v22  ;;  %v1554_v15 = vmul.f32 %v1549_v32, %v1544_v34 }
 0x6f3   : > { %v1551_v29 = vmul.f32 %v1549_v32, %v1545_v27  ;;  %1556 = vst [vmem:[#allocation4 + $0x20] sm:$0xff] %v1554_v15 }
 0x6f5   : > { %v5284_v19 = vadd.f32 %v1551_v29, %v5241_v22  ;;  %v1560_v22 = vld [vmem:[#allocation3 + $0x78] sm:$0xff] }
 0x6f7   : > { %v1566_v26 = vpack.c.bf16 %v5284_v19, %v5284_v19 }
 0x6f9   : > { %1600 = vmatmul.mubr.bf16.vlgmr.msra.gmra.mrb[20].mxu0 %v1566_v26  ;;  %3810 = vmatmul.mubr.bf16.vlgmr.msra.gmra.mrb[20].mxu1 %v1566_v26  ;;  %v1562_v26 = vld [vmem:[#allocation3 + $0x88] sm:$0xff] }
 0x6fa   : > { %1692 = vmatpush1.bf16.msra.mxu0 %v4912_v44  ;;  %3814 = vmatpush3.bf16.msra.mxu1 %v4926_v45 }
 0x6fb   : > { %1693 = vmatprep.subr.bf16.mxu0 %v4916_v51  ;;  %3815 = vmatprep.subr.bf16.mxu1 %v5937_v61 }
 0x6fc   : > { %1723 = vmatprep.mubr.bf16.mxu0 %v5938_v1  ;;  %3829 = vmatprep.mubr.msk.bf16.mxu1 %vm4472_vm1, %v5937_v61 }
 0x6fe   : > { %1694 = vmatpush1.bf16.msra.mxu0 %v4922_v38  ;;  %3816 = vmatpush3.bf16.msra.mxu1 %v4937_v52 }
 0x6ff   : > { %1695 = vmatprep.subr.bf16.mxu0 %v4931_v46  ;;  %3817 = vmatprep.subr.bf16.mxu1 %v5937_v61 }
 0x702   : > { %1696 = vmatpush1.bf16.msra.mxu0 %v4947_v48  ;;  %3818 = vmatpush3.bf16.msra.mxu1 %v4960_v56 }
 0x703   : > { %1697 = vmatprep.subr.bf16.mxu0 %v4954_v55  ;;  %3819 = vmatprep.subr.bf16.mxu1 %v5937_v61 }
 0x706   : > { %1698 = vmatpush1.bf16.msra.mxu0 %v4970_v58  ;;  %3820 = vmatpush3.bf16.msra.mxu1 %v4980_v60 }
 0x707   : > { %1699 = vmatprep.subr.bf16.mxu0 %v4975_v59  ;;  %3821 = vmatprep.subr.bf16.mxu1 %v5937_v61 }
 0x70a   : > { %1700 = vmatpush1.bf16.msra.mxu0 %v4989_v62  ;;  %3822 = vmatpush3.bf16.msra.mxu1 %v4999_v0 }
 0x70b   : > { %1701 = vmatprep.subr.bf16.mxu0 %v4994_v63  ;;  %3823 = vmatprep.subr.bf16.mxu1 %v5937_v61 }
 0x70e   : > { %1702 = vmatpush1.bf16.msra.mxu0 %v5008_v35  ;;  %3824 = vmatpush3.bf16.msra.mxu1 %v5018_v37 }
 0x70f   : > { %1703 = vmatprep.subr.bf16.mxu0 %v5013_v36  ;;  %3825 = vmatprep.subr.bf16.mxu1 %v5937_v61 }
 0x712   : > { %1704 = vmatpush1.bf16.msra.mxu0 %v5024_v39  ;;  %3826 = vmatpush3.bf16.msra.mxu1 %v5034_v41 }
 0x713   : > { %1705 = vmatprep.subr.bf16.mxu0 %v5029_v40  ;;  %3827 = vmatprep.subr.bf16.mxu1 %v5937_v61 }
 0x716   : > { %1706 = vmatpush1.bf16.msra.mxu0 %v5040_v42  ;;  %3828 = vmatpush3.bf16.msra.mxu1 %v5048_v54 }
 0x717   : > { %1815 = vmatprep.subr.bf16.mxu0 %v4908_v50  ;;  %3833 = vmatprep.subr.bf16.mxu1 %v5937_v61 }
 0x7cc   : > { %v1601_v21 = vpop.f32.mrb[20].mxu0  ;;  %v1642_v30 = vpop.f32.mrb[20].mxu1 }
 0x7cd   : > { %v1648_v25 = vadd.f32 %v1601_v21, %v1560_v22  ;;  %v1603_v28 = vpop.f32.mrb[21].mxu0  ;;  %v3811_v43 = vpop.f32.mrb[21].mxu1  ;;  %v1662_v15 = vadd.f32 %v1642_v30, %v5094_v49 }
 0x7ce   : > { %v1605_v53 = vpop.f32.mrb[22].mxu0  ;;  %v1645_v23 = vpop.f32.mrb[22].mxu1  ;;  %v1655_v31 = vadd.f32 %v1603_v28, %v1561_v33 }
 0x7cf   : > { %v3432_v47 = vmul.f32 -1.442695, %v1648_v25  ;;  %v1606_v57 = vpop.f32.mrb[23].mxu0  ;;  %v3812_v24 = vpop.f32.mrb[23].mxu1 }
 0x7d0   : > { %v3433_v34 = vmul.f32 -1.442695, %v1655_v31  ;;  %v1673_v57 = vpop.permute.xlu1 %1672 }
 0x7d1   : > { %4170 = vpow2.f32 %v3432_v47 }
 0x7d2   : > { %4172 = vpow2.f32 %v3433_v34 }
 0x7db   : > { %v4171_v32 = vpop.eup %4170 }
 0x7dc   : > { %v1652_v27 = vadd.f32 1.0, %v4171_v32  ;;  %v4173_v50 = vpop.eup %4172 }
 0x7dd   : > { %v1659_v43 = vadd.f32 1.0, %v4173_v50  ;;  %v1797_v50 = vpop.permute.xlu0 %1796 }
 0x7de   : > { %4174 = vrcp.f32 %v1652_v27 }
 0x7e8   : > { %v4175_v29 = vpop.eup %4174 }
 0x7e9   : > { %v1663_v22 = vmul.f32 %v4175_v29, %v1662_v15 }
 0x7eb   : > { %v1664_v21 = vadd.f32 %v1663_v22, %v1562_v26 }
 0x7ed   : > { %4176 = vtanh.f32 %v1664_v21 }
 0x7ee   : > { %4178 = vrcp.f32 %v1659_v43  ;;  %v1808_v43 = vld [vmem:[#allocation3 + $0xa8] sm:$0xff] }
 0x7f7   : > { %v4177_v25 = vpop.eup %4176 }
 0x7f8   : > { %v1666_v53 = vsub.f32 %v5284_v19, %v4177_v25  ;;  %v4179_v23 = vpop.eup %4178 }
 0x7fa   : > { %v1667_v28 = vmul.f32 %v4179_v23, %v1666_v53 }
 0x7fc   : > { %v1668_v47 = vadd.f32 %v4177_v25, %v1667_v28 }
 0x7fe   : > { %v1669_v24 = vsub.f32 %v1668_v47, %v5284_v19  ;;  %v1678_v33 = vmul.f32 %v1673_v57, %v1668_v47 }
 0x800   : > { %v1675_v31 = vmul.f32 %v1673_v57, %v1669_v24  ;;  %1680 = vst [vmem:[#allocation4 + $0x28] sm:$0xff] %v1678_v33 }
 0x802   : > { %v5327_v30 = vadd.f32 %v1675_v31, %v5284_v19 }
 0x804   : > { %v1690_v34 = vpack.c.bf16 %v5327_v30, %v5327_v30 }
 0x806   : > { %1724 = vmatmul.mubr.bf16.vlgmr.msra.gmra.mrb[24].mxu0 %v1690_v34  ;;  %3830 = vmatmul.mubr.bf16.vlgmr.msra.gmra.mrb[24].mxu1 %v1690_v34 }
 0x807   : > { %1816 = vmatpush1.bf16.msra.mxu0 %v4912_v44  ;;  %3834 = vmatpush3.bf16.msra.mxu1 %v4926_v45  ;;  %v1684_v44 = vld [vmem:[#allocation3 + $0x90] sm:$0xff] }
 0x808   : > { %1817 = vmatprep.subr.bf16.mxu0 %v4916_v51  ;;  %3835 = vmatprep.subr.bf16.mxu1 %v5937_v61 }
 0x809   : > { %1847 = vmatprep.mubr.bf16.mxu0 %v5938_v1  ;;  %3849 = vmatprep.mubr.msk.bf16.mxu1 %vm4472_vm1, %v5937_v61 }
 0x80b   : > { %1818 = vmatpush1.bf16.msra.mxu0 %v4922_v38  ;;  %3836 = vmatpush3.bf16.msra.mxu1 %v4937_v52 }
 0x80c   : > { %1819 = vmatprep.subr.bf16.mxu0 %v4931_v46  ;;  %3837 = vmatprep.subr.bf16.mxu1 %v5937_v61 }
 0x80f   : > { %1820 = vmatpush1.bf16.msra.mxu0 %v4947_v48  ;;  %3838 = vmatpush3.bf16.msra.mxu1 %v4960_v56 }
 0x810   : > { %1821 = vmatprep.subr.bf16.mxu0 %v4954_v55  ;;  %3839 = vmatprep.subr.bf16.mxu1 %v5937_v61 }
 0x813   : > { %1822 = vmatpush1.bf16.msra.mxu0 %v4970_v58  ;;  %3840 = vmatpush3.bf16.msra.mxu1 %v4980_v60  ;;  %v1685_v60 = vld [vmem:[#allocation3 + $0x98] sm:$0xff] }
 0x814   : > { %1823 = vmatprep.subr.bf16.mxu0 %v4975_v59  ;;  %3841 = vmatprep.subr.bf16.mxu1 %v5937_v61 }
 0x817   : > { %1824 = vmatpush1.bf16.msra.mxu0 %v4989_v62  ;;  %3842 = vmatpush3.bf16.msra.mxu1 %v4999_v0 }
 0x818   : > { %1825 = vmatprep.subr.bf16.mxu0 %v4994_v63  ;;  %3843 = vmatprep.subr.bf16.mxu1 %v5937_v61 }
 0x81b   : > { %1826 = vmatpush1.bf16.msra.mxu0 %v5008_v35  ;;  %3844 = vmatpush3.bf16.msra.mxu1 %v5018_v37 }
 0x81c   : > { %1827 = vmatprep.subr.bf16.mxu0 %v5013_v36  ;;  %3845 = vmatprep.subr.bf16.mxu1 %v5937_v61 }
 0x81f   : > { %1828 = vmatpush1.bf16.msra.mxu0 %v5024_v39  ;;  %3846 = vmatpush3.bf16.msra.mxu1 %v5034_v41 }
 0x820   : > { %1829 = vmatprep.subr.bf16.mxu0 %v5029_v40  ;;  %3847 = vmatprep.subr.bf16.mxu1 %v5937_v61  ;;  %v1686_v40 = vld [vmem:[#allocation3 + $0xa0] sm:$0xff] }
 0x823   : > { %1830 = vmatpush1.bf16.msra.mxu0 %v5040_v42  ;;  %3848 = vmatpush3.bf16.msra.mxu1 %v5048_v54 }
 0x8d9   : > { %v1725_v51 = vpop.f32.mrb[24].mxu0  ;;  %v1766_v38 = vpop.f32.mrb[24].mxu1 }
 0x8da   : > { %v1772_v45 = vadd.f32 %v1725_v51, %v1684_v44  ;;  %v1727_v46 = vpop.f32.mrb[25].mxu0  ;;  %v3831_v52 = vpop.f32.mrb[25].mxu1  ;;  %v1786_v37 = vadd.f32 %v1766_v38, %v5094_v49  ;;  %v1809_v44 = vld [vmem:[#allocation3 + $0xb0] sm:$0xff] }
 0x8db   : > { %v1729_v48 = vpop.f32.mrb[26].mxu0  ;;  %v1769_v55 = vpop.f32.mrb[26].mxu1  ;;  %v1779_v62 = vadd.f32 %v1727_v46, %v1685_v60 }
 0x8dc   : > { %v3435_v56 = vmul.f32 -1.442695, %v1772_v45  ;;  %v1730_v58 = vpop.f32.mrb[27].mxu0  ;;  %v3832_v59 = vpop.f32.mrb[27].mxu1  ;;  %v1810_v55 = vld [vmem:[#allocation3 + $0xb8] sm:$0xff] }
 0x8dd   : > { %v3436_v63 = vmul.f32 -1.442695, %v1779_v62 }
 0x8de   : > { %4180 = vpow2.f32 %v3435_v56 }
 0x8df   : > { %4182 = vpow2.f32 %v3436_v63 }
 0x8e8   : > { %v4181_v0 = vpop.eup %4180 }
 0x8e9   : > { %v1776_v35 = vadd.f32 1.0, %v4181_v0  ;;  %v4183_v36 = vpop.eup %4182 }
 0x8ea   : > { %v1783_v54 = vadd.f32 1.0, %v4183_v36  ;;  %v1921_v36 = vpop.permute.xlu1 %1920 }
 0x8eb   : > { %4184 = vrcp.f32 %v1776_v35 }
 0x8f5   : > { %v4185_v39 = vpop.eup %4184 }
 0x8f6   : > { %v1787_v41 = vmul.f32 %v4185_v39, %v1786_v37 }
 0x8f8   : > { %v1788_v42 = vadd.f32 %v1787_v41, %v1686_v40 }
 0x8fa   : > { %4186 = vtanh.f32 %v1788_v42 }
 0x8fb   : > { %4188 = vrcp.f32 %v1783_v54 }
 0x904   : > { %v4187_v61 = vpop.eup %4186 }
 0x905   : > { %v1790_v1 = vsub.f32 %v5327_v30, %v4187_v61  ;;  %v4189_v19 = vpop.eup %4188 }
 0x907   : > { %v1791_v32 = vmul.f32 %v4189_v19, %v1790_v1 }
 0x909   : > { %v1792_v27 = vadd.f32 %v4187_v61, %v1791_v32 }
 0x90b   : > { %v1793_v15 = vsub.f32 %v1792_v27, %v5327_v30  ;;  %v1802_v29 = vmul.f32 %v1797_v50, %v1792_v27 }
 0x90d   : > { %v1799_v26 = vmul.f32 %v1797_v50, %v1793_v15  ;;  %1804 = vst [vmem:[#allocation4 + $0x30] sm:$0xff] %v1802_v29 }
 0x90f   : > { %v1800_v22 = vadd.f32 %v1799_v26, %v5327_v30 }
 0x911   : > { %v1814_v21 = vpack.c.bf16 %v1800_v22, %v1800_v22 }
 0x913   : > { %1848 = vmatmul.mubr.bf16.vlgmr.msra.gmra.mrb[28].mxu0 %v1814_v21  ;;  %3850 = vmatmul.mubr.bf16.vlgmr.msra.gmra.mrb[28].mxu1 %v1814_v21 }
 0x9e6   : > { %v1849_v25 = vpop.f32.mrb[28].mxu0  ;;  %v1890_v53 = vpop.f32.mrb[28].mxu1 }
 0x9e7   : > { %v1896_v23 = vadd.f32 %v1849_v25, %v1808_v43  ;;  %v1851_v28 = vpop.f32.mrb[29].mxu0  ;;  %v3851_v47 = vpop.f32.mrb[29].mxu1  ;;  %v1910_v52 = vadd.f32 %v1890_v53, %v5094_v49 }
 0x9e8   : > { %v1853_v57 = vpop.f32.mrb[30].mxu0  ;;  %v1893_v24 = vpop.f32.mrb[30].mxu1  ;;  %v1903_v51 = vadd.f32 %v1851_v28, %v1809_v44 }
 0x9e9   : > { %v3438_v33 = vmul.f32 -1.442695, %v1896_v23  ;;  %v1854_v31 = vpop.f32.mrb[31].mxu0  ;;  %v3852_v34 = vpop.f32.mrb[31].mxu1 }
 0x9ea   : > { %v3439_v38 = vmul.f32 -1.442695, %v1903_v51 }
 0x9eb   : > { %4190 = vpow2.f32 %v3438_v33 }
 0x9ec   : > { %4192 = vpow2.f32 %v3439_v38 }
 0x9f5   : > { %v4191_v45 = vpop.eup %4190 }
 0x9f6   : > { %v1900_v30 = vadd.f32 1.0, %v4191_v45  ;;  %v4193_v46 = vpop.eup %4192 }
 0x9f7   : > { %v1907_v59 = vadd.f32 1.0, %v4193_v46 }
 0x9f8   : > { %4194 = vrcp.f32 %v1900_v30 }
 0xa02   : > { %v4195_v48 = vpop.eup %4194 }
 0xa03   : > { %v1911_v56 = vmul.f32 %v4195_v48, %v1910_v52 }
 0xa05   : > { %v1912_v58 = vadd.f32 %v1911_v56, %v1810_v55 }
 0xa07   : > { %4196 = vtanh.f32 %v1912_v58 }
 0xa08   : > { %4198 = vrcp.f32 %v1907_v59 }
 0xa11   : > { %v4197_v60 = vpop.eup %4196 }
 0xa12   : > { %v1914_v62 = vsub.f32 %v1800_v22, %v4197_v60  ;;  %v4199_v63 = vpop.eup %4198 }
 0xa14   : > { %v1915_v0 = vmul.f32 %v4199_v63, %v1914_v62 }
 0xa16   : > { %v1916_v35 = vadd.f32 %v4197_v60, %v1915_v0 }
 0xa18   : > { %v1917_v37 = vsub.f32 %v1916_v35, %v1800_v22  ;;  %v1926_v39 = vmul.f32 %v1921_v36, %v1916_v35 }
 0xa1a   : > { %v1923_v40 = vmul.f32 %v1921_v36, %v1917_v37  ;;  %1928 = vst [vmem:[#allocation4 + $0x38] sm:$0xff] %v1926_v39 }
 0xa1c   : > { %v1924_v41 = vadd.f32 %v1923_v40, %v1800_v22 }
 0xa1e   : > { %1925 = vst [vmem:[#allocation2] sm:$0xff] %v1924_v41 }
 0xa1f PF: > { %p3440_p9 = scmp.eq.s32.totalorder %s4452_s24, 0 }
 0xa20   : > { %v5372_v49 = vcombine.high (!%p3440_p9), %v4750_v2, %v4756_v4  ;;  %v5376_v42 = vcombine.low (!%p3440_p9), %v4750_v2, %v4756_v4  ;;  %v5380_v54 = vcombine.high (!%p3440_p9), %v4762_v6, %v4768_v8  ;;  %v5386_v61 = vcombine.low (!%p3440_p9), %v4762_v6, %v4768_v8  ;;  %v5940_v32 = vld [vmem:[#allocation23_spill] sm:$0xff] (!%p3440_p9)  ;;  %v5941_v27 = vld [vmem:[#allocation21_spill] sm:$0xff] (!%p3440_p9)  ;;  %v5946_v43 = vld [vmem:[#allocation24_spill] sm:$0xff] (!%p3440_p9) }
 0xa21   : > { %1932 = sbr.rel (%p3440_p9) target bundleno = 4777 (0x12a9), region = 72  ;;  %v5390_v1 = vcombine.low (!%p3440_p9), %v4753_v3, %v4759_v5  ;;  %v5395_v2 = vcombine.high (!%p3440_p9), %v4774_v10, %v4780_v12  ;;  %v4473_v4 = vmov (!%p3440_p9), 0.0   ;;  %v5401_v19 = vcombine.low (!%p3440_p9), %v4765_v7, %v4771_v9  ;;  %v3441_v3 = vld [vmem:[%s5874_s5 + $0x38] sm:$0xff] (!%p3440_p9)  ;;  %v3468_v9 = vld [vmem:[%s5874_s5 + $0x30] sm:$0xff] (!%p3440_p9)  ;;  %v5945_v22 = vld [vmem:[#allocation25_spill] sm:$0xff] (!%p3440_p9) }
 0xa22   : > { %2071 = vmatprep.subr.bf16.mxu0 (!%p3440_p9), %v5372_v49  ;;  %3853 = vmatprep.subr.bf16.mxu1 (!%p3440_p9), %v4473_v4  ;;  %v4474_v6 = vmov (!%p3440_p9), 0   ;;  %v5411_v5 = vcombine.low (!%p3440_p9), %v4774_v10, %v4780_v12  ;;  %vm4475_vm2 = vmmov (!%p3440_p9), 0   ;;  %v5418_v7 = vcombine.high (!%p3440_p9), %v4786_v14, %v4792_v16  ;;  %v5939_v12 = vld [vmem:[#allocation18_spill] sm:$0xff] (!%p3440_p9)  ;;  %v5943_v15 = vld [vmem:[#allocation19_spill] sm:$0xff] (!%p3440_p9)  ;;  %v5949_v47 = vld [vmem:[#allocation29_spill] sm:$0xff] (!%p3440_p9) }
 0xa23   : > { %2072 = vmatpush1.bf16.msra.mxu0 (!%p3440_p9), %v5376_v42  ;;  %3854 = vmatpush3.bf16.msra.mxu1 (!%p3440_p9), %v5390_v1  ;;  %v5424_v8 = vcombine.low (!%p3440_p9), %v4777_v11, %v4783_v13  ;;  %v5434_v10 = vcombine.low (!%p3440_p9), %v4786_v14, %v4792_v16  ;;  %v5439_v11 = vcombine.high (!%p3440_p9), %v4798_v18, %v4804_v20  ;;  %v3477_v14 = vld [vmem:[%s5874_s5 + $0x18] sm:$0xff] (!%p3440_p9)  ;;  %v5947_v25 = vld [vmem:[#allocation22_spill] sm:$0xff] (!%p3440_p9)  ;;  %v5950_v24 = vld [vmem:[#allocation28_spill] sm:$0xff] (!%p3440_p9) }
 0xa24   : > { %2073 = vmatprep.subr.bf16.mxu0 (!%p3440_p9), %v5380_v54  ;;  %2103 = vmatprep.mubr.bf16.mxu0 (!%p3440_p9), %v4474_v6  ;;  %v5444_v13 = vcombine.low (!%p3440_p9), %v5939_v12, %v4795_v17  ;;  %v5453_v16 = vcombine.low (!%p3440_p9), %v4798_v18, %v4804_v20  ;;  %v5458_v50 = vcombine.high (!%p3440_p9), %v5941_v27, %v5940_v32  ;;  %v5942_v17 = vld [vmem:[#allocation20_spill] sm:$0xff] (!%p3440_p9)  ;;  %v3483_v18 = vld [vmem:[%s5874_s5 + $0x8] sm:$0xff] (!%p3440_p9)  ;;  %v5944_v26 = vld [vmem:[#allocation27_spill] sm:$0xff] (!%p3440_p9) }
 0xa25   : > { %3855 = vmatprep.subr.bf16.mxu1 (!%p3440_p9), %v4473_v4  ;;  %3869 = vmatprep.mubr.msk.bf16.mxu1 (!%p3440_p9), %vm4475_vm2, %v4473_v4  ;;  %v5463_v29 = vcombine.low (!%p3440_p9), %v5943_v15, %v5942_v17  ;;  %v5472_v20 = vcombine.low (!%p3440_p9), %v5941_v27, %v5940_v32  ;;  %v5477_v21 = vcombine.high (!%p3440_p9), %v5945_v22, %v5944_v26  ;;  %v5948_v28 = vld [vmem:[#allocation31_spill] sm:$0xff] (!%p3440_p9)  ;;  %v5951_v33 = vld [vmem:[#allocation26_spill] sm:$0xff] (!%p3440_p9)  ;;  %v5506_v44 = vld [vmem:[#allocation2] sm:$0xff] (!%p3440_p9) }
 0xa26   : > { %4200 = vset.pattern.permute.xlu0 (!%p3440_p9), %v4474_v6  ;;  %4201 = vset.pattern.permute.xlu1 (!%p3440_p9), %v4474_v6  ;;  %v5482_v53 = vcombine.low (!%p3440_p9), %v5947_v25, %v5946_v43  ;;  %v5488_v23 = vcombine.low (!%p3440_p9), %v5945_v22, %v5944_v26  ;;  %v5493_v57 = vcombine.high (!%p3440_p9), %v5949_v47, %v5948_v28  ;;  %v5952_v51 = vld [vmem:[#allocation32_spill] sm:$0xff] (!%p3440_p9)  ;;  %v5953_v38 = vld [vmem:[#allocation30_spill] sm:$0xff] (!%p3440_p9)  ;;  %v1937_v35 = vld [vmem:[#allocation3 + $0xb0] sm:$0xff] (!%p3440_p9) }
 0xa27   : > { %2074 = vmatpush1.bf16.msra.mxu0 (!%p3440_p9), %v5386_v61  ;;  %3856 = vmatpush3.bf16.msra.mxu1 (!%p3440_p9), %v5401_v19  ;;  %v5498_v31 = vcombine.low (!%p3440_p9), %v5951_v33, %v5950_v24  ;;  %v5504_v34 = vcombine.low (!%p3440_p9), %v5949_v47, %v5948_v28  ;;  %v5512_v45 = vcombine.low (!%p3440_p9), %v5953_v38, %v5952_v51  ;;  %v1936_v46 = vld [vmem:[#allocation3 + $0xa8] sm:$0xff] (!%p3440_p9)  ;;  %v1938_v27 = vld [vmem:[#allocation3 + $0xb8] sm:$0xff] (!%p3440_p9) }
 0xa28   : > { %2075 = vmatprep.subr.bf16.mxu0 %v5395_v2  ;;  %2182 = vperm.xlu0 %4200, %v3441_v3   ;;  %v1942_v30 = vpack.c.bf16 %v5506_v44, %v5506_v44  ;;  %v5954_v41 = vld [vmem:[#allocation34_spill] sm:$0xff]  ;;  %v5955_v3 = vld [vmem:[#allocation33_spill] sm:$0xff] }
 0xa29   : > { %3857 = vmatprep.subr.bf16.mxu1 %v4473_v4 }
 0xa2b   : > { %2076 = vmatpush1.bf16.msra.mxu0 %v5411_v5  ;;  %3858 = vmatpush3.bf16.msra.mxu1 %v5424_v8 }
 0xa2c   : > { %2077 = vmatprep.subr.bf16.mxu0 %v5418_v7  ;;  %2306 = vperm.xlu0 %4200, %v3468_v9   ;;  %v5558_v9 = vrot.slane %v5955_v3, %v5954_v41 }
 0xa2d   : > { %3859 = vmatprep.subr.bf16.mxu1 %v4473_v4 }
 0xa2f   : > { %2078 = vmatpush1.bf16.msra.mxu0 %v5434_v10  ;;  %3860 = vmatpush3.bf16.msra.mxu1 %v5444_v13 }
 0xa30   : > { %2079 = vmatprep.subr.bf16.mxu0 %v5439_v11  ;;  %2678 = vperm.xlu0 %4200, %v3477_v14  }
 0xa31   : > { %3861 = vmatprep.subr.bf16.mxu1 %v4473_v4 }
 0xa33   : > { %2080 = vmatpush1.bf16.msra.mxu0 %v5453_v16  ;;  %3862 = vmatpush3.bf16.msra.mxu1 %v5463_v29 }
 0xa34   : > { %2081 = vmatprep.subr.bf16.mxu0 %v5458_v50  ;;  %2926 = vperm.xlu0 %4200, %v3483_v18  }
 0xa35   : > { %3863 = vmatprep.subr.bf16.mxu1 %v4473_v4 }
 0xa37   : > { %2082 = vmatpush1.bf16.msra.mxu0 %v5472_v20  ;;  %3864 = vmatpush3.bf16.msra.mxu1 %v5482_v53 }
 0xa38   : > { %2083 = vmatprep.subr.bf16.mxu0 %v5477_v21  ;;  %3865 = vmatprep.subr.bf16.mxu1 %v4473_v4 }
 0xa3b   : > { %2084 = vmatpush1.bf16.msra.mxu0 %v5488_v23  ;;  %3866 = vmatpush3.bf16.msra.mxu1 %v5498_v31 }
 0xa3c   : > { %2085 = vmatprep.subr.bf16.mxu0 %v5493_v57  ;;  %3867 = vmatprep.subr.bf16.mxu1 %v4473_v4 }
 0xa3f   : > { %2086 = vmatpush1.bf16.msra.mxu0 %v5504_v34  ;;  %3868 = vmatpush3.bf16.msra.mxu1 %v5512_v45 }
 0xa40   : > { %2201 = vmatprep.subr.bf16.mxu0 %v5372_v49  ;;  %3873 = vmatprep.subr.bf16.mxu1 %v4473_v4 }
 0xa42   : > { %2104 = vmatmul.mubr.bf16.vlgmr.msra.gmra.mrb[0].mxu0 %v1942_v30  ;;  %3870 = vmatmul.mubr.bf16.vlgmr.msra.gmra.mrb[0].mxu1 %v1942_v30 }
 0xa43   : > { %2202 = vmatpush1.bf16.msra.mxu0 %v5376_v42  ;;  %2233 = vmatprep.mubr.bf16.mxu0 %v4474_v6 }
 0xa44   : > { %2203 = vmatprep.subr.bf16.mxu0 %v5380_v54  ;;  %3874 = vmatpush3.bf16.msra.mxu1 %v5390_v1 }
 0xa45   : > { %3889 = vmatprep.mubr.msk.bf16.mxu1 %vm4475_vm2, %v4473_v4  ;;  %3875 = vmatprep.subr.bf16.mxu1 %v4473_v4 }
 0xa47   : > { %2204 = vmatpush1.bf16.msra.mxu0 %v5386_v61 }
 0xa48   : > { %2205 = vmatprep.subr.bf16.mxu0 %v5395_v2  ;;  %3876 = vmatpush3.bf16.msra.mxu1 %v5401_v19 }
 0xa49   : > { %3877 = vmatprep.subr.bf16.mxu1 %v4473_v4 }
 0xa4b   : > { %2206 = vmatpush1.bf16.msra.mxu0 %v5411_v5 }
 0xa4c   : > { %2207 = vmatprep.subr.bf16.mxu0 %v5418_v7  ;;  %3878 = vmatpush3.bf16.msra.mxu1 %v5424_v8 }
 0xa4d   : > { %3879 = vmatprep.subr.bf16.mxu1 %v4473_v4 }
 0xa4f   : > { %2208 = vmatpush1.bf16.msra.mxu0 %v5434_v10 }
 0xa50   : > { %2209 = vmatprep.subr.bf16.mxu0 %v5439_v11  ;;  %3880 = vmatpush3.bf16.msra.mxu1 %v5444_v13 }
 0xa51   : > { %3881 = vmatprep.subr.bf16.mxu1 %v4473_v4 }
 0xa53   : > { %2210 = vmatpush1.bf16.msra.mxu0 %v5453_v16 }
 0xa54   : > { %2211 = vmatprep.subr.bf16.mxu0 %v5458_v50  ;;  %3882 = vmatpush3.bf16.msra.mxu1 %v5463_v29 }
 0xa55   : > { %3883 = vmatprep.subr.bf16.mxu1 %v4473_v4 }
 0xa57   : > { %2212 = vmatpush1.bf16.msra.mxu0 %v5472_v20 }
 0xa58   : > { %2213 = vmatprep.subr.bf16.mxu0 %v5477_v21  ;;  %3884 = vmatpush3.bf16.msra.mxu1 %v5482_v53 }
 0xa59   : > { %3885 = vmatprep.subr.bf16.mxu1 %v4473_v4 }
 0xa5b   : > { %2214 = vmatpush1.bf16.msra.mxu0 %v5488_v23 }
 0xa5c   : > { %2215 = vmatprep.subr.bf16.mxu0 %v5493_v57  ;;  %3886 = vmatpush3.bf16.msra.mxu1 %v5498_v31 }
 0xa5d   : > { %3887 = vmatprep.subr.bf16.mxu1 %v4473_v4 }
 0xa5f   : > { %2216 = vmatpush1.bf16.msra.mxu0 %v5504_v34 }
 0xa60   : > { %2325 = vmatprep.subr.bf16.mxu0 %v5372_v49  ;;  %3888 = vmatpush3.bf16.msra.mxu1 %v5512_v45 }
 0xa61   : > { %3893 = vmatprep.subr.bf16.mxu1 %v4473_v4 }
 0xaa7   : > { %v2183_v47 = vpop.permute.xlu0 %2182 }
 0xb15   : > { %v2105_v52 = vpop.f32.mrb[0].mxu0  ;;  %v2146_v58 = vpop.f32.mrb[0].mxu1 }
 0xb16   : > { %v2152_v48 = vadd.f32 %v2105_v52, %v1936_v46  ;;  %v2107_v55 = vpop.f32.mrb[1].mxu0  ;;  %v3871_v62 = vpop.f32.mrb[1].mxu1  ;;  %v2172_v12 = vadd.f32 %v5558_v9, %v2146_v58  ;;  %v3474_v46 = vld [vmem:[%s5874_s5 + $0x20] sm:$0xff]  ;;  %v3480_v52 = vld [vmem:[%s5874_s5 + $0x10] sm:$0xff] }
 0xb17   : > { %v2109_v56 = vpop.f32.mrb[2].mxu0  ;;  %v2149_v63 = vpop.f32.mrb[2].mxu1  ;;  %v2159_v36 = vadd.f32 %v2107_v55, %v1937_v35  ;;  %v2194_v55 = vld [vmem:[#allocation3 + $0x90] sm:$0xff] }
 0xb18   : > { %v3466_v59 = vmul.f32 -1.442695, %v2152_v48  ;;  %v2110_v60 = vpop.f32.mrb[3].mxu0  ;;  %v3872_v0 = vpop.f32.mrb[3].mxu1  ;;  %v2941_v48 = vld [vmem:[%s5874_s5] sm:$0xff] }
 0xb19   : > { %v3467_v37 = vmul.f32 -1.442695, %v2159_v36 }
 0xb1a   : > { %4202 = vpow2.f32 %v3466_v59 }
 0xb1b   : > { %4204 = vpow2.f32 %v3467_v37 }
 0xb24   : > { %v4203_v39 = vpop.eup %4202 }
 0xb25   : > { %v2156_v40 = vadd.f32 1.0, %v4203_v39  ;;  %v4205_v14 = vpop.eup %4204  ;;  %v2195_v39 = vld [vmem:[#allocation3 + $0x98] sm:$0xff] }
 0xb26   : > { %v2163_v15 = vadd.f32 1.0, %v4205_v14 }
 0xb27   : > { %4206 = vrcp.f32 %v2156_v40 }
 0xb31   : > { %v4207_v32 = vpop.eup %4206 }
 0xb32   : > { %v2173_v17 = vmul.f32 %v4207_v32, %v2172_v12 }
 0xb34   : > { %v2174_v18 = vadd.f32 %v2173_v17, %v1938_v27  ;;  %v2196_v17 = vld [vmem:[#allocation3 + $0xa0] sm:$0xff] }
 0xb36   : > { %4208 = vtanh.f32 %v2174_v18 }
 0xb37   : > { %4210 = vrcp.f32 %v2163_v15 }
 0xb40   : > { %v4209_v26 = vpop.eup %4208 }
 0xb41   : > { %v2176_v22 = vsub.f32 %v5506_v44, %v4209_v26  ;;  %v4211_v43 = vpop.eup %4210 }
 0xb43   : > { %v2177_v25 = vmul.f32 %v4211_v43, %v2176_v22 }
 0xb45   : > { %v2178_v28 = vadd.f32 %v4209_v26, %v2177_v25 }
 0xb47   : > { %v2179_v24 = vsub.f32 %v2178_v28, %v5506_v44  ;;  %v2188_v33 = vmul.f32 %v2183_v47, %v2178_v28 }
 0xb49   : > { %v2185_v51 = vmul.f32 %v2183_v47, %v2179_v24  ;;  %2190 = vst [vmem:[#allocation4 + $0x38] sm:$0xff] %v2188_v33  ;;  %v2307_v24 = vpop.permute.xlu0 %2306 }
 0xb4b   : > { %v5564_v38 = vadd.f32 %v2185_v51, %v5506_v44  ;;  %v3471_v44 = vld [vmem:[%s5874_s5 + $0x28] sm:$0xff] }
 0xb4c   : > { %2430 = vperm.xlu1 %4201, %v3471_v44  }
 0xb4d   : > { %v2200_v30 = vpack.c.bf16 %v5564_v38, %v5564_v38 }
 0xb4f   : > { %2234 = vmatmul.mubr.bf16.vlgmr.msra.gmra.mrb[4].mxu0 %v2200_v30  ;;  %3890 = vmatmul.mubr.bf16.vlgmr.msra.gmra.mrb[4].mxu1 %v2200_v30 }
 0xb50   : > { %2326 = vmatpush1.bf16.msra.mxu0 %v5376_v42  ;;  %3894 = vmatpush3.bf16.msra.mxu1 %v5390_v1 }
 0xb51   : > { %2327 = vmatprep.subr.bf16.mxu0 %v5380_v54  ;;  %3895 = vmatprep.subr.bf16.mxu1 %v4473_v4 }
 0xb52   : > { %2357 = vmatprep.mubr.bf16.mxu0 %v4474_v6  ;;  %3909 = vmatprep.mubr.msk.bf16.mxu1 %vm4475_vm2, %v4473_v4 }
 0xb53   : > { %2554 = vperm.xlu1 %4201, %v3474_v46  }
 0xb54   : > { %2328 = vmatpush1.bf16.msra.mxu0 %v5386_v61  ;;  %3896 = vmatpush3.bf16.msra.mxu1 %v5401_v19 }
 0xb55   : > { %2329 = vmatprep.subr.bf16.mxu0 %v5395_v2  ;;  %3897 = vmatprep.subr.bf16.mxu1 %v4473_v4 }
 0xb57   : > { %2802 = vperm.xlu1 %4201, %v3480_v52  }
 0xb58   : > { %2330 = vmatpush1.bf16.msra.mxu0 %v5411_v5  ;;  %3898 = vmatpush3.bf16.msra.mxu1 %v5424_v8 }
 0xb59   : > { %2331 = vmatprep.subr.bf16.mxu0 %v5418_v7  ;;  %3899 = vmatprep.subr.bf16.mxu1 %v4473_v4 }
 0xb5b   : > { %3049 = vperm.xlu1 %4201, %v2941_v48  }
 0xb5c   : > { %2332 = vmatpush1.bf16.msra.mxu0 %v5434_v10  ;;  %3900 = vmatpush3.bf16.msra.mxu1 %v5444_v13 }
 0xb5d   : > { %2333 = vmatprep.subr.bf16.mxu0 %v5439_v11  ;;  %3901 = vmatprep.subr.bf16.mxu1 %v4473_v4 }
 0xb60   : > { %2334 = vmatpush1.bf16.msra.mxu0 %v5453_v16  ;;  %3902 = vmatpush3.bf16.msra.mxu1 %v5463_v29 }
 0xb61   : > { %2335 = vmatprep.subr.bf16.mxu0 %v5458_v50  ;;  %3903 = vmatprep.subr.bf16.mxu1 %v4473_v4 }
 0xb64   : > { %2336 = vmatpush1.bf16.msra.mxu0 %v5472_v20  ;;  %3904 = vmatpush3.bf16.msra.mxu1 %v5482_v53 }
 0xb65   : > { %2337 = vmatprep.subr.bf16.mxu0 %v5477_v21  ;;  %3905 = vmatprep.subr.bf16.mxu1 %v4473_v4 }
 0xb68   : > { %2338 = vmatpush1.bf16.msra.mxu0 %v5488_v23  ;;  %3906 = vmatpush3.bf16.msra.mxu1 %v5498_v31 }
 0xb69   : > { %2339 = vmatprep.subr.bf16.mxu0 %v5493_v57  ;;  %3907 = vmatprep.subr.bf16.mxu1 %v4473_v4 }
 0xb6c   : > { %2340 = vmatpush1.bf16.msra.mxu0 %v5504_v34  ;;  %3908 = vmatpush3.bf16.msra.mxu1 %v5512_v45 }
 0xb6d   : > { %2449 = vmatprep.subr.bf16.mxu0 %v5372_v49  ;;  %3913 = vmatprep.subr.bf16.mxu1 %v4473_v4 }
 0xc22   : > { %v2235_v56 = vpop.f32.mrb[4].mxu0  ;;  %v2276_v58 = vpop.f32.mrb[4].mxu1 }
 0xc23   : > { %v2282_v59 = vadd.f32 %v2235_v56, %v2194_v55  ;;  %v2237_v60 = vpop.f32.mrb[5].mxu0  ;;  %v3891_v62 = vpop.f32.mrb[5].mxu1  ;;  %v2296_v32 = vadd.f32 %v2276_v58, %v5558_v9 }
 0xc24   : > { %v2239_v63 = vpop.f32.mrb[6].mxu0  ;;  %v2279_v0 = vpop.f32.mrb[6].mxu1  ;;  %v2289_v40 = vadd.f32 %v2237_v60, %v2195_v39 }
 0xc25   : > { %v3469_v35 = vmul.f32 -1.442695, %v2282_v59  ;;  %v2240_v36 = vpop.f32.mrb[7].mxu0  ;;  %v3892_v37 = vpop.f32.mrb[7].mxu1 }
 0xc26   : > { %v3470_v41 = vmul.f32 -1.442695, %v2289_v40 }
 0xc27   : > { %4212 = vpow2.f32 %v3469_v35  ;;  %v2319_v35 = vld [vmem:[#allocation3 + $0x80] sm:$0xff] }
 0xc28   : > { %4214 = vpow2.f32 %v3470_v41 }
 0xc31   : > { %v4213_v3 = vpop.eup %4212 }
 0xc32   : > { %v2286_v12 = vadd.f32 1.0, %v4213_v3  ;;  %v4215_v14 = vpop.eup %4214 }
 0xc33   : > { %v2293_v26 = vadd.f32 1.0, %v4215_v14  ;;  %v2320_v14 = vld [vmem:[#allocation3 + $0x88] sm:$0xff] }
 0xc34   : > { %4216 = vrcp.f32 %v2286_v12 }
 0xc3e   : > { %v4217_v27 = vpop.eup %4216 }
 0xc3f   : > { %v2297_v15 = vmul.f32 %v4217_v27, %v2296_v32 }
 0xc41   : > { %v2298_v18 = vadd.f32 %v2297_v15, %v2196_v17 }
 0xc43   : > { %4218 = vtanh.f32 %v2298_v18 }
 0xc44   : > { %4220 = vrcp.f32 %v2293_v26 }
 0xc4d   : > { %v4219_v22 = vpop.eup %4218 }
 0xc4e   : > { %v2300_v43 = vsub.f32 %v5564_v38, %v4219_v22  ;;  %v4221_v25 = vpop.eup %4220 }
 0xc50   : > { %v2301_v28 = vmul.f32 %v4221_v25, %v2300_v43  ;;  %v2431_v25 = vpop.permute.xlu1 %2430 }
 0xc52   : > { %v2302_v47 = vadd.f32 %v4219_v22, %v2301_v28 }
 0xc54   : > { %v2303_v33 = vsub.f32 %v2302_v47, %v5564_v38  ;;  %v2312_v51 = vmul.f32 %v2307_v24, %v2302_v47 }
 0xc56   : > { %v2309_v30 = vmul.f32 %v2307_v24, %v2303_v33  ;;  %2314 = vst [vmem:[#allocation4 + $0x30] sm:$0xff] %v2312_v51 }
 0xc58   : > { %v5619_v44 = vadd.f32 %v2309_v30, %v5564_v38  ;;  %v2318_v38 = vld [vmem:[#allocation3 + $0x78] sm:$0xff]  ;;  %v2442_v30 = vld [vmem:[#allocation3 + $0x60] sm:$0xff] }
 0xc5a   : > { %v2324_v46 = vpack.c.bf16 %v5619_v44, %v5619_v44 }
 0xc5c   : > { %2358 = vmatmul.mubr.bf16.vlgmr.msra.gmra.mrb[8].mxu0 %v2324_v46  ;;  %3910 = vmatmul.mubr.bf16.vlgmr.msra.gmra.mrb[8].mxu1 %v2324_v46 }
 0xc5d   : > { %2450 = vmatpush1.bf16.msra.mxu0 %v5376_v42  ;;  %3914 = vmatpush3.bf16.msra.mxu1 %v5390_v1 }
 0xc5e   : > { %2451 = vmatprep.subr.bf16.mxu0 %v5380_v54  ;;  %3915 = vmatprep.subr.bf16.mxu1 %v4473_v4 }
 0xc5f   : > { %2481 = vmatprep.mubr.bf16.mxu0 %v4474_v6  ;;  %3929 = vmatprep.mubr.msk.bf16.mxu1 %vm4475_vm2, %v4473_v4 }
 0xc61   : > { %2452 = vmatpush1.bf16.msra.mxu0 %v5386_v61  ;;  %3916 = vmatpush3.bf16.msra.mxu1 %v5401_v19 }
 0xc62   : > { %2453 = vmatprep.subr.bf16.mxu0 %v5395_v2  ;;  %3917 = vmatprep.subr.bf16.mxu1 %v4473_v4 }
 0xc65   : > { %2454 = vmatpush1.bf16.msra.mxu0 %v5411_v5  ;;  %3918 = vmatpush3.bf16.msra.mxu1 %v5424_v8 }
 0xc66   : > { %2455 = vmatprep.subr.bf16.mxu0 %v5418_v7  ;;  %3919 = vmatprep.subr.bf16.mxu1 %v4473_v4 }
 0xc69   : > { %2456 = vmatpush1.bf16.msra.mxu0 %v5434_v10  ;;  %3920 = vmatpush3.bf16.msra.mxu1 %v5444_v13 }
 0xc6a   : > { %2457 = vmatprep.subr.bf16.mxu0 %v5439_v11  ;;  %3921 = vmatprep.subr.bf16.mxu1 %v4473_v4 }
 0xc6d   : > { %2458 = vmatpush1.bf16.msra.mxu0 %v5453_v16  ;;  %3922 = vmatpush3.bf16.msra.mxu1 %v5463_v29 }
 0xc6e   : > { %2459 = vmatprep.subr.bf16.mxu0 %v5458_v50  ;;  %3923 = vmatprep.subr.bf16.mxu1 %v4473_v4 }
 0xc71   : > { %2460 = vmatpush1.bf16.msra.mxu0 %v5472_v20  ;;  %3924 = vmatpush3.bf16.msra.mxu1 %v5482_v53 }
 0xc72   : > { %2461 = vmatprep.subr.bf16.mxu0 %v5477_v21  ;;  %3925 = vmatprep.subr.bf16.mxu1 %v4473_v4 }
 0xc75   : > { %2462 = vmatpush1.bf16.msra.mxu0 %v5488_v23  ;;  %3926 = vmatpush3.bf16.msra.mxu1 %v5498_v31 }
 0xc76   : > { %2463 = vmatprep.subr.bf16.mxu0 %v5493_v57  ;;  %3927 = vmatprep.subr.bf16.mxu1 %v4473_v4 }
 0xc79   : > { %2464 = vmatpush1.bf16.msra.mxu0 %v5504_v34  ;;  %3928 = vmatpush3.bf16.msra.mxu1 %v5512_v45 }
 0xc7a   : > { %2573 = vmatprep.subr.bf16.mxu0 %v5372_v49  ;;  %3933 = vmatprep.subr.bf16.mxu1 %v4473_v4 }
 0xd2f   : > { %v2359_v52 = vpop.f32.mrb[8].mxu0  ;;  %v2400_v48 = vpop.f32.mrb[8].mxu1 }
 0xd30   : > { %v2406_v55 = vadd.f32 %v2359_v52, %v2318_v38  ;;  %v2361_v56 = vpop.f32.mrb[9].mxu0  ;;  %v3911_v58 = vpop.f32.mrb[9].mxu1  ;;  %v2420_v3 = vadd.f32 %v2400_v48, %v5558_v9 }
 0xd31   : > { %v2363_v59 = vpop.f32.mrb[10].mxu0  ;;  %v2403_v60 = vpop.f32.mrb[10].mxu1  ;;  %v2413_v36 = vadd.f32 %v2361_v56, %v2319_v35 }
 0xd32   : > { %v3472_v62 = vmul.f32 -1.442695, %v2406_v55  ;;  %v2364_v63 = vpop.f32.mrb[11].mxu0  ;;  %v3912_v0 = vpop.f32.mrb[11].mxu1 }
 0xd33   : > { %v3473_v37 = vmul.f32 -1.442695, %v2413_v36 }
 0xd34   : > { %4222 = vpow2.f32 %v3472_v62  ;;  %v2443_v62 = vld [vmem:[#allocation3 + $0x68] sm:$0xff] }
 0xd35   : > { %4224 = vpow2.f32 %v3473_v37 }
 0xd3e   : > { %v4223_v39 = vpop.eup %4222 }
 0xd3f   : > { %v2410_v40 = vadd.f32 1.0, %v4223_v39  ;;  %v4225_v41 = vpop.eup %4224 }
 0xd40   : > { %v2417_v17 = vadd.f32 1.0, %v4225_v41  ;;  %v2444_v41 = vld [vmem:[#allocation3 + $0x70] sm:$0xff] }
 0xd41   : > { %4226 = vrcp.f32 %v2410_v40 }
 0xd4b   : > { %v4227_v12 = vpop.eup %4226 }
 0xd4c   : > { %v2421_v32 = vmul.f32 %v4227_v12, %v2420_v3 }
 0xd4e   : > { %v2422_v27 = vadd.f32 %v2421_v32, %v2320_v14 }
 0xd50   : > { %4228 = vtanh.f32 %v2422_v27 }
 0xd51   : > { %4230 = vrcp.f32 %v2417_v17 }
 0xd5a   : > { %v4229_v15 = vpop.eup %4228 }
 0xd5b   : > { %v2424_v18 = vsub.f32 %v5619_v44, %v4229_v15  ;;  %v4231_v26 = vpop.eup %4230 }
 0xd5d   : > { %v2425_v22 = vmul.f32 %v4231_v26, %v2424_v18  ;;  %v2555_v26 = vpop.permute.xlu1 %2554 }
 0xd5f   : > { %v2426_v43 = vadd.f32 %v4229_v15, %v2425_v22 }
 0xd61   : > { %v2427_v28 = vsub.f32 %v2426_v43, %v5619_v44  ;;  %v2436_v47 = vmul.f32 %v2431_v25, %v2426_v43 }
 0xd63   : > { %v2433_v24 = vmul.f32 %v2431_v25, %v2427_v28  ;;  %2438 = vst [vmem:[#allocation4 + $0x28] sm:$0xff] %v2436_v47 }
 0xd65   : > { %v5662_v33 = vadd.f32 %v2433_v24, %v5619_v44  ;;  %v2566_v24 = vld [vmem:[#allocation3 + $0x48] sm:$0xff] }
 0xd67   : > { %v2448_v51 = vpack.c.bf16 %v5662_v33, %v5662_v33 }
 0xd69   : > { %2482 = vmatmul.mubr.bf16.vlgmr.msra.gmra.mrb[12].mxu0 %v2448_v51  ;;  %3930 = vmatmul.mubr.bf16.vlgmr.msra.gmra.mrb[12].mxu1 %v2448_v51 }
 0xd6a   : > { %2574 = vmatpush1.bf16.msra.mxu0 %v5376_v42  ;;  %3934 = vmatpush3.bf16.msra.mxu1 %v5390_v1 }
 0xd6b   : > { %2575 = vmatprep.subr.bf16.mxu0 %v5380_v54  ;;  %3935 = vmatprep.subr.bf16.mxu1 %v4473_v4 }
 0xd6c   : > { %2605 = vmatprep.mubr.bf16.mxu0 %v4474_v6  ;;  %3949 = vmatprep.mubr.msk.bf16.mxu1 %vm4475_vm2, %v4473_v4 }
 0xd6e   : > { %2576 = vmatpush1.bf16.msra.mxu0 %v5386_v61  ;;  %3936 = vmatpush3.bf16.msra.mxu1 %v5401_v19 }
 0xd6f   : > { %2577 = vmatprep.subr.bf16.mxu0 %v5395_v2  ;;  %3937 = vmatprep.subr.bf16.mxu1 %v4473_v4 }
 0xd72   : > { %2578 = vmatpush1.bf16.msra.mxu0 %v5411_v5  ;;  %3938 = vmatpush3.bf16.msra.mxu1 %v5424_v8 }
 0xd73   : > { %2579 = vmatprep.subr.bf16.mxu0 %v5418_v7  ;;  %3939 = vmatprep.subr.bf16.mxu1 %v4473_v4 }
 0xd76   : > { %2580 = vmatpush1.bf16.msra.mxu0 %v5434_v10  ;;  %3940 = vmatpush3.bf16.msra.mxu1 %v5444_v13 }
 0xd77   : > { %2581 = vmatprep.subr.bf16.mxu0 %v5439_v11  ;;  %3941 = vmatprep.subr.bf16.mxu1 %v4473_v4 }
 0xd7a   : > { %2582 = vmatpush1.bf16.msra.mxu0 %v5453_v16  ;;  %3942 = vmatpush3.bf16.msra.mxu1 %v5463_v29 }
 0xd7b   : > { %2583 = vmatprep.subr.bf16.mxu0 %v5458_v50  ;;  %3943 = vmatprep.subr.bf16.mxu1 %v4473_v4 }
 0xd7e   : > { %2584 = vmatpush1.bf16.msra.mxu0 %v5472_v20  ;;  %3944 = vmatpush3.bf16.msra.mxu1 %v5482_v53 }
 0xd7f   : > { %2585 = vmatprep.subr.bf16.mxu0 %v5477_v21  ;;  %3945 = vmatprep.subr.bf16.mxu1 %v4473_v4 }
 0xd82   : > { %2586 = vmatpush1.bf16.msra.mxu0 %v5488_v23  ;;  %3946 = vmatpush3.bf16.msra.mxu1 %v5498_v31 }
 0xd83   : > { %2587 = vmatprep.subr.bf16.mxu0 %v5493_v57  ;;  %3947 = vmatprep.subr.bf16.mxu1 %v4473_v4 }
 0xd86   : > { %2588 = vmatpush1.bf16.msra.mxu0 %v5504_v34  ;;  %3948 = vmatpush3.bf16.msra.mxu1 %v5512_v45 }
 0xd87   : > { %2697 = vmatprep.subr.bf16.mxu0 %v5372_v49  ;;  %3953 = vmatprep.subr.bf16.mxu1 %v4473_v4 }
 0xe3c   : > { %v2483_v44 = vpop.f32.mrb[12].mxu0  ;;  %v2524_v46 = vpop.f32.mrb[12].mxu1 }
 0xe3d   : > { %v2530_v38 = vadd.f32 %v2483_v44, %v2442_v30  ;;  %v2485_v52 = vpop.f32.mrb[13].mxu0  ;;  %v3931_v48 = vpop.f32.mrb[13].mxu1  ;;  %v2544_v39 = vadd.f32 %v2524_v46, %v5558_v9 }
 0xe3e   : > { %v2487_v55 = vpop.f32.mrb[14].mxu0  ;;  %v2527_v56 = vpop.f32.mrb[14].mxu1  ;;  %v2537_v63 = vadd.f32 %v2485_v52, %v2443_v62 }
 0xe3f   : > { %v3475_v58 = vmul.f32 -1.442695, %v2530_v38  ;;  %v2488_v59 = vpop.f32.mrb[15].mxu0  ;;  %v3932_v60 = vpop.f32.mrb[15].mxu1 }
 0xe40   : > { %v3476_v0 = vmul.f32 -1.442695, %v2537_v63 }
 0xe41   : > { %4232 = vpow2.f32 %v3475_v58  ;;  %v2567_v58 = vld [vmem:[#allocation3 + $0x50] sm:$0xff] }
 0xe42   : > { %4234 = vpow2.f32 %v3476_v0 }
 0xe4b   : > { %v4233_v35 = vpop.eup %4232 }
 0xe4c   : > { %v2534_v36 = vadd.f32 1.0, %v4233_v35  ;;  %v4235_v37 = vpop.eup %4234 }
 0xe4d   : > { %v2541_v14 = vadd.f32 1.0, %v4235_v37  ;;  %v2568_v37 = vld [vmem:[#allocation3 + $0x58] sm:$0xff] }
 0xe4e   : > { %4236 = vrcp.f32 %v2534_v36 }
 0xe58   : > { %v4237_v40 = vpop.eup %4236 }
 0xe59   : > { %v2545_v3 = vmul.f32 %v4237_v40, %v2544_v39 }
 0xe5b   : > { %v2546_v12 = vadd.f32 %v2545_v3, %v2444_v41 }
 0xe5d   : > { %4238 = vtanh.f32 %v2546_v12 }
 0xe5e   : > { %4240 = vrcp.f32 %v2541_v14 }
 0xe67   : > { %v4239_v32 = vpop.eup %4238 }
 0xe68   : > { %v2548_v27 = vsub.f32 %v5662_v33, %v4239_v32  ;;  %v4241_v17 = vpop.eup %4240 }
 0xe6a   : > { %v2549_v15 = vmul.f32 %v4241_v17, %v2548_v27  ;;  %v2679_v17 = vpop.permute.xlu0 %2678 }
 0xe6c   : > { %v2550_v18 = vadd.f32 %v4239_v32, %v2549_v15 }
 0xe6e   : > { %v2551_v22 = vsub.f32 %v2550_v18, %v5662_v33  ;;  %v2560_v43 = vmul.f32 %v2555_v26, %v2550_v18 }
 0xe70   : > { %v2557_v25 = vmul.f32 %v2555_v26, %v2551_v22  ;;  %2562 = vst [vmem:[#allocation4 + $0x20] sm:$0xff] %v2560_v43 }
 0xe72   : > { %v5705_v28 = vadd.f32 %v2557_v25, %v5662_v33  ;;  %v2690_v25 = vld [vmem:[#allocation3 + $0x30] sm:$0xff] }
 0xe74   : > { %v2572_v47 = vpack.c.bf16 %v5705_v28, %v5705_v28 }
 0xe76   : > { %2606 = vmatmul.mubr.bf16.vlgmr.msra.gmra.mrb[16].mxu0 %v2572_v47  ;;  %3950 = vmatmul.mubr.bf16.vlgmr.msra.gmra.mrb[16].mxu1 %v2572_v47 }
 0xe77   : > { %2698 = vmatpush1.bf16.msra.mxu0 %v5376_v42  ;;  %3954 = vmatpush3.bf16.msra.mxu1 %v5390_v1 }
 0xe78   : > { %2699 = vmatprep.subr.bf16.mxu0 %v5380_v54  ;;  %3955 = vmatprep.subr.bf16.mxu1 %v4473_v4 }
 0xe79   : > { %2729 = vmatprep.mubr.bf16.mxu0 %v4474_v6  ;;  %3969 = vmatprep.mubr.msk.bf16.mxu1 %vm4475_vm2, %v4473_v4 }
 0xe7b   : > { %2700 = vmatpush1.bf16.msra.mxu0 %v5386_v61  ;;  %3956 = vmatpush3.bf16.msra.mxu1 %v5401_v19 }
 0xe7c   : > { %2701 = vmatprep.subr.bf16.mxu0 %v5395_v2  ;;  %3957 = vmatprep.subr.bf16.mxu1 %v4473_v4 }
 0xe7f   : > { %2702 = vmatpush1.bf16.msra.mxu0 %v5411_v5  ;;  %3958 = vmatpush3.bf16.msra.mxu1 %v5424_v8 }
 0xe80   : > { %2703 = vmatprep.subr.bf16.mxu0 %v5418_v7  ;;  %3959 = vmatprep.subr.bf16.mxu1 %v4473_v4 }
 0xe83   : > { %2704 = vmatpush1.bf16.msra.mxu0 %v5434_v10  ;;  %3960 = vmatpush3.bf16.msra.mxu1 %v5444_v13 }
 0xe84   : > { %2705 = vmatprep.subr.bf16.mxu0 %v5439_v11  ;;  %3961 = vmatprep.subr.bf16.mxu1 %v4473_v4 }
 0xe87   : > { %2706 = vmatpush1.bf16.msra.mxu0 %v5453_v16  ;;  %3962 = vmatpush3.bf16.msra.mxu1 %v5463_v29 }
 0xe88   : > { %2707 = vmatprep.subr.bf16.mxu0 %v5458_v50  ;;  %3963 = vmatprep.subr.bf16.mxu1 %v4473_v4 }
 0xe8b   : > { %2708 = vmatpush1.bf16.msra.mxu0 %v5472_v20  ;;  %3964 = vmatpush3.bf16.msra.mxu1 %v5482_v53 }
 0xe8c   : > { %2709 = vmatprep.subr.bf16.mxu0 %v5477_v21  ;;  %3965 = vmatprep.subr.bf16.mxu1 %v4473_v4 }
 0xe8f   : > { %2710 = vmatpush1.bf16.msra.mxu0 %v5488_v23  ;;  %3966 = vmatpush3.bf16.msra.mxu1 %v5498_v31 }
 0xe90   : > { %2711 = vmatprep.subr.bf16.mxu0 %v5493_v57  ;;  %3967 = vmatprep.subr.bf16.mxu1 %v4473_v4 }
 0xe93   : > { %2712 = vmatpush1.bf16.msra.mxu0 %v5504_v34  ;;  %3968 = vmatpush3.bf16.msra.mxu1 %v5512_v45 }
 0xe94   : > { %2821 = vmatprep.subr.bf16.mxu0 %v5372_v49  ;;  %3973 = vmatprep.subr.bf16.mxu1 %v4473_v4 }
 0xf49   : > { %v2607_v33 = vpop.f32.mrb[16].mxu0  ;;  %v2648_v51 = vpop.f32.mrb[16].mxu1 }
 0xf4a   : > { %v2654_v30 = vadd.f32 %v2607_v33, %v2566_v24  ;;  %v2609_v44 = vpop.f32.mrb[17].mxu0  ;;  %v3951_v46 = vpop.f32.mrb[17].mxu1  ;;  %v2668_v35 = vadd.f32 %v2648_v51, %v5558_v9 }
 0xf4b   : > { %v2611_v38 = vpop.f32.mrb[18].mxu0  ;;  %v2651_v52 = vpop.f32.mrb[18].mxu1  ;;  %v2661_v59 = vadd.f32 %v2609_v44, %v2567_v58 }
 0xf4c   : > { %v3478_v48 = vmul.f32 -1.442695, %v2654_v30  ;;  %v2612_v55 = vpop.f32.mrb[19].mxu0  ;;  %v3952_v56 = vpop.f32.mrb[19].mxu1 }
 0xf4d   : > { %v3479_v60 = vmul.f32 -1.442695, %v2661_v59 }
 0xf4e   : > { %4242 = vpow2.f32 %v3478_v48  ;;  %v2691_v48 = vld [vmem:[#allocation3 + $0x38] sm:$0xff] }
 0xf4f   : > { %4244 = vpow2.f32 %v3479_v60 }
 0xf58   : > { %v4243_v62 = vpop.eup %4242 }
 0xf59   : > { %v2658_v63 = vadd.f32 1.0, %v4243_v62  ;;  %v4245_v0 = vpop.eup %4244 }
 0xf5a   : > { %v2665_v41 = vadd.f32 1.0, %v4245_v0 }
 0xf5b   : > { %4246 = vrcp.f32 %v2658_v63  ;;  %v2692_v63 = vld [vmem:[#allocation3 + $0x40] sm:$0xff] }
 0xf65   : > { %v4247_v36 = vpop.eup %4246 }
 0xf66   : > { %v2669_v39 = vmul.f32 %v4247_v36, %v2668_v35 }
 0xf68   : > { %v2670_v40 = vadd.f32 %v2669_v39, %v2568_v37 }
 0xf6a   : > { %4248 = vtanh.f32 %v2670_v40 }
 0xf6b   : > { %4250 = vrcp.f32 %v2665_v41 }
 0xf74   : > { %v4249_v3 = vpop.eup %4248 }
 0xf75   : > { %v2672_v12 = vsub.f32 %v5705_v28, %v4249_v3  ;;  %v4251_v14 = vpop.eup %4250 }
 0xf77   : > { %v2673_v32 = vmul.f32 %v4251_v14, %v2672_v12  ;;  %v2803_v12 = vpop.permute.xlu1 %2802 }
 0xf79   : > { %v2674_v27 = vadd.f32 %v4249_v3, %v2673_v32 }
 0xf7b   : > { %v2675_v15 = vsub.f32 %v2674_v27, %v5705_v28  ;;  %v2684_v18 = vmul.f32 %v2679_v17, %v2674_v27 }
 0xf7d   : > { %v2681_v26 = vmul.f32 %v2679_v17, %v2675_v15  ;;  %2686 = vst [vmem:[#allocation4 + $0x18] sm:$0xff] %v2684_v18 }
 0xf7f   : > { %v5748_v22 = vadd.f32 %v2681_v26, %v5705_v28 }
 0xf81   : > { %v2696_v43 = vpack.c.bf16 %v5748_v22, %v5748_v22 }
 0xf83   : > { %2730 = vmatmul.mubr.bf16.vlgmr.msra.gmra.mrb[20].mxu0 %v2696_v43  ;;  %3970 = vmatmul.mubr.bf16.vlgmr.msra.gmra.mrb[20].mxu1 %v2696_v43  ;;  %v2927_v43 = vpop.permute.xlu0 %2926 }
 0xf84   : > { %2822 = vmatpush1.bf16.msra.mxu0 %v5376_v42  ;;  %3974 = vmatpush3.bf16.msra.mxu1 %v5390_v1 }
 0xf85   : > { %2823 = vmatprep.subr.bf16.mxu0 %v5380_v54  ;;  %3975 = vmatprep.subr.bf16.mxu1 %v4473_v4 }
 0xf86   : > { %2853 = vmatprep.mubr.bf16.mxu0 %v4474_v6  ;;  %3989 = vmatprep.mubr.msk.bf16.mxu1 %vm4475_vm2, %v4473_v4 }
 0xf88   : > { %2824 = vmatpush1.bf16.msra.mxu0 %v5386_v61  ;;  %3976 = vmatpush3.bf16.msra.mxu1 %v5401_v19 }
 0xf89   : > { %2825 = vmatprep.subr.bf16.mxu0 %v5395_v2  ;;  %3977 = vmatprep.subr.bf16.mxu1 %v4473_v4 }
 0xf8c   : > { %2826 = vmatpush1.bf16.msra.mxu0 %v5411_v5  ;;  %3978 = vmatpush3.bf16.msra.mxu1 %v5424_v8 }
 0xf8d   : > { %2827 = vmatprep.subr.bf16.mxu0 %v5418_v7  ;;  %3979 = vmatprep.subr.bf16.mxu1 %v4473_v4 }
 0xf90   : > { %2828 = vmatpush1.bf16.msra.mxu0 %v5434_v10  ;;  %3980 = vmatpush3.bf16.msra.mxu1 %v5444_v13 }
 0xf91   : > { %2829 = vmatprep.subr.bf16.mxu0 %v5439_v11  ;;  %3981 = vmatprep.subr.bf16.mxu1 %v4473_v4 }
 0xf94   : > { %2830 = vmatpush1.bf16.msra.mxu0 %v5453_v16  ;;  %3982 = vmatpush3.bf16.msra.mxu1 %v5463_v29 }
 0xf95   : > { %2831 = vmatprep.subr.bf16.mxu0 %v5458_v50  ;;  %3983 = vmatprep.subr.bf16.mxu1 %v4473_v4 }
 0xf98   : > { %2832 = vmatpush1.bf16.msra.mxu0 %v5472_v20  ;;  %3984 = vmatpush3.bf16.msra.mxu1 %v5482_v53 }
 0xf99   : > { %2833 = vmatprep.subr.bf16.mxu0 %v5477_v21  ;;  %3985 = vmatprep.subr.bf16.mxu1 %v4473_v4 }
 0xf9c   : > { %2834 = vmatpush1.bf16.msra.mxu0 %v5488_v23  ;;  %3986 = vmatpush3.bf16.msra.mxu1 %v5498_v31 }
 0xf9d   : > { %2835 = vmatprep.subr.bf16.mxu0 %v5493_v57  ;;  %3987 = vmatprep.subr.bf16.mxu1 %v4473_v4 }
 0xfa0   : > { %2836 = vmatpush1.bf16.msra.mxu0 %v5504_v34  ;;  %3988 = vmatpush3.bf16.msra.mxu1 %v5512_v45 }
 0xfa1   : > { %2944 = vmatprep.subr.bf16.mxu0 %v5372_v49  ;;  %3993 = vmatprep.subr.bf16.mxu1 %v4473_v4 }
0x1056   : > { %v2731_v28 = vpop.f32.mrb[20].mxu0  ;;  %v2772_v47 = vpop.f32.mrb[20].mxu1 }
0x1057   : > { %v2778_v24 = vadd.f32 %v2731_v28, %v2690_v25  ;;  %v2733_v33 = vpop.f32.mrb[21].mxu0  ;;  %v3971_v51 = vpop.f32.mrb[21].mxu1  ;;  %v2792_v60 = vadd.f32 %v2772_v47, %v5558_v9 }
0x1058   : > { %v2735_v30 = vpop.f32.mrb[22].mxu0  ;;  %v2775_v44 = vpop.f32.mrb[22].mxu1  ;;  %v2785_v55 = vadd.f32 %v2733_v33, %v2691_v48  ;;  %v2938_v51 = vld [vmem:[#allocation3] sm:$0xff] }
0x1059   : > { %v3481_v46 = vmul.f32 -1.442695, %v2778_v24  ;;  %v2736_v38 = vpop.f32.mrb[23].mxu0  ;;  %v3972_v52 = vpop.f32.mrb[23].mxu1 }
0x105a   : > { %v3482_v56 = vmul.f32 -1.442695, %v2785_v55 }
0x105b   : > { %4252 = vpow2.f32 %v3481_v46 }
0x105c   : > { %4254 = vpow2.f32 %v3482_v56 }
0x1065   : > { %v4253_v58 = vpop.eup %4252 }
0x1066   : > { %v2782_v59 = vadd.f32 1.0, %v4253_v58  ;;  %v4255_v49 = vpop.eup %4254 }
0x1067   : > { %v2789_v36 = vadd.f32 1.0, %v4255_v49  ;;  %v2939_v49 = vld [vmem:[#allocation3 + $0x8] sm:$0xff] }
0x1068   : > { %4256 = vrcp.f32 %v2782_v59 }
0x1072   : > { %v4257_v62 = vpop.eup %4256 }
0x1073   : > { %v2793_v0 = vmul.f32 %v4257_v62, %v2792_v60 }
0x1075   : > { %v2794_v35 = vadd.f32 %v2793_v0, %v2692_v63 }
0x1077   : > { %4258 = vtanh.f32 %v2794_v35 }
0x1078   : > { %4260 = vrcp.f32 %v2789_v36 }
0x1081   : > { %v4259_v37 = vpop.eup %4258 }
0x1082   : > { %v2796_v39 = vsub.f32 %v5748_v22, %v4259_v37  ;;  %v4261_v40 = vpop.eup %4260 }
0x1084   : > { %v2797_v41 = vmul.f32 %v4261_v40, %v2796_v39  ;;  %v2940_v39 = vld [vmem:[#allocation3 + $0x10] sm:$0xff] }
0x1086   : > { %v2798_v3 = vadd.f32 %v4259_v37, %v2797_v41 }
0x1088   : > { %v2799_v14 = vsub.f32 %v2798_v3, %v5748_v22  ;;  %v2808_v32 = vmul.f32 %v2803_v12, %v2798_v3 }
0x108a   : > { %v2805_v27 = vmul.f32 %v2803_v12, %v2799_v14  ;;  %2810 = vst [vmem:[#allocation4 + $0x10] sm:$0xff] %v2808_v32 }
0x108c   : > { %v5791_v17 = vadd.f32 %v2805_v27, %v5748_v22 }
0x108e   : > { %v2820_v15 = vpack.c.bf16 %v5791_v17, %v5791_v17 }
0x1090   : > { %2854 = vmatmul.mubr.bf16.vlgmr.msra.gmra.mrb[24].mxu0 %v2820_v15  ;;  %3990 = vmatmul.mubr.bf16.vlgmr.msra.gmra.mrb[24].mxu1 %v2820_v15  ;;  %v3050_v15 = vpop.permute.xlu1 %3049 }
0x1091   : > { %2945 = vmatpush1.bf16.msra.mxu0 %v5376_v42  ;;  %3994 = vmatpush3.bf16.msra.mxu1 %v5390_v1  ;;  %v2814_v42 = vld [vmem:[#allocation3 + $0x18] sm:$0xff] }
0x1092   : > { %2946 = vmatprep.subr.bf16.mxu0 %v5380_v54  ;;  %3995 = vmatprep.subr.bf16.mxu1 %v4473_v4 }
0x1093   : > { %2976 = vmatprep.mubr.bf16.mxu0 %v4474_v6  ;;  %4009 = vmatprep.mubr.msk.bf16.mxu1 %vm4475_vm2, %v4473_v4 }
0x1095   : > { %2947 = vmatpush1.bf16.msra.mxu0 %v5386_v61  ;;  %3996 = vmatpush3.bf16.msra.mxu1 %v5401_v19 }
0x1096   : > { %2948 = vmatprep.subr.bf16.mxu0 %v5395_v2  ;;  %3997 = vmatprep.subr.bf16.mxu1 %v4473_v4 }
0x1099   : > { %2949 = vmatpush1.bf16.msra.mxu0 %v5411_v5  ;;  %3998 = vmatpush3.bf16.msra.mxu1 %v5424_v8 }
0x109a   : > { %2950 = vmatprep.subr.bf16.mxu0 %v5418_v7  ;;  %3999 = vmatprep.subr.bf16.mxu1 %v4473_v4 }
0x109d   : > { %2951 = vmatpush1.bf16.msra.mxu0 %v5434_v10  ;;  %4000 = vmatpush3.bf16.msra.mxu1 %v5444_v13 }
0x109e   : > { %2952 = vmatprep.subr.bf16.mxu0 %v5439_v11  ;;  %4001 = vmatprep.subr.bf16.mxu1 %v4473_v4  ;;  %v2815_v11 = vld [vmem:[#allocation3 + $0x20] sm:$0xff] }
0x10a1   : > { %2953 = vmatpush1.bf16.msra.mxu0 %v5453_v16  ;;  %4002 = vmatpush3.bf16.msra.mxu1 %v5463_v29 }
0x10a2   : > { %2954 = vmatprep.subr.bf16.mxu0 %v5458_v50  ;;  %4003 = vmatprep.subr.bf16.mxu1 %v4473_v4 }
0x10a5   : > { %2955 = vmatpush1.bf16.msra.mxu0 %v5472_v20  ;;  %4004 = vmatpush3.bf16.msra.mxu1 %v5482_v53  ;;  %v2816_v53 = vld [vmem:[#allocation3 + $0x28] sm:$0xff] }
0x10a6   : > { %2956 = vmatprep.subr.bf16.mxu0 %v5477_v21  ;;  %4005 = vmatprep.subr.bf16.mxu1 %v4473_v4 }
0x10a9   : > { %2957 = vmatpush1.bf16.msra.mxu0 %v5488_v23  ;;  %4006 = vmatpush3.bf16.msra.mxu1 %v5498_v31 }
0x10aa   : > { %2958 = vmatprep.subr.bf16.mxu0 %v5493_v57  ;;  %4007 = vmatprep.subr.bf16.mxu1 %v4473_v4 }
0x10ad   : > { %2959 = vmatpush1.bf16.msra.mxu0 %v5504_v34  ;;  %4008 = vmatpush3.bf16.msra.mxu1 %v5512_v45 }
0x1163   : > { %v2855_v54 = vpop.f32.mrb[24].mxu0  ;;  %v2896_v61 = vpop.f32.mrb[24].mxu1 }
0x1164   : > { %v2902_v1 = vadd.f32 %v2855_v54, %v2814_v42  ;;  %v2857_v2 = vpop.f32.mrb[25].mxu0  ;;  %v3991_v19 = vpop.f32.mrb[25].mxu1  ;;  %v2916_v20 = vadd.f32 %v2896_v61, %v5558_v9 }
0x1165   : > { %v2859_v6 = vpop.f32.mrb[26].mxu0  ;;  %v2899_v5 = vpop.f32.mrb[26].mxu1  ;;  %v2909_v13 = vadd.f32 %v2857_v2, %v2815_v11 }
0x1166   : > { %v3484_v7 = vmul.f32 -1.442695, %v2902_v1  ;;  %v2860_v8 = vpop.f32.mrb[27].mxu0  ;;  %v3992_v10 = vpop.f32.mrb[27].mxu1 }
0x1167   : > { %v3485_v16 = vmul.f32 -1.442695, %v2909_v13 }
0x1168   : > { %4262 = vpow2.f32 %v3484_v7 }
0x1169   : > { %4264 = vpow2.f32 %v3485_v16 }
0x1172   : > { %v4263_v4 = vpop.eup %4262 }
0x1173   : > { %v2906_v50 = vadd.f32 1.0, %v4263_v4  ;;  %v4265_v29 = vpop.eup %4264 }
0x1174   : > { %v2913_v31 = vadd.f32 1.0, %v4265_v29 }
0x1175   : > { %4266 = vrcp.f32 %v2906_v50 }
0x117f   : > { %v4267_v21 = vpop.eup %4266 }
0x1180   : > { %v2917_v23 = vmul.f32 %v4267_v21, %v2916_v20 }
0x1182   : > { %v2918_v57 = vadd.f32 %v2917_v23, %v2816_v53 }
0x1184   : > { %4268 = vtanh.f32 %v2918_v57 }
0x1185   : > { %4270 = vrcp.f32 %v2913_v31 }
0x118e   : > { %v4269_v34 = vpop.eup %4268 }
0x118f   : > { %v2920_v45 = vsub.f32 %v5791_v17, %v4269_v34  ;;  %v4271_v18 = vpop.eup %4270 }
0x1191   : > { %v2921_v26 = vmul.f32 %v4271_v18, %v2920_v45 }
0x1193   : > { %v2922_v22 = vadd.f32 %v4269_v34, %v2921_v26 }
0x1195   : > { %v2923_v25 = vsub.f32 %v2922_v22, %v5791_v17  ;;  %v2932_v28 = vmul.f32 %v2927_v43, %v2922_v22 }
0x1197   : > { %v2929_v47 = vmul.f32 %v2927_v43, %v2923_v25  ;;  %2934 = vst [vmem:[#allocation4 + $0x8] sm:$0xff] %v2932_v28 }
0x1199   : > { %v2930_v24 = vadd.f32 %v2929_v47, %v5791_v17 }
0x119b   : > { %v2943_v33 = vpack.c.bf16 %v2930_v24, %v2930_v24 }
0x119d   : > { %2977 = vmatmul.mubr.bf16.vlgmr.msra.gmra.mrb[28].mxu0 %v2943_v33  ;;  %4010 = vmatmul.mubr.bf16.vlgmr.msra.gmra.mrb[28].mxu1 %v2943_v33 }
0x1270   : > { %v2978_v30 = vpop.f32.mrb[28].mxu0  ;;  %v3019_v44 = vpop.f32.mrb[28].mxu1 }
0x1271   : > { %v3025_v46 = vadd.f32 %v2978_v30, %v2938_v51  ;;  %v2980_v38 = vpop.f32.mrb[29].mxu0  ;;  %v4011_v52 = vpop.f32.mrb[29].mxu1  ;;  %v3039_v36 = vadd.f32 %v3019_v44, %v5558_v9 }
0x1272   : > { %v2982_v48 = vpop.f32.mrb[30].mxu0  ;;  %v3022_v55 = vpop.f32.mrb[30].mxu1  ;;  %v3032_v60 = vadd.f32 %v2980_v38, %v2939_v49 }
0x1273   : > { %v3486_v56 = vmul.f32 -1.442695, %v3025_v46  ;;  %v2983_v58 = vpop.f32.mrb[31].mxu0  ;;  %v4012_v59 = vpop.f32.mrb[31].mxu1 }
0x1274   : > { %v3487_v62 = vmul.f32 -1.442695, %v3032_v60 }
0x1275   : > { %4272 = vpow2.f32 %v3486_v56 }
0x1276   : > { %4274 = vpow2.f32 %v3487_v62 }
0x127f   : > { %v4273_v63 = vpop.eup %4272 }
0x1280   : > { %v3029_v0 = vadd.f32 1.0, %v4273_v63  ;;  %v4275_v35 = vpop.eup %4274 }
0x1281   : > { %v3036_v3 = vadd.f32 1.0, %v4275_v35 }
0x1282   : > { %4276 = vrcp.f32 %v3029_v0 }
0x128c   : > { %v4277_v37 = vpop.eup %4276 }
0x128d   : > { %v3040_v40 = vmul.f32 %v4277_v37, %v3039_v36 }
0x128f   : > { %v3041_v41 = vadd.f32 %v3040_v40, %v2940_v39 }
0x1291   : > { %4278 = vtanh.f32 %v3041_v41 }
0x1292   : > { %4280 = vrcp.f32 %v3036_v3 }
0x129b   : > { %v4279_v12 = vpop.eup %4278 }
0x129c   : > { %v3043_v14 = vsub.f32 %v2930_v24, %v4279_v12  ;;  %v4281_v32 = vpop.eup %4280 }
0x129e   : > { %v3044_v27 = vmul.f32 %v4281_v32, %v3043_v14 }
0x12a0   : > { %v3045_v17 = vadd.f32 %v4279_v12, %v3044_v27 }
0x12a2   : > { %v3046_v42 = vsub.f32 %v3045_v17, %v2930_v24  ;;  %v3055_v54 = vmul.f32 %v3050_v15, %v3045_v17 }
0x12a4   : > { %v3052_v61 = vmul.f32 %v3050_v15, %v3046_v42  ;;  %3056 = vst [vmem:[#allocation4] sm:$0xff] %v3055_v54 }
0x12a6   : > { %v3053_v1 = vadd.f32 %v3052_v61, %v2930_v24 }
0x12a8   : > { %3054 = vst [vmem:[#allocation2] sm:$0xff] %v3053_v1 }
0x12a9 PF: > { %v3058_v2 = vld [vmem:[#allocation4 + $0x8] sm:$0xff]  ;;  %v3059_v19 = vld [vmem:[#allocation4 + $0x10] sm:$0xff]  ;;  %v3060_v5 = vld [vmem:[#allocation4 + $0x18] sm:$0xff]  ;;  %p5956_p4 = scmp.ne.s32.totalorder %s5911_s9, 0 }
0x12aa   : > { %v3061_v7 = vld [vmem:[#allocation4 + $0x20] sm:$0xff]  ;;  %v3062_v8 = vld [vmem:[#allocation4 + $0x28] sm:$0xff]  ;;  %v3516_v10 = vpack.c.bf16 %v3060_v5, %v3059_v19  ;;  %v3063_v13 = vld [vmem:[#allocation4 + $0x30] sm:$0xff]  ;;  %s3497_s19 = sshll.u32 (%p5956_p4), %s4452_s24, 2 }
0x12ab   : > { %v3057_v9 = vld [vmem:[#allocation4] sm:$0xff]  ;;  %v3521_v11 = vpack.c.bf16 %v3062_v8, %v3061_v7  ;;  %v3064_v16 = vld [vmem:[#allocation4 + $0x38] sm:$0xff]  ;;  %3111 = sbr.rel (!%p5956_p4) target bundleno = 4793 (0x12b9), region = 76  ;;  %s3120_s1 = scalar_lea.vmem (%p5956_p4), %s5875_s6, %s3497_s19 }
0x12ac   : > { %v3511_v6 = vpack.c.bf16 %v3058_v2, %v3057_v9  ;;  %v3526_v4 = vpack.c.bf16 %v3064_v16, %v3063_v13  ;;  %3528 = vst [vmem:[%s4903_s13 + $0x8] sm:$0xff] %v3516_v10  }
0x12ad   : > { %3529 = vst [vmem:[%s4903_s13 + $0x10] sm:$0xff] %v3521_v11  }
0x12ae   : > { %3512 = vst [vmem:[%s4903_s13] sm:$0xff] %v3511_v6   ;;  %3530 = vst [vmem:[%s4903_s13 + $0x18] sm:$0xff] %v3526_v4  }
0x12b3   : > { %v3140_v20 = vld [vmem:[%s4903_s13 + $0x8] sm:$0xf]  ;;  %v3142_v21 = vld [vmem:[%s4903_s13 + $0xc] sm:$0xf] }
0x12b4   : > { %v3144_v53 = vld [vmem:[%s4903_s13 + $0x10] sm:$0xf]  ;;  %3141 = vst [vmem:[%s3120_s1 + $0x10] sm:$0xf] %v3140_v20  ;;  %3143 = vst [vmem:[%s3120_s1 + $0x18] sm:$0xf] %v3142_v21 }
0x12b5   : > { %v3136_v50 = vld [vmem:[%s4903_s13] sm:$0xf]  ;;  %v3138_v29 = vld [vmem:[%s4903_s13 + $0x4] sm:$0xf]  ;;  %3145 = vst [vmem:[%s3120_s1 + $0x20] sm:$0xf] %v3144_v53 }
0x12b6   : > { %3137 = vst [vmem:[%s3120_s1] sm:$0xf] %v3136_v50  ;;  %3139 = vst [vmem:[%s3120_s1 + $0x8] sm:$0xf] %v3138_v29  ;;  %v3146_v23 = vld [vmem:[%s4903_s13 + $0x14] sm:$0xf] }
0x12b7   : > { %v3148_v57 = vld [vmem:[%s4903_s13 + $0x18] sm:$0xf]  ;;  %v3150_v31 = vld [vmem:[%s4903_s13 + $0x1c] sm:$0xf]  ;;  %3147 = vst [vmem:[%s3120_s1 + $0x28] sm:$0xf] %v3146_v23 }
0x12b8   : > { %3149 = vst [vmem:[%s3120_s1 + $0x30] sm:$0xf] %v3148_v57  ;;  %3151 = vst [vmem:[%s3120_s1 + $0x38] sm:$0xf] %v3150_v31 }
0x12b9 PF: > { %s25_s26 = sadd.s32 1, %s4460_s26   ;;  %s5957_s24 = sld [smem:[#allocation17_spill]] }
0x12ba   : > { %p22_p7 = scmp.ge.s32.totalorder %s25_s26, 4   ;;  %s5958_s9 = sld [smem:[#allocation16_spill]] }
0x12bb   : > { %s5959_s21 = smov %s4444_s22  ;;  %s5960_s22 = smov %s4448_s23 }
0x12bc   :  { %24 = sbr.rel (!%p22_p7) target bundleno = 11 (0xb), region = 224 }
0x12bf   : > { %s5961_s23 = smov %s5957_s24  ;;  %s5962_s24 = smov %s4456_s25 }
0x12c0   : > { %s5963_s25 = smov %s5958_s9 }
0x12c3   :  { %3200 = vsyncpa [#allocation6], 1 }
0x12c4   :  { %3202 = vsyncpa [#allocation6 + $0x1], 1 }
0x12c5   :  { %3203 = vsyncpa [#allocation8], 1 }
0x12c6   :  { %3205 = vsyncpa [#allocation8 + $0x1], 1 }
0x12c7   :  { %3206 = vsyncpa [#allocation11], 1 }
0x12c8   :  { %3208 = vsyncpa [#allocation11 + $0x1], 1 }

// kernel: _forward_full.4
= control target key start
LH: loop header
LB: loop body
LE: loop exit
PB: predicated region body
PF: predicated region fallthrough
CT: control target
= control target key end

     0   :  { %s4614_s21 = smov 0   ;;  %s4616_s22 = smov 0   ;;  %s5817_s0 = inlined_call_operand.vmem [shape: bf16[64,256], index: 0, kind: input, shape index: {}]   ;;  %s5818_s1 = inlined_call_operand.vmem [shape: bf16[2,256,384], index: 1, kind: input, shape index: {}]   ;;  %s5819_s2 = inlined_call_operand.vmem [shape: f32[2,1,384], index: 2, kind: input, shape index: {}]   ;;  %s5820_s3 = inlined_call_operand.vmem [shape: bf16[2,128,384], index: 3, kind: input, shape index: {}]   ;;  %s5821_s4 = inlined_call_operand.vmem [shape: f32[2,1,128], index: 4, kind: input, shape index: {}]   ;;  %s5822_s5 = inlined_call_operand.vmem [shape: f32[64,1], index: 5, kind: input, shape index: {}]   ;;  %s5823_s6 = inlined_call_operand.vmem [shape: bf16[64,256], index: 6, kind: output, shape index: {}]  }
   0x1   :  { %s4618_s23 = smov 0   ;;  %s4620_s24 = smov 0  }
   0x2   :  { %s4622_s25 = smov 0  }
   0x3 LB: > { %s3533_s26 = sadd.s32 4294967295, %s4570_s25   ;;  %s28_s27 = sadd.s32 1, %s4566_s24  ;;  %s4570_s25 = sphi %s4622_s25, %s16_s25   ;;  %s4566_s24 = sphi %s4620_s24, %s5891_s24   ;;  %s4562_s23 = sphi %s4618_s23, %s5890_s23   ;;  %s4558_s22 = sphi %s4616_s22, %s5889_s22   ;;  %s4554_s21 = sphi %s4614_s21, %s5888_s21  }
   0x4   : > { %p30_p0 = scmp.ge.s32.totalorder %s28_s27, 2  ;;  %s217_s28 = sadd.s32 1, %s4558_s22 }
   0x5   : > { %p227_p1 = scmp.ne.s32.totalorder %s4558_s22, %s4554_s21  ;;  %p228_p2 = scmp.eq.s32.totalorder %s3533_s26, 1 }
   0x6   : > { %s5893_s27 = smov (%p30_p0, %s28_s27), 0  ;;  %p3539_p4 = scmp.ge.s32.totalorder %s4570_s25, 1 }
   0x7   : > { %p4643_p3 = por %p228_p2, %p227_p1  ;;  %s213_s30 = ssub.s32 %s4566_s24, %s5893_s27 }
   0x8   : > { %p316_p5 = scmp.lt.s32.totalorder %s4570_s25, 3  ;;  %p215_p6 = scmp.eq.s32.totalorder %s213_s30, 0 }
   0xa   : > { %p317_p7 = pnand %p3539_p4, %p316_p5 }
   0xb   : > { %s4652_s7 = scalar_select %p215_p6, %s4558_s22, %s217_s28  }
   0xc   : > { %320 = sbr.rel (%p317_p7) target bundleno = 4720 (0x1270), region = 44 }
  0x13   : > { %s373_s8 = sand.u32 1, %s4554_s21   ;;  %p391_p8 = scmp.lt.s32.totalorder %s4562_s23, 1  ;;  %v4572_v0 = vmov 0.0   ;;  %v4355_v1 = vld [vmem:[%s5817_s0 + $0x4] ss:$8 sps:$4 sm:$0xff]  }
  0x14   : > { %s4655_s9 = sshll.u32 %s373_s8, 5  ;;  %432 = vst [vmem:[#allocation2] sm:$0xff] %v4572_v0  ;;  %923 = vmatprep.mubr.bf16.mxu1 %v4355_v1  ;;  %850 = vmatprep.mubr.bf16.mxu0 %v4355_v1  ;;  %p3599_p9 = scmp.ne.s32.totalorder %s4562_s23, 0 }
  0x15   : > { %s4661_s12 = scalar_select %p391_p8, %s4562_s23, 1 }
  0x16   : > { %vm4575_vm0 = vmmov (!%p3599_p9), 0  }
  0x17   : > { %s4242_s13 = smul.u32 384, %s4661_s12  ;;  %s407_s16 = scalar_lea.vmem %s5821_s4, %s4661_s12 }
  0x18   : > { %s4244_s17 = smul.u32 192, %s4661_s12  ;;  %v4669_v2 = vld [vmem:[%s407_s16] sm:$0x1] }
  0x19   : > { %5852 = vst [vmem:[#allocation6_spill] sm:$0xff] %v4669_v2  ;;  %s4674_s20 = scalar_lea.vmem %s5818_s1, %s4242_s13  ;;  %s4243_s30 = smul.u32 3, %s4661_s12 }
  0x1a   : > { %s4679_s28 = scalar_lea.vmem %s5820_s3, %s4244_s17  ;;  %v4292_v3 = vld [vmem:[%s4674_s20 + $0x4] ss:$12 sps:$4 sm:$0xff]   ;;  %v4294_v36 = vld [vmem:[%s4674_s20] ss:$12 sps:$4 sm:$0xff]   ;;  %v4295_v37 = vld [vmem:[%s4674_s20 + $0x1c] ss:$12 sps:$4 sm:$0xff]  }
  0x1b   : > { %v4683_v4 = vld [vmem:[%s4679_s28] sm:$0xff]  ;;  %v4686_v5 = vld [vmem:[%s4679_s28 + $0x8] sm:$0xf]  ;;  %v4689_v6 = vld [vmem:[%s4679_s28 + $0xc] sm:$0xff]  ;;  %818 = vmatprep.subr.bf16.mxu0 %v4292_v3  ;;  %s399_s10 = scalar_lea.vmem %s5819_s2, %s4243_s30  ;;  %s4854_s12 = scalar_lea.vmem [#allocation5], %s4655_s9 }
  0x1c   : > { %v4692_v7 = vld [vmem:[%s4679_s28 + $0x14] sm:$0xf]  ;;  %v4695_v8 = vld [vmem:[%s4679_s28 + $0x18] sm:$0xff]  ;;  %v4698_v9 = vld [vmem:[%s4679_s28 + $0x20] sm:$0xf]  ;;  %819 = vmatpush1.bf16.msra.mxu0 %v4294_v36 }
  0x1d   : > { %v4701_v10 = vld [vmem:[%s4679_s28 + $0x24] sm:$0xff]  ;;  %v4704_v11 = vld [vmem:[%s4679_s28 + $0x2c] sm:$0xf]  ;;  %v4707_v12 = vld [vmem:[%s4679_s28 + $0x30] sm:$0xff]  ;;  %820 = vmatprep.subr.bf16.mxu0 %v4295_v37 }
  0x1e   : > { %v4710_v13 = vld [vmem:[%s4679_s28 + $0x38] sm:$0xf]  ;;  %v4713_v14 = vld [vmem:[%s4679_s28 + $0x3c] sm:$0xff]  ;;  %v4716_v15 = vld [vmem:[%s4679_s28 + $0x44] sm:$0xf] }
  0x1f   : > { %v4719_v16 = vld [vmem:[%s4679_s28 + $0x48] sm:$0xff]  ;;  %v4722_v17 = vld [vmem:[%s4679_s28 + $0x50] sm:$0xf]  ;;  %v4725_v18 = vld [vmem:[%s4679_s28 + $0x54] sm:$0xff] }
  0x20   : > { %5853 = vst [vmem:[#allocation7_spill] sm:$0xff] %v4722_v17  ;;  %v4728_v19 = vld [vmem:[%s4679_s28 + $0x5c] sm:$0xf]  ;;  %v4731_v20 = vld [vmem:[%s4679_s28 + $0x60] sm:$0xff]  ;;  %v4734_v21 = vld [vmem:[%s4679_s28 + $0x68] sm:$0xf] }
  0x21   : > { %5854 = vst [vmem:[#allocation8_spill] sm:$0xff] %v4734_v21  ;;  %v4737_v22 = vld [vmem:[%s4679_s28 + $0x6c] sm:$0xff]  ;;  %v4740_v23 = vld [vmem:[%s4679_s28 + $0x74] sm:$0xf]  ;;  %v4743_v24 = vld [vmem:[%s4679_s28 + $0x78] sm:$0xff] }
  0x22   : > { %5855 = vst [vmem:[#allocation9_spill] sm:$0xff] %v4740_v23  ;;  %5856 = vst [vmem:[#allocation10_spill] sm:$0xff] %v4743_v24  ;;  %v4746_v25 = vld [vmem:[%s4679_s28 + $0x80] sm:$0xf]  ;;  %v4749_v26 = vld [vmem:[%s4679_s28 + $0x84] sm:$0xff] }
  0x23   : > { %5857 = vst [vmem:[#allocation11_spill] sm:$0xff] %v4746_v25  ;;  %5858 = vst [vmem:[#allocation12_spill] sm:$0xff] %v4749_v26  ;;  %v4752_v27 = vld [vmem:[%s4679_s28 + $0x8c] sm:$0xf]  ;;  %v4755_v28 = vld [vmem:[%s4679_s28 + $0x90] sm:$0xff] }
  0x24   : > { %5859 = vst [vmem:[#allocation13_spill] sm:$0xff] %v4752_v27  ;;  %5860 = vst [vmem:[#allocation14_spill] sm:$0xff] %v4755_v28  ;;  %v4758_v29 = vld [vmem:[%s4679_s28 + $0x98] sm:$0xf]  ;;  %v4761_v30 = vld [vmem:[%s4679_s28 + $0x9c] sm:$0xff] }
  0x25   : > { %5861 = vst [vmem:[#allocation15_spill] sm:$0xff] %v4758_v29  ;;  %5862 = vst [vmem:[#allocation16_spill] sm:$0xff] %v4761_v30  ;;  %v4764_v31 = vld [vmem:[%s4679_s28 + $0xa4] sm:$0xf]  ;;  %v4767_v32 = vld [vmem:[%s4679_s28 + $0xa8] sm:$0xff] }
  0x26   : > { %5863 = vst [vmem:[#allocation17_spill] sm:$0xff] %v4764_v31  ;;  %5864 = vst [vmem:[#allocation18_spill] sm:$0xff] %v4767_v32  ;;  %v4770_v33 = vld [vmem:[%s4679_s28 + $0xb0] sm:$0xf]  ;;  %v4773_v34 = vld [vmem:[%s4679_s28 + $0xb4] sm:$0xff] }
  0x27   : > { %5865 = vst [vmem:[#allocation19_spill] sm:$0xff] %v4770_v33  ;;  %5866 = vst [vmem:[#allocation20_spill] sm:$0xff] %v4773_v34  ;;  %v4776_v35 = vld [vmem:[%s4679_s28 + $0xbc] sm:$0xf]  ;;  %v4297_v38 = vld [vmem:[%s4674_s20 + $0x18] ss:$12 sps:$4 sm:$0xff]  }
  0x28   : > { %5867 = vst [vmem:[#allocation21_spill] sm:$0xff] %v4776_v35  ;;  %v4298_v39 = vld [vmem:[%s4674_s20 + $0x34] ss:$12 sps:$4 sm:$0xff]   ;;  %821 = vmatpush1.bf16.msra.mxu0 %v4297_v38  ;;  %v4300_v40 = vld [vmem:[%s4674_s20 + $0x30] ss:$12 sps:$4 sm:$0xff]  }
  0x29   : > { %822 = vmatprep.subr.bf16.mxu0 %v4298_v39  ;;  %v4301_v41 = vld [vmem:[%s4674_s20 + $0x4c] ss:$12 sps:$4 sm:$0xff]   ;;  %v4303_v42 = vld [vmem:[%s4674_s20 + $0x48] ss:$12 sps:$4 sm:$0xff]   ;;  %v4304_v44 = vld [vmem:[%s4674_s20 + $0x64] ss:$12 sps:$4 sm:$0xff]  }
  0x2a   : > { %v4313_v43 = vld [vmem:[%s4674_s20 + $0xc8] ss:$12 sps:$4 sm:$0xff]   ;;  %v4318_v46 = vld [vmem:[%s4674_s20 + $0xe0] ss:$12 sps:$4 sm:$0xff]   ;;  %v4323_v50 = vld [vmem:[%s4674_s20 + $0xf8] ss:$12 sps:$4 sm:$0xff]  }
  0x2b   : > { %3738 = vmatprep.subr.bf16.mxu1 %v4313_v43  ;;  %v4316_v45 = vld [vmem:[%s4674_s20 + $0x8] ss:$12 sps:$4 sm:$0xff]   ;;  %v4306_v47 = vld [vmem:[%s4674_s20 + $0x60] ss:$12 sps:$4 sm:$0xff]   ;;  %v4309_v51 = vld [vmem:[%s4674_s20 + $0x78] ss:$12 sps:$4 sm:$0xff]  }
  0x2c   : > { %823 = vmatpush1.bf16.msra.mxu0 %v4300_v40  ;;  %3739 = vmatpush3.bf16.msra.mxu1 %v4316_v45  ;;  %v4307_v48 = vld [vmem:[%s4674_s20 + $0x7c] ss:$12 sps:$4 sm:$0xff]   ;;  %v4321_v49 = vld [vmem:[%s4674_s20 + $0x20] ss:$12 sps:$4 sm:$0xff]   ;;  %v4326_v53 = vld [vmem:[%s4674_s20 + $0x38] ss:$12 sps:$4 sm:$0xff]  }
  0x2d   : > { %824 = vmatprep.subr.bf16.mxu0 %v4301_v41  ;;  %3740 = vmatprep.subr.bf16.mxu1 %v4318_v46  ;;  %v4310_v52 = vld [vmem:[%s4674_s20 + $0x94] ss:$12 sps:$4 sm:$0xff]   ;;  %v4328_v54 = vld [vmem:[%s4674_s20 + $0x110] ss:$12 sps:$4 sm:$0xff]   ;;  %v4314_v57 = vld [vmem:[%s4674_s20 + $0xac] ss:$12 sps:$4 sm:$0xff]  }
  0x2e   : > { %v4312_v55 = vld [vmem:[%s4674_s20 + $0x90] ss:$12 sps:$4 sm:$0xff]   ;;  %v4333_v58 = vld [vmem:[%s4674_s20 + $0x128] ss:$12 sps:$4 sm:$0xff]   ;;  %v4338_v61 = vld [vmem:[%s4674_s20 + $0x140] ss:$12 sps:$4 sm:$0xff]  }
  0x2f   : > { %v4331_v56 = vld [vmem:[%s4674_s20 + $0x50] ss:$12 sps:$4 sm:$0xff]   ;;  %v4317_v59 = vld [vmem:[%s4674_s20 + $0xa8] ss:$12 sps:$4 sm:$0xff]   ;;  %v4322_v63 = vld [vmem:[%s4674_s20 + $0xc0] ss:$12 sps:$4 sm:$0xff]  }
  0x30   : > { %825 = vmatpush1.bf16.msra.mxu0 %v4303_v42  ;;  %3741 = vmatpush3.bf16.msra.mxu1 %v4321_v49  ;;  %v4336_v60 = vld [vmem:[%s4674_s20 + $0x68] ss:$12 sps:$4 sm:$0xff]   ;;  %v4319_v62 = vld [vmem:[%s4674_s20 + $0xc4] ss:$12 sps:$4 sm:$0xff]   ;;  %v4341_v0 = vld [vmem:[%s4674_s20 + $0x80] ss:$12 sps:$4 sm:$0xff]  }
  0x31   : > { %826 = vmatprep.subr.bf16.mxu0 %v4304_v44  ;;  %3742 = vmatprep.subr.bf16.mxu1 %v4323_v50  ;;  %v4343_v1 = vld [vmem:[%s4674_s20 + $0x158] ss:$12 sps:$4 sm:$0xff]   ;;  %v4324_v3 = vld [vmem:[%s4674_s20 + $0xdc] ss:$12 sps:$4 sm:$0xff]   ;;  %v4329_v39 = vld [vmem:[%s4674_s20 + $0xf4] ss:$12 sps:$4 sm:$0xff]  }
  0x32   : > { %v4327_v36 = vld [vmem:[%s4674_s20 + $0xd8] ss:$12 sps:$4 sm:$0xff]   ;;  %v4348_v38 = vld [vmem:[%s4674_s20 + $0x170] ss:$12 sps:$4 sm:$0xff]   ;;  %v4353_v43 = vld [vmem:[%s5817_s0] ss:$8 sps:$4 sm:$0xff]  }
  0x33   : > { %v4346_v37 = vld [vmem:[%s4674_s20 + $0x98] ss:$12 sps:$4 sm:$0xff]   ;;  %v4351_v40 = vld [vmem:[%s4674_s20 + $0xb0] ss:$12 sps:$4 sm:$0xff]   ;;  %v4337_v45 = vld [vmem:[%s4674_s20 + $0x108] ss:$12 sps:$4 sm:$0xff]  }
  0x34   : > { %827 = vmatpush1.bf16.msra.mxu0 %v4306_v47  ;;  %3743 = vmatpush3.bf16.msra.mxu1 %v4326_v53  ;;  %v4332_v41 = vld [vmem:[%s4674_s20 + $0xf0] ss:$12 sps:$4 sm:$0xff]   ;;  %v4334_v42 = vld [vmem:[%s4674_s20 + $0x10c] ss:$12 sps:$4 sm:$0xff]  }
  0x35   : > { %828 = vmatprep.subr.bf16.mxu0 %v4307_v48  ;;  %3744 = vmatprep.subr.bf16.mxu1 %v4328_v54  ;;  %v4359_v44 = vld [vmem:[%s5817_s0 + $0x14] ss:$8 sps:$4 sm:$0xff]   ;;  %v4339_v46 = vld [vmem:[%s4674_s20 + $0x124] ss:$12 sps:$4 sm:$0xff]   ;;  %v4342_v47 = vld [vmem:[%s4674_s20 + $0x120] ss:$12 sps:$4 sm:$0xff]  }
  0x36   : > { %v4344_v48 = vld [vmem:[%s4674_s20 + $0x13c] ss:$12 sps:$4 sm:$0xff]   ;;  %v4361_v49 = vld [vmem:[%s5817_s0 + $0x10] ss:$8 sps:$4 sm:$0xff]   ;;  %v4362_v50 = vld [vmem:[%s5817_s0 + $0x24] ss:$8 sps:$4 sm:$0xff]  }
  0x37   : > { %v4352_v53 = vld [vmem:[%s4674_s20 + $0x150] ss:$12 sps:$4 sm:$0xff]   ;;  %v4356_v54 = vld [vmem:[%s4674_s20 + $0x16c] ss:$12 sps:$4 sm:$0xff]  }
  0x38   : > { %829 = vmatpush1.bf16.msra.mxu0 %v4309_v51  ;;  %3745 = vmatpush3.bf16.msra.mxu1 %v4331_v56  ;;  %v4347_v51 = vld [vmem:[%s4674_s20 + $0x138] ss:$12 sps:$4 sm:$0xff]   ;;  %v4365_v56 = vld [vmem:[%s5817_s0 + $0x34] ss:$8 sps:$4 sm:$0xff]  }
  0x39   : > { %830 = vmatprep.subr.bf16.mxu0 %v4310_v52  ;;  %3746 = vmatprep.subr.bf16.mxu1 %v4333_v58  ;;  %v4349_v52 = vld [vmem:[%s4674_s20 + $0x154] ss:$12 sps:$4 sm:$0xff]   ;;  %v4367_v58 = vld [vmem:[%s5817_s0 + $0x30] ss:$8 sps:$4 sm:$0xff]  }
  0x3c   : > { %831 = vmatpush1.bf16.msra.mxu0 %v4312_v55  ;;  %3747 = vmatpush3.bf16.msra.mxu1 %v4336_v60  ;;  %v4364_v55 = vld [vmem:[%s5817_s0 + $0x20] ss:$8 sps:$4 sm:$0xff]  }
  0x3d   : > { %832 = vmatprep.subr.bf16.mxu0 %v4314_v57  ;;  %3748 = vmatprep.subr.bf16.mxu1 %v4338_v61  ;;  %v4358_v57 = vld [vmem:[%s4674_s20 + $0x168] ss:$12 sps:$4 sm:$0xff]  }
  0x40   : > { %833 = vmatpush1.bf16.msra.mxu0 %v4317_v59  ;;  %3749 = vmatpush3.bf16.msra.mxu1 %v4341_v0  ;;  %v507_v59 = vlaneseq }
  0x41   : > { %834 = vmatprep.subr.bf16.mxu0 %v4319_v62  ;;  %3750 = vmatprep.subr.bf16.mxu1 %v4343_v1  ;;  %v505_v62 = vld [vmem:[%s399_s10] sm:$0x7] }
  0x42   : > { %v508_v60 = vshrl.u32 %v507_v59, 7 }
  0x44   : > { %835 = vmatpush1.bf16.msra.mxu0 %v4322_v63  ;;  %3751 = vmatpush3.bf16.msra.mxu1 %v4346_v37  ;;  %v517_v61 = vsub.s32 2, %v508_v60 }
  0x45   : > { %836 = vmatprep.subr.bf16.mxu0 %v4324_v3  ;;  %3752 = vmatprep.subr.bf16.mxu1 %v4348_v38 }
  0x46   : > { %v518_v0 = vrot.slane %v505_v62, %v517_v61 }
  0x48   : > { %837 = vmatpush1.bf16.msra.mxu0 %v4327_v36  ;;  %3753 = vmatpush3.bf16.msra.mxu1 %v4351_v40 }
  0x49   : > { %838 = vmatprep.subr.bf16.mxu0 %v4329_v39 }
  0x4b   : > { %924 = vmatmul.mubr.bf16.vlgmr.msra.gmra.mrb[0].mxu1 %v4353_v43 }
  0x4c   : > { %839 = vmatpush1.bf16.msra.mxu0 %v4332_v41  ;;  %931 = vmatprep.mubr.bf16.mxu1 %v4359_v44 }
  0x4d   : > { %840 = vmatprep.subr.bf16.mxu0 %v4334_v42 }
  0x50   : > { %841 = vmatpush1.bf16.msra.mxu0 %v4337_v45 }
  0x51   : > { %842 = vmatprep.subr.bf16.mxu0 %v4339_v46 }
  0x53   : > { %932 = vmatmul.mubr.bf16.gmra.mrb[4].mxu1 %v4361_v49 }
  0x54   : > { %843 = vmatpush1.bf16.msra.mxu0 %v4342_v47  ;;  %939 = vmatprep.mubr.bf16.mxu1 %v4362_v50 }
  0x55   : > { %844 = vmatprep.subr.bf16.mxu0 %v4344_v48  ;;  %v4850_v48 = vsub.s32 0, %v508_v60 }
  0x57   : > { %5868 = vst [vmem:[#allocation22_spill] sm:$0xff] %v4850_v48 }
  0x58   : > { %845 = vmatpush1.bf16.msra.mxu0 %v4347_v51 }
  0x59   : > { %846 = vmatprep.subr.bf16.mxu0 %v4349_v52 }
  0x5b   : > { %940 = vmatmul.mubr.bf16.gmra.mrb[8].mxu1 %v4364_v55 }
  0x5c   : > { %847 = vmatpush1.bf16.msra.mxu0 %v4352_v53  ;;  %947 = vmatprep.mubr.bf16.mxu1 %v4365_v56  ;;  %v510_v53 = vrot.slane %v505_v62, %v4850_v48 }
  0x5d   : > { %848 = vmatprep.subr.bf16.mxu0 %v4356_v54 }
  0x60   : > { %849 = vmatpush1.bf16.msra.mxu0 %v4358_v57 }
  0x63   : > { %851 = vmatmul.mubr.bf16.vlgmr.msra.gmra.mrb[0].mxu0 %v4353_v43  ;;  %948 = vmatmul.mubr.bf16.gmra.mrb[12].mxu1 %v4367_v58 }
  0x64   : > { %860 = vmatprep.mubr.bf16.mxu0 %v4359_v44 }
  0x6b   : > { %861 = vmatmul.mubr.bf16.gmra.mrb[4].mxu0 %v4361_v49 }
  0x6c   : > { %870 = vmatprep.mubr.bf16.mxu0 %v4362_v50  ;;  %v513_v50 = vsub.s32 1, %v508_v60 }
  0x73   : > { %871 = vmatmul.mubr.bf16.gmra.mrb[8].mxu0 %v4364_v55 }
  0x74   : > { %880 = vmatprep.mubr.bf16.mxu0 %v4365_v56  ;;  %v514_v56 = vrot.slane %v505_v62, %v513_v50 }
  0x7b   : > { %881 = vmatmul.mubr.bf16.gmra.mrb[12].mxu0 %v4367_v58 }
 0x11e   : > { %v3754_v63 = vpop.f32.mrb[0].mxu1 }
 0x11f   : > { %v3755_v1 = vpop.f32.mrb[1].mxu1 }
 0x120   : > { %v3756_v3 = vadd.f32 %v3755_v1, %v3754_v63  ;;  %v3757_v36 = vpop.f32.mrb[2].mxu1 }
 0x121   : > { %v3758_v37 = vpop.f32.mrb[3].mxu1 }
 0x122   : > { %v926_v38 = vadd.f32 %v3756_v3, %v518_v0  ;;  %v3759_v39 = vadd.f32 %v3758_v37, %v3757_v36 }
 0x124   : > { %958 = vst [vmem:[#allocation3 + $0x10] sm:$0xff] %v926_v38  ;;  %v929_v40 = vadd.f32 %v3759_v39, %v518_v0 }
 0x126   : > { %961 = vst [vmem:[#allocation3 + $0x28] sm:$0xff] %v929_v40  ;;  %v3760_v41 = vpop.f32.mrb[4].mxu1 }
 0x127   : > { %v3761_v42 = vpop.f32.mrb[5].mxu1 }
 0x128   : > { %v3762_v43 = vadd.f32 %v3761_v42, %v3760_v41  ;;  %v3763_v44 = vpop.f32.mrb[6].mxu1 }
 0x129   : > { %v3764_v45 = vpop.f32.mrb[7].mxu1 }
 0x12a   : > { %v934_v46 = vadd.f32 %v3762_v43, %v518_v0  ;;  %v3765_v47 = vadd.f32 %v3764_v45, %v3763_v44 }
 0x12c   : > { %964 = vst [vmem:[#allocation3 + $0x40] sm:$0xff] %v934_v46  ;;  %v937_v49 = vadd.f32 %v3765_v47, %v518_v0 }
 0x12e   : > { %967 = vst [vmem:[#allocation3 + $0x58] sm:$0xff] %v937_v49  ;;  %v3766_v51 = vpop.f32.mrb[8].mxu1 }
 0x12f   : > { %v3767_v52 = vpop.f32.mrb[9].mxu1 }
 0x130   : > { %v3768_v54 = vadd.f32 %v3767_v52, %v3766_v51  ;;  %v3769_v55 = vpop.f32.mrb[10].mxu1 }
 0x131   : > { %v3770_v57 = vpop.f32.mrb[11].mxu1 }
 0x132   : > { %v942_v58 = vadd.f32 %v3768_v54, %v518_v0  ;;  %v3771_v59 = vadd.f32 %v3770_v57, %v3769_v55 }
 0x134   : > { %970 = vst [vmem:[#allocation3 + $0x70] sm:$0xff] %v942_v58  ;;  %v945_v3 = vadd.f32 %v3771_v59, %v518_v0 }
 0x136   : > { %v852_v61 = vpop.f32.mrb[0].mxu0  ;;  %973 = vst [vmem:[#allocation3 + $0x88] sm:$0xff] %v945_v3  ;;  %v3772_v39 = vpop.f32.mrb[12].mxu1 }
 0x137   : > { %v853_v63 = vadd.f32 %v852_v61, %v510_v53  ;;  %v854_v1 = vpop.f32.mrb[1].mxu0  ;;  %v3773_v41 = vpop.f32.mrb[13].mxu1 }
 0x138   : > { %v855_v36 = vadd.f32 %v854_v1, %v514_v56  ;;  %v856_v37 = vpop.f32.mrb[2].mxu0  ;;  %v3774_v62 = vadd.f32 %v3773_v41, %v3772_v39  ;;  %v3775_v42 = vpop.f32.mrb[14].mxu1 }
 0x139   : > { %956 = vst [vmem:[#allocation3] sm:$0xff] %v853_v63  ;;  %v857_v60 = vadd.f32 %v856_v37, %v510_v53  ;;  %v858_v38 = vpop.f32.mrb[3].mxu0  ;;  %v3776_v43 = vpop.f32.mrb[15].mxu1 }
 0x13a   : > { %957 = vst [vmem:[#allocation3 + $0x8] sm:$0xff] %v855_v36  ;;  %v859_v40 = vadd.f32 %v858_v38, %v514_v56  ;;  %v950_v44 = vadd.f32 %v3774_v62, %v518_v0  ;;  %v3777_v45 = vadd.f32 %v3776_v43, %v3775_v42  ;;  %v4859_v43 = vcombine.high (!%p3599_p9), %v4683_v4, %v4689_v6 }
 0x13b   : > { %959 = vst [vmem:[#allocation3 + $0x18] sm:$0xff] %v857_v60 }
 0x13c   : > { %960 = vst [vmem:[#allocation3 + $0x20] sm:$0xff] %v859_v40  ;;  %976 = vst [vmem:[#allocation3 + $0xa0] sm:$0xff] %v950_v44  ;;  %v953_v50 = vadd.f32 %v3777_v45, %v518_v0  ;;  %v4863_v44 = vcombine.low (!%p3599_p9), %v4683_v4, %v4689_v6  ;;  %1154 = vmatprep.subr.bf16.mxu0 (!%p3599_p9), %v4859_v43  ;;  %v4877_v45 = vcombine.low (!%p3599_p9), %v4686_v5, %v4692_v7 }
 0x13e   : > { %v862_v46 = vpop.f32.mrb[4].mxu0  ;;  %979 = vst [vmem:[#allocation3 + $0xb8] sm:$0xff] %v953_v50  ;;  %1155 = vmatpush1.bf16.msra.mxu0 (!%p3599_p9), %v4863_v44  ;;  %v5824_v50 = vmov (!%p3599_p9), 0  }
 0x13f   : > { %v863_v47 = vadd.f32 %v862_v46, %v510_v53  ;;  %v864_v49 = vpop.f32.mrb[5].mxu0  ;;  %v4882_v46 = vcombine.high (!%p3599_p9), %v4707_v12, %v4713_v14  ;;  %1186 = vmatprep.mubr.bf16.mxu0 (!%p3599_p9), %v5824_v50  ;;  %4368 = vset.pattern.permute.xlu0 (!%p3599_p9), %v5824_v50 }
 0x140   : > { %v865_v51 = vadd.f32 %v864_v49, %v514_v56  ;;  %v866_v52 = vpop.f32.mrb[6].mxu0  ;;  %v4888_v49 = vcombine.low (!%p3599_p9), %v4698_v9, %v4704_v11  ;;  %4369 = vset.pattern.permute.xlu1 (!%p3599_p9), %v5824_v50 }
 0x141   : > { %962 = vst [vmem:[#allocation3 + $0x30] sm:$0xff] %v863_v47  ;;  %v867_v54 = vadd.f32 %v866_v52, %v510_v53  ;;  %v868_v55 = vpop.f32.mrb[7].mxu0  ;;  %v5842_v47 = vmov (!%p3599_p9), 0.0   ;;  %v4898_v52 = vcombine.low (!%p3599_p9), %v4707_v12, %v4713_v14 }
 0x142   : > { %963 = vst [vmem:[#allocation3 + $0x38] sm:$0xff] %v865_v51  ;;  %v869_v57 = vadd.f32 %v868_v55, %v514_v56  ;;  %3922 = vmatprep.subr.bf16.mxu1 (!%p3599_p9), %v5842_v47  ;;  %v1023_v51 = vld [vmem:[%s5822_s5] sm:$0xff] (!%p3599_p9)  ;;  %3938 = vmatprep.mubr.msk.bf16.mxu1 (!%p3599_p9), %vm4575_vm0, %v5842_v47  ;;  %v4911_v55 = vcombine.low (!%p3599_p9), %v4710_v13, %v4716_v15 }
 0x143   : > { %965 = vst [vmem:[#allocation3 + $0x48] sm:$0xff] %v867_v54  ;;  %3923 = vmatpush3.bf16.msra.mxu1 (!%p3599_p9), %v4877_v45  ;;  %v4905_v54 = vcombine.high (!%p3599_p9), %v4719_v16, %v4725_v18  ;;  %1265 = vperm.xlu0 (!%p3599_p9), %4368, %v1023_v51   ;;  %v4999_v51 = vcombine.low (!%p3599_p9), %v4770_v33, %v4776_v35 }
 0x144   : > { %966 = vst [vmem:[#allocation3 + $0x50] sm:$0xff] %v869_v57  ;;  %3924 = vmatprep.subr.bf16.mxu1 (!%p3599_p9), %v5842_v47  ;;  %v3626_v57 = vld [vmem:[%s5822_s5 + $0x8] sm:$0xff] (!%p3599_p9) }
 0x146   : > { %v872_v58 = vpop.f32.mrb[8].mxu0 }
 0x147   : > { %v873_v59 = vadd.f32 %v872_v58, %v510_v53  ;;  %v874_v61 = vpop.f32.mrb[9].mxu0  ;;  %3925 = vmatpush3.bf16.msra.mxu1 (!%p3599_p9), %v4888_v49  ;;  %v4921_v58 = vcombine.low (!%p3599_p9), %v4719_v16, %v4725_v18  ;;  %1388 = vperm.xlu0 (!%p3599_p9), %4368, %v3626_v57  }
 0x148   : > { %v875_v63 = vadd.f32 %v874_v61, %v514_v56  ;;  %v876_v1 = vpop.f32.mrb[10].mxu0  ;;  %3926 = vmatprep.subr.bf16.mxu1 (!%p3599_p9), %v5842_v47  ;;  %v4931_v61 = vcombine.low (!%p3599_p9), %v4722_v17, %v4728_v19 }
 0x149   : > { %968 = vst [vmem:[#allocation3 + $0x60] sm:$0xff] %v873_v59  ;;  %v877_v3 = vadd.f32 %v876_v1, %v510_v53  ;;  %v878_v36 = vpop.f32.mrb[11].mxu0  ;;  %v4926_v59 = vcombine.high (!%p3599_p9), %v4731_v20, %v4737_v22  ;;  %v4940_v1 = vcombine.low (!%p3599_p9), %v4731_v20, %v4737_v22 }
 0x14a   : > { %969 = vst [vmem:[#allocation3 + $0x68] sm:$0xff] %v875_v63  ;;  %v879_v0 = vadd.f32 %v878_v36, %v514_v56  ;;  %v3635_v63 = vld [vmem:[%s5822_s5 + $0x20] sm:$0xff] (!%p3599_p9)  ;;  %v4950_v36 = vcombine.low (!%p3599_p9), %v4734_v21, %v4740_v23 }
 0x14b   : > { %971 = vst [vmem:[#allocation3 + $0x78] sm:$0xff] %v877_v3  ;;  %3927 = vmatpush3.bf16.msra.mxu1 (!%p3599_p9), %v4911_v55  ;;  %v4945_v3 = vcombine.high (!%p3599_p9), %v4743_v24, %v4749_v26  ;;  %1760 = vperm.xlu0 (!%p3599_p9), %4368, %v3635_v63   ;;  %v1020_v63 = vld [vmem:[#allocation3] sm:$0xff] (!%p3599_p9) }
 0x14c   : > { %972 = vst [vmem:[#allocation3 + $0x80] sm:$0xff] %v879_v0  ;;  %3928 = vmatprep.subr.bf16.mxu1 (!%p3599_p9), %v5842_v47  ;;  %v3641_v0 = vld [vmem:[%s5822_s5 + $0x30] sm:$0xff] (!%p3599_p9) }
 0x14e   : > { %v882_v37 = vpop.f32.mrb[12].mxu0  ;;  %1016 = sbr.rel (%p3599_p9) target bundleno = 2518 (0x9d6), region = 52 }
 0x14f   : > { %v883_v60 = vadd.f32 %v882_v37, %v510_v53  ;;  %v884_v38 = vpop.f32.mrb[13].mxu0  ;;  %3929 = vmatpush3.bf16.msra.mxu1 (!%p3599_p9), %v4931_v61  ;;  %v4959_v37 = vcombine.low (!%p3599_p9), %v4743_v24, %v4749_v26  ;;  %2008 = vperm.xlu0 (!%p3599_p9), %4368, %v3641_v0  }
 0x150   : > { %v885_v39 = vadd.f32 %v884_v38, %v514_v56  ;;  %v886_v40 = vpop.f32.mrb[14].mxu0  ;;  %3930 = vmatprep.subr.bf16.mxu1 (!%p3599_p9), %v5842_v47  ;;  %v4969_v38 = vcombine.low (!%p3599_p9), %v4746_v25, %v4752_v27  ;;  %v1021_v27 = vld [vmem:[#allocation3 + $0x8] sm:$0xff] (!%p3599_p9) }
 0x151   : > { %974 = vst [vmem:[#allocation3 + $0x90] sm:$0xff] %v883_v60  ;;  %v887_v41 = vadd.f32 %v886_v40, %v510_v53  ;;  %v888_v62 = vpop.f32.mrb[15].mxu0  ;;  %v4867_v53 = vcombine.high (!%p3599_p9), %v4695_v8, %v4701_v10  ;;  %v4964_v60 = vcombine.high (!%p3599_p9), %v4755_v28, %v4761_v30  ;;  %v4980_v40 = vcombine.high (!%p3599_p9), %v4767_v32, %v4773_v34 }
 0x152   : > { %975 = vst [vmem:[#allocation3 + $0x98] sm:$0xff] %v885_v39  ;;  %v889_v42 = vadd.f32 %v888_v62, %v514_v56  ;;  %v4873_v56 = vcombine.low (!%p3599_p9), %v4695_v8, %v4701_v10  ;;  %v4975_v39 = vcombine.low (!%p3599_p9), %v4755_v28, %v4761_v30  ;;  %v4991_v62 = vcombine.low (!%p3599_p9), %v4767_v32, %v4773_v34 }
 0x153   : > { %977 = vst [vmem:[#allocation3 + $0xa8] sm:$0xff] %v887_v41  ;;  %1156 = vmatprep.subr.bf16.mxu0 (!%p3599_p9), %v4867_v53  ;;  %3931 = vmatpush3.bf16.msra.mxu1 (!%p3599_p9), %v4950_v36  ;;  %v4985_v41 = vcombine.low (!%p3599_p9), %v4758_v29, %v4764_v31 }
 0x154   : > { %978 = vst [vmem:[#allocation3 + $0xb0] sm:$0xff] %v889_v42  ;;  %1157 = vmatpush1.bf16.msra.mxu0 (!%p3599_p9), %v4873_v56  ;;  %3932 = vmatprep.subr.bf16.mxu1 (!%p3599_p9), %v5842_v47  ;;  %v4993_v42 = vld [vmem:[#allocation2] sm:$0xff] (!%p3599_p9) }
 0x155   : > { %1158 = vmatprep.subr.bf16.mxu0 %v4882_v46  ;;  %v1025_v57 = vpack.c.bf16 %v4993_v42, %v4993_v42 }
 0x157   : > { %3933 = vmatpush3.bf16.msra.mxu1 %v4969_v38 }
 0x158   : > { %1159 = vmatpush1.bf16.msra.mxu0 %v4898_v52  ;;  %3934 = vmatprep.subr.bf16.mxu1 %v5842_v47 }
 0x159   : > { %1160 = vmatprep.subr.bf16.mxu0 %v4905_v54 }
 0x15b   : > { %3935 = vmatpush3.bf16.msra.mxu1 %v4985_v41 }
 0x15c   : > { %1161 = vmatpush1.bf16.msra.mxu0 %v4921_v58  ;;  %3936 = vmatprep.subr.bf16.mxu1 %v5842_v47 }
 0x15d   : > { %1162 = vmatprep.subr.bf16.mxu0 %v4926_v59 }
 0x15f   : > { %3937 = vmatpush3.bf16.msra.mxu1 %v4999_v51 }
 0x160   : > { %1163 = vmatpush1.bf16.msra.mxu0 %v4940_v1  ;;  %3942 = vmatprep.subr.bf16.mxu1 %v5842_v47 }
 0x161   : > { %1164 = vmatprep.subr.bf16.mxu0 %v4945_v3 }
 0x162   : > { %3939 = vmatmul.mubr.bf16.vlgmr.msra.gmra.mrb[0].mxu1 %v1025_v57 }
 0x163   : > { %3943 = vmatpush3.bf16.msra.mxu1 %v4877_v45  ;;  %3958 = vmatprep.mubr.msk.bf16.mxu1 %vm4575_vm0, %v5842_v47 }
 0x164   : > { %1165 = vmatpush1.bf16.msra.mxu0 %v4959_v37  ;;  %3944 = vmatprep.subr.bf16.mxu1 %v5842_v47 }
 0x165   : > { %1166 = vmatprep.subr.bf16.mxu0 %v4964_v60 }
 0x167   : > { %3945 = vmatpush3.bf16.msra.mxu1 %v4888_v49 }
 0x168   : > { %1167 = vmatpush1.bf16.msra.mxu0 %v4975_v39  ;;  %3946 = vmatprep.subr.bf16.mxu1 %v5842_v47 }
 0x169   : > { %1168 = vmatprep.subr.bf16.mxu0 %v4980_v40 }
 0x16b   : > { %3947 = vmatpush3.bf16.msra.mxu1 %v4911_v55 }
 0x16c   : > { %1169 = vmatpush1.bf16.msra.mxu0 %v4991_v62  ;;  %3948 = vmatprep.subr.bf16.mxu1 %v5842_v47 }
 0x16d   : > { %1283 = vmatprep.subr.bf16.mxu0 %v4859_v43 }
 0x16f   : > { %1187 = vmatmul.mubr.bf16.vlgmr.msra.gmra.mrb[0].mxu0 %v1025_v57  ;;  %3949 = vmatpush3.bf16.msra.mxu1 %v4931_v61 }
 0x170   : > { %1284 = vmatpush1.bf16.msra.mxu0 %v4863_v44  ;;  %1315 = vmatprep.mubr.bf16.mxu0 %v5824_v50 }
 0x171   : > { %1285 = vmatprep.subr.bf16.mxu0 %v4867_v53  ;;  %3950 = vmatprep.subr.bf16.mxu1 %v5842_v47 }
 0x173   : > { %3951 = vmatpush3.bf16.msra.mxu1 %v4950_v36 }
 0x174   : > { %1286 = vmatpush1.bf16.msra.mxu0 %v4873_v56  ;;  %3952 = vmatprep.subr.bf16.mxu1 %v5842_v47 }
 0x175   : > { %1287 = vmatprep.subr.bf16.mxu0 %v4882_v46 }
 0x177   : > { %3953 = vmatpush3.bf16.msra.mxu1 %v4969_v38 }
 0x178   : > { %1288 = vmatpush1.bf16.msra.mxu0 %v4898_v52  ;;  %3954 = vmatprep.subr.bf16.mxu1 %v5842_v47 }
 0x179   : > { %1289 = vmatprep.subr.bf16.mxu0 %v4905_v54 }
 0x17b   : > { %3955 = vmatpush3.bf16.msra.mxu1 %v4985_v41 }
 0x17c   : > { %1290 = vmatpush1.bf16.msra.mxu0 %v4921_v58  ;;  %3956 = vmatprep.subr.bf16.mxu1 %v5842_v47 }
 0x17d   : > { %1291 = vmatprep.subr.bf16.mxu0 %v4926_v59 }
 0x17f   : > { %3957 = vmatpush3.bf16.msra.mxu1 %v4999_v51 }
 0x180   : > { %1292 = vmatpush1.bf16.msra.mxu0 %v4940_v1  ;;  %3962 = vmatprep.subr.bf16.mxu1 %v5842_v47  ;;  %v5045_v47 = vrot.slane %v4669_v2, %v4850_v48 }
 0x181   : > { %1293 = vmatprep.subr.bf16.mxu0 %v4945_v3 }
 0x184   : > { %1294 = vmatpush1.bf16.msra.mxu0 %v4959_v37 }
 0x185   : > { %1295 = vmatprep.subr.bf16.mxu0 %v4964_v60 }
 0x188   : > { %1296 = vmatpush1.bf16.msra.mxu0 %v4975_v39 }
 0x189   : > { %1297 = vmatprep.subr.bf16.mxu0 %v4980_v40 }
 0x18c   : > { %1298 = vmatpush1.bf16.msra.mxu0 %v4991_v62 }
 0x18d   : > { %1407 = vmatprep.subr.bf16.mxu0 %v4859_v43 }
 0x235   : > { %v1229_v35 = vpop.f32.mrb[0].mxu1 }
 0x236   : > { %v3940_v32 = vpop.f32.mrb[1].mxu1 }
 0x237   : > { %v1232_v34 = vpop.f32.mrb[2].mxu1 }
 0x238   : > { %v3941_v25 = vpop.f32.mrb[3].mxu1 }
 0x242   : > { %v1188_v0 = vpop.f32.mrb[0].mxu0 }
 0x243   : > { %v1235_v57 = vadd.f32 %v1188_v0, %v1020_v63  ;;  %v1190_v50 = vpop.f32.mrb[1].mxu0 }
 0x244   : > { %v1192_v33 = vpop.f32.mrb[2].mxu0  ;;  %v1242_v28 = vadd.f32 %v1190_v50, %v1021_v27 }
 0x245   : > { %v3624_v29 = vmul.f32 -1.442695, %v1235_v57  ;;  %v1193_v31 = vpop.f32.mrb[3].mxu0  ;;  %v1255_v33 = vadd.f32 %v5045_v47, %v1229_v35 }
 0x246   : > { %v3625_v30 = vmul.f32 -1.442695, %v1242_v28  ;;  %v1022_v31 = vld [vmem:[#allocation3 + $0x10] sm:$0xff] }
 0x247   : > { %4370 = vpow2.f32 %v3624_v29 }
 0x248   : > { %4372 = vpow2.f32 %v3625_v30  ;;  %v1266_v30 = vpop.permute.xlu0 %1265 }
 0x251   : > { %v4371_v21 = vpop.eup %4370 }
 0x252   : > { %v1239_v23 = vadd.f32 1.0, %v4371_v21  ;;  %v4373_v63 = vpop.eup %4372 }
 0x253   : > { %v1246_v34 = vadd.f32 1.0, %v4373_v63  ;;  %v5869_v63 = vmov 0.0  }
 0x254   : > { %4374 = vrcp.f32 %v1239_v23 }
 0x25e   : > { %v4375_v0 = vpop.eup %4374 }
 0x25f   : > { %v1256_v32 = vmul.f32 %v4375_v0, %v1255_v33  ;;  %v5870_v0 = vmov 0  }
 0x261   : > { %v1257_v29 = vadd.f32 %v1256_v32, %v1022_v31  ;;  %v3638_v31 = vld [vmem:[%s5822_s5 + $0x28] sm:$0xff]  ;;  %v3644_v32 = vld [vmem:[%s5822_s5 + $0x38] sm:$0xff] }
 0x263   : > { %4376 = vtanh.f32 %v1257_v29 }
 0x264   : > { %4378 = vrcp.f32 %v1246_v34  ;;  %v1276_v34 = vld [vmem:[#allocation3 + $0x18] sm:$0xff] }
 0x26d   : > { %v4377_v25 = vpop.eup %4376 }
 0x26e   : > { %v1259_v27 = vsub.f32 %v4993_v42, %v4377_v25  ;;  %v4379_v21 = vpop.eup %4378 }
 0x270   : > { %v1260_v28 = vmul.f32 %v4379_v21, %v1259_v27 }
 0x272   : > { %v1261_v23 = vadd.f32 %v4377_v25, %v1260_v28 }
 0x274   : > { %v1262_v50 = vsub.f32 %v1261_v23, %v4993_v42  ;;  %v1271_v57 = vmul.f32 %v1266_v30, %v1261_v23 }
 0x276   : > { %v1268_v2 = vmul.f32 %v1266_v30, %v1262_v50  ;;  %1272 = vst [vmem:[#allocation4] sm:$0xff] %v1271_v57 }
 0x278   : > { %v5051_v35 = vadd.f32 %v1268_v2, %v4993_v42  ;;  %v3629_v2 = vld [vmem:[%s5822_s5 + $0x10] sm:$0xff]  ;;  %v3632_v42 = vld [vmem:[%s5822_s5 + $0x18] sm:$0xff] }
 0x279   : > { %1512 = vperm.xlu1 %4369, %v3629_v2   ;;  %v1277_v2 = vld [vmem:[#allocation3 + $0x20] sm:$0xff] }
 0x27a   : > { %v1282_v33 = vpack.c.bf16 %v5051_v35, %v5051_v35 }
 0x27c   : > { %1316 = vmatmul.mubr.bf16.vlgmr.msra.gmra.mrb[4].mxu0 %v1282_v33  ;;  %3959 = vmatmul.mubr.bf16.vlgmr.msra.gmra.mrb[4].mxu1 %v1282_v33 }
 0x27d   : > { %1408 = vmatpush1.bf16.msra.mxu0 %v4863_v44  ;;  %3963 = vmatpush3.bf16.msra.mxu1 %v4877_v45 }
 0x27e   : > { %1409 = vmatprep.subr.bf16.mxu0 %v4867_v53  ;;  %3964 = vmatprep.subr.bf16.mxu1 %v5869_v63 }
 0x27f   : > { %1439 = vmatprep.mubr.bf16.mxu0 %v5870_v0  ;;  %3978 = vmatprep.mubr.msk.bf16.mxu1 %vm4575_vm0, %v5869_v63 }
 0x280   : > { %1636 = vperm.xlu1 %4369, %v3632_v42  }
 0x281   : > { %1410 = vmatpush1.bf16.msra.mxu0 %v4873_v56  ;;  %3965 = vmatpush3.bf16.msra.mxu1 %v4888_v49 }
 0x282   : > { %1411 = vmatprep.subr.bf16.mxu0 %v4882_v46  ;;  %3966 = vmatprep.subr.bf16.mxu1 %v5869_v63 }
 0x284   : > { %1884 = vperm.xlu1 %4369, %v3638_v31  }
 0x285   : > { %1412 = vmatpush1.bf16.msra.mxu0 %v4898_v52  ;;  %3967 = vmatpush3.bf16.msra.mxu1 %v4911_v55 }
 0x286   : > { %1413 = vmatprep.subr.bf16.mxu0 %v4905_v54  ;;  %3968 = vmatprep.subr.bf16.mxu1 %v5869_v63 }
 0x288   : > { %2132 = vperm.xlu1 %4369, %v3644_v32  }
 0x289   : > { %1414 = vmatpush1.bf16.msra.mxu0 %v4921_v58  ;;  %3969 = vmatpush3.bf16.msra.mxu1 %v4931_v61 }
 0x28a   : > { %1415 = vmatprep.subr.bf16.mxu0 %v4926_v59  ;;  %3970 = vmatprep.subr.bf16.mxu1 %v5869_v63 }
 0x28d   : > { %1416 = vmatpush1.bf16.msra.mxu0 %v4940_v1  ;;  %3971 = vmatpush3.bf16.msra.mxu1 %v4950_v36 }
 0x28e   : > { %1417 = vmatprep.subr.bf16.mxu0 %v4945_v3  ;;  %3972 = vmatprep.subr.bf16.mxu1 %v5869_v63 }
 0x291   : > { %1418 = vmatpush1.bf16.msra.mxu0 %v4959_v37  ;;  %3973 = vmatpush3.bf16.msra.mxu1 %v4969_v38 }
 0x292   : > { %1419 = vmatprep.subr.bf16.mxu0 %v4964_v60  ;;  %3974 = vmatprep.subr.bf16.mxu1 %v5869_v63 }
 0x295   : > { %1420 = vmatpush1.bf16.msra.mxu0 %v4975_v39  ;;  %3975 = vmatpush3.bf16.msra.mxu1 %v4985_v41 }
 0x296   : > { %1421 = vmatprep.subr.bf16.mxu0 %v4980_v40  ;;  %3976 = vmatprep.subr.bf16.mxu1 %v5869_v63 }
 0x299   : > { %1422 = vmatpush1.bf16.msra.mxu0 %v4991_v62  ;;  %3977 = vmatpush3.bf16.msra.mxu1 %v4999_v51 }
 0x29a   : > { %1531 = vmatprep.subr.bf16.mxu0 %v4859_v43  ;;  %3982 = vmatprep.subr.bf16.mxu1 %v5869_v63 }
 0x34f   : > { %v1317_v29 = vpop.f32.mrb[4].mxu0  ;;  %v1358_v25 = vpop.f32.mrb[4].mxu1 }
 0x350   : > { %v1364_v27 = vadd.f32 %v1317_v29, %v1276_v34  ;;  %v1319_v21 = vpop.f32.mrb[5].mxu0  ;;  %v3960_v28 = vpop.f32.mrb[5].mxu1  ;;  %v1378_v26 = vadd.f32 %v1358_v25, %v5045_v47  ;;  %v1278_v34 = vld [vmem:[#allocation3 + $0x28] sm:$0xff] }
 0x351   : > { %v1321_v23 = vpop.f32.mrb[6].mxu0  ;;  %v1361_v30 = vpop.f32.mrb[6].mxu1  ;;  %v1371_v42 = vadd.f32 %v1319_v21, %v1277_v2 }
 0x352   : > { %v3627_v50 = vmul.f32 -1.442695, %v1364_v27  ;;  %v1322_v57 = vpop.f32.mrb[7].mxu0  ;;  %v3961_v33 = vpop.f32.mrb[7].mxu1 }
 0x353   : > { %v3628_v31 = vmul.f32 -1.442695, %v1371_v42  ;;  %v1389_v33 = vpop.permute.xlu0 %1388 }
 0x354   : > { %4380 = vpow2.f32 %v3627_v50 }
 0x355   : > { %4382 = vpow2.f32 %v3628_v31 }
 0x35e   : > { %v4381_v48 = vpop.eup %4380 }
 0x35f   : > { %v1368_v24 = vadd.f32 1.0, %v4381_v48  ;;  %v4383_v32 = vpop.eup %4382 }
 0x360   : > { %v1375_v23 = vadd.f32 1.0, %v4383_v32 }
 0x361   : > { %4384 = vrcp.f32 %v1368_v24 }
 0x36b   : > { %v4385_v17 = vpop.eup %4384 }
 0x36c   : > { %v1379_v29 = vmul.f32 %v4385_v17, %v1378_v26  ;;  %v1400_v26 = vld [vmem:[#allocation3 + $0x30] sm:$0xff] }
 0x36e   : > { %v1380_v28 = vadd.f32 %v1379_v29, %v1278_v34 }
 0x370   : > { %4386 = vtanh.f32 %v1380_v28 }
 0x371   : > { %4388 = vrcp.f32 %v1375_v23 }
 0x37a   : > { %v4387_v27 = vpop.eup %4386 }
 0x37b   : > { %v1382_v30 = vsub.f32 %v5051_v35, %v4387_v27  ;;  %v4389_v50 = vpop.eup %4388 }
 0x37d   : > { %v1383_v21 = vmul.f32 %v4389_v50, %v1382_v30  ;;  %v1401_v50 = vld [vmem:[#allocation3 + $0x38] sm:$0xff] }
 0x37f   : > { %v1384_v57 = vadd.f32 %v4387_v27, %v1383_v21 }
 0x381   : > { %v1385_v48 = vsub.f32 %v1384_v57, %v5051_v35  ;;  %v1394_v24 = vmul.f32 %v1389_v33, %v1384_v57 }
 0x383   : > { %v1391_v2 = vmul.f32 %v1389_v33, %v1385_v48  ;;  %1396 = vst [vmem:[#allocation4 + $0x8] sm:$0xff] %v1394_v24 }
 0x385   : > { %v5106_v25 = vadd.f32 %v1391_v2, %v5051_v35 }
 0x387   : > { %v1406_v17 = vpack.c.bf16 %v5106_v25, %v5106_v25 }
 0x389   : > { %1440 = vmatmul.mubr.bf16.vlgmr.msra.gmra.mrb[8].mxu0 %v1406_v17  ;;  %3979 = vmatmul.mubr.bf16.vlgmr.msra.gmra.mrb[8].mxu1 %v1406_v17 }
 0x38a   : > { %1532 = vmatpush1.bf16.msra.mxu0 %v4863_v44  ;;  %3983 = vmatpush3.bf16.msra.mxu1 %v4877_v45 }
 0x38b   : > { %1533 = vmatprep.subr.bf16.mxu0 %v4867_v53  ;;  %3984 = vmatprep.subr.bf16.mxu1 %v5869_v63 }
 0x38c   : > { %1563 = vmatprep.mubr.bf16.mxu0 %v5870_v0  ;;  %3998 = vmatprep.mubr.msk.bf16.mxu1 %vm4575_vm0, %v5869_v63 }
 0x38e   : > { %1534 = vmatpush1.bf16.msra.mxu0 %v4873_v56  ;;  %3985 = vmatpush3.bf16.msra.mxu1 %v4888_v49 }
 0x38f   : > { %1535 = vmatprep.subr.bf16.mxu0 %v4882_v46  ;;  %3986 = vmatprep.subr.bf16.mxu1 %v5869_v63 }
 0x392   : > { %1536 = vmatpush1.bf16.msra.mxu0 %v4898_v52  ;;  %3987 = vmatpush3.bf16.msra.mxu1 %v4911_v55 }
 0x393   : > { %1537 = vmatprep.subr.bf16.mxu0 %v4905_v54  ;;  %3988 = vmatprep.subr.bf16.mxu1 %v5869_v63 }
 0x396   : > { %1538 = vmatpush1.bf16.msra.mxu0 %v4921_v58  ;;  %3989 = vmatpush3.bf16.msra.mxu1 %v4931_v61 }
 0x397   : > { %1539 = vmatprep.subr.bf16.mxu0 %v4926_v59  ;;  %3990 = vmatprep.subr.bf16.mxu1 %v5869_v63 }
 0x39a   : > { %1540 = vmatpush1.bf16.msra.mxu0 %v4940_v1  ;;  %3991 = vmatpush3.bf16.msra.mxu1 %v4950_v36 }
 0x39b   : > { %1541 = vmatprep.subr.bf16.mxu0 %v4945_v3  ;;  %3992 = vmatprep.subr.bf16.mxu1 %v5869_v63 }
 0x39e   : > { %1542 = vmatpush1.bf16.msra.mxu0 %v4959_v37  ;;  %3993 = vmatpush3.bf16.msra.mxu1 %v4969_v38 }
 0x39f   : > { %1543 = vmatprep.subr.bf16.mxu0 %v4964_v60  ;;  %3994 = vmatprep.subr.bf16.mxu1 %v5869_v63 }
 0x3a2   : > { %1544 = vmatpush1.bf16.msra.mxu0 %v4975_v39  ;;  %3995 = vmatpush3.bf16.msra.mxu1 %v4985_v41 }
 0x3a3   : > { %1545 = vmatprep.subr.bf16.mxu0 %v4980_v40  ;;  %3996 = vmatprep.subr.bf16.mxu1 %v5869_v63 }
 0x3a6   : > { %1546 = vmatpush1.bf16.msra.mxu0 %v4991_v62  ;;  %3997 = vmatpush3.bf16.msra.mxu1 %v4999_v51 }
 0x3a7   : > { %1655 = vmatprep.subr.bf16.mxu0 %v4859_v43  ;;  %4002 = vmatprep.subr.bf16.mxu1 %v5869_v63 }
 0x45c   : > { %v1441_v35 = vpop.f32.mrb[8].mxu0  ;;  %v1482_v42 = vpop.f32.mrb[8].mxu1 }
 0x45d   : > { %v1488_v31 = vadd.f32 %v1441_v35, %v1400_v26  ;;  %v1443_v32 = vpop.f32.mrb[9].mxu0  ;;  %v3980_v34 = vpop.f32.mrb[9].mxu1  ;;  %v1502_v2 = vadd.f32 %v1482_v42, %v5045_v47  ;;  %v1402_v26 = vld [vmem:[#allocation3 + $0x40] sm:$0xff] }
 0x45e   : > { %v1445_v29 = vpop.f32.mrb[10].mxu0  ;;  %v1485_v28 = vpop.f32.mrb[10].mxu1  ;;  %v1495_v21 = vadd.f32 %v1443_v32, %v1401_v50 }
 0x45f   : > { %v3630_v23 = vmul.f32 -1.442695, %v1488_v31  ;;  %v1446_v27 = vpop.f32.mrb[11].mxu0  ;;  %v3981_v30 = vpop.f32.mrb[11].mxu1 }
 0x460   : > { %v3631_v57 = vmul.f32 -1.442695, %v1495_v21  ;;  %v1513_v30 = vpop.permute.xlu1 %1512 }
 0x461   : > { %4390 = vpow2.f32 %v3630_v23 }
 0x462   : > { %4392 = vpow2.f32 %v3631_v57 }
 0x46b   : > { %v4391_v33 = vpop.eup %4390 }
 0x46c   : > { %v1492_v48 = vadd.f32 1.0, %v4391_v33  ;;  %v4393_v24 = vpop.eup %4392 }
 0x46d   : > { %v1499_v29 = vadd.f32 1.0, %v4393_v24 }
 0x46e   : > { %4394 = vrcp.f32 %v1492_v48 }
 0x478   : > { %v4395_v17 = vpop.eup %4394 }
 0x479   : > { %v1503_v35 = vmul.f32 %v4395_v17, %v1502_v2 }
 0x47b   : > { %v1504_v34 = vadd.f32 %v1503_v35, %v1402_v26 }
 0x47d   : > { %4396 = vtanh.f32 %v1504_v34 }
 0x47e   : > { %4398 = vrcp.f32 %v1499_v29 }
 0x487   : > { %v4397_v31 = vpop.eup %4396 }
 0x488   : > { %v1506_v28 = vsub.f32 %v5106_v25, %v4397_v31  ;;  %v4399_v23 = vpop.eup %4398 }
 0x48a   : > { %v1507_v32 = vmul.f32 %v4399_v23, %v1506_v28  ;;  %v1525_v23 = vld [vmem:[#allocation3 + $0x50] sm:$0xff] }
 0x48c   : > { %v1508_v27 = vadd.f32 %v4397_v31, %v1507_v32 }
 0x48e   : > { %v1509_v50 = vsub.f32 %v1508_v27, %v5106_v25  ;;  %v1518_v21 = vmul.f32 %v1513_v30, %v1508_v27 }
 0x490   : > { %v1515_v57 = vmul.f32 %v1513_v30, %v1509_v50  ;;  %1520 = vst [vmem:[#allocation4 + $0x10] sm:$0xff] %v1518_v21 }
 0x492   : > { %v5149_v42 = vadd.f32 %v1515_v57, %v5106_v25  ;;  %v1524_v25 = vld [vmem:[#allocation3 + $0x48] sm:$0xff] }
 0x494   : > { %v1530_v33 = vpack.c.bf16 %v5149_v42, %v5149_v42 }
 0x496   : > { %1564 = vmatmul.mubr.bf16.vlgmr.msra.gmra.mrb[12].mxu0 %v1530_v33  ;;  %3999 = vmatmul.mubr.bf16.vlgmr.msra.gmra.mrb[12].mxu1 %v1530_v33 }
 0x497   : > { %1656 = vmatpush1.bf16.msra.mxu0 %v4863_v44  ;;  %4003 = vmatpush3.bf16.msra.mxu1 %v4877_v45 }
 0x498   : > { %1657 = vmatprep.subr.bf16.mxu0 %v4867_v53  ;;  %4004 = vmatprep.subr.bf16.mxu1 %v5869_v63 }
 0x499   : > { %1687 = vmatprep.mubr.bf16.mxu0 %v5870_v0  ;;  %4018 = vmatprep.mubr.msk.bf16.mxu1 %vm4575_vm0, %v5869_v63 }
 0x49b   : > { %1658 = vmatpush1.bf16.msra.mxu0 %v4873_v56  ;;  %4005 = vmatpush3.bf16.msra.mxu1 %v4888_v49 }
 0x49c   : > { %1659 = vmatprep.subr.bf16.mxu0 %v4882_v46  ;;  %4006 = vmatprep.subr.bf16.mxu1 %v5869_v63 }
 0x49f   : > { %1660 = vmatpush1.bf16.msra.mxu0 %v4898_v52  ;;  %4007 = vmatpush3.bf16.msra.mxu1 %v4911_v55 }
 0x4a0   : > { %1661 = vmatprep.subr.bf16.mxu0 %v4905_v54  ;;  %4008 = vmatprep.subr.bf16.mxu1 %v5869_v63 }
 0x4a3   : > { %1662 = vmatpush1.bf16.msra.mxu0 %v4921_v58  ;;  %4009 = vmatpush3.bf16.msra.mxu1 %v4931_v61 }
 0x4a4   : > { %1663 = vmatprep.subr.bf16.mxu0 %v4926_v59  ;;  %4010 = vmatprep.subr.bf16.mxu1 %v5869_v63 }
 0x4a7   : > { %1664 = vmatpush1.bf16.msra.mxu0 %v4940_v1  ;;  %4011 = vmatpush3.bf16.msra.mxu1 %v4950_v36 }
 0x4a8   : > { %1665 = vmatprep.subr.bf16.mxu0 %v4945_v3  ;;  %4012 = vmatprep.subr.bf16.mxu1 %v5869_v63 }
 0x4ab   : > { %1666 = vmatpush1.bf16.msra.mxu0 %v4959_v37  ;;  %4013 = vmatpush3.bf16.msra.mxu1 %v4969_v38 }
 0x4ac   : > { %1667 = vmatprep.subr.bf16.mxu0 %v4964_v60  ;;  %4014 = vmatprep.subr.bf16.mxu1 %v5869_v63 }
 0x4af   : > { %1668 = vmatpush1.bf16.msra.mxu0 %v4975_v39  ;;  %4015 = vmatpush3.bf16.msra.mxu1 %v4985_v41 }
 0x4b0   : > { %1669 = vmatprep.subr.bf16.mxu0 %v4980_v40  ;;  %4016 = vmatprep.subr.bf16.mxu1 %v5869_v63 }
 0x4b3   : > { %1670 = vmatpush1.bf16.msra.mxu0 %v4991_v62  ;;  %4017 = vmatpush3.bf16.msra.mxu1 %v4999_v51 }
 0x4b4   : > { %1779 = vmatprep.subr.bf16.mxu0 %v4859_v43  ;;  %4022 = vmatprep.subr.bf16.mxu1 %v5869_v63 }
 0x569   : > { %v1565_v48 = vpop.f32.mrb[12].mxu0  ;;  %v1606_v24 = vpop.f32.mrb[12].mxu1 }
 0x56a   : > { %v1612_v2 = vadd.f32 %v1565_v48, %v1524_v25  ;;  %v1567_v17 = vpop.f32.mrb[13].mxu0  ;;  %v4000_v26 = vpop.f32.mrb[13].mxu1  ;;  %v1626_v57 = vadd.f32 %v1606_v24, %v5045_v47  ;;  %v1526_v25 = vld [vmem:[#allocation3 + $0x58] sm:$0xff] }
 0x56b   : > { %v1569_v35 = vpop.f32.mrb[14].mxu0  ;;  %v1609_v34 = vpop.f32.mrb[14].mxu1  ;;  %v1619_v32 = vadd.f32 %v1567_v17, %v1525_v23 }
 0x56c   : > { %v3633_v29 = vmul.f32 -1.442695, %v1612_v2  ;;  %v1570_v31 = vpop.f32.mrb[15].mxu0  ;;  %v4001_v28 = vpop.f32.mrb[15].mxu1 }
 0x56d   : > { %v3634_v27 = vmul.f32 -1.442695, %v1619_v32  ;;  %v1637_v28 = vpop.permute.xlu1 %1636 }
 0x56e   : > { %4400 = vpow2.f32 %v3633_v29 }
 0x56f   : > { %4402 = vpow2.f32 %v3634_v27 }
 0x578   : > { %v4401_v30 = vpop.eup %4400 }
 0x579   : > { %v1616_v50 = vadd.f32 1.0, %v4401_v30  ;;  %v4403_v21 = vpop.eup %4402 }
 0x57a   : > { %v1623_v35 = vadd.f32 1.0, %v4403_v21 }
 0x57b   : > { %4404 = vrcp.f32 %v1616_v50 }
 0x585   : > { %v4405_v33 = vpop.eup %4404 }
 0x586   : > { %v1627_v48 = vmul.f32 %v4405_v33, %v1626_v57 }
 0x588   : > { %v1628_v26 = vadd.f32 %v1627_v48, %v1526_v25 }
 0x58a   : > { %4406 = vtanh.f32 %v1628_v26 }
 0x58b   : > { %4408 = vrcp.f32 %v1623_v35 }
 0x594   : > { %v4407_v2 = vpop.eup %4406 }
 0x595   : > { %v1630_v34 = vsub.f32 %v5149_v42, %v4407_v2  ;;  %v4409_v29 = vpop.eup %4408 }
 0x597   : > { %v1631_v17 = vmul.f32 %v4409_v29, %v1630_v34  ;;  %v1649_v29 = vld [vmem:[#allocation3 + $0x68] sm:$0xff] }
 0x599   : > { %v1632_v31 = vadd.f32 %v4407_v2, %v1631_v17 }
 0x59b   : > { %v1633_v23 = vsub.f32 %v1632_v31, %v5149_v42  ;;  %v1642_v32 = vmul.f32 %v1637_v28, %v1632_v31 }
 0x59d   : > { %v1639_v27 = vmul.f32 %v1637_v28, %v1633_v23  ;;  %1644 = vst [vmem:[#allocation4 + $0x18] sm:$0xff] %v1642_v32 }
 0x59f   : > { %v5192_v24 = vadd.f32 %v1639_v27, %v5149_v42  ;;  %v1648_v42 = vld [vmem:[#allocation3 + $0x60] sm:$0xff] }
 0x5a1   : > { %v1654_v30 = vpack.c.bf16 %v5192_v24, %v5192_v24 }
 0x5a3   : > { %1688 = vmatmul.mubr.bf16.vlgmr.msra.gmra.mrb[16].mxu0 %v1654_v30  ;;  %4019 = vmatmul.mubr.bf16.vlgmr.msra.gmra.mrb[16].mxu1 %v1654_v30 }
 0x5a4   : > { %1780 = vmatpush1.bf16.msra.mxu0 %v4863_v44  ;;  %4023 = vmatpush3.bf16.msra.mxu1 %v4877_v45 }
 0x5a5   : > { %1781 = vmatprep.subr.bf16.mxu0 %v4867_v53  ;;  %4024 = vmatprep.subr.bf16.mxu1 %v5869_v63 }
 0x5a6   : > { %1811 = vmatprep.mubr.bf16.mxu0 %v5870_v0  ;;  %4038 = vmatprep.mubr.msk.bf16.mxu1 %vm4575_vm0, %v5869_v63 }
 0x5a8   : > { %1782 = vmatpush1.bf16.msra.mxu0 %v4873_v56  ;;  %4025 = vmatpush3.bf16.msra.mxu1 %v4888_v49 }
 0x5a9   : > { %1783 = vmatprep.subr.bf16.mxu0 %v4882_v46  ;;  %4026 = vmatprep.subr.bf16.mxu1 %v5869_v63 }
 0x5ac   : > { %1784 = vmatpush1.bf16.msra.mxu0 %v4898_v52  ;;  %4027 = vmatpush3.bf16.msra.mxu1 %v4911_v55 }
 0x5ad   : > { %1785 = vmatprep.subr.bf16.mxu0 %v4905_v54  ;;  %4028 = vmatprep.subr.bf16.mxu1 %v5869_v63 }
 0x5b0   : > { %1786 = vmatpush1.bf16.msra.mxu0 %v4921_v58  ;;  %4029 = vmatpush3.bf16.msra.mxu1 %v4931_v61 }
 0x5b1   : > { %1787 = vmatprep.subr.bf16.mxu0 %v4926_v59  ;;  %4030 = vmatprep.subr.bf16.mxu1 %v5869_v63 }
 0x5b4   : > { %1788 = vmatpush1.bf16.msra.mxu0 %v4940_v1  ;;  %4031 = vmatpush3.bf16.msra.mxu1 %v4950_v36 }
 0x5b5   : > { %1789 = vmatprep.subr.bf16.mxu0 %v4945_v3  ;;  %4032 = vmatprep.subr.bf16.mxu1 %v5869_v63 }
 0x5b8   : > { %1790 = vmatpush1.bf16.msra.mxu0 %v4959_v37  ;;  %4033 = vmatpush3.bf16.msra.mxu1 %v4969_v38 }
 0x5b9   : > { %1791 = vmatprep.subr.bf16.mxu0 %v4964_v60  ;;  %4034 = vmatprep.subr.bf16.mxu1 %v5869_v63 }
 0x5bc   : > { %1792 = vmatpush1.bf16.msra.mxu0 %v4975_v39  ;;  %4035 = vmatpush3.bf16.msra.mxu1 %v4985_v41 }
 0x5bd   : > { %1793 = vmatprep.subr.bf16.mxu0 %v4980_v40  ;;  %4036 = vmatprep.subr.bf16.mxu1 %v5869_v63 }
 0x5c0   : > { %1794 = vmatpush1.bf16.msra.mxu0 %v4991_v62  ;;  %4037 = vmatpush3.bf16.msra.mxu1 %v4999_v51 }
 0x5c1   : > { %1903 = vmatprep.subr.bf16.mxu0 %v4859_v43  ;;  %4042 = vmatprep.subr.bf16.mxu1 %v5869_v63 }
 0x676   : > { %v1689_v50 = vpop.f32.mrb[16].mxu0  ;;  %v1730_v21 = vpop.f32.mrb[16].mxu1 }
 0x677   : > { %v1736_v57 = vadd.f32 %v1689_v50, %v1648_v42  ;;  %v1691_v33 = vpop.f32.mrb[17].mxu0  ;;  %v4020_v25 = vpop.f32.mrb[17].mxu1  ;;  %v1750_v27 = vadd.f32 %v1730_v21, %v5045_v47  ;;  %v1650_v42 = vld [vmem:[#allocation3 + $0x70] sm:$0xff] }
 0x678   : > { %v1693_v48 = vpop.f32.mrb[18].mxu0  ;;  %v1733_v26 = vpop.f32.mrb[18].mxu1  ;;  %v1743_v17 = vadd.f32 %v1691_v33, %v1649_v29 }
 0x679   : > { %v3636_v35 = vmul.f32 -1.442695, %v1736_v57  ;;  %v1694_v2 = vpop.f32.mrb[19].mxu0  ;;  %v4021_v34 = vpop.f32.mrb[19].mxu1 }
 0x67a   : > { %v3637_v31 = vmul.f32 -1.442695, %v1743_v17  ;;  %v1761_v34 = vpop.permute.xlu0 %1760 }
 0x67b   : > { %4410 = vpow2.f32 %v3636_v35 }
 0x67c   : > { %4412 = vpow2.f32 %v3637_v31 }
 0x685   : > { %v4411_v28 = vpop.eup %4410 }
 0x686   : > { %v1740_v23 = vadd.f32 1.0, %v4411_v28  ;;  %v4413_v32 = vpop.eup %4412 }
 0x687   : > { %v1747_v48 = vadd.f32 1.0, %v4413_v32 }
 0x688   : > { %4414 = vrcp.f32 %v1740_v23 }
 0x692   : > { %v4415_v30 = vpop.eup %4414 }
 0x693   : > { %v1751_v50 = vmul.f32 %v4415_v30, %v1750_v27 }
 0x695   : > { %v1752_v25 = vadd.f32 %v1751_v50, %v1650_v42 }
 0x697   : > { %4416 = vtanh.f32 %v1752_v25 }
 0x698   : > { %4418 = vrcp.f32 %v1747_v48 }
 0x6a1   : > { %v4417_v57 = vpop.eup %4416 }
 0x6a2   : > { %v1754_v26 = vsub.f32 %v5192_v24, %v4417_v57  ;;  %v4419_v35 = vpop.eup %4418 }
 0x6a4   : > { %v1755_v33 = vmul.f32 %v4419_v35, %v1754_v26  ;;  %v1773_v35 = vld [vmem:[#allocation3 + $0x80] sm:$0xff] }
 0x6a6   : > { %v1756_v2 = vadd.f32 %v4417_v57, %v1755_v33 }
 0x6a8   : > { %v1757_v29 = vsub.f32 %v1756_v2, %v5192_v24  ;;  %v1766_v17 = vmul.f32 %v1761_v34, %v1756_v2 }
 0x6aa   : > { %v1763_v31 = vmul.f32 %v1761_v34, %v1757_v29  ;;  %1768 = vst [vmem:[#allocation4 + $0x20] sm:$0xff] %v1766_v17 }
 0x6ac   : > { %v5235_v21 = vadd.f32 %v1763_v31, %v5192_v24  ;;  %v1772_v24 = vld [vmem:[#allocation3 + $0x78] sm:$0xff] }
 0x6ae   : > { %v1778_v28 = vpack.c.bf16 %v5235_v21, %v5235_v21 }
 0x6b0   : > { %1812 = vmatmul.mubr.bf16.vlgmr.msra.gmra.mrb[20].mxu0 %v1778_v28  ;;  %4039 = vmatmul.mubr.bf16.vlgmr.msra.gmra.mrb[20].mxu1 %v1778_v28  ;;  %v1774_v28 = vld [vmem:[#allocation3 + $0x88] sm:$0xff] }
 0x6b1   : > { %1904 = vmatpush1.bf16.msra.mxu0 %v4863_v44  ;;  %4043 = vmatpush3.bf16.msra.mxu1 %v4877_v45 }
 0x6b2   : > { %1905 = vmatprep.subr.bf16.mxu0 %v4867_v53  ;;  %4044 = vmatprep.subr.bf16.mxu1 %v5869_v63 }
 0x6b3   : > { %1935 = vmatprep.mubr.bf16.mxu0 %v5870_v0  ;;  %4058 = vmatprep.mubr.msk.bf16.mxu1 %vm4575_vm0, %v5869_v63 }
 0x6b5   : > { %1906 = vmatpush1.bf16.msra.mxu0 %v4873_v56  ;;  %4045 = vmatpush3.bf16.msra.mxu1 %v4888_v49 }
 0x6b6   : > { %1907 = vmatprep.subr.bf16.mxu0 %v4882_v46  ;;  %4046 = vmatprep.subr.bf16.mxu1 %v5869_v63 }
 0x6b9   : > { %1908 = vmatpush1.bf16.msra.mxu0 %v4898_v52  ;;  %4047 = vmatpush3.bf16.msra.mxu1 %v4911_v55 }
 0x6ba   : > { %1909 = vmatprep.subr.bf16.mxu0 %v4905_v54  ;;  %4048 = vmatprep.subr.bf16.mxu1 %v5869_v63 }
 0x6bd   : > { %1910 = vmatpush1.bf16.msra.mxu0 %v4921_v58  ;;  %4049 = vmatpush3.bf16.msra.mxu1 %v4931_v61 }
 0x6be   : > { %1911 = vmatprep.subr.bf16.mxu0 %v4926_v59  ;;  %4050 = vmatprep.subr.bf16.mxu1 %v5869_v63 }
 0x6c1   : > { %1912 = vmatpush1.bf16.msra.mxu0 %v4940_v1  ;;  %4051 = vmatpush3.bf16.msra.mxu1 %v4950_v36 }
 0x6c2   : > { %1913 = vmatprep.subr.bf16.mxu0 %v4945_v3  ;;  %4052 = vmatprep.subr.bf16.mxu1 %v5869_v63 }
 0x6c5   : > { %1914 = vmatpush1.bf16.msra.mxu0 %v4959_v37  ;;  %4053 = vmatpush3.bf16.msra.mxu1 %v4969_v38 }
 0x6c6   : > { %1915 = vmatprep.subr.bf16.mxu0 %v4964_v60  ;;  %4054 = vmatprep.subr.bf16.mxu1 %v5869_v63 }
 0x6c9   : > { %1916 = vmatpush1.bf16.msra.mxu0 %v4975_v39  ;;  %4055 = vmatpush3.bf16.msra.mxu1 %v4985_v41 }
 0x6ca   : > { %1917 = vmatprep.subr.bf16.mxu0 %v4980_v40  ;;  %4056 = vmatprep.subr.bf16.mxu1 %v5869_v63 }
 0x6cd   : > { %1918 = vmatpush1.bf16.msra.mxu0 %v4991_v62  ;;  %4057 = vmatpush3.bf16.msra.mxu1 %v4999_v51 }
 0x6ce   : > { %2027 = vmatprep.subr.bf16.mxu0 %v4859_v43  ;;  %4062 = vmatprep.subr.bf16.mxu1 %v5869_v63 }
 0x783   : > { %v1813_v23 = vpop.f32.mrb[20].mxu0  ;;  %v1854_v32 = vpop.f32.mrb[20].mxu1 }
 0x784   : > { %v1860_v27 = vadd.f32 %v1813_v23, %v1772_v24  ;;  %v1815_v30 = vpop.f32.mrb[21].mxu0  ;;  %v4040_v42 = vpop.f32.mrb[21].mxu1  ;;  %v1874_v17 = vadd.f32 %v1854_v32, %v5045_v47 }
 0x785   : > { %v1817_v50 = vpop.f32.mrb[22].mxu0  ;;  %v1857_v25 = vpop.f32.mrb[22].mxu1  ;;  %v1867_v33 = vadd.f32 %v1815_v30, %v1773_v35 }
 0x786   : > { %v3639_v48 = vmul.f32 -1.442695, %v1860_v27  ;;  %v1818_v57 = vpop.f32.mrb[23].mxu0  ;;  %v4041_v26 = vpop.f32.mrb[23].mxu1 }
 0x787   : > { %v3640_v2 = vmul.f32 -1.442695, %v1867_v33  ;;  %v1885_v57 = vpop.permute.xlu1 %1884 }
 0x788   : > { %4420 = vpow2.f32 %v3639_v48 }
 0x789   : > { %4422 = vpow2.f32 %v3640_v2 }
 0x792   : > { %v4421_v34 = vpop.eup %4420 }
 0x793   : > { %v1864_v29 = vadd.f32 1.0, %v4421_v34  ;;  %v4423_v43 = vpop.eup %4422 }
 0x794   : > { %v1871_v42 = vadd.f32 1.0, %v4423_v43  ;;  %v2009_v43 = vpop.permute.xlu0 %2008 }
 0x795   : > { %4424 = vrcp.f32 %v1864_v29 }
 0x79f   : > { %v4425_v31 = vpop.eup %4424 }
 0x7a0   : > { %v1875_v24 = vmul.f32 %v4425_v31, %v1874_v17 }
 0x7a2   : > { %v1876_v23 = vadd.f32 %v1875_v24, %v1774_v28 }
 0x7a4   : > { %4426 = vtanh.f32 %v1876_v23 }
 0x7a5   : > { %4428 = vrcp.f32 %v1871_v42  ;;  %v2020_v42 = vld [vmem:[#allocation3 + $0xa8] sm:$0xff] }
 0x7ae   : > { %v4427_v27 = vpop.eup %4426 }
 0x7af   : > { %v1878_v50 = vsub.f32 %v5235_v21, %v4427_v27  ;;  %v4429_v25 = vpop.eup %4428 }
 0x7b1   : > { %v1879_v30 = vmul.f32 %v4429_v25, %v1878_v50 }
 0x7b3   : > { %v1880_v48 = vadd.f32 %v4427_v27, %v1879_v30 }
 0x7b5   : > { %v1881_v26 = vsub.f32 %v1880_v48, %v5235_v21  ;;  %v1890_v35 = vmul.f32 %v1885_v57, %v1880_v48 }
 0x7b7   : > { %v1887_v33 = vmul.f32 %v1885_v57, %v1881_v26  ;;  %1892 = vst [vmem:[#allocation4 + $0x28] sm:$0xff] %v1890_v35 }
 0x7b9   : > { %v5278_v32 = vadd.f32 %v1887_v33, %v5235_v21 }
 0x7bb   : > { %v1902_v2 = vpack.c.bf16 %v5278_v32, %v5278_v32 }
 0x7bd   : > { %1936 = vmatmul.mubr.bf16.vlgmr.msra.gmra.mrb[24].mxu0 %v1902_v2  ;;  %4059 = vmatmul.mubr.bf16.vlgmr.msra.gmra.mrb[24].mxu1 %v1902_v2 }
 0x7be   : > { %2028 = vmatpush1.bf16.msra.mxu0 %v4863_v44  ;;  %4063 = vmatpush3.bf16.msra.mxu1 %v4877_v45  ;;  %v1896_v44 = vld [vmem:[#allocation3 + $0x90] sm:$0xff] }
 0x7bf   : > { %2029 = vmatprep.subr.bf16.mxu0 %v4867_v53  ;;  %4064 = vmatprep.subr.bf16.mxu1 %v5869_v63 }
 0x7c0   : > { %2059 = vmatprep.mubr.bf16.mxu0 %v5870_v0  ;;  %4078 = vmatprep.mubr.msk.bf16.mxu1 %vm4575_vm0, %v5869_v63 }
 0x7c2   : > { %2030 = vmatpush1.bf16.msra.mxu0 %v4873_v56  ;;  %4065 = vmatpush3.bf16.msra.mxu1 %v4888_v49 }
 0x7c3   : > { %2031 = vmatprep.subr.bf16.mxu0 %v4882_v46  ;;  %4066 = vmatprep.subr.bf16.mxu1 %v5869_v63 }
 0x7c6   : > { %2032 = vmatpush1.bf16.msra.mxu0 %v4898_v52  ;;  %4067 = vmatpush3.bf16.msra.mxu1 %v4911_v55 }
 0x7c7   : > { %2033 = vmatprep.subr.bf16.mxu0 %v4905_v54  ;;  %4068 = vmatprep.subr.bf16.mxu1 %v5869_v63 }
 0x7ca   : > { %2034 = vmatpush1.bf16.msra.mxu0 %v4921_v58  ;;  %4069 = vmatpush3.bf16.msra.mxu1 %v4931_v61  ;;  %v1897_v61 = vld [vmem:[#allocation3 + $0x98] sm:$0xff] }
 0x7cb   : > { %2035 = vmatprep.subr.bf16.mxu0 %v4926_v59  ;;  %4070 = vmatprep.subr.bf16.mxu1 %v5869_v63 }
 0x7ce   : > { %2036 = vmatpush1.bf16.msra.mxu0 %v4940_v1  ;;  %4071 = vmatpush3.bf16.msra.mxu1 %v4950_v36 }
 0x7cf   : > { %2037 = vmatprep.subr.bf16.mxu0 %v4945_v3  ;;  %4072 = vmatprep.subr.bf16.mxu1 %v5869_v63 }
 0x7d2   : > { %2038 = vmatpush1.bf16.msra.mxu0 %v4959_v37  ;;  %4073 = vmatpush3.bf16.msra.mxu1 %v4969_v38 }
 0x7d3   : > { %2039 = vmatprep.subr.bf16.mxu0 %v4964_v60  ;;  %4074 = vmatprep.subr.bf16.mxu1 %v5869_v63 }
 0x7d6   : > { %2040 = vmatpush1.bf16.msra.mxu0 %v4975_v39  ;;  %4075 = vmatpush3.bf16.msra.mxu1 %v4985_v41 }
 0x7d7   : > { %2041 = vmatprep.subr.bf16.mxu0 %v4980_v40  ;;  %4076 = vmatprep.subr.bf16.mxu1 %v5869_v63  ;;  %v1898_v40 = vld [vmem:[#allocation3 + $0xa0] sm:$0xff] }
 0x7da   : > { %2042 = vmatpush1.bf16.msra.mxu0 %v4991_v62  ;;  %4077 = vmatpush3.bf16.msra.mxu1 %v4999_v51 }
 0x890   : > { %v1937_v53 = vpop.f32.mrb[24].mxu0  ;;  %v1978_v56 = vpop.f32.mrb[24].mxu1 }
 0x891   : > { %v1984_v45 = vadd.f32 %v1937_v53, %v1896_v44  ;;  %v1939_v46 = vpop.f32.mrb[25].mxu0  ;;  %v4060_v49 = vpop.f32.mrb[25].mxu1  ;;  %v1998_v38 = vadd.f32 %v1978_v56, %v5045_v47  ;;  %v2021_v44 = vld [vmem:[#allocation3 + $0xb0] sm:$0xff] }
 0x892   : > { %v1941_v52 = vpop.f32.mrb[26].mxu0  ;;  %v1981_v54 = vpop.f32.mrb[26].mxu1  ;;  %v1991_v1 = vadd.f32 %v1939_v46, %v1897_v61 }
 0x893   : > { %v3642_v55 = vmul.f32 -1.442695, %v1984_v45  ;;  %v1942_v58 = vpop.f32.mrb[27].mxu0  ;;  %v4061_v59 = vpop.f32.mrb[27].mxu1  ;;  %v2022_v54 = vld [vmem:[#allocation3 + $0xb8] sm:$0xff] }
 0x894   : > { %v3643_v3 = vmul.f32 -1.442695, %v1991_v1 }
 0x895   : > { %4430 = vpow2.f32 %v3642_v55 }
 0x896   : > { %4432 = vpow2.f32 %v3643_v3 }
 0x89f   : > { %v4431_v36 = vpop.eup %4430 }
 0x8a0   : > { %v1988_v37 = vadd.f32 1.0, %v4431_v36  ;;  %v4433_v60 = vpop.eup %4432 }
 0x8a1   : > { %v1995_v51 = vadd.f32 1.0, %v4433_v60  ;;  %v2133_v60 = vpop.permute.xlu1 %2132 }
 0x8a2   : > { %4434 = vrcp.f32 %v1988_v37 }
 0x8ac   : > { %v4435_v39 = vpop.eup %4434 }
 0x8ad   : > { %v1999_v41 = vmul.f32 %v4435_v39, %v1998_v38 }
 0x8af   : > { %v2000_v62 = vadd.f32 %v1999_v41, %v1898_v40 }
 0x8b1   : > { %4436 = vtanh.f32 %v2000_v62 }
 0x8b2   : > { %4438 = vrcp.f32 %v1995_v51 }
 0x8bb   : > { %v4437_v63 = vpop.eup %4436 }
 0x8bc   : > { %v2002_v0 = vsub.f32 %v5278_v32, %v4437_v63  ;;  %v4439_v21 = vpop.eup %4438 }
 0x8be   : > { %v2003_v34 = vmul.f32 %v4439_v21, %v2002_v0 }
 0x8c0   : > { %v2004_v29 = vadd.f32 %v4437_v63, %v2003_v34 }
 0x8c2   : > { %v2005_v17 = vsub.f32 %v2004_v29, %v5278_v32  ;;  %v2014_v31 = vmul.f32 %v2009_v43, %v2004_v29 }
 0x8c4   : > { %v2011_v28 = vmul.f32 %v2009_v43, %v2005_v17  ;;  %2016 = vst [vmem:[#allocation4 + $0x30] sm:$0xff] %v2014_v31 }
 0x8c6   : > { %v2012_v24 = vadd.f32 %v2011_v28, %v5278_v32 }
 0x8c8   : > { %v2026_v23 = vpack.c.bf16 %v2012_v24, %v2012_v24 }
 0x8ca   : > { %2060 = vmatmul.mubr.bf16.vlgmr.msra.gmra.mrb[28].mxu0 %v2026_v23  ;;  %4079 = vmatmul.mubr.bf16.vlgmr.msra.gmra.mrb[28].mxu1 %v2026_v23 }
 0x99d   : > { %v2061_v27 = vpop.f32.mrb[28].mxu0  ;;  %v2102_v50 = vpop.f32.mrb[28].mxu1 }
 0x99e   : > { %v2108_v25 = vadd.f32 %v2061_v27, %v2020_v42  ;;  %v2063_v30 = vpop.f32.mrb[29].mxu0  ;;  %v4080_v48 = vpop.f32.mrb[29].mxu1  ;;  %v2122_v49 = vadd.f32 %v2102_v50, %v5045_v47 }
 0x99f   : > { %v2065_v57 = vpop.f32.mrb[30].mxu0  ;;  %v2105_v26 = vpop.f32.mrb[30].mxu1  ;;  %v2115_v53 = vadd.f32 %v2063_v30, %v2021_v44 }
 0x9a0   : > { %v3645_v35 = vmul.f32 -1.442695, %v2108_v25  ;;  %v2066_v33 = vpop.f32.mrb[31].mxu0  ;;  %v4081_v2 = vpop.f32.mrb[31].mxu1 }
 0x9a1   : > { %v3646_v56 = vmul.f32 -1.442695, %v2115_v53 }
 0x9a2   : > { %4440 = vpow2.f32 %v3645_v35 }
 0x9a3   : > { %4442 = vpow2.f32 %v3646_v56 }
 0x9ac   : > { %v4441_v45 = vpop.eup %4440 }
 0x9ad   : > { %v2112_v32 = vadd.f32 1.0, %v4441_v45  ;;  %v4443_v46 = vpop.eup %4442 }
 0x9ae   : > { %v2119_v59 = vadd.f32 1.0, %v4443_v46 }
 0x9af   : > { %4444 = vrcp.f32 %v2112_v32 }
 0x9b9   : > { %v4445_v52 = vpop.eup %4444 }
 0x9ba   : > { %v2123_v55 = vmul.f32 %v4445_v52, %v2122_v49 }
 0x9bc   : > { %v2124_v58 = vadd.f32 %v2123_v55, %v2022_v54 }
 0x9be   : > { %4446 = vtanh.f32 %v2124_v58 }
 0x9bf   : > { %4448 = vrcp.f32 %v2119_v59 }
 0x9c8   : > { %v4447_v61 = vpop.eup %4446 }
 0x9c9   : > { %v2126_v1 = vsub.f32 %v2012_v24, %v4447_v61  ;;  %v4449_v3 = vpop.eup %4448 }
 0x9cb   : > { %v2127_v36 = vmul.f32 %v4449_v3, %v2126_v1 }
 0x9cd   : > { %v2128_v37 = vadd.f32 %v4447_v61, %v2127_v36 }
 0x9cf   : > { %v2129_v38 = vsub.f32 %v2128_v37, %v2012_v24  ;;  %v2138_v39 = vmul.f32 %v2133_v60, %v2128_v37 }
 0x9d1   : > { %v2135_v40 = vmul.f32 %v2133_v60, %v2129_v38  ;;  %2140 = vst [vmem:[#allocation4 + $0x38] sm:$0xff] %v2138_v39 }
 0x9d3   : > { %v2136_v41 = vadd.f32 %v2135_v40, %v2012_v24 }
 0x9d5   : > { %2137 = vst [vmem:[#allocation2] sm:$0xff] %v2136_v41 }
 0x9d6 PF: > { %p3647_p10 = scmp.eq.s32.totalorder %s4562_s23, 0 }
 0x9d7   : > { %v5323_v47 = vcombine.high (!%p3647_p10), %v4683_v4, %v4689_v6  ;;  %v5327_v62 = vcombine.low (!%p3647_p10), %v4683_v4, %v4689_v6  ;;  %v5331_v51 = vcombine.high (!%p3647_p10), %v4695_v8, %v4701_v10  ;;  %v5337_v63 = vcombine.low (!%p3647_p10), %v4695_v8, %v4701_v10  ;;  %v5872_v34 = vld [vmem:[#allocation12_spill] sm:$0xff] (!%p3647_p10)  ;;  %v5873_v29 = vld [vmem:[#allocation10_spill] sm:$0xff] (!%p3647_p10)  ;;  %v5878_v42 = vld [vmem:[#allocation13_spill] sm:$0xff] (!%p3647_p10) }
 0x9d8   : > { %2144 = sbr.rel (%p3647_p10) target bundleno = 4704 (0x1260), region = 56  ;;  %v5341_v0 = vcombine.low (!%p3647_p10), %v4686_v5, %v4692_v7  ;;  %v5346_v4 = vcombine.high (!%p3647_p10), %v4707_v12, %v4713_v14  ;;  %v4576_v6 = vmov (!%p3647_p10), 0.0   ;;  %v5352_v21 = vcombine.low (!%p3647_p10), %v4698_v9, %v4704_v11  ;;  %v3648_v5 = vld [vmem:[%s5822_s5 + $0x38] sm:$0xff] (!%p3647_p10)  ;;  %v3675_v11 = vld [vmem:[%s5822_s5 + $0x30] sm:$0xff] (!%p3647_p10)  ;;  %v5877_v24 = vld [vmem:[#allocation14_spill] sm:$0xff] (!%p3647_p10) }
 0x9d9   : > { %2283 = vmatprep.subr.bf16.mxu0 (!%p3647_p10), %v5323_v47  ;;  %4082 = vmatprep.subr.bf16.mxu1 (!%p3647_p10), %v4576_v6  ;;  %v4577_v8 = vmov (!%p3647_p10), 0   ;;  %v5362_v7 = vcombine.low (!%p3647_p10), %v4707_v12, %v4713_v14  ;;  %vm4578_vm1 = vmmov (!%p3647_p10), 0   ;;  %v5369_v9 = vcombine.high (!%p3647_p10), %v4719_v16, %v4725_v18  ;;  %v5871_v14 = vld [vmem:[#allocation7_spill] sm:$0xff] (!%p3647_p10)  ;;  %v5875_v17 = vld [vmem:[#allocation8_spill] sm:$0xff] (!%p3647_p10)  ;;  %v5881_v48 = vld [vmem:[#allocation18_spill] sm:$0xff] (!%p3647_p10) }
 0x9da   : > { %2284 = vmatpush1.bf16.msra.mxu0 (!%p3647_p10), %v5327_v62  ;;  %4083 = vmatpush3.bf16.msra.mxu1 (!%p3647_p10), %v5341_v0  ;;  %v5375_v10 = vcombine.low (!%p3647_p10), %v4710_v13, %v4716_v15  ;;  %v5385_v12 = vcombine.low (!%p3647_p10), %v4719_v16, %v4725_v18  ;;  %v5390_v13 = vcombine.high (!%p3647_p10), %v4731_v20, %v4737_v22  ;;  %v3684_v16 = vld [vmem:[%s5822_s5 + $0x18] sm:$0xff] (!%p3647_p10)  ;;  %v5879_v27 = vld [vmem:[#allocation11_spill] sm:$0xff] (!%p3647_p10)  ;;  %v5882_v26 = vld [vmem:[#allocation17_spill] sm:$0xff] (!%p3647_p10) }
 0x9db   : > { %2285 = vmatprep.subr.bf16.mxu0 (!%p3647_p10), %v5331_v51  ;;  %2315 = vmatprep.mubr.bf16.mxu0 (!%p3647_p10), %v4577_v8  ;;  %v5395_v15 = vcombine.low (!%p3647_p10), %v5871_v14, %v4728_v19  ;;  %v5404_v18 = vcombine.low (!%p3647_p10), %v4731_v20, %v4737_v22  ;;  %v5409_v43 = vcombine.high (!%p3647_p10), %v5873_v29, %v5872_v34  ;;  %v5874_v19 = vld [vmem:[#allocation9_spill] sm:$0xff] (!%p3647_p10)  ;;  %v3690_v20 = vld [vmem:[%s5822_s5 + $0x8] sm:$0xff] (!%p3647_p10)  ;;  %v5876_v28 = vld [vmem:[#allocation16_spill] sm:$0xff] (!%p3647_p10) }
 0x9dc   : > { %4084 = vmatprep.subr.bf16.mxu1 (!%p3647_p10), %v4576_v6  ;;  %4098 = vmatprep.mubr.msk.bf16.mxu1 (!%p3647_p10), %vm4578_vm1, %v4576_v6  ;;  %v5414_v31 = vcombine.low (!%p3647_p10), %v5875_v17, %v5874_v19  ;;  %v5423_v22 = vcombine.low (!%p3647_p10), %v5873_v29, %v5872_v34  ;;  %v5428_v23 = vcombine.high (!%p3647_p10), %v5877_v24, %v5876_v28  ;;  %v5880_v30 = vld [vmem:[#allocation20_spill] sm:$0xff] (!%p3647_p10)  ;;  %v5883_v35 = vld [vmem:[#allocation15_spill] sm:$0xff] (!%p3647_p10)  ;;  %v5457_v44 = vld [vmem:[#allocation2] sm:$0xff] (!%p3647_p10) }
 0x9dd   : > { %4450 = vset.pattern.permute.xlu0 (!%p3647_p10), %v4577_v8  ;;  %4451 = vset.pattern.permute.xlu1 (!%p3647_p10), %v4577_v8  ;;  %v5433_v50 = vcombine.low (!%p3647_p10), %v5879_v27, %v5878_v42  ;;  %v5439_v25 = vcombine.low (!%p3647_p10), %v5877_v24, %v5876_v28  ;;  %v5444_v57 = vcombine.high (!%p3647_p10), %v5881_v48, %v5880_v30  ;;  %v5884_v53 = vld [vmem:[#allocation21_spill] sm:$0xff] (!%p3647_p10)  ;;  %v5885_v56 = vld [vmem:[#allocation19_spill] sm:$0xff] (!%p3647_p10)  ;;  %v2149_v37 = vld [vmem:[#allocation3 + $0xb0] sm:$0xff] (!%p3647_p10) }
 0x9de   : > { %2286 = vmatpush1.bf16.msra.mxu0 (!%p3647_p10), %v5337_v63  ;;  %4085 = vmatpush3.bf16.msra.mxu1 (!%p3647_p10), %v5352_v21  ;;  %v5449_v33 = vcombine.low (!%p3647_p10), %v5883_v35, %v5882_v26  ;;  %v5455_v2 = vcombine.low (!%p3647_p10), %v5881_v48, %v5880_v30  ;;  %v5463_v45 = vcombine.low (!%p3647_p10), %v5885_v56, %v5884_v53  ;;  %v2148_v46 = vld [vmem:[#allocation3 + $0xa8] sm:$0xff] (!%p3647_p10)  ;;  %v5886_v41 = vld [vmem:[#allocation22_spill] sm:$0xff] (!%p3647_p10)  ;;  %v2150_v29 = vld [vmem:[#allocation3 + $0xb8] sm:$0xff] (!%p3647_p10) }
 0x9df   : > { %2287 = vmatprep.subr.bf16.mxu0 %v5346_v4  ;;  %2394 = vperm.xlu0 %4450, %v3648_v5   ;;  %v2154_v32 = vpack.c.bf16 %v5457_v44, %v5457_v44  ;;  %v5887_v5 = vld [vmem:[#allocation6_spill] sm:$0xff] }
 0x9e0   : > { %4086 = vmatprep.subr.bf16.mxu1 %v4576_v6 }
 0x9e2   : > { %2288 = vmatpush1.bf16.msra.mxu0 %v5362_v7  ;;  %4087 = vmatpush3.bf16.msra.mxu1 %v5375_v10 }
 0x9e3   : > { %2289 = vmatprep.subr.bf16.mxu0 %v5369_v9  ;;  %2518 = vperm.xlu0 %4450, %v3675_v11   ;;  %v5509_v11 = vrot.slane %v5887_v5, %v5886_v41 }
 0x9e4   : > { %4088 = vmatprep.subr.bf16.mxu1 %v4576_v6 }
 0x9e6   : > { %2290 = vmatpush1.bf16.msra.mxu0 %v5385_v12  ;;  %4089 = vmatpush3.bf16.msra.mxu1 %v5395_v15 }
 0x9e7   : > { %2291 = vmatprep.subr.bf16.mxu0 %v5390_v13  ;;  %2890 = vperm.xlu0 %4450, %v3684_v16  }
 0x9e8   : > { %4090 = vmatprep.subr.bf16.mxu1 %v4576_v6 }
 0x9ea   : > { %2292 = vmatpush1.bf16.msra.mxu0 %v5404_v18  ;;  %4091 = vmatpush3.bf16.msra.mxu1 %v5414_v31 }
 0x9eb   : > { %2293 = vmatprep.subr.bf16.mxu0 %v5409_v43  ;;  %3138 = vperm.xlu0 %4450, %v3690_v20  }
 0x9ec   : > { %4092 = vmatprep.subr.bf16.mxu1 %v4576_v6 }
 0x9ee   : > { %2294 = vmatpush1.bf16.msra.mxu0 %v5423_v22  ;;  %4093 = vmatpush3.bf16.msra.mxu1 %v5433_v50 }
 0x9ef   : > { %2295 = vmatprep.subr.bf16.mxu0 %v5428_v23  ;;  %4094 = vmatprep.subr.bf16.mxu1 %v4576_v6 }
 0x9f2   : > { %2296 = vmatpush1.bf16.msra.mxu0 %v5439_v25  ;;  %4095 = vmatpush3.bf16.msra.mxu1 %v5449_v33 }
 0x9f3   : > { %2297 = vmatprep.subr.bf16.mxu0 %v5444_v57  ;;  %4096 = vmatprep.subr.bf16.mxu1 %v4576_v6 }
 0x9f6   : > { %2298 = vmatpush1.bf16.msra.mxu0 %v5455_v2  ;;  %4097 = vmatpush3.bf16.msra.mxu1 %v5463_v45 }
 0x9f7   : > { %2413 = vmatprep.subr.bf16.mxu0 %v5323_v47  ;;  %4102 = vmatprep.subr.bf16.mxu1 %v4576_v6 }
 0x9f9   : > { %2316 = vmatmul.mubr.bf16.vlgmr.msra.gmra.mrb[0].mxu0 %v2154_v32  ;;  %4099 = vmatmul.mubr.bf16.vlgmr.msra.gmra.mrb[0].mxu1 %v2154_v32 }
 0x9fa   : > { %2414 = vmatpush1.bf16.msra.mxu0 %v5327_v62  ;;  %2445 = vmatprep.mubr.bf16.mxu0 %v4577_v8 }
 0x9fb   : > { %2415 = vmatprep.subr.bf16.mxu0 %v5331_v51  ;;  %4103 = vmatpush3.bf16.msra.mxu1 %v5341_v0 }
 0x9fc   : > { %4118 = vmatprep.mubr.msk.bf16.mxu1 %vm4578_vm1, %v4576_v6  ;;  %4104 = vmatprep.subr.bf16.mxu1 %v4576_v6 }
 0x9fe   : > { %2416 = vmatpush1.bf16.msra.mxu0 %v5337_v63 }
 0x9ff   : > { %2417 = vmatprep.subr.bf16.mxu0 %v5346_v4  ;;  %4105 = vmatpush3.bf16.msra.mxu1 %v5352_v21 }
 0xa00   : > { %4106 = vmatprep.subr.bf16.mxu1 %v4576_v6 }
 0xa02   : > { %2418 = vmatpush1.bf16.msra.mxu0 %v5362_v7 }
 0xa03   : > { %2419 = vmatprep.subr.bf16.mxu0 %v5369_v9  ;;  %4107 = vmatpush3.bf16.msra.mxu1 %v5375_v10 }
 0xa04   : > { %4108 = vmatprep.subr.bf16.mxu1 %v4576_v6 }
 0xa06   : > { %2420 = vmatpush1.bf16.msra.mxu0 %v5385_v12 }
 0xa07   : > { %2421 = vmatprep.subr.bf16.mxu0 %v5390_v13  ;;  %4109 = vmatpush3.bf16.msra.mxu1 %v5395_v15 }
 0xa08   : > { %4110 = vmatprep.subr.bf16.mxu1 %v4576_v6 }
 0xa0a   : > { %2422 = vmatpush1.bf16.msra.mxu0 %v5404_v18 }
 0xa0b   : > { %2423 = vmatprep.subr.bf16.mxu0 %v5409_v43  ;;  %4111 = vmatpush3.bf16.msra.mxu1 %v5414_v31 }
 0xa0c   : > { %4112 = vmatprep.subr.bf16.mxu1 %v4576_v6 }
 0xa0e   : > { %2424 = vmatpush1.bf16.msra.mxu0 %v5423_v22 }
 0xa0f   : > { %2425 = vmatprep.subr.bf16.mxu0 %v5428_v23  ;;  %4113 = vmatpush3.bf16.msra.mxu1 %v5433_v50 }
 0xa10   : > { %4114 = vmatprep.subr.bf16.mxu1 %v4576_v6 }
 0xa12   : > { %2426 = vmatpush1.bf16.msra.mxu0 %v5439_v25 }
 0xa13   : > { %2427 = vmatprep.subr.bf16.mxu0 %v5444_v57  ;;  %4115 = vmatpush3.bf16.msra.mxu1 %v5449_v33 }
 0xa14   : > { %4116 = vmatprep.subr.bf16.mxu1 %v4576_v6 }
 0xa16   : > { %2428 = vmatpush1.bf16.msra.mxu0 %v5455_v2 }
 0xa17   : > { %2537 = vmatprep.subr.bf16.mxu0 %v5323_v47  ;;  %4117 = vmatpush3.bf16.msra.mxu1 %v5463_v45 }
 0xa18   : > { %4122 = vmatprep.subr.bf16.mxu1 %v4576_v6 }
 0xa5e   : > { %v2395_v48 = vpop.permute.xlu0 %2394 }
 0xacc   : > { %v2317_v49 = vpop.f32.mrb[0].mxu0  ;;  %v2358_v58 = vpop.f32.mrb[0].mxu1 }
 0xacd   : > { %v2364_v52 = vadd.f32 %v2317_v49, %v2148_v46  ;;  %v2319_v54 = vpop.f32.mrb[1].mxu0  ;;  %v4100_v1 = vpop.f32.mrb[1].mxu1  ;;  %v2384_v14 = vadd.f32 %v5509_v11, %v2358_v58  ;;  %v3681_v46 = vld [vmem:[%s5822_s5 + $0x20] sm:$0xff]  ;;  %v3687_v49 = vld [vmem:[%s5822_s5 + $0x10] sm:$0xff] }
 0xace   : > { %v2321_v55 = vpop.f32.mrb[2].mxu0  ;;  %v2361_v3 = vpop.f32.mrb[2].mxu1  ;;  %v2371_v60 = vadd.f32 %v2319_v54, %v2149_v37  ;;  %v2406_v54 = vld [vmem:[#allocation3 + $0x90] sm:$0xff] }
 0xacf   : > { %v3673_v59 = vmul.f32 -1.442695, %v2364_v52  ;;  %v2322_v61 = vpop.f32.mrb[3].mxu0  ;;  %v4101_v36 = vpop.f32.mrb[3].mxu1  ;;  %v3153_v52 = vld [vmem:[%s5822_s5] sm:$0xff] }
 0xad0   : > { %v3674_v38 = vmul.f32 -1.442695, %v2371_v60 }
 0xad1   : > { %4452 = vpow2.f32 %v3673_v59 }
 0xad2   : > { %4454 = vpow2.f32 %v3674_v38 }
 0xadb   : > { %v4453_v39 = vpop.eup %4452 }
 0xadc   : > { %v2368_v40 = vadd.f32 1.0, %v4453_v39  ;;  %v4455_v16 = vpop.eup %4454  ;;  %v2407_v39 = vld [vmem:[#allocation3 + $0x98] sm:$0xff] }
 0xadd   : > { %v2375_v17 = vadd.f32 1.0, %v4455_v16 }
 0xade   : > { %4456 = vrcp.f32 %v2368_v40 }
 0xae8   : > { %v4457_v34 = vpop.eup %4456 }
 0xae9   : > { %v2385_v19 = vmul.f32 %v4457_v34, %v2384_v14 }
 0xaeb   : > { %v2386_v20 = vadd.f32 %v2385_v19, %v2150_v29  ;;  %v2408_v19 = vld [vmem:[#allocation3 + $0xa0] sm:$0xff] }
 0xaed   : > { %4458 = vtanh.f32 %v2386_v20 }
 0xaee   : > { %4460 = vrcp.f32 %v2375_v17 }
 0xaf7   : > { %v4459_v28 = vpop.eup %4458 }
 0xaf8   : > { %v2388_v24 = vsub.f32 %v5457_v44, %v4459_v28  ;;  %v4461_v42 = vpop.eup %4460 }
 0xafa   : > { %v2389_v27 = vmul.f32 %v4461_v42, %v2388_v24 }
 0xafc   : > { %v2390_v30 = vadd.f32 %v4459_v28, %v2389_v27 }
 0xafe   : > { %v2391_v26 = vsub.f32 %v2390_v30, %v5457_v44  ;;  %v2400_v35 = vmul.f32 %v2395_v48, %v2390_v30 }
 0xb00   : > { %v2397_v53 = vmul.f32 %v2395_v48, %v2391_v26  ;;  %2402 = vst [vmem:[#allocation4 + $0x38] sm:$0xff] %v2400_v35  ;;  %v2519_v26 = vpop.permute.xlu0 %2518 }
 0xb02   : > { %v5515_v56 = vadd.f32 %v2397_v53, %v5457_v44  ;;  %v3678_v44 = vld [vmem:[%s5822_s5 + $0x28] sm:$0xff] }
 0xb03   : > { %2642 = vperm.xlu1 %4451, %v3678_v44  }
 0xb04   : > { %v2412_v32 = vpack.c.bf16 %v5515_v56, %v5515_v56 }
 0xb06   : > { %2446 = vmatmul.mubr.bf16.vlgmr.msra.gmra.mrb[4].mxu0 %v2412_v32  ;;  %4119 = vmatmul.mubr.bf16.vlgmr.msra.gmra.mrb[4].mxu1 %v2412_v32 }
 0xb07   : > { %2538 = vmatpush1.bf16.msra.mxu0 %v5327_v62  ;;  %4123 = vmatpush3.bf16.msra.mxu1 %v5341_v0 }
 0xb08   : > { %2539 = vmatprep.subr.bf16.mxu0 %v5331_v51  ;;  %4124 = vmatprep.subr.bf16.mxu1 %v4576_v6 }
 0xb09   : > { %2569 = vmatprep.mubr.bf16.mxu0 %v4577_v8  ;;  %4138 = vmatprep.mubr.msk.bf16.mxu1 %vm4578_vm1, %v4576_v6 }
 0xb0a   : > { %2766 = vperm.xlu1 %4451, %v3681_v46  }
 0xb0b   : > { %2540 = vmatpush1.bf16.msra.mxu0 %v5337_v63  ;;  %4125 = vmatpush3.bf16.msra.mxu1 %v5352_v21 }
 0xb0c   : > { %2541 = vmatprep.subr.bf16.mxu0 %v5346_v4  ;;  %4126 = vmatprep.subr.bf16.mxu1 %v4576_v6 }
 0xb0e   : > { %3014 = vperm.xlu1 %4451, %v3687_v49  }
 0xb0f   : > { %2542 = vmatpush1.bf16.msra.mxu0 %v5362_v7  ;;  %4127 = vmatpush3.bf16.msra.mxu1 %v5375_v10 }
 0xb10   : > { %2543 = vmatprep.subr.bf16.mxu0 %v5369_v9  ;;  %4128 = vmatprep.subr.bf16.mxu1 %v4576_v6 }
 0xb12   : > { %3261 = vperm.xlu1 %4451, %v3153_v52  }
 0xb13   : > { %2544 = vmatpush1.bf16.msra.mxu0 %v5385_v12  ;;  %4129 = vmatpush3.bf16.msra.mxu1 %v5395_v15 }
 0xb14   : > { %2545 = vmatprep.subr.bf16.mxu0 %v5390_v13  ;;  %4130 = vmatprep.subr.bf16.mxu1 %v4576_v6 }
 0xb17   : > { %2546 = vmatpush1.bf16.msra.mxu0 %v5404_v18  ;;  %4131 = vmatpush3.bf16.msra.mxu1 %v5414_v31 }
 0xb18   : > { %2547 = vmatprep.subr.bf16.mxu0 %v5409_v43  ;;  %4132 = vmatprep.subr.bf16.mxu1 %v4576_v6 }
 0xb1b   : > { %2548 = vmatpush1.bf16.msra.mxu0 %v5423_v22  ;;  %4133 = vmatpush3.bf16.msra.mxu1 %v5433_v50 }
 0xb1c   : > { %2549 = vmatprep.subr.bf16.mxu0 %v5428_v23  ;;  %4134 = vmatprep.subr.bf16.mxu1 %v4576_v6 }
 0xb1f   : > { %2550 = vmatpush1.bf16.msra.mxu0 %v5439_v25  ;;  %4135 = vmatpush3.bf16.msra.mxu1 %v5449_v33 }
 0xb20   : > { %2551 = vmatprep.subr.bf16.mxu0 %v5444_v57  ;;  %4136 = vmatprep.subr.bf16.mxu1 %v4576_v6 }
 0xb23   : > { %2552 = vmatpush1.bf16.msra.mxu0 %v5455_v2  ;;  %4137 = vmatpush3.bf16.msra.mxu1 %v5463_v45 }
 0xb24   : > { %2661 = vmatprep.subr.bf16.mxu0 %v5323_v47  ;;  %4142 = vmatprep.subr.bf16.mxu1 %v4576_v6 }
 0xbd9   : > { %v2447_v55 = vpop.f32.mrb[4].mxu0  ;;  %v2488_v58 = vpop.f32.mrb[4].mxu1 }
 0xbda   : > { %v2494_v59 = vadd.f32 %v2447_v55, %v2406_v54  ;;  %v2449_v61 = vpop.f32.mrb[5].mxu0  ;;  %v4120_v1 = vpop.f32.mrb[5].mxu1  ;;  %v2508_v34 = vadd.f32 %v2488_v58, %v5509_v11 }
 0xbdb   : > { %v2451_v3 = vpop.f32.mrb[6].mxu0  ;;  %v2491_v36 = vpop.f32.mrb[6].mxu1  ;;  %v2501_v40 = vadd.f32 %v2449_v61, %v2407_v39 }
 0xbdc   : > { %v3676_v37 = vmul.f32 -1.442695, %v2494_v59  ;;  %v2452_v60 = vpop.f32.mrb[7].mxu0  ;;  %v4121_v38 = vpop.f32.mrb[7].mxu1 }
 0xbdd   : > { %v3677_v41 = vmul.f32 -1.442695, %v2501_v40 }
 0xbde   : > { %4462 = vpow2.f32 %v3676_v37  ;;  %v2531_v37 = vld [vmem:[#allocation3 + $0x80] sm:$0xff] }
 0xbdf   : > { %4464 = vpow2.f32 %v3677_v41 }
 0xbe8   : > { %v4463_v5 = vpop.eup %4462 }
 0xbe9   : > { %v2498_v14 = vadd.f32 1.0, %v4463_v5  ;;  %v4465_v16 = vpop.eup %4464 }
 0xbea   : > { %v2505_v28 = vadd.f32 1.0, %v4465_v16  ;;  %v2532_v16 = vld [vmem:[#allocation3 + $0x88] sm:$0xff] }
 0xbeb   : > { %4466 = vrcp.f32 %v2498_v14 }
 0xbf5   : > { %v4467_v29 = vpop.eup %4466 }
 0xbf6   : > { %v2509_v17 = vmul.f32 %v4467_v29, %v2508_v34 }
 0xbf8   : > { %v2510_v20 = vadd.f32 %v2509_v17, %v2408_v19 }
 0xbfa   : > { %4468 = vtanh.f32 %v2510_v20 }
 0xbfb   : > { %4470 = vrcp.f32 %v2505_v28 }
 0xc04   : > { %v4469_v24 = vpop.eup %4468 }
 0xc05   : > { %v2512_v42 = vsub.f32 %v5515_v56, %v4469_v24  ;;  %v4471_v27 = vpop.eup %4470 }
 0xc07   : > { %v2513_v30 = vmul.f32 %v4471_v27, %v2512_v42  ;;  %v2643_v27 = vpop.permute.xlu1 %2642 }
 0xc09   : > { %v2514_v48 = vadd.f32 %v4469_v24, %v2513_v30 }
 0xc0b   : > { %v2515_v35 = vsub.f32 %v2514_v48, %v5515_v56  ;;  %v2524_v53 = vmul.f32 %v2519_v26, %v2514_v48 }
 0xc0d   : > { %v2521_v32 = vmul.f32 %v2519_v26, %v2515_v35  ;;  %2526 = vst [vmem:[#allocation4 + $0x30] sm:$0xff] %v2524_v53 }
 0xc0f   : > { %v5570_v44 = vadd.f32 %v2521_v32, %v5515_v56  ;;  %v2530_v56 = vld [vmem:[#allocation3 + $0x78] sm:$0xff]  ;;  %v2654_v32 = vld [vmem:[#allocation3 + $0x60] sm:$0xff] }
 0xc11   : > { %v2536_v46 = vpack.c.bf16 %v5570_v44, %v5570_v44 }
 0xc13   : > { %2570 = vmatmul.mubr.bf16.vlgmr.msra.gmra.mrb[8].mxu0 %v2536_v46  ;;  %4139 = vmatmul.mubr.bf16.vlgmr.msra.gmra.mrb[8].mxu1 %v2536_v46 }
 0xc14   : > { %2662 = vmatpush1.bf16.msra.mxu0 %v5327_v62  ;;  %4143 = vmatpush3.bf16.msra.mxu1 %v5341_v0 }
 0xc15   : > { %2663 = vmatprep.subr.bf16.mxu0 %v5331_v51  ;;  %4144 = vmatprep.subr.bf16.mxu1 %v4576_v6 }
 0xc16   : > { %2693 = vmatprep.mubr.bf16.mxu0 %v4577_v8  ;;  %4158 = vmatprep.mubr.msk.bf16.mxu1 %vm4578_vm1, %v4576_v6 }
 0xc18   : > { %2664 = vmatpush1.bf16.msra.mxu0 %v5337_v63  ;;  %4145 = vmatpush3.bf16.msra.mxu1 %v5352_v21 }
 0xc19   : > { %2665 = vmatprep.subr.bf16.mxu0 %v5346_v4  ;;  %4146 = vmatprep.subr.bf16.mxu1 %v4576_v6 }
 0xc1c   : > { %2666 = vmatpush1.bf16.msra.mxu0 %v5362_v7  ;;  %4147 = vmatpush3.bf16.msra.mxu1 %v5375_v10 }
 0xc1d   : > { %2667 = vmatprep.subr.bf16.mxu0 %v5369_v9  ;;  %4148 = vmatprep.subr.bf16.mxu1 %v4576_v6 }
 0xc20   : > { %2668 = vmatpush1.bf16.msra.mxu0 %v5385_v12  ;;  %4149 = vmatpush3.bf16.msra.mxu1 %v5395_v15 }
 0xc21   : > { %2669 = vmatprep.subr.bf16.mxu0 %v5390_v13  ;;  %4150 = vmatprep.subr.bf16.mxu1 %v4576_v6 }
 0xc24   : > { %2670 = vmatpush1.bf16.msra.mxu0 %v5404_v18  ;;  %4151 = vmatpush3.bf16.msra.mxu1 %v5414_v31 }
 0xc25   : > { %2671 = vmatprep.subr.bf16.mxu0 %v5409_v43  ;;  %4152 = vmatprep.subr.bf16.mxu1 %v4576_v6 }
 0xc28   : > { %2672 = vmatpush1.bf16.msra.mxu0 %v5423_v22  ;;  %4153 = vmatpush3.bf16.msra.mxu1 %v5433_v50 }
 0xc29   : > { %2673 = vmatprep.subr.bf16.mxu0 %v5428_v23  ;;  %4154 = vmatprep.subr.bf16.mxu1 %v4576_v6 }
 0xc2c   : > { %2674 = vmatpush1.bf16.msra.mxu0 %v5439_v25  ;;  %4155 = vmatpush3.bf16.msra.mxu1 %v5449_v33 }
 0xc2d   : > { %2675 = vmatprep.subr.bf16.mxu0 %v5444_v57  ;;  %4156 = vmatprep.subr.bf16.mxu1 %v4576_v6 }
 0xc30   : > { %2676 = vmatpush1.bf16.msra.mxu0 %v5455_v2  ;;  %4157 = vmatpush3.bf16.msra.mxu1 %v5463_v45 }
 0xc31   : > { %2785 = vmatprep.subr.bf16.mxu0 %v5323_v47  ;;  %4162 = vmatprep.subr.bf16.mxu1 %v4576_v6 }
 0xce6   : > { %v2571_v49 = vpop.f32.mrb[8].mxu0  ;;  %v2612_v52 = vpop.f32.mrb[8].mxu1 }
 0xce7   : > { %v2618_v54 = vadd.f32 %v2571_v49, %v2530_v56  ;;  %v2573_v55 = vpop.f32.mrb[9].mxu0  ;;  %v4140_v58 = vpop.f32.mrb[9].mxu1  ;;  %v2632_v5 = vadd.f32 %v2612_v52, %v5509_v11 }
 0xce8   : > { %v2575_v59 = vpop.f32.mrb[10].mxu0  ;;  %v2615_v61 = vpop.f32.mrb[10].mxu1  ;;  %v2625_v60 = vadd.f32 %v2573_v55, %v2531_v37 }
 0xce9   : > { %v3679_v1 = vmul.f32 -1.442695, %v2618_v54  ;;  %v2576_v3 = vpop.f32.mrb[11].mxu0  ;;  %v4141_v36 = vpop.f32.mrb[11].mxu1 }
 0xcea   : > { %v3680_v38 = vmul.f32 -1.442695, %v2625_v60 }
 0xceb   : > { %4472 = vpow2.f32 %v3679_v1  ;;  %v2655_v1 = vld [vmem:[#allocation3 + $0x68] sm:$0xff] }
 0xcec   : > { %4474 = vpow2.f32 %v3680_v38 }
 0xcf5   : > { %v4473_v39 = vpop.eup %4472 }
 0xcf6   : > { %v2622_v40 = vadd.f32 1.0, %v4473_v39  ;;  %v4475_v41 = vpop.eup %4474 }
 0xcf7   : > { %v2629_v19 = vadd.f32 1.0, %v4475_v41  ;;  %v2656_v41 = vld [vmem:[#allocation3 + $0x70] sm:$0xff] }
 0xcf8   : > { %4476 = vrcp.f32 %v2622_v40 }
 0xd02   : > { %v4477_v14 = vpop.eup %4476 }
 0xd03   : > { %v2633_v34 = vmul.f32 %v4477_v14, %v2632_v5 }
 0xd05   : > { %v2634_v29 = vadd.f32 %v2633_v34, %v2532_v16 }
 0xd07   : > { %4478 = vtanh.f32 %v2634_v29 }
 0xd08   : > { %4480 = vrcp.f32 %v2629_v19 }
 0xd11   : > { %v4479_v17 = vpop.eup %4478 }
 0xd12   : > { %v2636_v20 = vsub.f32 %v5570_v44, %v4479_v17  ;;  %v4481_v28 = vpop.eup %4480 }
 0xd14   : > { %v2637_v24 = vmul.f32 %v4481_v28, %v2636_v20  ;;  %v2767_v28 = vpop.permute.xlu1 %2766 }
 0xd16   : > { %v2638_v42 = vadd.f32 %v4479_v17, %v2637_v24 }
 0xd18   : > { %v2639_v30 = vsub.f32 %v2638_v42, %v5570_v44  ;;  %v2648_v48 = vmul.f32 %v2643_v27, %v2638_v42 }
 0xd1a   : > { %v2645_v26 = vmul.f32 %v2643_v27, %v2639_v30  ;;  %2650 = vst [vmem:[#allocation4 + $0x28] sm:$0xff] %v2648_v48 }
 0xd1c   : > { %v5613_v35 = vadd.f32 %v2645_v26, %v5570_v44  ;;  %v2778_v26 = vld [vmem:[#allocation3 + $0x48] sm:$0xff] }
 0xd1e   : > { %v2660_v53 = vpack.c.bf16 %v5613_v35, %v5613_v35 }
 0xd20   : > { %2694 = vmatmul.mubr.bf16.vlgmr.msra.gmra.mrb[12].mxu0 %v2660_v53  ;;  %4159 = vmatmul.mubr.bf16.vlgmr.msra.gmra.mrb[12].mxu1 %v2660_v53 }
 0xd21   : > { %2786 = vmatpush1.bf16.msra.mxu0 %v5327_v62  ;;  %4163 = vmatpush3.bf16.msra.mxu1 %v5341_v0 }
 0xd22   : > { %2787 = vmatprep.subr.bf16.mxu0 %v5331_v51  ;;  %4164 = vmatprep.subr.bf16.mxu1 %v4576_v6 }
 0xd23   : > { %2817 = vmatprep.mubr.bf16.mxu0 %v4577_v8  ;;  %4178 = vmatprep.mubr.msk.bf16.mxu1 %vm4578_vm1, %v4576_v6 }
 0xd25   : > { %2788 = vmatpush1.bf16.msra.mxu0 %v5337_v63  ;;  %4165 = vmatpush3.bf16.msra.mxu1 %v5352_v21 }
 0xd26   : > { %2789 = vmatprep.subr.bf16.mxu0 %v5346_v4  ;;  %4166 = vmatprep.subr.bf16.mxu1 %v4576_v6 }
 0xd29   : > { %2790 = vmatpush1.bf16.msra.mxu0 %v5362_v7  ;;  %4167 = vmatpush3.bf16.msra.mxu1 %v5375_v10 }
 0xd2a   : > { %2791 = vmatprep.subr.bf16.mxu0 %v5369_v9  ;;  %4168 = vmatprep.subr.bf16.mxu1 %v4576_v6 }
 0xd2d   : > { %2792 = vmatpush1.bf16.msra.mxu0 %v5385_v12  ;;  %4169 = vmatpush3.bf16.msra.mxu1 %v5395_v15 }
 0xd2e   : > { %2793 = vmatprep.subr.bf16.mxu0 %v5390_v13  ;;  %4170 = vmatprep.subr.bf16.mxu1 %v4576_v6 }
 0xd31   : > { %2794 = vmatpush1.bf16.msra.mxu0 %v5404_v18  ;;  %4171 = vmatpush3.bf16.msra.mxu1 %v5414_v31 }
 0xd32   : > { %2795 = vmatprep.subr.bf16.mxu0 %v5409_v43  ;;  %4172 = vmatprep.subr.bf16.mxu1 %v4576_v6 }
 0xd35   : > { %2796 = vmatpush1.bf16.msra.mxu0 %v5423_v22  ;;  %4173 = vmatpush3.bf16.msra.mxu1 %v5433_v50 }
 0xd36   : > { %2797 = vmatprep.subr.bf16.mxu0 %v5428_v23  ;;  %4174 = vmatprep.subr.bf16.mxu1 %v4576_v6 }
 0xd39   : > { %2798 = vmatpush1.bf16.msra.mxu0 %v5439_v25  ;;  %4175 = vmatpush3.bf16.msra.mxu1 %v5449_v33 }
 0xd3a   : > { %2799 = vmatprep.subr.bf16.mxu0 %v5444_v57  ;;  %4176 = vmatprep.subr.bf16.mxu1 %v4576_v6 }
 0xd3d   : > { %2800 = vmatpush1.bf16.msra.mxu0 %v5455_v2  ;;  %4177 = vmatpush3.bf16.msra.mxu1 %v5463_v45 }
 0xd3e   : > { %2909 = vmatprep.subr.bf16.mxu0 %v5323_v47  ;;  %4182 = vmatprep.subr.bf16.mxu1 %v4576_v6 }
 0xdf3   : > { %v2695_v44 = vpop.f32.mrb[12].mxu0  ;;  %v2736_v46 = vpop.f32.mrb[12].mxu1 }
 0xdf4   : > { %v2742_v56 = vadd.f32 %v2695_v44, %v2654_v32  ;;  %v2697_v49 = vpop.f32.mrb[13].mxu0  ;;  %v4160_v52 = vpop.f32.mrb[13].mxu1  ;;  %v2756_v39 = vadd.f32 %v2736_v46, %v5509_v11 }
 0xdf5   : > { %v2699_v54 = vpop.f32.mrb[14].mxu0  ;;  %v2739_v55 = vpop.f32.mrb[14].mxu1  ;;  %v2749_v3 = vadd.f32 %v2697_v49, %v2655_v1 }
 0xdf6   : > { %v3682_v58 = vmul.f32 -1.442695, %v2742_v56  ;;  %v2700_v59 = vpop.f32.mrb[15].mxu0  ;;  %v4161_v61 = vpop.f32.mrb[15].mxu1 }
 0xdf7   : > { %v3683_v36 = vmul.f32 -1.442695, %v2749_v3 }
 0xdf8   : > { %4482 = vpow2.f32 %v3682_v58  ;;  %v2779_v58 = vld [vmem:[#allocation3 + $0x50] sm:$0xff] }
 0xdf9   : > { %4484 = vpow2.f32 %v3683_v36 }
 0xe02   : > { %v4483_v37 = vpop.eup %4482 }
 0xe03   : > { %v2746_v60 = vadd.f32 1.0, %v4483_v37  ;;  %v4485_v38 = vpop.eup %4484 }
 0xe04   : > { %v2753_v16 = vadd.f32 1.0, %v4485_v38  ;;  %v2780_v38 = vld [vmem:[#allocation3 + $0x58] sm:$0xff] }
 0xe05   : > { %4486 = vrcp.f32 %v2746_v60 }
 0xe0f   : > { %v4487_v40 = vpop.eup %4486 }
 0xe10   : > { %v2757_v5 = vmul.f32 %v4487_v40, %v2756_v39 }
 0xe12   : > { %v2758_v14 = vadd.f32 %v2757_v5, %v2656_v41 }
 0xe14   : > { %4488 = vtanh.f32 %v2758_v14 }
 0xe15   : > { %4490 = vrcp.f32 %v2753_v16 }
 0xe1e   : > { %v4489_v34 = vpop.eup %4488 }
 0xe1f   : > { %v2760_v29 = vsub.f32 %v5613_v35, %v4489_v34  ;;  %v4491_v19 = vpop.eup %4490 }
 0xe21   : > { %v2761_v17 = vmul.f32 %v4491_v19, %v2760_v29  ;;  %v2891_v19 = vpop.permute.xlu0 %2890 }
 0xe23   : > { %v2762_v20 = vadd.f32 %v4489_v34, %v2761_v17 }
 0xe25   : > { %v2763_v24 = vsub.f32 %v2762_v20, %v5613_v35  ;;  %v2772_v42 = vmul.f32 %v2767_v28, %v2762_v20 }
 0xe27   : > { %v2769_v27 = vmul.f32 %v2767_v28, %v2763_v24  ;;  %2774 = vst [vmem:[#allocation4 + $0x20] sm:$0xff] %v2772_v42 }
 0xe29   : > { %v5656_v30 = vadd.f32 %v2769_v27, %v5613_v35  ;;  %v2902_v27 = vld [vmem:[#allocation3 + $0x30] sm:$0xff] }
 0xe2b   : > { %v2784_v48 = vpack.c.bf16 %v5656_v30, %v5656_v30 }
 0xe2d   : > { %2818 = vmatmul.mubr.bf16.vlgmr.msra.gmra.mrb[16].mxu0 %v2784_v48  ;;  %4179 = vmatmul.mubr.bf16.vlgmr.msra.gmra.mrb[16].mxu1 %v2784_v48 }
 0xe2e   : > { %2910 = vmatpush1.bf16.msra.mxu0 %v5327_v62  ;;  %4183 = vmatpush3.bf16.msra.mxu1 %v5341_v0 }
 0xe2f   : > { %2911 = vmatprep.subr.bf16.mxu0 %v5331_v51  ;;  %4184 = vmatprep.subr.bf16.mxu1 %v4576_v6 }
 0xe30   : > { %2941 = vmatprep.mubr.bf16.mxu0 %v4577_v8  ;;  %4198 = vmatprep.mubr.msk.bf16.mxu1 %vm4578_vm1, %v4576_v6 }
 0xe32   : > { %2912 = vmatpush1.bf16.msra.mxu0 %v5337_v63  ;;  %4185 = vmatpush3.bf16.msra.mxu1 %v5352_v21 }
 0xe33   : > { %2913 = vmatprep.subr.bf16.mxu0 %v5346_v4  ;;  %4186 = vmatprep.subr.bf16.mxu1 %v4576_v6 }
 0xe36   : > { %2914 = vmatpush1.bf16.msra.mxu0 %v5362_v7  ;;  %4187 = vmatpush3.bf16.msra.mxu1 %v5375_v10 }
 0xe37   : > { %2915 = vmatprep.subr.bf16.mxu0 %v5369_v9  ;;  %4188 = vmatprep.subr.bf16.mxu1 %v4576_v6 }
 0xe3a   : > { %2916 = vmatpush1.bf16.msra.mxu0 %v5385_v12  ;;  %4189 = vmatpush3.bf16.msra.mxu1 %v5395_v15 }
 0xe3b   : > { %2917 = vmatprep.subr.bf16.mxu0 %v5390_v13  ;;  %4190 = vmatprep.subr.bf16.mxu1 %v4576_v6 }
 0xe3e   : > { %2918 = vmatpush1.bf16.msra.mxu0 %v5404_v18  ;;  %4191 = vmatpush3.bf16.msra.mxu1 %v5414_v31 }
 0xe3f   : > { %2919 = vmatprep.subr.bf16.mxu0 %v5409_v43  ;;  %4192 = vmatprep.subr.bf16.mxu1 %v4576_v6 }
 0xe42   : > { %2920 = vmatpush1.bf16.msra.mxu0 %v5423_v22  ;;  %4193 = vmatpush3.bf16.msra.mxu1 %v5433_v50 }
 0xe43   : > { %2921 = vmatprep.subr.bf16.mxu0 %v5428_v23  ;;  %4194 = vmatprep.subr.bf16.mxu1 %v4576_v6 }
 0xe46   : > { %2922 = vmatpush1.bf16.msra.mxu0 %v5439_v25  ;;  %4195 = vmatpush3.bf16.msra.mxu1 %v5449_v33 }
 0xe47   : > { %2923 = vmatprep.subr.bf16.mxu0 %v5444_v57  ;;  %4196 = vmatprep.subr.bf16.mxu1 %v4576_v6 }
 0xe4a   : > { %2924 = vmatpush1.bf16.msra.mxu0 %v5455_v2  ;;  %4197 = vmatpush3.bf16.msra.mxu1 %v5463_v45 }
 0xe4b   : > { %3033 = vmatprep.subr.bf16.mxu0 %v5323_v47  ;;  %4202 = vmatprep.subr.bf16.mxu1 %v4576_v6 }
 0xf00   : > { %v2819_v35 = vpop.f32.mrb[16].mxu0  ;;  %v2860_v53 = vpop.f32.mrb[16].mxu1 }
 0xf01   : > { %v2866_v32 = vadd.f32 %v2819_v35, %v2778_v26  ;;  %v2821_v44 = vpop.f32.mrb[17].mxu0  ;;  %v4180_v46 = vpop.f32.mrb[17].mxu1  ;;  %v2880_v37 = vadd.f32 %v2860_v53, %v5509_v11 }
 0xf02   : > { %v2823_v56 = vpop.f32.mrb[18].mxu0  ;;  %v2863_v49 = vpop.f32.mrb[18].mxu1  ;;  %v2873_v59 = vadd.f32 %v2821_v44, %v2779_v58 }
 0xf03   : > { %v3685_v52 = vmul.f32 -1.442695, %v2866_v32  ;;  %v2824_v54 = vpop.f32.mrb[19].mxu0  ;;  %v4181_v55 = vpop.f32.mrb[19].mxu1 }
 0xf04   : > { %v3686_v61 = vmul.f32 -1.442695, %v2873_v59 }
 0xf05   : > { %4492 = vpow2.f32 %v3685_v52  ;;  %v2903_v52 = vld [vmem:[#allocation3 + $0x38] sm:$0xff] }
 0xf06   : > { %4494 = vpow2.f32 %v3686_v61 }
 0xf0f   : > { %v4493_v1 = vpop.eup %4492 }
 0xf10   : > { %v2870_v3 = vadd.f32 1.0, %v4493_v1  ;;  %v4495_v36 = vpop.eup %4494 }
 0xf11   : > { %v2877_v41 = vadd.f32 1.0, %v4495_v36 }
 0xf12   : > { %4496 = vrcp.f32 %v2870_v3  ;;  %v2904_v3 = vld [vmem:[#allocation3 + $0x40] sm:$0xff] }
 0xf1c   : > { %v4497_v60 = vpop.eup %4496 }
 0xf1d   : > { %v2881_v39 = vmul.f32 %v4497_v60, %v2880_v37 }
 0xf1f   : > { %v2882_v40 = vadd.f32 %v2881_v39, %v2780_v38 }
 0xf21   : > { %4498 = vtanh.f32 %v2882_v40 }
 0xf22   : > { %4500 = vrcp.f32 %v2877_v41 }
 0xf2b   : > { %v4499_v5 = vpop.eup %4498 }
 0xf2c   : > { %v2884_v14 = vsub.f32 %v5656_v30, %v4499_v5  ;;  %v4501_v16 = vpop.eup %4500 }
 0xf2e   : > { %v2885_v34 = vmul.f32 %v4501_v16, %v2884_v14  ;;  %v3015_v14 = vpop.permute.xlu1 %3014 }
 0xf30   : > { %v2886_v29 = vadd.f32 %v4499_v5, %v2885_v34 }
 0xf32   : > { %v2887_v17 = vsub.f32 %v2886_v29, %v5656_v30  ;;  %v2896_v20 = vmul.f32 %v2891_v19, %v2886_v29 }
 0xf34   : > { %v2893_v28 = vmul.f32 %v2891_v19, %v2887_v17  ;;  %2898 = vst [vmem:[#allocation4 + $0x18] sm:$0xff] %v2896_v20 }
 0xf36   : > { %v5699_v24 = vadd.f32 %v2893_v28, %v5656_v30 }
 0xf38   : > { %v2908_v42 = vpack.c.bf16 %v5699_v24, %v5699_v24 }
 0xf3a   : > { %2942 = vmatmul.mubr.bf16.vlgmr.msra.gmra.mrb[20].mxu0 %v2908_v42  ;;  %4199 = vmatmul.mubr.bf16.vlgmr.msra.gmra.mrb[20].mxu1 %v2908_v42  ;;  %v3139_v42 = vpop.permute.xlu0 %3138 }
 0xf3b   : > { %3034 = vmatpush1.bf16.msra.mxu0 %v5327_v62  ;;  %4203 = vmatpush3.bf16.msra.mxu1 %v5341_v0 }
 0xf3c   : > { %3035 = vmatprep.subr.bf16.mxu0 %v5331_v51  ;;  %4204 = vmatprep.subr.bf16.mxu1 %v4576_v6 }
 0xf3d   : > { %3065 = vmatprep.mubr.bf16.mxu0 %v4577_v8  ;;  %4218 = vmatprep.mubr.msk.bf16.mxu1 %vm4578_vm1, %v4576_v6 }
 0xf3f   : > { %3036 = vmatpush1.bf16.msra.mxu0 %v5337_v63  ;;  %4205 = vmatpush3.bf16.msra.mxu1 %v5352_v21 }
 0xf40   : > { %3037 = vmatprep.subr.bf16.mxu0 %v5346_v4  ;;  %4206 = vmatprep.subr.bf16.mxu1 %v4576_v6 }
 0xf43   : > { %3038 = vmatpush1.bf16.msra.mxu0 %v5362_v7  ;;  %4207 = vmatpush3.bf16.msra.mxu1 %v5375_v10 }
 0xf44   : > { %3039 = vmatprep.subr.bf16.mxu0 %v5369_v9  ;;  %4208 = vmatprep.subr.bf16.mxu1 %v4576_v6 }
 0xf47   : > { %3040 = vmatpush1.bf16.msra.mxu0 %v5385_v12  ;;  %4209 = vmatpush3.bf16.msra.mxu1 %v5395_v15 }
 0xf48   : > { %3041 = vmatprep.subr.bf16.mxu0 %v5390_v13  ;;  %4210 = vmatprep.subr.bf16.mxu1 %v4576_v6 }
 0xf4b   : > { %3042 = vmatpush1.bf16.msra.mxu0 %v5404_v18  ;;  %4211 = vmatpush3.bf16.msra.mxu1 %v5414_v31 }
 0xf4c   : > { %3043 = vmatprep.subr.bf16.mxu0 %v5409_v43  ;;  %4212 = vmatprep.subr.bf16.mxu1 %v4576_v6 }
 0xf4f   : > { %3044 = vmatpush1.bf16.msra.mxu0 %v5423_v22  ;;  %4213 = vmatpush3.bf16.msra.mxu1 %v5433_v50 }
 0xf50   : > { %3045 = vmatprep.subr.bf16.mxu0 %v5428_v23  ;;  %4214 = vmatprep.subr.bf16.mxu1 %v4576_v6 }
 0xf53   : > { %3046 = vmatpush1.bf16.msra.mxu0 %v5439_v25  ;;  %4215 = vmatpush3.bf16.msra.mxu1 %v5449_v33 }
 0xf54   : > { %3047 = vmatprep.subr.bf16.mxu0 %v5444_v57  ;;  %4216 = vmatprep.subr.bf16.mxu1 %v4576_v6 }
 0xf57   : > { %3048 = vmatpush1.bf16.msra.mxu0 %v5455_v2  ;;  %4217 = vmatpush3.bf16.msra.mxu1 %v5463_v45 }
 0xf58   : > { %3156 = vmatprep.subr.bf16.mxu0 %v5323_v47  ;;  %4222 = vmatprep.subr.bf16.mxu1 %v4576_v6 }
0x100d   : > { %v2943_v30 = vpop.f32.mrb[20].mxu0  ;;  %v2984_v48 = vpop.f32.mrb[20].mxu1 }
0x100e   : > { %v2990_v26 = vadd.f32 %v2943_v30, %v2902_v27  ;;  %v2945_v35 = vpop.f32.mrb[21].mxu0  ;;  %v4200_v53 = vpop.f32.mrb[21].mxu1  ;;  %v3004_v61 = vadd.f32 %v2984_v48, %v5509_v11 }
0x100f   : > { %v2947_v32 = vpop.f32.mrb[22].mxu0  ;;  %v2987_v44 = vpop.f32.mrb[22].mxu1  ;;  %v2997_v54 = vadd.f32 %v2945_v35, %v2903_v52  ;;  %v3150_v53 = vld [vmem:[#allocation3] sm:$0xff] }
0x1010   : > { %v3688_v46 = vmul.f32 -1.442695, %v2990_v26  ;;  %v2948_v56 = vpop.f32.mrb[23].mxu0  ;;  %v4201_v49 = vpop.f32.mrb[23].mxu1 }
0x1011   : > { %v3689_v55 = vmul.f32 -1.442695, %v2997_v54 }
0x1012   : > { %4502 = vpow2.f32 %v3688_v46 }
0x1013   : > { %4504 = vpow2.f32 %v3689_v55 }
0x101c   : > { %v4503_v58 = vpop.eup %4502 }
0x101d   : > { %v2994_v59 = vadd.f32 1.0, %v4503_v58  ;;  %v4505_v47 = vpop.eup %4504 }
0x101e   : > { %v3001_v60 = vadd.f32 1.0, %v4505_v47  ;;  %v3151_v47 = vld [vmem:[#allocation3 + $0x8] sm:$0xff] }
0x101f   : > { %4506 = vrcp.f32 %v2994_v59 }
0x1029   : > { %v4507_v1 = vpop.eup %4506 }
0x102a   : > { %v3005_v36 = vmul.f32 %v4507_v1, %v3004_v61 }
0x102c   : > { %v3006_v37 = vadd.f32 %v3005_v36, %v2904_v3 }
0x102e   : > { %4508 = vtanh.f32 %v3006_v37 }
0x102f   : > { %4510 = vrcp.f32 %v3001_v60 }
0x1038   : > { %v4509_v38 = vpop.eup %4508 }
0x1039   : > { %v3008_v39 = vsub.f32 %v5699_v24, %v4509_v38  ;;  %v4511_v40 = vpop.eup %4510 }
0x103b   : > { %v3009_v41 = vmul.f32 %v4511_v40, %v3008_v39  ;;  %v3152_v39 = vld [vmem:[#allocation3 + $0x10] sm:$0xff] }
0x103d   : > { %v3010_v5 = vadd.f32 %v4509_v38, %v3009_v41 }
0x103f   : > { %v3011_v16 = vsub.f32 %v3010_v5, %v5699_v24  ;;  %v3020_v34 = vmul.f32 %v3015_v14, %v3010_v5 }
0x1041   : > { %v3017_v29 = vmul.f32 %v3015_v14, %v3011_v16  ;;  %3022 = vst [vmem:[#allocation4 + $0x10] sm:$0xff] %v3020_v34 }
0x1043   : > { %v5742_v19 = vadd.f32 %v3017_v29, %v5699_v24 }
0x1045   : > { %v3032_v17 = vpack.c.bf16 %v5742_v19, %v5742_v19 }
0x1047   : > { %3066 = vmatmul.mubr.bf16.vlgmr.msra.gmra.mrb[24].mxu0 %v3032_v17  ;;  %4219 = vmatmul.mubr.bf16.vlgmr.msra.gmra.mrb[24].mxu1 %v3032_v17  ;;  %v3262_v17 = vpop.permute.xlu1 %3261 }
0x1048   : > { %3157 = vmatpush1.bf16.msra.mxu0 %v5327_v62  ;;  %4223 = vmatpush3.bf16.msra.mxu1 %v5341_v0  ;;  %v3026_v62 = vld [vmem:[#allocation3 + $0x18] sm:$0xff] }
0x1049   : > { %3158 = vmatprep.subr.bf16.mxu0 %v5331_v51  ;;  %4224 = vmatprep.subr.bf16.mxu1 %v4576_v6 }
0x104a   : > { %3188 = vmatprep.mubr.bf16.mxu0 %v4577_v8  ;;  %4238 = vmatprep.mubr.msk.bf16.mxu1 %vm4578_vm1, %v4576_v6 }
0x104c   : > { %3159 = vmatpush1.bf16.msra.mxu0 %v5337_v63  ;;  %4225 = vmatpush3.bf16.msra.mxu1 %v5352_v21 }
0x104d   : > { %3160 = vmatprep.subr.bf16.mxu0 %v5346_v4  ;;  %4226 = vmatprep.subr.bf16.mxu1 %v4576_v6 }
0x1050   : > { %3161 = vmatpush1.bf16.msra.mxu0 %v5362_v7  ;;  %4227 = vmatpush3.bf16.msra.mxu1 %v5375_v10 }
0x1051   : > { %3162 = vmatprep.subr.bf16.mxu0 %v5369_v9  ;;  %4228 = vmatprep.subr.bf16.mxu1 %v4576_v6 }
0x1054   : > { %3163 = vmatpush1.bf16.msra.mxu0 %v5385_v12  ;;  %4229 = vmatpush3.bf16.msra.mxu1 %v5395_v15 }
0x1055   : > { %3164 = vmatprep.subr.bf16.mxu0 %v5390_v13  ;;  %4230 = vmatprep.subr.bf16.mxu1 %v4576_v6  ;;  %v3027_v13 = vld [vmem:[#allocation3 + $0x20] sm:$0xff] }
0x1058   : > { %3165 = vmatpush1.bf16.msra.mxu0 %v5404_v18  ;;  %4231 = vmatpush3.bf16.msra.mxu1 %v5414_v31 }
0x1059   : > { %3166 = vmatprep.subr.bf16.mxu0 %v5409_v43  ;;  %4232 = vmatprep.subr.bf16.mxu1 %v4576_v6 }
0x105c   : > { %3167 = vmatpush1.bf16.msra.mxu0 %v5423_v22  ;;  %4233 = vmatpush3.bf16.msra.mxu1 %v5433_v50  ;;  %v3028_v50 = vld [vmem:[#allocation3 + $0x28] sm:$0xff] }
0x105d   : > { %3168 = vmatprep.subr.bf16.mxu0 %v5428_v23  ;;  %4234 = vmatprep.subr.bf16.mxu1 %v4576_v6 }
0x1060   : > { %3169 = vmatpush1.bf16.msra.mxu0 %v5439_v25  ;;  %4235 = vmatpush3.bf16.msra.mxu1 %v5449_v33 }
0x1061   : > { %3170 = vmatprep.subr.bf16.mxu0 %v5444_v57  ;;  %4236 = vmatprep.subr.bf16.mxu1 %v4576_v6 }
0x1064   : > { %3171 = vmatpush1.bf16.msra.mxu0 %v5455_v2  ;;  %4237 = vmatpush3.bf16.msra.mxu1 %v5463_v45 }
0x111a   : > { %v3067_v51 = vpop.f32.mrb[24].mxu0  ;;  %v3108_v63 = vpop.f32.mrb[24].mxu1 }
0x111b   : > { %v3114_v0 = vadd.f32 %v3067_v51, %v3026_v62  ;;  %v3069_v4 = vpop.f32.mrb[25].mxu0  ;;  %v4220_v21 = vpop.f32.mrb[25].mxu1  ;;  %v3128_v22 = vadd.f32 %v3108_v63, %v5509_v11 }
0x111c   : > { %v3071_v8 = vpop.f32.mrb[26].mxu0  ;;  %v3111_v7 = vpop.f32.mrb[26].mxu1  ;;  %v3121_v15 = vadd.f32 %v3069_v4, %v3027_v13 }
0x111d   : > { %v3691_v9 = vmul.f32 -1.442695, %v3114_v0  ;;  %v3072_v10 = vpop.f32.mrb[27].mxu0  ;;  %v4221_v12 = vpop.f32.mrb[27].mxu1 }
0x111e   : > { %v3692_v18 = vmul.f32 -1.442695, %v3121_v15 }
0x111f   : > { %4512 = vpow2.f32 %v3691_v9 }
0x1120   : > { %4514 = vpow2.f32 %v3692_v18 }
0x1129   : > { %v4513_v6 = vpop.eup %4512 }
0x112a   : > { %v3118_v43 = vadd.f32 1.0, %v4513_v6  ;;  %v4515_v31 = vpop.eup %4514 }
0x112b   : > { %v3125_v33 = vadd.f32 1.0, %v4515_v31 }
0x112c   : > { %4516 = vrcp.f32 %v3118_v43 }
0x1136   : > { %v4517_v23 = vpop.eup %4516 }
0x1137   : > { %v3129_v25 = vmul.f32 %v4517_v23, %v3128_v22 }
0x1139   : > { %v3130_v57 = vadd.f32 %v3129_v25, %v3028_v50 }
0x113b   : > { %4518 = vtanh.f32 %v3130_v57 }
0x113c   : > { %4520 = vrcp.f32 %v3125_v33 }
0x1145   : > { %v4519_v2 = vpop.eup %4518 }
0x1146   : > { %v3132_v45 = vsub.f32 %v5742_v19, %v4519_v2  ;;  %v4521_v20 = vpop.eup %4520 }
0x1148   : > { %v3133_v28 = vmul.f32 %v4521_v20, %v3132_v45 }
0x114a   : > { %v3134_v24 = vadd.f32 %v4519_v2, %v3133_v28 }
0x114c   : > { %v3135_v27 = vsub.f32 %v3134_v24, %v5742_v19  ;;  %v3144_v30 = vmul.f32 %v3139_v42, %v3134_v24 }
0x114e   : > { %v3141_v48 = vmul.f32 %v3139_v42, %v3135_v27  ;;  %3146 = vst [vmem:[#allocation4 + $0x8] sm:$0xff] %v3144_v30 }
0x1150   : > { %v3142_v26 = vadd.f32 %v3141_v48, %v5742_v19 }
0x1152   : > { %v3155_v35 = vpack.c.bf16 %v3142_v26, %v3142_v26 }
0x1154   : > { %3189 = vmatmul.mubr.bf16.vlgmr.msra.gmra.mrb[28].mxu0 %v3155_v35  ;;  %4239 = vmatmul.mubr.bf16.vlgmr.msra.gmra.mrb[28].mxu1 %v3155_v35 }
0x1227   : > { %v3190_v32 = vpop.f32.mrb[28].mxu0  ;;  %v3231_v44 = vpop.f32.mrb[28].mxu1 }
0x1228   : > { %v3237_v46 = vadd.f32 %v3190_v32, %v3150_v53  ;;  %v3192_v56 = vpop.f32.mrb[29].mxu0  ;;  %v4240_v49 = vpop.f32.mrb[29].mxu1  ;;  %v3251_v60 = vadd.f32 %v3231_v44, %v5509_v11 }
0x1229   : > { %v3194_v52 = vpop.f32.mrb[30].mxu0  ;;  %v3234_v54 = vpop.f32.mrb[30].mxu1  ;;  %v3244_v61 = vadd.f32 %v3192_v56, %v3151_v47 }
0x122a   : > { %v3693_v55 = vmul.f32 -1.442695, %v3237_v46  ;;  %v3195_v58 = vpop.f32.mrb[31].mxu0  ;;  %v4241_v59 = vpop.f32.mrb[31].mxu1 }
0x122b   : > { %v3694_v1 = vmul.f32 -1.442695, %v3244_v61 }
0x122c   : > { %4522 = vpow2.f32 %v3693_v55 }
0x122d   : > { %4524 = vpow2.f32 %v3694_v1 }
0x1236   : > { %v4523_v3 = vpop.eup %4522 }
0x1237   : > { %v3241_v36 = vadd.f32 1.0, %v4523_v3  ;;  %v4525_v37 = vpop.eup %4524 }
0x1238   : > { %v3248_v5 = vadd.f32 1.0, %v4525_v37 }
0x1239   : > { %4526 = vrcp.f32 %v3241_v36 }
0x1243   : > { %v4527_v38 = vpop.eup %4526 }
0x1244   : > { %v3252_v40 = vmul.f32 %v4527_v38, %v3251_v60 }
0x1246   : > { %v3253_v41 = vadd.f32 %v3252_v40, %v3152_v39 }
0x1248   : > { %4528 = vtanh.f32 %v3253_v41 }
0x1249   : > { %4530 = vrcp.f32 %v3248_v5 }
0x1252   : > { %v4529_v14 = vpop.eup %4528 }
0x1253   : > { %v3255_v16 = vsub.f32 %v3142_v26, %v4529_v14  ;;  %v4531_v34 = vpop.eup %4530 }
0x1255   : > { %v3256_v29 = vmul.f32 %v4531_v34, %v3255_v16 }
0x1257   : > { %v3257_v19 = vadd.f32 %v4529_v14, %v3256_v29 }
0x1259   : > { %v3258_v62 = vsub.f32 %v3257_v19, %v3142_v26  ;;  %v3267_v51 = vmul.f32 %v3262_v17, %v3257_v19 }
0x125b   : > { %v3264_v63 = vmul.f32 %v3262_v17, %v3258_v62  ;;  %3268 = vst [vmem:[#allocation4] sm:$0xff] %v3267_v51 }
0x125d   : > { %v3265_v0 = vadd.f32 %v3264_v63, %v3142_v26 }
0x125f   : > { %3266 = vst [vmem:[#allocation2] sm:$0xff] %v3265_v0 }
0x1260 PF: > { %v3270_v4 = vld [vmem:[#allocation4 + $0x8] sm:$0xff]  ;;  %v3271_v21 = vld [vmem:[#allocation4 + $0x10] sm:$0xff]  ;;  %v3272_v7 = vld [vmem:[#allocation4 + $0x18] sm:$0xff]  ;;  %3323 = sbr.rel (!%p4643_p3) target bundleno = 4720 (0x1270), region = 60  ;;  %s3704_s9 = sshll.u32 (%p4643_p3), %s4562_s23, 2 }
0x1261   : > { %v3273_v9 = vld [vmem:[#allocation4 + $0x20] sm:$0xff]  ;;  %v3274_v10 = vld [vmem:[#allocation4 + $0x28] sm:$0xff]  ;;  %v3723_v12 = vpack.c.bf16 %v3272_v7, %v3271_v21  ;;  %v3275_v15 = vld [vmem:[#allocation4 + $0x30] sm:$0xff]  ;;  %s3332_s14 = scalar_lea.vmem (%p4643_p3), %s5823_s6, %s3704_s9 }
0x1262   : > { %v3269_v11 = vld [vmem:[#allocation4] sm:$0xff]  ;;  %v3728_v13 = vpack.c.bf16 %v3274_v10, %v3273_v9  ;;  %v3276_v18 = vld [vmem:[#allocation4 + $0x38] sm:$0xff] }
0x1263   : > { %v3718_v8 = vpack.c.bf16 %v3270_v4, %v3269_v11  ;;  %v3733_v6 = vpack.c.bf16 %v3276_v18, %v3275_v15  ;;  %3735 = vst [vmem:[%s4854_s12 + $0x8] sm:$0xff] %v3723_v12  }
0x1264   : > { %3736 = vst [vmem:[%s4854_s12 + $0x10] sm:$0xff] %v3728_v13  }
0x1265   : > { %3719 = vst [vmem:[%s4854_s12] sm:$0xff] %v3718_v8   ;;  %3737 = vst [vmem:[%s4854_s12 + $0x18] sm:$0xff] %v3733_v6  }
0x126a   : > { %v3352_v22 = vld [vmem:[%s4854_s12 + $0x8] sm:$0xf]  ;;  %v3354_v23 = vld [vmem:[%s4854_s12 + $0xc] sm:$0xf] }
0x126b   : > { %v3356_v50 = vld [vmem:[%s4854_s12 + $0x10] sm:$0xf]  ;;  %3353 = vst [vmem:[%s3332_s14 + $0x10] sm:$0xf] %v3352_v22  ;;  %3355 = vst [vmem:[%s3332_s14 + $0x18] sm:$0xf] %v3354_v23 }
0x126c   : > { %v3348_v43 = vld [vmem:[%s4854_s12] sm:$0xf]  ;;  %v3350_v31 = vld [vmem:[%s4854_s12 + $0x4] sm:$0xf]  ;;  %3357 = vst [vmem:[%s3332_s14 + $0x20] sm:$0xf] %v3356_v50 }
0x126d   : > { %3349 = vst [vmem:[%s3332_s14] sm:$0xf] %v3348_v43  ;;  %3351 = vst [vmem:[%s3332_s14 + $0x8] sm:$0xf] %v3350_v31  ;;  %v3358_v25 = vld [vmem:[%s4854_s12 + $0x14] sm:$0xf] }
0x126e   : > { %v3360_v57 = vld [vmem:[%s4854_s12 + $0x18] sm:$0xf]  ;;  %v3362_v33 = vld [vmem:[%s4854_s12 + $0x1c] sm:$0xf]  ;;  %3359 = vst [vmem:[%s3332_s14 + $0x28] sm:$0xf] %v3358_v25 }
0x126f   : > { %3361 = vst [vmem:[%s3332_s14 + $0x30] sm:$0xf] %v3360_v57  ;;  %3363 = vst [vmem:[%s3332_s14 + $0x38] sm:$0xf] %v3362_v33 }
0x1270 PF: > { %s16_s25 = sadd.s32 1, %s4570_s25   ;;  %s5888_s21 = smov %s4558_s22 }
0x1271   : > { %p13_p11 = scmp.ge.s32.totalorder %s16_s25, 4   ;;  %s5889_s22 = smov %s4652_s7 }
0x1272   : > { %s5890_s23 = smov %s4566_s24  ;;  %s5891_s24 = smov %s5893_s27 }
0x1273   :  { %15 = sbr.rel (!%p13_p11) target bundleno = 3 (0x3), region = 186 }

</bundles_post_ra>
